<compile_context>
chip_gen: v6e
topology: v6e:2x2x1
jax: 0.10.0
libtpu: 0.0.40
codegen_flags: <defaults>
</compile_context>

<pallas_src>
import jax
import jax.numpy as jnp
import numpy as np
from jax import lax
from jax.experimental import pallas as pl
from jax.experimental.pallas import tpu as pltpu


# ---------------------------------------------------------------------------
# Fused Pallas kernel: B images per grid step, everything VMEM-resident.
# ---------------------------------------------------------------------------

def _fused_cnn_kernel(p_ref, w1_ref, b1_ref, w2_ref, b2_ref, wf_ref, o_ref):
    B, R, K = p_ref.shape                      # (block_n, 1024, 12)
    hidden = w1_ref.shape[1]
    outc = b2_ref.shape[1]

    # conv1 + ReLU : ONE bf16 MXU matmul for the whole B-image block.
    p = p_ref[...].reshape(B * R, K)                           # leading merge
    y1 = jnp.dot(p, w1_ref[...], preferred_element_type=jnp.float32)
    y1 = jnp.maximum(y1 + b1_ref[...], 0.0)                    # [B*1024, hid]

    # pool1: max over the (a,b) bit pair -> 4 contiguous 256-row chunks/img.
    y1 = y1.reshape(B, 4, R // 4, hidden)
    pooled1 = jnp.maximum(jnp.maximum(y1[:, 0], y1[:, 1]),
                          jnp.maximum(y1[:, 2], y1[:, 3]))     # [B, 256, hid]

    # conv2 + ReLU: 4 accumulated bf16 matmuls, one per (kh2,kw2)=(c,d) chunk.
    # NOTE: W2p stacking in prepare_params must stay in lockstep with this
    # chunk order (validated by the end-to-end test below).
    p1 = pooled1.astype(w2_ref.dtype).reshape(B, 4, R // 16, hidden)
    y2 = jnp.dot(p1[:, 0].reshape(B * (R // 16), hidden), w2_ref[0],
                 preferred_element_type=jnp.float32)
    for k in range(1, 4):
        y2 = y2 + jnp.dot(p1[:, k].reshape(B * (R // 16), hidden), w2_ref[k],
                          preferred_element_type=jnp.float32)
    y2 = jnp.maximum(y2 + b2_ref[...], 0.0)                    # [B*64, outc]

    # pool2: max over the (e,f) bit pair -> 4 contiguous 16-row chunks/img.
    y2 = y2.reshape(B, 4, R // 64, outc)
    pooled2 = jnp.maximum(jnp.maximum(y2[:, 0], y2[:, 1]),
                          jnp.maximum(y2[:, 2], y2[:, 3]))     # [B, 16, outc]

    # fc1 (output width 1): VPU multiply + reduce - no 1-wide MXU column.
    prod = pooled2 * wf_ref[...]                               # [B, 16, outc]
    tot = jnp.sum(jnp.sum(prod, axis=2, keepdims=True), axis=1)   # [B, 1]
    # Lane-dense full-tile store; the wrapper slices column 0.
    o_ref[...] = jnp.broadcast_to(tot, o_ref.shape).astype(o_ref.dtype)


# ---------------------------------------------------------------------------
# Wrapper-side layout plumbing
# ---------------------------------------------------------------------------

def _conv1_patches(x):
    """im2row for conv1 (k=2, s=2) with pool/conv-friendly row ordering.

    Row index = (((((a*2+b)*2+c)*2+d)*2+e)*2+f)*16 + h4*4 + w4
    Col index = cin*4 + kh*2 + kw
    where the input pixel is  H_in = 16*h4+8*e+4*c+2*a+kh,
                              W_in = 16*w4+8*f+4*d+2*b+kw.
    Cast to bf16 BEFORE the transpose so the layout shuffle moves half the
    bytes and the kernel's patch stream is already MXU-ready.
    # TODO(synk): the transpose still has tiny contiguous source runs; move
    #             im2row into the kernel (or re-order bits) if it shows up in
    #             end-to-end profiles.
    """
    N, C, H, W = x.shape
    assert (C, H, W) == (3, 64, 64), (C, H, W)   # fixed by fc1 in_features
    xb = x.astype(jnp.bfloat16)
    xr = xb.reshape(N, C, 4, 2, 2, 2, 2, 4, 2, 2, 2, 2)
    #               0  1  h4 e  c  a kh  w4 f  d  b kw
    xp = xr.transpose(0, 5, 10, 4, 9, 3, 8, 2, 7, 1, 6, 11)
    # -> (N, a, b, c, d, e, f, h4, w4, C, kh, kw)
    return xp.reshape(N, 1024, C * 4)


def prepare_params(params):
    """One-time weight reshapes + bf16 casts (call OUTSIDE the jitted fwd)."""
    hidden = params["w1"].shape[0]
    outc = params["w2"].shape[0]
    W1 = params["w1"].reshape(hidden, -1).T.astype(jnp.bfloat16)   # [12, hid]
    b1 = params["b1"].reshape(1, hidden).astype(jnp.float32)
    w2 = params["w2"]                                              # [outc, hid, 2, 2]
    # Stacking order (kh,kw) = (0,0),(0,1),(1,0),(1,1) matches the kernel's
    # (c,d) chunk order - keep in lockstep with _conv1_patches.
    W2p = jnp.stack([w2[:, :, kh, kw].T
                     for kh in (0, 1) for kw in (0, 1)],
                    axis=0).astype(jnp.bfloat16)                   # [4, hid, outc]
    b2 = params["b2"].reshape(1, outc).astype(jnp.float32)
    # fc weight reordered from PyTorch (c, h4, w4) flatten to kernel (h4, w4, c)
    wf = (params["wf"].reshape(outc, 4, 4).transpose(1, 2, 0)
          .reshape(16, outc).astype(jnp.float32))
    bf = params["bf"].reshape(1, 1).astype(jnp.float32)
    return dict(W1=W1, b1=b1, W2p=W2p, b2=b2, wf=wf, bf=bf)


def cnn_regression_forward(x, prep, *, block_n=8):
    """Fused Pallas implementation of CNNRegression.forward.  x: [N,3,64,64].

    block_n = images per grid step (multiple of 8).  8 is safe on all
    generations (v5e/v7x VMEM limits); raise to 16-32 on v6e if desired.
    """
    N = x.shape[0]
    hidden = prep["W1"].shape[1]
    outc = prep["b2"].shape[1]

    patches = _conv1_patches(x)                                   # [N,1024,12] bf16
    n_pad = pl.cdiv(N, block_n) * block_n
    if n_pad != N:                                                # pad batch to a
        patches = jnp.pad(patches, ((0, n_pad - N), (0, 0), (0, 0)))  # full block

    out = pl.pallas_call(
        _fused_cnn_kernel,
        out_shape=jax.ShapeDtypeStruct((n_pad, 128), jnp.float32),
        grid=(n_pad // block_n,),
        in_specs=[
            pl.BlockSpec((block_n, 1024, 12), lambda i: (i, 0, 0)),  # patches
            pl.BlockSpec((12, hidden), lambda i: (0, 0)),            # W1 (bf16)
            pl.BlockSpec((1, hidden), lambda i: (0, 0)),             # b1
            pl.BlockSpec((4, hidden, outc), lambda i: (0, 0, 0)),    # W2p (bf16)
            pl.BlockSpec((1, outc), lambda i: (0, 0)),               # b2
            pl.BlockSpec((16, outc), lambda i: (0, 0)),              # wf
        ],
        out_specs=pl.BlockSpec((block_n, 128), lambda i: (i, 0)),
        compiler_params=pltpu.CompilerParams(
            dimension_semantics=("parallel",),
            vmem_limit_bytes=32 * 1024 * 1024),
    )(patches, prep["W1"], prep["b1"], prep["W2p"], prep["b2"], prep["wf"])

    # fc bias added here (kept out of the kernel: one fewer padded buffer).
    return out[:N, :1] + prep["bf"]                               # [N, 1]


# ---------------------------------------------------------------------------
# Params + pure-JAX reference (mirrors the PyTorch graph) for verification
# ---------------------------------------------------------------------------

def init_params(key, hidden_channels=16, out_channels=32):
    k1, k2, k3, k4, k5, k6 = jax.random.split(key, 6)
    return dict(
        w1=jax.random.normal(k1, (hidden_channels, 3, 2, 2), jnp.float32) * 0.2,
        b1=jax.random.normal(k2, (hidden_channels,), jnp.float32) * 0.1,
        w2=jax.random.normal(k3, (out_channels, hidden_channels, 2, 2),
                             jnp.float32) * 0.1,
        b2=jax.random.normal(k4, (out_channels,), jnp.float32) * 0.1,
        wf=jax.random.normal(k5, (1, out_channels * 4 * 4), jnp.float32) * 0.05,
        bf=jax.random.normal(k6, (1,), jnp.float32) * 0.05,
    )


def reference_forward(x, params):
    dn1 = lax.conv_dimension_numbers(x.shape, params["w1"].shape,
                                     ("NCHW", "OIHW", "NCHW"))
    y = lax.conv_general_dilated(x, params["w1"], (2, 2), "VALID",
                                 dimension_numbers=dn1)
    y = jnp.maximum(y + params["b1"].reshape(1, -1, 1, 1), 0.0)
    y = lax.reduce_window(y, -jnp.inf, lax.max, (1, 1, 2, 2), (1, 1, 2, 2),
                          "VALID")

    dn2 = lax.conv_dimension_numbers(y.shape, params["w2"].shape,
                                     ("NCHW", "OIHW", "NCHW"))
    y = lax.conv_general_dilated(y, params["w2"], (2, 2), "VALID",
                                 dimension_numbers=dn2)
    y = jnp.maximum(y + params["b2"].reshape(1, -1, 1, 1), 0.0)
    y = lax.reduce_window(y, -jnp.inf, lax.max, (1, 1, 2, 2), (1, 1, 2, 2),
                          "VALID")

    flat = y.reshape(y.shape[0], -1)
    return flat @ params["wf"].T + params["bf"]


# ---------------------------------------------------------------------------

if __name__ == "__main__":
    key = jax.random.PRNGKey(0)
    kx, kp = jax.random.split(key)

    # Input spatial size 64x64 is required by fc1 (out_channels * 4 * 4 feats).
    # N=10 exercises both batch padding (10 -> 16) and a 2-step parallel grid.
    x = jax.random.normal(kx, (10, 3, 64, 64), jnp.float32)
    params = init_params(kp)
    prep = prepare_params(params)          # weight plumbing + bf16 casts, once

    fwd = jax.jit(cnn_regression_forward)
    out = jax.block_until_ready(fwd(x, prep))
    ref = jax.block_until_ready(reference_forward(x, params))

    assert out.shape == (10, 1), out.shape
    # bf16 MXU operands (f32 accumulation) trade ~1e-2 absolute error vs the
    # pure-f32 PyTorch-semantics reference; 5e-2 keeps a comfortable margin.
    np.testing.assert_allclose(np.asarray(out), np.asarray(ref),
                               rtol=5e-2, atol=5e-2)
    print("KERNEL_OK")
</pallas_src>

<mosaic_0001>
module attributes {stable_mosaic.version = 11 : i64} {
  func.func @_fused_cnn_kernel(%arg0: i32, %arg1: memref<8x1024x12xbf16, #tpu.memory_space<vmem>>, %arg2: memref<12x16xbf16, #tpu.memory_space<vmem>>, %arg3: memref<1x16xf32, #tpu.memory_space<vmem>>, %arg4: memref<4x16x32xbf16, #tpu.memory_space<vmem>>, %arg5: memref<1x32xf32, #tpu.memory_space<vmem>>, %arg6: memref<16x32xf32, #tpu.memory_space<vmem>>, %arg7: memref<8x128xf32, #tpu.memory_space<vmem>>) attributes {dimension_semantics = [#tpu.dimension_semantics<parallel>], iteration_bounds = array<i64: 2>, scalar_prefetch = 0 : i64, scratch_operands = 0 : i64, tpu.core_type = #tpu.core_type<tc>, window_params = [{transform_indices = @transform_0, window_bounds = array<i64: 8, 1024, 12>}, {pipeline_mode = #tpu.pipeline_mode<synchronous>, transform_indices = @transform_1, window_bounds = array<i64: 12, 16>}, {pipeline_mode = #tpu.pipeline_mode<synchronous>, transform_indices = @transform_2, window_bounds = array<i64: 1, 16>}, {pipeline_mode = #tpu.pipeline_mode<synchronous>, transform_indices = @transform_3, window_bounds = array<i64: 4, 16, 32>}, {pipeline_mode = #tpu.pipeline_mode<synchronous>, transform_indices = @transform_4, window_bounds = array<i64: 1, 32>}, {pipeline_mode = #tpu.pipeline_mode<synchronous>, transform_indices = @transform_5, window_bounds = array<i64: 16, 32>}, {transform_indices = @transform_6, window_bounds = array<i64: 8, 128>}]} {
    %c0 = arith.constant 0 : index
    %c0_0 = arith.constant 0 : index
    %c0_1 = arith.constant 0 : index
    %0 = vector.load %arg1[%c0, %c0_0, %c0_1] : memref<8x1024x12xbf16, #tpu.memory_space<vmem>>, vector<8x1024x12xbf16>
    %1 = vector.shape_cast %0 : vector<8x1024x12xbf16> to vector<8192x12xbf16>
    %c0_2 = arith.constant 0 : index
    %c0_3 = arith.constant 0 : index
    %2 = vector.load %arg2[%c0_2, %c0_3] : memref<12x16xbf16, #tpu.memory_space<vmem>>, vector<12x16xbf16>
    %cst = arith.constant dense<0.000000e+00> : vector<8192x16xf32>
    %3 = tpu.matmul %1, %2, %cst {dimension_numbers = #tpu.dot_dimension_numbers<[1], [0], [0], [1], [0, 0, 1, 1], [], []>} : vector<8192x12xbf16>, vector<12x16xbf16>, vector<8192x16xf32> -> vector<8192x16xf32>
    %c0_4 = arith.constant 0 : index
    %c0_5 = arith.constant 0 : index
    %4 = vector.load %arg3[%c0_4, %c0_5] : memref<1x16xf32, #tpu.memory_space<vmem>>, vector<1x16xf32>
    %5 = vector.broadcast %4 : vector<1x16xf32> to vector<8192x16xf32>
    %6 = arith.addf %3, %5 : vector<8192x16xf32>
    %cst_6 = arith.constant 0.000000e+00 : f32
    %7 = vector.broadcast %cst_6 : f32 to vector<8192x16xf32>
    %8 = arith.maximumf %6, %7 : vector<8192x16xf32>
    %9 = vector.shape_cast %8 : vector<8192x16xf32> to vector<8x4x256x16xf32>
    %10 = vector.extract_strided_slice %9 {offsets = [0, 0, 0, 0], sizes = [8, 1, 256, 16], strides = [1, 1, 1, 1]} : vector<8x4x256x16xf32> to vector<8x1x256x16xf32>
    %11 = vector.shape_cast %10 : vector<8x1x256x16xf32> to vector<8x256x16xf32>
    %12 = vector.extract_strided_slice %9 {offsets = [0, 1, 0, 0], sizes = [8, 1, 256, 16], strides = [1, 1, 1, 1]} : vector<8x4x256x16xf32> to vector<8x1x256x16xf32>
    %13 = vector.shape_cast %12 : vector<8x1x256x16xf32> to vector<8x256x16xf32>
    %14 = arith.maximumf %11, %13 : vector<8x256x16xf32>
    %15 = vector.extract_strided_slice %9 {offsets = [0, 2, 0, 0], sizes = [8, 1, 256, 16], strides = [1, 1, 1, 1]} : vector<8x4x256x16xf32> to vector<8x1x256x16xf32>
    %16 = vector.shape_cast %15 : vector<8x1x256x16xf32> to vector<8x256x16xf32>
    %17 = vector.extract_strided_slice %9 {offsets = [0, 3, 0, 0], sizes = [8, 1, 256, 16], strides = [1, 1, 1, 1]} : vector<8x4x256x16xf32> to vector<8x1x256x16xf32>
    %18 = vector.shape_cast %17 : vector<8x1x256x16xf32> to vector<8x256x16xf32>
    %19 = arith.maximumf %16, %18 : vector<8x256x16xf32>
    %20 = arith.maximumf %14, %19 : vector<8x256x16xf32>
    %21 = arith.truncf %20 : vector<8x256x16xf32> to vector<8x256x16xbf16>
    %22 = vector.shape_cast %21 : vector<8x256x16xbf16> to vector<8x4x64x16xbf16>
    %23 = vector.extract_strided_slice %22 {offsets = [0, 0, 0, 0], sizes = [8, 1, 64, 16], strides = [1, 1, 1, 1]} : vector<8x4x64x16xbf16> to vector<8x1x64x16xbf16>
    %24 = vector.shape_cast %23 : vector<8x1x64x16xbf16> to vector<8x64x16xbf16>
    %25 = vector.shape_cast %24 : vector<8x64x16xbf16> to vector<512x16xbf16>
    %c0_7 = arith.constant 0 : index
    %c0_8 = arith.constant 0 : index
    %c0_9 = arith.constant 0 : index
    %26 = vector.load %arg4[%c0_7, %c0_8, %c0_9] : memref<4x16x32xbf16, #tpu.memory_space<vmem>>, vector<1x16x32xbf16>
    %27 = vector.shape_cast %26 : vector<1x16x32xbf16> to vector<16x32xbf16>
    %cst_10 = arith.constant dense<0.000000e+00> : vector<512x32xf32>
    %28 = tpu.matmul %25, %27, %cst_10 {dimension_numbers = #tpu.dot_dimension_numbers<[1], [0], [0], [1], [0, 0, 1, 1], [], []>} : vector<512x16xbf16>, vector<16x32xbf16>, vector<512x32xf32> -> vector<512x32xf32>
    %29 = vector.extract_strided_slice %22 {offsets = [0, 1, 0, 0], sizes = [8, 1, 64, 16], strides = [1, 1, 1, 1]} : vector<8x4x64x16xbf16> to vector<8x1x64x16xbf16>
    %30 = vector.shape_cast %29 : vector<8x1x64x16xbf16> to vector<8x64x16xbf16>
    %31 = vector.shape_cast %30 : vector<8x64x16xbf16> to vector<512x16xbf16>
    %c1 = arith.constant 1 : index
    %c0_11 = arith.constant 0 : index
    %c0_12 = arith.constant 0 : index
    %32 = vector.load %arg4[%c1, %c0_11, %c0_12] : memref<4x16x32xbf16, #tpu.memory_space<vmem>>, vector<1x16x32xbf16>
    %33 = vector.shape_cast %32 : vector<1x16x32xbf16> to vector<16x32xbf16>
    %cst_13 = arith.constant dense<0.000000e+00> : vector<512x32xf32>
    %34 = tpu.matmul %31, %33, %cst_13 {dimension_numbers = #tpu.dot_dimension_numbers<[1], [0], [0], [1], [0, 0, 1, 1], [], []>} : vector<512x16xbf16>, vector<16x32xbf16>, vector<512x32xf32> -> vector<512x32xf32>
    %35 = arith.addf %28, %34 : vector<512x32xf32>
    %36 = vector.extract_strided_slice %22 {offsets = [0, 2, 0, 0], sizes = [8, 1, 64, 16], strides = [1, 1, 1, 1]} : vector<8x4x64x16xbf16> to vector<8x1x64x16xbf16>
    %37 = vector.shape_cast %36 : vector<8x1x64x16xbf16> to vector<8x64x16xbf16>
    %38 = vector.shape_cast %37 : vector<8x64x16xbf16> to vector<512x16xbf16>
    %c2 = arith.constant 2 : index
    %c0_14 = arith.constant 0 : index
    %c0_15 = arith.constant 0 : index
    %39 = vector.load %arg4[%c2, %c0_14, %c0_15] : memref<4x16x32xbf16, #tpu.memory_space<vmem>>, vector<1x16x32xbf16>
    %40 = vector.shape_cast %39 : vector<1x16x32xbf16> to vector<16x32xbf16>
    %cst_16 = arith.constant dense<0.000000e+00> : vector<512x32xf32>
    %41 = tpu.matmul %38, %40, %cst_16 {dimension_numbers = #tpu.dot_dimension_numbers<[1], [0], [0], [1], [0, 0, 1, 1], [], []>} : vector<512x16xbf16>, vector<16x32xbf16>, vector<512x32xf32> -> vector<512x32xf32>
    %42 = arith.addf %35, %41 : vector<512x32xf32>
    %43 = vector.extract_strided_slice %22 {offsets = [0, 3, 0, 0], sizes = [8, 1, 64, 16], strides = [1, 1, 1, 1]} : vector<8x4x64x16xbf16> to vector<8x1x64x16xbf16>
    %44 = vector.shape_cast %43 : vector<8x1x64x16xbf16> to vector<8x64x16xbf16>
    %45 = vector.shape_cast %44 : vector<8x64x16xbf16> to vector<512x16xbf16>
    %c3 = arith.constant 3 : index
    %c0_17 = arith.constant 0 : index
    %c0_18 = arith.constant 0 : index
    %46 = vector.load %arg4[%c3, %c0_17, %c0_18] : memref<4x16x32xbf16, #tpu.memory_space<vmem>>, vector<1x16x32xbf16>
    %47 = vector.shape_cast %46 : vector<1x16x32xbf16> to vector<16x32xbf16>
    %cst_19 = arith.constant dense<0.000000e+00> : vector<512x32xf32>
    %48 = tpu.matmul %45, %47, %cst_19 {dimension_numbers = #tpu.dot_dimension_numbers<[1], [0], [0], [1], [0, 0, 1, 1], [], []>} : vector<512x16xbf16>, vector<16x32xbf16>, vector<512x32xf32> -> vector<512x32xf32>
    %49 = arith.addf %42, %48 : vector<512x32xf32>
    %c0_20 = arith.constant 0 : index
    %c0_21 = arith.constant 0 : index
    %50 = vector.load %arg5[%c0_20, %c0_21] : memref<1x32xf32, #tpu.memory_space<vmem>>, vector<1x32xf32>
    %51 = vector.broadcast %50 : vector<1x32xf32> to vector<512x32xf32>
    %52 = arith.addf %49, %51 : vector<512x32xf32>
    %cst_22 = arith.constant 0.000000e+00 : f32
    %53 = vector.broadcast %cst_22 : f32 to vector<512x32xf32>
    %54 = arith.maximumf %52, %53 : vector<512x32xf32>
    %55 = vector.shape_cast %54 : vector<512x32xf32> to vector<8x4x16x32xf32>
    %56 = vector.extract_strided_slice %55 {offsets = [0, 0, 0, 0], sizes = [8, 1, 16, 32], strides = [1, 1, 1, 1]} : vector<8x4x16x32xf32> to vector<8x1x16x32xf32>
    %57 = vector.shape_cast %56 : vector<8x1x16x32xf32> to vector<8x16x32xf32>
    %58 = vector.extract_strided_slice %55 {offsets = [0, 1, 0, 0], sizes = [8, 1, 16, 32], strides = [1, 1, 1, 1]} : vector<8x4x16x32xf32> to vector<8x1x16x32xf32>
    %59 = vector.shape_cast %58 : vector<8x1x16x32xf32> to vector<8x16x32xf32>
    %60 = arith.maximumf %57, %59 : vector<8x16x32xf32>
    %61 = vector.extract_strided_slice %55 {offsets = [0, 2, 0, 0], sizes = [8, 1, 16, 32], strides = [1, 1, 1, 1]} : vector<8x4x16x32xf32> to vector<8x1x16x32xf32>
    %62 = vector.shape_cast %61 : vector<8x1x16x32xf32> to vector<8x16x32xf32>
    %63 = vector.extract_strided_slice %55 {offsets = [0, 3, 0, 0], sizes = [8, 1, 16, 32], strides = [1, 1, 1, 1]} : vector<8x4x16x32xf32> to vector<8x1x16x32xf32>
    %64 = vector.shape_cast %63 : vector<8x1x16x32xf32> to vector<8x16x32xf32>
    %65 = arith.maximumf %62, %64 : vector<8x16x32xf32>
    %66 = arith.maximumf %60, %65 : vector<8x16x32xf32>
    %c0_23 = arith.constant 0 : index
    %c0_24 = arith.constant 0 : index
    %67 = vector.load %arg6[%c0_23, %c0_24] : memref<16x32xf32, #tpu.memory_space<vmem>>, vector<16x32xf32>
    %68 = vector.shape_cast %67 : vector<16x32xf32> to vector<1x16x32xf32>
    %69 = vector.broadcast %68 : vector<1x16x32xf32> to vector<8x16x32xf32>
    %70 = arith.mulf %66, %69 : vector<8x16x32xf32>
    %cst_25 = arith.constant dense<0.000000e+00> : vector<8x16xf32>
    %71 = vector.multi_reduction <add>, %70, %cst_25 [2] : vector<8x16x32xf32> to vector<8x16xf32>
    %72 = vector.shape_cast %71 : vector<8x16xf32> to vector<8x16x1xf32>
    %cst_26 = arith.constant dense<0.000000e+00> : vector<8x1xf32>
    %73 = vector.multi_reduction <add>, %72, %cst_26 [1] : vector<8x16x1xf32> to vector<8x1xf32>
    %74 = vector.shape_cast %73 : vector<8x1xf32> to vector<8x1xf32>
    %75 = vector.broadcast %74 : vector<8x1xf32> to vector<8x128xf32>
    %c0_27 = arith.constant 0 : index
    %c0_28 = arith.constant 0 : index
    %76 = vector.load %arg7[%c0_27, %c0_28] : memref<8x128xf32, #tpu.memory_space<vmem>>, vector<8x128xf32>
    tpu.vector_store %arg7[%c0_27, %c0_28], %75 {strides = array<i32>} : memref<8x128xf32, #tpu.memory_space<vmem>>, vector<8x128xf32>,
    return
  }
  func.func @transform_0(%arg0: i32) -> (i32, i32, i32) {
    %c0_i32 = arith.constant 0 : i32
    %c0_i32_0 = arith.constant 0 : i32
    %c0_i32_1 = arith.constant 0 : i32
    return %arg0, %c0_i32, %c0_i32_0 : i32, i32, i32
  }
  func.func @transform_1(%arg0: i32) -> (i32, i32) {
    %c0_i32 = arith.constant 0 : i32
    %c0_i32_0 = arith.constant 0 : i32
    %c0_i32_1 = arith.constant 0 : i32
    return %c0_i32, %c0_i32_0 : i32, i32
  }
  func.func @transform_2(%arg0: i32) -> (i32, i32) {
    %c0_i32 = arith.constant 0 : i32
    %c0_i32_0 = arith.constant 0 : i32
    %c0_i32_1 = arith.constant 0 : i32
    return %c0_i32, %c0_i32_0 : i32, i32
  }
  func.func @transform_3(%arg0: i32) -> (i32, i32, i32) {
    %c0_i32 = arith.constant 0 : i32
    %c0_i32_0 = arith.constant 0 : i32
    %c0_i32_1 = arith.constant 0 : i32
    %c0_i32_2 = arith.constant 0 : i32
    return %c0_i32, %c0_i32_0, %c0_i32_1 : i32, i32, i32
  }
  func.func @transform_4(%arg0: i32) -> (i32, i32) {
    %c0_i32 = arith.constant 0 : i32
    %c0_i32_0 = arith.constant 0 : i32
    %c0_i32_1 = arith.constant 0 : i32
    return %c0_i32, %c0_i32_0 : i32, i32
  }
  func.func @transform_5(%arg0: i32) -> (i32, i32) {
    %c0_i32 = arith.constant 0 : i32
    %c0_i32_0 = arith.constant 0 : i32
    %c0_i32_1 = arith.constant 0 : i32
    return %c0_i32, %c0_i32_0 : i32, i32
  }
  func.func @transform_6(%arg0: i32) -> (i32, i32) {
    %c0_i32 = arith.constant 0 : i32
    %c0_i32_0 = arith.constant 0 : i32
    return %arg0, %c0_i32 : i32, i32
  }
}

</mosaic_0001>

<bundles_post_ra>
// kernel: cnn_regression_forward.1
= control target key start
LH: loop header
LB: loop body
LE: loop exit
PB: predicated region body
PF: predicated region fallthrough
CT: control target
= control target key end

     0   :  { %s17225_s21 = smov 0   ;;  %s24954_s0 = inlined_call_operand.vmem [shape: bf16[16,1024,12], index: 0, kind: input, shape index: {}]   ;;  %s24955_s1 = inlined_call_operand.vmem [shape: bf16[12,16], index: 1, kind: input, shape index: {}]   ;;  %s24956_s2 = inlined_call_operand.vmem [shape: f32[1,16], index: 2, kind: input, shape index: {}]   ;;  %s24957_s3 = inlined_call_operand.vmem [shape: bf16[4,16,32], index: 3, kind: input, shape index: {}]   ;;  %s24958_s4 = inlined_call_operand.vmem [shape: f32[1,32], index: 4, kind: input, shape index: {}]   ;;  %s24959_s5 = inlined_call_operand.vmem [shape: f32[16,32], index: 5, kind: input, shape index: {}]   ;;  %s24960_s6 = inlined_call_operand.vmem [shape: f32[16,128], index: 6, kind: output, shape index: {}]  }
   0x1 LB: > { %s17231_s22 = sadd.s32 4294967295, %s17188_s21   ;;  %p13535_p0 = scmp.ge.s32.totalorder %s17188_s21, 1  ;;  %s17188_s21 = sphi %s17225_s21, %s16_s21  }
   0x2   : > { %p214_p1 = scmp.lt.s32.totalorder %s17188_s21, 3 }
   0x4   : > { %p215_p2 = pnand %p13535_p0, %p214_p1 }
   0x6   : > { %218 = sbr.rel (%p215_p2) target bundleno = 2305 (0x901), region = 44 }
   0xb   : > { %v16655_v0 = vld [vmem:[%s24955_s1] sm:$0x3f]   ;;  %vm5391_vm0 = vcmask 1045504   ;;  %s13536_s25 = sshll.u32 %s17231_s22, 3  ;;  %vm3854_vm1 = vcmask 97280   ;;  %vm11455_vm2 = vcmask 130048  }
   0xc   : > { %16645 = vmatprep.subr.msk.bf16.mxu0 %vm5391_vm0, %v16655_v0  ;;  %16646 = vmatprep.subr.msk.bf16.mxu1 %vm5391_vm0, %v16655_v0  ;;  %v5393_v1 = vsel %vm5391_vm0, %v16655_v0, 0  ;;  %p245_p3 = scmp.lt.s32.totalorder %s13536_s25, 15  ;;  %vm13349_vm3 = vcmask 261120   ;;  %p251_p4 = scmp.lt.s32.totalorder %s17231_s22, 1  ;;  %vm13462_vm4 = vcmask 1041409   ;;  %vm13464_vm5 = vcmask 1042434  }
   0xd   : > { %15354 = vmatpush3.bf16.msra.mxu0 %v5393_v1  ;;  %16644 = vmatpush3.bf16.msra.mxu1 %v5393_v1  ;;  %vm13466_vm6 = vcmask 1043459   ;;  %vm13468_vm7 = vcmask 1044484   ;;  %vm13470_vm8 = vcmask 1045509   ;;  %vm13472_vm9 = vcmask 1046534  }
   0xe   : > { %s26793_s25 = smov (!%p245_p3, %s13536_s25), 15  ;;  %s26795_s22 = smov (!%p251_p4, %s17231_s22), 1  ;;  %vm13474_vm10 = vcmask 1047559  }
   0xf   : > { %s14707_s26 = sshll.u32 %s26793_s25, 9  ;;  %s13539_s20 = sshll.u32 %s26795_s22, 3 }
  0x10   : > { %s17242_s29 = scalar_lea.vmem %s24954_s0, %s14707_s26  ;;  %s254_s25 = scalar_lea.vmem %s24960_s6, %s13539_s20 }
  0x11   : > { %v16656_v2 = vld [vmem:[%s17242_s29] sm:$0xff]   ;;  %v16658_v4 = vld [vmem:[%s17242_s29 + $0x8] sm:$0xff]   ;;  %v16660_v6 = vld [vmem:[%s17242_s29 + $0x10] sm:$0xff]  }
  0x12   : > { %v16657_v3 = vld [vmem:[%s17242_s29 + $0xa00] sm:$0xff]   ;;  %15355 = vmatprep.mubr.msk.bf16.mxu0 %vm3854_vm1, %v16656_v2  ;;  %v16659_v5 = vld [vmem:[%s17242_s29 + $0xa08] sm:$0xff]   ;;  %v16661_v7 = vld [vmem:[%s17242_s29 + $0xa10] sm:$0xff]  }
  0x13   : > { %15995 = vmatprep.mubr.msk.bf16.mxu1 %vm3854_vm1, %v16657_v3  ;;  %15356 = vmatmul.mubr.msk.bf16.vlgmr.msra.gmra.mxu0 %vm3854_vm1, %v16658_v4  ;;  %v16662_v8 = vld [vmem:[%s17242_s29 + $0x18] sm:$0xff]   ;;  %v16664_v10 = vld [vmem:[%s17242_s29 + $0x20] sm:$0xff]   ;;  %v16666_v12 = vld [vmem:[%s17242_s29 + $0x28] sm:$0xff]  }
  0x14   : > { %15996 = vmatmul.mubr.msk.bf16.vlgmr.msra.gmra.mxu1 %vm3854_vm1, %v16659_v5  ;;  %15359 = vmatprep.mubr.msk.bf16.mxu0 %vm3854_vm1, %v16660_v6  ;;  %v16663_v9 = vld [vmem:[%s17242_s29 + $0xa18] sm:$0xff]   ;;  %v16665_v11 = vld [vmem:[%s17242_s29 + $0xa20] sm:$0xff]   ;;  %v16667_v13 = vld [vmem:[%s17242_s29 + $0xa28] sm:$0xff]  }
  0x15   : > { %15999 = vmatprep.mubr.msk.bf16.mxu1 %vm3854_vm1, %v16661_v7  ;;  %v16668_v14 = vld [vmem:[%s17242_s29 + $0x30] sm:$0xff]   ;;  %v16670_v16 = vld [vmem:[%s17242_s29 + $0x38] sm:$0xff]   ;;  %v16672_v18 = vld [vmem:[%s17242_s29 + $0x40] sm:$0xff]  }
  0x16   : > { %v16669_v15 = vld [vmem:[%s17242_s29 + $0xa30] sm:$0xff]   ;;  %v16671_v17 = vld [vmem:[%s17242_s29 + $0xa38] sm:$0xff]   ;;  %v16673_v19 = vld [vmem:[%s17242_s29 + $0xa40] sm:$0xff]  }
  0x17   : > { %v16674_v20 = vld [vmem:[%s17242_s29 + $0x48] sm:$0xff]   ;;  %v16676_v22 = vld [vmem:[%s17242_s29 + $0x50] sm:$0xff]   ;;  %v16678_v24 = vld [vmem:[%s17242_s29 + $0x58] sm:$0xff]  }
  0x18   : > { %v16675_v21 = vld [vmem:[%s17242_s29 + $0xa48] sm:$0xff]   ;;  %v16677_v23 = vld [vmem:[%s17242_s29 + $0xa50] sm:$0xff]   ;;  %v16679_v25 = vld [vmem:[%s17242_s29 + $0xa58] sm:$0xff]  }
  0x19   : > { %v16680_v26 = vld [vmem:[%s17242_s29 + $0x60] sm:$0xff]   ;;  %v16682_v28 = vld [vmem:[%s17242_s29 + $0x68] sm:$0xff]   ;;  %v16684_v30 = vld [vmem:[%s17242_s29 + $0x70] sm:$0xff]  }
  0x1a   : > { %v16681_v27 = vld [vmem:[%s17242_s29 + $0xa60] sm:$0xff]   ;;  %v16683_v29 = vld [vmem:[%s17242_s29 + $0xa68] sm:$0xff]   ;;  %v16685_v31 = vld [vmem:[%s17242_s29 + $0xa70] sm:$0xff]  }
  0x1b   : > { %15360 = vmatmul.mubr.msk.bf16.gmra.mxu0 %vm3854_vm1, %v16662_v8  ;;  %v16686_v32 = vld [vmem:[%s17242_s29 + $0x78] sm:$0xff]   ;;  %v16688_v34 = vld [vmem:[%s17242_s29 + $0x80] sm:$0xff]   ;;  %v16690_v36 = vld [vmem:[%s17242_s29 + $0x88] sm:$0xff]  }
  0x1c   : > { %16000 = vmatmul.mubr.msk.bf16.gmra.mxu1 %vm3854_vm1, %v16663_v9  ;;  %15363 = vmatprep.mubr.msk.bf16.mxu0 %vm3854_vm1, %v16664_v10  ;;  %v16687_v33 = vld [vmem:[%s17242_s29 + $0xa78] sm:$0xff]   ;;  %v16689_v35 = vld [vmem:[%s17242_s29 + $0xa80] sm:$0xff]   ;;  %v16691_v37 = vld [vmem:[%s17242_s29 + $0xa88] sm:$0xff]  }
  0x1d   : > { %16003 = vmatprep.mubr.msk.bf16.mxu1 %vm3854_vm1, %v16665_v11  ;;  %v16692_v38 = vld [vmem:[%s17242_s29 + $0x90] sm:$0xff]   ;;  %v16694_v40 = vld [vmem:[%s17242_s29 + $0x98] sm:$0xff]   ;;  %v16696_v42 = vld [vmem:[%s17242_s29 + $0xa0] sm:$0xff]  }
  0x1e   : > { %v16693_v39 = vld [vmem:[%s17242_s29 + $0xa90] sm:$0xff]   ;;  %v16695_v41 = vld [vmem:[%s17242_s29 + $0xa98] sm:$0xff]   ;;  %v16697_v43 = vld [vmem:[%s17242_s29 + $0xaa0] sm:$0xff]  }
  0x1f   : > { %v16698_v44 = vld [vmem:[%s17242_s29 + $0xa8] sm:$0xff]   ;;  %v16700_v46 = vld [vmem:[%s17242_s29 + $0xb0] sm:$0xff]   ;;  %v16702_v48 = vld [vmem:[%s17242_s29 + $0xb8] sm:$0xff]  }
  0x20   : > { %v16699_v45 = vld [vmem:[%s17242_s29 + $0xaa8] sm:$0xff]   ;;  %v16701_v47 = vld [vmem:[%s17242_s29 + $0xab0] sm:$0xff]   ;;  %v16703_v49 = vld [vmem:[%s17242_s29 + $0xab8] sm:$0xff]  }
  0x21   : > { %v16704_v50 = vld [vmem:[%s17242_s29 + $0xc0] sm:$0xff]   ;;  %v16706_v52 = vld [vmem:[%s17242_s29 + $0xc8] sm:$0xff]   ;;  %v16708_v54 = vld [vmem:[%s17242_s29 + $0xd0] sm:$0xff]  }
  0x22   : > { %v16705_v51 = vld [vmem:[%s17242_s29 + $0xac0] sm:$0xff]   ;;  %v16707_v53 = vld [vmem:[%s17242_s29 + $0xac8] sm:$0xff]   ;;  %v16709_v55 = vld [vmem:[%s17242_s29 + $0xad0] sm:$0xff]  }
  0x23   : > { %15364 = vmatmul.mubr.msk.bf16.gmra.mxu0 %vm3854_vm1, %v16666_v12  ;;  %v16710_v56 = vld [vmem:[%s17242_s29 + $0xd8] sm:$0xff]   ;;  %v16712_v58 = vld [vmem:[%s17242_s29 + $0xe0] sm:$0xff]   ;;  %v16714_v60 = vld [vmem:[%s17242_s29 + $0xe8] sm:$0xff]  }
  0x24   : > { %16004 = vmatmul.mubr.msk.bf16.gmra.mxu1 %vm3854_vm1, %v16667_v13  ;;  %15367 = vmatprep.mubr.msk.bf16.mxu0 %vm3854_vm1, %v16668_v14  ;;  %v16711_v57 = vld [vmem:[%s17242_s29 + $0xad8] sm:$0xff]   ;;  %v16713_v59 = vld [vmem:[%s17242_s29 + $0xae0] sm:$0xff]   ;;  %v16715_v61 = vld [vmem:[%s17242_s29 + $0xae8] sm:$0xff]  }
  0x25   : > { %16007 = vmatprep.mubr.msk.bf16.mxu1 %vm3854_vm1, %v16669_v15  ;;  %v16716_v62 = vld [vmem:[%s17242_s29 + $0xf0] sm:$0xff]   ;;  %v16718_v0 = vld [vmem:[%s17242_s29 + $0xf8] sm:$0xff]   ;;  %v16720_v2 = vld [vmem:[%s17242_s29 + $0x100] sm:$0xff]  }
  0x26   : > { %v16717_v63 = vld [vmem:[%s17242_s29 + $0xaf0] sm:$0xff]   ;;  %v16719_v1 = vld [vmem:[%s17242_s29 + $0xaf8] sm:$0xff]   ;;  %v16721_v3 = vld [vmem:[%s17242_s29 + $0xb00] sm:$0xff]  }
  0x27   : > { %v16722_v4 = vld [vmem:[%s17242_s29 + $0x108] sm:$0xff]   ;;  %v16724_v6 = vld [vmem:[%s17242_s29 + $0x110] sm:$0xff]   ;;  %v16726_v8 = vld [vmem:[%s17242_s29 + $0x118] sm:$0xff]  }
  0x28   : > { %v16723_v5 = vld [vmem:[%s17242_s29 + $0xb08] sm:$0xff]   ;;  %v16725_v7 = vld [vmem:[%s17242_s29 + $0xb10] sm:$0xff]   ;;  %v16727_v9 = vld [vmem:[%s17242_s29 + $0xb18] sm:$0xff]  }
  0x29   : > { %v16728_v10 = vld [vmem:[%s17242_s29 + $0x120] sm:$0xff]   ;;  %v16730_v12 = vld [vmem:[%s17242_s29 + $0x128] sm:$0xff]   ;;  %v16732_v14 = vld [vmem:[%s17242_s29 + $0x130] sm:$0xff]  }
  0x2a   : > { %v16729_v11 = vld [vmem:[%s17242_s29 + $0xb20] sm:$0xff]   ;;  %v16731_v13 = vld [vmem:[%s17242_s29 + $0xb28] sm:$0xff]   ;;  %v16733_v15 = vld [vmem:[%s17242_s29 + $0xb30] sm:$0xff]  }
  0x2b   : > { %15368 = vmatmul.mubr.msk.bf16.gmra.mxu0 %vm3854_vm1, %v16670_v16  ;;  %v16734_v16 = vld [vmem:[%s17242_s29 + $0x138] sm:$0xff]  }
  0x2c   : > { %16008 = vmatmul.mubr.msk.bf16.gmra.mxu1 %vm3854_vm1, %v16671_v17  ;;  %15371 = vmatprep.mubr.msk.bf16.mxu0 %vm3854_vm1, %v16672_v18  ;;  %v16735_v17 = vld [vmem:[%s17242_s29 + $0xb38] sm:$0xff]   ;;  %v16736_v18 = vld [vmem:[%s17242_s29 + $0x140] sm:$0xff]  }
  0x2d   : > { %16011 = vmatprep.mubr.msk.bf16.mxu1 %vm3854_vm1, %v16673_v19  ;;  %v16737_v19 = vld [vmem:[%s17242_s29 + $0xb40] sm:$0xff]  }
  0x33   : > { %15372 = vmatmul.mubr.msk.bf16.gmra.mxu0 %vm3854_vm1, %v16674_v20  ;;  %v16738_v20 = vld [vmem:[%s17242_s29 + $0x148] sm:$0xff]  }
  0x34   : > { %16012 = vmatmul.mubr.msk.bf16.gmra.mxu1 %vm3854_vm1, %v16675_v21  ;;  %15375 = vmatprep.mubr.msk.bf16.mxu0 %vm3854_vm1, %v16676_v22  ;;  %v16739_v21 = vld [vmem:[%s17242_s29 + $0xb48] sm:$0xff]   ;;  %v16740_v22 = vld [vmem:[%s17242_s29 + $0x150] sm:$0xff]  }
  0x35   : > { %16015 = vmatprep.mubr.msk.bf16.mxu1 %vm3854_vm1, %v16677_v23  ;;  %v16741_v23 = vld [vmem:[%s17242_s29 + $0xb50] sm:$0xff]  }
  0x3b   : > { %15376 = vmatmul.mubr.msk.bf16.gmra.mxu0 %vm3854_vm1, %v16678_v24  ;;  %v16742_v24 = vld [vmem:[%s17242_s29 + $0x158] sm:$0xff]  }
  0x3c   : > { %16016 = vmatmul.mubr.msk.bf16.gmra.mxu1 %vm3854_vm1, %v16679_v25  ;;  %15379 = vmatprep.mubr.msk.bf16.mxu0 %vm3854_vm1, %v16680_v26  ;;  %v16743_v25 = vld [vmem:[%s17242_s29 + $0xb58] sm:$0xff]   ;;  %v16744_v26 = vld [vmem:[%s17242_s29 + $0x160] sm:$0xff]  }
  0x3d   : > { %16019 = vmatprep.mubr.msk.bf16.mxu1 %vm3854_vm1, %v16681_v27  ;;  %v16745_v27 = vld [vmem:[%s17242_s29 + $0xb60] sm:$0xff]  }
  0x43   : > { %15380 = vmatmul.mubr.msk.bf16.gmra.mxu0 %vm3854_vm1, %v16682_v28  ;;  %v16746_v28 = vld [vmem:[%s17242_s29 + $0x168] sm:$0xff]  }
  0x44   : > { %16020 = vmatmul.mubr.msk.bf16.gmra.mxu1 %vm3854_vm1, %v16683_v29  ;;  %15383 = vmatprep.mubr.msk.bf16.mxu0 %vm3854_vm1, %v16684_v30  ;;  %v16747_v29 = vld [vmem:[%s17242_s29 + $0xb68] sm:$0xff]   ;;  %v16748_v30 = vld [vmem:[%s17242_s29 + $0x170] sm:$0xff]  }
  0x45   : > { %16023 = vmatprep.mubr.msk.bf16.mxu1 %vm3854_vm1, %v16685_v31  ;;  %v16749_v31 = vld [vmem:[%s17242_s29 + $0xb70] sm:$0xff]  }
  0x4b   : > { %15384 = vmatmul.mubr.msk.bf16.gmra.mxu0 %vm3854_vm1, %v16686_v32  ;;  %v16750_v32 = vld [vmem:[%s17242_s29 + $0x178] sm:$0xff]  }
  0x4c   : > { %16024 = vmatmul.mubr.msk.bf16.gmra.mxu1 %vm3854_vm1, %v16687_v33  ;;  %15387 = vmatprep.mubr.msk.bf16.mxu0 %vm3854_vm1, %v16688_v34  ;;  %v16751_v33 = vld [vmem:[%s17242_s29 + $0xb78] sm:$0xff]   ;;  %v16752_v34 = vld [vmem:[%s17242_s29 + $0x180] sm:$0xff]  }
  0x4d   : > { %16027 = vmatprep.mubr.msk.bf16.mxu1 %vm3854_vm1, %v16689_v35  ;;  %v16753_v35 = vld [vmem:[%s17242_s29 + $0xb80] sm:$0xff]  }
  0x53   : > { %15388 = vmatmul.mubr.msk.bf16.gmra.mxu0 %vm3854_vm1, %v16690_v36  ;;  %v16754_v36 = vld [vmem:[%s17242_s29 + $0x188] sm:$0xff]  }
  0x54   : > { %16028 = vmatmul.mubr.msk.bf16.gmra.mxu1 %vm3854_vm1, %v16691_v37  ;;  %15391 = vmatprep.mubr.msk.bf16.mxu0 %vm3854_vm1, %v16692_v38  ;;  %v16755_v37 = vld [vmem:[%s17242_s29 + $0xb88] sm:$0xff]   ;;  %v16756_v38 = vld [vmem:[%s17242_s29 + $0x190] sm:$0xff]  }
  0x55   : > { %16031 = vmatprep.mubr.msk.bf16.mxu1 %vm3854_vm1, %v16693_v39  ;;  %v16757_v39 = vld [vmem:[%s17242_s29 + $0xb90] sm:$0xff]  }
  0x5b   : > { %15392 = vmatmul.mubr.msk.bf16.gmra.mxu0 %vm3854_vm1, %v16694_v40 }
  0x5c   : > { %16032 = vmatmul.mubr.msk.bf16.gmra.mxu1 %vm3854_vm1, %v16695_v41  ;;  %15395 = vmatprep.mubr.msk.bf16.mxu0 %vm3854_vm1, %v16696_v42 }
  0x5d   : > { %16035 = vmatprep.mubr.msk.bf16.mxu1 %vm3854_vm1, %v16697_v43 }
  0x63   : > { %15396 = vmatmul.mubr.msk.bf16.gmra.mxu0 %vm3854_vm1, %v16698_v44  ;;  %v16758_v44 = vld [vmem:[%s17242_s29 + $0x198] sm:$0xff]  }
  0x64   : > { %16036 = vmatmul.mubr.msk.bf16.gmra.mxu1 %vm3854_vm1, %v16699_v45  ;;  %15399 = vmatprep.mubr.msk.bf16.mxu0 %vm3854_vm1, %v16700_v46  ;;  %v16759_v46 = vld [vmem:[%s17242_s29 + $0xb98] sm:$0xff]  }
  0x65   : > { %16039 = vmatprep.mubr.msk.bf16.mxu1 %vm3854_vm1, %v16701_v47 }
  0x6b   : > { %15400 = vmatmul.mubr.msk.bf16.gmra.mxu0 %vm3854_vm1, %v16702_v48  ;;  %v16760_v48 = vld [vmem:[%s17242_s29 + $0x1a0] sm:$0xff]  }
  0x6c   : > { %16040 = vmatmul.mubr.msk.bf16.gmra.mxu1 %vm3854_vm1, %v16703_v49  ;;  %15403 = vmatprep.mubr.msk.bf16.mxu0 %vm3854_vm1, %v16704_v50  ;;  %v16761_v50 = vld [vmem:[%s17242_s29 + $0xba0] sm:$0xff]  }
  0x6d   : > { %16043 = vmatprep.mubr.msk.bf16.mxu1 %vm3854_vm1, %v16705_v51 }
  0x73   : > { %15404 = vmatmul.mubr.msk.bf16.gmra.mxu0 %vm3854_vm1, %v16706_v52 }
  0x74   : > { %16044 = vmatmul.mubr.msk.bf16.gmra.mxu1 %vm3854_vm1, %v16707_v53  ;;  %15407 = vmatprep.mubr.msk.bf16.mxu0 %vm3854_vm1, %v16708_v54 }
  0x75   : > { %16047 = vmatprep.mubr.msk.bf16.mxu1 %vm3854_vm1, %v16709_v55 }
  0x7b   : > { %15408 = vmatmul.mubr.msk.bf16.gmra.mxu0 %vm3854_vm1, %v16710_v56  ;;  %v16762_v56 = vld [vmem:[%s17242_s29 + $0x1a8] sm:$0xff]  }
  0x7c   : > { %16048 = vmatmul.mubr.msk.bf16.gmra.mxu1 %vm3854_vm1, %v16711_v57  ;;  %15411 = vmatprep.mubr.msk.bf16.mxu0 %vm3854_vm1, %v16712_v58  ;;  %v16763_v58 = vld [vmem:[%s17242_s29 + $0xba8] sm:$0xff]  }
  0x7d   : > { %16051 = vmatprep.mubr.msk.bf16.mxu1 %vm3854_vm1, %v16713_v59 }
  0x83   : > { %15412 = vmatmul.mubr.msk.bf16.gmra.mxu0 %vm3854_vm1, %v16714_v60  ;;  %v16764_v60 = vld [vmem:[%s17242_s29 + $0x1b0] sm:$0xff]  }
  0x84   : > { %16052 = vmatmul.mubr.msk.bf16.gmra.mxu1 %vm3854_vm1, %v16715_v61  ;;  %15415 = vmatprep.mubr.msk.bf16.mxu0 %vm3854_vm1, %v16716_v62  ;;  %v16765_v62 = vld [vmem:[%s17242_s29 + $0xbb0] sm:$0xff]  }
  0x85   : > { %16055 = vmatprep.mubr.msk.bf16.mxu1 %vm3854_vm1, %v16717_v63 }
  0x8b   : > { %15416 = vmatmul.mubr.msk.bf16.gmra.mxu0 %vm3854_vm1, %v16718_v0 }
  0x8c   : > { %16056 = vmatmul.mubr.msk.bf16.gmra.mxu1 %vm3854_vm1, %v16719_v1  ;;  %15419 = vmatprep.mubr.msk.bf16.mxu0 %vm3854_vm1, %v16720_v2 }
  0x8d   : > { %16059 = vmatprep.mubr.msk.bf16.mxu1 %vm3854_vm1, %v16721_v3 }
  0x93   : > { %15420 = vmatmul.mubr.msk.bf16.gmra.mxu0 %vm3854_vm1, %v16722_v4  ;;  %v16766_v4 = vld [vmem:[%s17242_s29 + $0x1b8] sm:$0xff]  }
  0x94   : > { %16060 = vmatmul.mubr.msk.bf16.gmra.mxu1 %vm3854_vm1, %v16723_v5  ;;  %15423 = vmatprep.mubr.msk.bf16.mxu0 %vm3854_vm1, %v16724_v6  ;;  %v16767_v6 = vld [vmem:[%s17242_s29 + $0xbb8] sm:$0xff]  }
  0x95   : > { %16063 = vmatprep.mubr.msk.bf16.mxu1 %vm3854_vm1, %v16725_v7 }
  0x9b   : > { %15424 = vmatmul.mubr.msk.bf16.gmra.mxu0 %vm3854_vm1, %v16726_v8  ;;  %v16768_v8 = vld [vmem:[%s17242_s29 + $0x1c0] sm:$0xff]  }
  0x9c   : > { %16064 = vmatmul.mubr.msk.bf16.gmra.mxu1 %vm3854_vm1, %v16727_v9  ;;  %15427 = vmatprep.mubr.msk.bf16.mxu0 %vm3854_vm1, %v16728_v10  ;;  %v16769_v10 = vld [vmem:[%s17242_s29 + $0xbc0] sm:$0xff]  }
  0x9d   : > { %16067 = vmatprep.mubr.msk.bf16.mxu1 %vm3854_vm1, %v16729_v11 }
  0xa3   : > { %15428 = vmatmul.mubr.msk.bf16.gmra.mxu0 %vm3854_vm1, %v16730_v12 }
  0xa4   : > { %16068 = vmatmul.mubr.msk.bf16.gmra.mxu1 %vm3854_vm1, %v16731_v13  ;;  %15431 = vmatprep.mubr.msk.bf16.mxu0 %vm3854_vm1, %v16732_v14 }
  0xa5   : > { %16071 = vmatprep.mubr.msk.bf16.mxu1 %vm3854_vm1, %v16733_v15 }
  0xab   : > { %15432 = vmatmul.mubr.msk.bf16.gmra.mxu0 %vm3854_vm1, %v16734_v16  ;;  %v16770_v16 = vld [vmem:[%s17242_s29 + $0x1c8] sm:$0xff]  }
  0xac   : > { %16072 = vmatmul.mubr.msk.bf16.gmra.mxu1 %vm3854_vm1, %v16735_v17  ;;  %15435 = vmatprep.mubr.msk.bf16.mxu0 %vm3854_vm1, %v16736_v18  ;;  %v16771_v18 = vld [vmem:[%s17242_s29 + $0xbc8] sm:$0xff]  }
  0xad   : > { %16075 = vmatprep.mubr.msk.bf16.mxu1 %vm3854_vm1, %v16737_v19 }
  0xb3   : > { %15436 = vmatmul.mubr.msk.bf16.gmra.mxu0 %vm3854_vm1, %v16738_v20  ;;  %v16772_v20 = vld [vmem:[%s17242_s29 + $0x1d0] sm:$0xff]  }
  0xb4   : > { %16076 = vmatmul.mubr.msk.bf16.gmra.mxu1 %vm3854_vm1, %v16739_v21  ;;  %15439 = vmatprep.mubr.msk.bf16.mxu0 %vm3854_vm1, %v16740_v22  ;;  %v16773_v22 = vld [vmem:[%s17242_s29 + $0xbd0] sm:$0xff]  }
  0xb5   : > { %16079 = vmatprep.mubr.msk.bf16.mxu1 %vm3854_vm1, %v16741_v23 }
  0xbb   : > { %15440 = vmatmul.mubr.msk.bf16.gmra.mxu0 %vm3854_vm1, %v16742_v24 }
  0xbc   : > { %16080 = vmatmul.mubr.msk.bf16.gmra.mxu1 %vm3854_vm1, %v16743_v25  ;;  %15443 = vmatprep.mubr.msk.bf16.mxu0 %vm3854_vm1, %v16744_v26 }
  0xbd   : > { %16083 = vmatprep.mubr.msk.bf16.mxu1 %vm3854_vm1, %v16745_v27 }
  0xc3   : > { %15444 = vmatmul.mubr.msk.bf16.gmra.mxu0 %vm3854_vm1, %v16746_v28  ;;  %v16774_v28 = vld [vmem:[%s17242_s29 + $0x1d8] sm:$0xff]  }
  0xc4   : > { %16084 = vmatmul.mubr.msk.bf16.gmra.mxu1 %vm3854_vm1, %v16747_v29  ;;  %15447 = vmatprep.mubr.msk.bf16.mxu0 %vm3854_vm1, %v16748_v30  ;;  %v16775_v30 = vld [vmem:[%s17242_s29 + $0xbd8] sm:$0xff]  }
  0xc5   : > { %16087 = vmatprep.mubr.msk.bf16.mxu1 %vm3854_vm1, %v16749_v31 }
  0xcb   : > { %15448 = vmatmul.mubr.msk.bf16.gmra.mxu0 %vm3854_vm1, %v16750_v32  ;;  %v16776_v32 = vld [vmem:[%s17242_s29 + $0x1e0] sm:$0xff]  }
  0xcc   : > { %16088 = vmatmul.mubr.msk.bf16.gmra.mxu1 %vm3854_vm1, %v16751_v33  ;;  %15451 = vmatprep.mubr.msk.bf16.mxu0 %vm3854_vm1, %v16752_v34  ;;  %v16777_v34 = vld [vmem:[%s17242_s29 + $0xbe0] sm:$0xff]  }
  0xcd   : > { %16091 = vmatprep.mubr.msk.bf16.mxu1 %vm3854_vm1, %v16753_v35 }
  0xd3   : > { %v17444_v40 = vpop.f32.mrf.mxu0  ;;  %15452 = vmatmul.mubr.msk.bf16.gmra.mxu0 %vm3854_vm1, %v16754_v36 }
  0xd4   : > { %v17447_v41 = vpop.f32.mrf.mxu1  ;;  %16092 = vmatmul.mubr.msk.bf16.gmra.mxu1 %vm3854_vm1, %v16755_v37  ;;  %15455 = vmatprep.mubr.msk.bf16.mxu0 %vm3854_vm1, %v16756_v38 }
  0xd5   : > { %v17451_v42 = vpop.f32.mrf.mxu0  ;;  %16095 = vmatprep.mubr.msk.bf16.mxu1 %vm3854_vm1, %v16757_v39  ;;  %v17577_v39 = vld [vmem:[%s24956_s2] ss:$0 sm:$0xff] }
  0xd6   : > { %v17454_v43 = vpop.f32.mrf.mxu1 }
  0xd7   : > { %v17457_v45 = vpop.f32.mrf.mxu0 }
  0xd8   : > { %v17460_v47 = vpop.f32.mrf.mxu1 }
  0xd9   : > { %v17463_v49 = vpop.f32.mrf.mxu0 }
  0xda   : > { %v17466_v51 = vpop.f32.mrf.mxu1 }
  0xdb   : > { %v17468_v52 = vpop.f32.mrf.mxu0  ;;  %15456 = vmatmul.mubr.msk.bf16.gmra.mxu0 %vm3854_vm1, %v16758_v44 }
  0xdc   : > { %v17471_v53 = vpop.f32.mrf.mxu1  ;;  %16096 = vmatmul.mubr.msk.bf16.gmra.mxu1 %vm3854_vm1, %v16759_v46  ;;  %15459 = vmatprep.mubr.msk.bf16.mxu0 %vm3854_vm1, %v16760_v48  ;;  %v16778_v46 = vld [vmem:[%s17242_s29 + $0x1e8] sm:$0xff]  }
  0xdd   : > { %v17475_v54 = vpop.f32.mrf.mxu0  ;;  %16099 = vmatprep.mubr.msk.bf16.mxu1 %vm3854_vm1, %v16761_v50  ;;  %v16779_v50 = vld [vmem:[%s17242_s29 + $0xbe8] sm:$0xff]  }
  0xde   : > { %v17478_v55 = vpop.f32.mrf.mxu1 }
  0xdf   : > { %v17481_v57 = vpop.f32.mrf.mxu0 }
  0xe0   : > { %v17484_v59 = vpop.f32.mrf.mxu1 }
  0xe1   : > { %v17487_v61 = vpop.f32.mrf.mxu0 }
  0xe2   : > { %v17490_v63 = vpop.f32.mrf.mxu1 }
  0xe3   : > { %v17492_v0 = vpop.f32.mrf.mxu0  ;;  %15460 = vmatmul.mubr.msk.bf16.gmra.mxu0 %vm3854_vm1, %v16762_v56 }
  0xe4   : > { %v17495_v1 = vpop.f32.mrf.mxu1  ;;  %16100 = vmatmul.mubr.msk.bf16.gmra.mxu1 %vm3854_vm1, %v16763_v58  ;;  %15463 = vmatprep.mubr.msk.bf16.mxu0 %vm3854_vm1, %v16764_v60  ;;  %v16780_v58 = vld [vmem:[%s17242_s29 + $0x1f0] sm:$0xff]  }
  0xe5   : > { %v17499_v2 = vpop.f32.mrf.mxu0  ;;  %16103 = vmatprep.mubr.msk.bf16.mxu1 %vm3854_vm1, %v16765_v62  ;;  %v16781_v62 = vld [vmem:[%s17242_s29 + $0xbf0] sm:$0xff]  }
  0xe6   : > { %v17502_v3 = vpop.f32.mrf.mxu1 }
  0xe7   : > { %v17505_v5 = vpop.f32.mrf.mxu0 }
  0xe8   : > { %v17508_v7 = vpop.f32.mrf.mxu1 }
  0xe9   : > { %v17511_v9 = vpop.f32.mrf.mxu0 }
  0xea   : > { %v17514_v11 = vpop.f32.mrf.mxu1 }
  0xeb   : > { %v17516_v12 = vpop.f32.mrf.mxu0  ;;  %15464 = vmatmul.mubr.msk.bf16.gmra.mxu0 %vm3854_vm1, %v16766_v4 }
  0xec   : > { %v17519_v13 = vpop.f32.mrf.mxu1  ;;  %16104 = vmatmul.mubr.msk.bf16.gmra.mxu1 %vm3854_vm1, %v16767_v6  ;;  %15467 = vmatprep.mubr.msk.bf16.mxu0 %vm3854_vm1, %v16768_v8  ;;  %v17595_v6 = vadd.f32 %v17444_v40, %v17577_v39  ;;  %v17614_v40 = vadd.f32 %v17577_v39, %v17454_v43  ;;  %v17634_v43 = vadd.f32 %v17577_v39, %v17466_v51  ;;  %v16785_v51 = vld [vmem:[%s17242_s29 + $0xc00] sm:$0xff]  }
  0xed   : > { %v17523_v14 = vpop.f32.mrf.mxu0  ;;  %16107 = vmatprep.mubr.msk.bf16.mxu1 %vm3854_vm1, %v16769_v10  ;;  %v17602_v10 = vadd.f32 %v17447_v41, %v17577_v39 }
  0xee   : > { %v17526_v15 = vpop.f32.mrf.mxu1 }
  0xef   : > { %v17529_v17 = vpop.f32.mrf.mxu0 }
  0xf0   : > { %v17532_v19 = vpop.f32.mrf.mxu1 }
  0xf1   : > { %v17535_v21 = vpop.f32.mrf.mxu0 }
  0xf2   : > { %v17538_v23 = vpop.f32.mrf.mxu1 }
  0xf3   : > { %v17540_v24 = vpop.f32.mrf.mxu0  ;;  %15468 = vmatmul.mubr.msk.bf16.gmra.mxu0 %vm3854_vm1, %v16770_v16  ;;  %v17606_v16 = vadd.f32 %v17577_v39, %v17451_v42  ;;  %v16782_v42 = vld [vmem:[%s17242_s29 + $0x1f8] sm:$0xff]  }
  0xf4   : > { %v17543_v25 = vpop.f32.mrf.mxu1  ;;  %16108 = vmatmul.mubr.msk.bf16.gmra.mxu1 %vm3854_vm1, %v16771_v18  ;;  %15471 = vmatprep.mubr.msk.bf16.mxu0 %vm3854_vm1, %v16772_v20  ;;  %v17618_v20 = vadd.f32 %v17457_v45, %v17577_v39  ;;  %v16783_v45 = vld [vmem:[%s17242_s29 + $0xbf8] sm:$0xff]  }
  0xf5   : > { %v17547_v26 = vpop.f32.mrf.mxu0  ;;  %16111 = vmatprep.mubr.msk.bf16.mxu1 %vm3854_vm1, %v16773_v22  ;;  %v17626_v22 = vadd.f32 %v17460_v47, %v17577_v39  ;;  %v17646_v47 = vadd.f32 %v17471_v53, %v17577_v39 }
  0xf6   : > { %v17550_v27 = vpop.f32.mrf.mxu1 }
  0xf7   : > { %v17553_v29 = vpop.f32.mrf.mxu0 }
  0xf8   : > { %v17556_v31 = vpop.f32.mrf.mxu1 }
  0xf9   : > { %v17559_v33 = vpop.f32.mrf.mxu0 }
  0xfa   : > { %v17562_v35 = vpop.f32.mrf.mxu1 }
  0xfb   : > { %v17564_v36 = vpop.f32.mrf.mxu0  ;;  %15472 = vmatmul.mubr.msk.bf16.gmra.mxu0 %vm3854_vm1, %v16774_v28  ;;  %v17630_v28 = vadd.f32 %v17577_v39, %v17463_v49 }
  0xfc   : > { %v17567_v37 = vpop.f32.mrf.mxu1  ;;  %16112 = vmatmul.mubr.msk.bf16.gmra.mxu1 %vm3854_vm1, %v16775_v30  ;;  %15475 = vmatprep.mubr.msk.bf16.mxu0 %vm3854_vm1, %v16776_v32  ;;  %v17681_v32 = vadd.f32 %v17577_v39, %v17487_v61 }
  0xfd   : > { %v17571_v38 = vpop.f32.mrf.mxu0  ;;  %16115 = vmatprep.mubr.msk.bf16.mxu1 %vm3854_vm1, %v16777_v34  ;;  %v17642_v34 = vadd.f32 %v17468_v52, %v17577_v39 }
  0xfe   : > { %v17579_v44 = vpop.f32.mrf.mxu1 }
  0xff   : > { %v17582_v48 = vpop.f32.mrf.mxu0 }
 0x100   : > { %v17585_v56 = vpop.f32.mrf.mxu1 }
 0x101   : > { %v17588_v60 = vpop.f32.mrf.mxu0 }
 0x102   : > { %v17591_v4 = vpop.f32.mrf.mxu1 }
 0x103   : > { %v17597_v8 = vpop.f32.mrf.mxu0  ;;  %15476 = vmatmul.mubr.msk.bf16.gmra.mxu0 %vm3854_vm1, %v16778_v46  ;;  %v16784_v46 = vld [vmem:[%s17242_s29 + $0x200] sm:$0xff]  }
 0x104   : > { %25155 = vst [vmem:[#allocation2_spill] sm:$0xff] %v17597_v8  ;;  %v17608_v18 = vpop.f32.mrf.mxu1  ;;  %16116 = vmatmul.mubr.msk.bf16.gmra.mxu1 %vm3854_vm1, %v16779_v50  ;;  %15479 = vmatprep.mubr.msk.bf16.mxu0 %vm3854_vm1, %v16780_v58  ;;  %v17655_v58 = vadd.f32 %v17577_v39, %v17475_v54  ;;  %v17671_v50 = vadd.f32 %v17484_v59, %v17577_v39 }
 0x105   : > { %25156 = vst [vmem:[#allocation3_spill] sm:$0xff] %v17608_v18  ;;  %v17620_v41 = vpop.f32.mrf.mxu0  ;;  %16119 = vmatprep.mubr.msk.bf16.mxu1 %vm3854_vm1, %v16781_v62  ;;  %v17659_v62 = vadd.f32 %v17577_v39, %v17478_v55  ;;  %v17693_v55 = vadd.f32 %v17492_v0, %v17577_v39  ;;  %v17702_v59 = vadd.f32 %v17495_v1, %v17577_v39  ;;  %v16791_v18 = vld [vmem:[%s17242_s29 + $0xc18] sm:$0xff]  }
 0x106   : > { %25157 = vst [vmem:[#allocation4_spill] sm:$0xff] %v17620_v41  ;;  %v17636_v30 = vpop.f32.mrf.mxu1  ;;  %v17716_v1 = vadd.f32 %v17577_v39, %v17502_v3  ;;  %v17737_v3 = vadd.f32 %v17577_v39, %v17514_v11  ;;  %v16789_v11 = vld [vmem:[%s17242_s29 + $0xc10] sm:$0xff]  }
 0x107   : > { %25158 = vst [vmem:[#allocation5_spill] sm:$0xff] %v17636_v30  ;;  %v17648_v49 = vpop.f32.mrf.mxu0  ;;  %v17733_v30 = vadd.f32 %v17577_v39, %v17511_v9  ;;  %v17751_v9 = vadd.f32 %v17519_v13, %v17577_v39  ;;  %v17785_v13 = vadd.f32 %v17577_v39, %v17535_v21  ;;  %v17800_v21 = vadd.f32 %v17540_v24, %v17577_v39 }
 0x108   : > { %25159 = vst [vmem:[#allocation6_spill] sm:$0xff] %v17648_v49  ;;  %v17661_v52 = vpop.f32.mrf.mxu1  ;;  %v17667_v49 = vadd.f32 %v17481_v57, %v17577_v39  ;;  %v16786_v57 = vld [vmem:[%s17242_s29 + $0x208] sm:$0xff]  }
 0x109   : > { %25160 = vst [vmem:[#allocation7_spill] sm:$0xff] %v17661_v52  ;;  %v17673_v54 = vpop.f32.mrf.mxu0  ;;  %25174 = vst [vmem:[#allocation21_spill] sm:$0xff] %v17785_v13 }
 0x10a   : > { %25161 = vst [vmem:[#allocation8_spill] sm:$0xff] %v17673_v54  ;;  %v17683_v53 = vpop.f32.mrf.mxu1  ;;  %v17689_v54 = vadd.f32 %v17577_v39, %v17490_v63  ;;  %v17706_v63 = vadd.f32 %v17577_v39, %v17499_v2  ;;  %v17720_v2 = vadd.f32 %v17505_v5, %v17577_v39 }
 0x10b   : > { %25162 = vst [vmem:[#allocation9_spill] sm:$0xff] %v17683_v53  ;;  %v17695_v52 = vpop.f32.mrf.mxu0  ;;  %15480 = vmatmul.mubr.msk.bf16.gmra.mxu0 %vm3854_vm1, %v16782_v42  ;;  %v16787_v42 = vld [vmem:[%s17242_s29 + $0xc08] sm:$0xff]   ;;  %v17809_v53 = vadd.f32 %v17543_v25, %v17577_v39  ;;  %v17821_v25 = vadd.f32 %v17577_v39, %v17547_v26 }
 0x10c   : > { %25163 = vst [vmem:[#allocation10_spill] sm:$0xff] %v17695_v52  ;;  %v17708_v0 = vpop.f32.mrf.mxu1  ;;  %16120 = vmatmul.mubr.msk.bf16.gmra.mxu1 %vm3854_vm1, %v16783_v45  ;;  %15483 = vmatprep.mubr.msk.bf16.mxu0 %vm3854_vm1, %v16784_v46  ;;  %v17729_v46 = vadd.f32 %v17508_v7, %v17577_v39  ;;  %v17747_v7 = vadd.f32 %v17516_v12, %v17577_v39 }
 0x10d   : > { %25164 = vst [vmem:[#allocation11_spill] sm:$0xff] %v17708_v0  ;;  %v17722_v61 = vpop.f32.mrf.mxu0  ;;  %16123 = vmatprep.mubr.msk.bf16.mxu1 %vm3854_vm1, %v16785_v51  ;;  %v17759_v52 = vadd.f32 %v17577_v39, %v17523_v14  ;;  %v17763_v45 = vadd.f32 %v17577_v39, %v17526_v15 }
 0x10e   : > { %25165 = vst [vmem:[#allocation12_spill] sm:$0xff] %v17722_v61  ;;  %v17739_v5 = vpop.f32.mrf.mxu1  ;;  %v16788_v61 = vld [vmem:[%s17242_s29 + $0x210] sm:$0xff]  }
 0x10f   : > { %25166 = vst [vmem:[#allocation13_spill] sm:$0xff] %v17739_v5  ;;  %v17753_v0 = vpop.f32.mrf.mxu0  ;;  %25168 = vst [vmem:[#allocation15_spill] sm:$0xff] %v17759_v52  ;;  %v17775_v5 = vadd.f32 %v17532_v19, %v17577_v39  ;;  %v16793_v52 = vld [vmem:[%s17242_s29 + $0xc20] sm:$0xff]  }
 0x110   : > { %25167 = vst [vmem:[#allocation14_spill] sm:$0xff] %v17753_v0  ;;  %25169 = vst [vmem:[#allocation16_spill] sm:$0xff] %v17763_v45  ;;  %v17765_v12 = vpop.f32.mrf.mxu1  ;;  %v17771_v0 = vadd.f32 %v17529_v17, %v17577_v39 }
 0x111   : > { %25170 = vst [vmem:[#allocation17_spill] sm:$0xff] %v17765_v12  ;;  %25172 = vst [vmem:[#allocation19_spill] sm:$0xff] %v17775_v5  ;;  %v17777_v14 = vpop.f32.mrf.mxu0 }
 0x112   : > { %25171 = vst [vmem:[#allocation18_spill] sm:$0xff] %v17771_v0  ;;  %25173 = vst [vmem:[#allocation20_spill] sm:$0xff] %v17777_v14  ;;  %v17787_v51 = vpop.f32.mrf.mxu1  ;;  %v17793_v14 = vadd.f32 %v17577_v39, %v17538_v23  ;;  %v16792_v23 = vld [vmem:[%s17242_s29 + $0x220] sm:$0xff]  }
 0x113   : > { %25175 = vst [vmem:[#allocation22_spill] sm:$0xff] %v17787_v51  ;;  %v15389_v15 = vpop.f32.mrf.mxu0  ;;  %15484 = vmatmul.mubr.msk.bf16.gmra.mxu0 %vm3854_vm1, %v16786_v57 }
 0x114   : > { %25176 = vst [vmem:[#allocation23_spill] sm:$0xff] %v17793_v14  ;;  %v5566_v17 = vadd.f32 %v15389_v15, %v17577_v39  ;;  %v16029_v19 = vpop.f32.mrf.mxu1  ;;  %16124 = vmatmul.mubr.msk.bf16.gmra.mxu1 %vm3854_vm1, %v16787_v42  ;;  %15487 = vmatprep.mubr.msk.bf16.mxu0 %vm3854_vm1, %v16788_v61  ;;  %v16790_v15 = vld [vmem:[%s17242_s29 + $0x218] sm:$0xff]   ;;  %v25178_v14 = vmax.f32 %v17602_v10, 0.0 }
 0x115   : > { %v8126_v24 = vadd.f32 %v16029_v19, %v17577_v39  ;;  %v5557_v12 = vpop.f32.mrf.mxu0  ;;  %16127 = vmatprep.mubr.msk.bf16.mxu1 %vm3854_vm1, %v16789_v11 }
 0x116   : > { %v9558_v41 = vmax.f32 %v5566_v17, 0.0  ;;  %v5558_v42 = vadd.f32 %v17577_v39, %v5557_v12  ;;  %v8117_v61 = vpop.f32.mrf.mxu1  ;;  %v25177_v17 = vmax.f32 %v17595_v6, 0.0  ;;  %v17839_v6 = vadd.f32 %v17577_v39, %v17550_v27 }
 0x117   : > { %v10198_v19 = vmax.f32 %v8126_v24, 0.0  ;;  %v8118_v5 = vadd.f32 %v17577_v39, %v8117_v61  ;;  %v15390_v11 = vpop.f32.mrf.mxu0 }
 0x118   : > { %v17827_v51 = vmax.f32 %v25177_v17, %v9558_v41  ;;  %v9556_v12 = vmax.f32 %v5558_v42, 0.0  ;;  %v5569_v13 = vadd.f32 %v15390_v11, %v17577_v39  ;;  %v16030_v8 = vpop.f32.mrf.mxu1  ;;  %v25179_v41 = vmax.f32 %v17606_v16, 0.0 }
 0x119   : > { %v17833_v26 = vmax.f32 %v25178_v14, %v10198_v19  ;;  %v10196_v24 = vmax.f32 %v8118_v5, 0.0  ;;  %v8129_v61 = vadd.f32 %v16030_v8, %v17577_v39  ;;  %v5560_v45 = vpop.f32.mrf.mxu0  ;;  %v25180_v5 = vmax.f32 %v17614_v40, 0.0 }
 0x11a   : > { %v17843_v42 = vmax.f32 %v25179_v41, %v9556_v12  ;;  %v9559_v11 = vmax.f32 %v5569_v13, 0.0  ;;  %v5561_v17 = vadd.f32 %v17577_v39, %v5560_v45  ;;  %v8120_v57 = vpop.f32.mrf.mxu1  ;;  %v17855_v16 = vadd.f32 %v17553_v29, %v17577_v39 }
 0x11b   : > { %v17849_v14 = vmax.f32 %v25180_v5, %v10196_v24  ;;  %v10199_v8 = vmax.f32 %v8129_v61, 0.0  ;;  %v8121_v19 = vadd.f32 %v17577_v39, %v8120_v57  ;;  %v15393_v27 = vpop.f32.mrf.mxu0  ;;  %15488 = vmatmul.mubr.msk.bf16.gmra.mxu0 %vm3854_vm1, %v16790_v15  ;;  %v25182_v45 = vmax.f32 %v17618_v20, 0.0 }
 0x11c   : > { %v9557_v12 = vmax.f32 %v5561_v17, 0.0  ;;  %v5582_v40 = vadd.f32 %v15393_v27, %v17577_v39  ;;  %v16033_v24 = vpop.f32.mrf.mxu1  ;;  %16128 = vmatmul.mubr.msk.bf16.gmra.mxu1 %vm3854_vm1, %v16791_v18  ;;  %15491 = vmatprep.mubr.msk.bf16.mxu0 %vm3854_vm1, %v16792_v23  ;;  %v17866_v57 = vadd.f32 %v17556_v31, %v17577_v39  ;;  %v25183_v29 = vmax.f32 %v17626_v22, 0.0  ;;  %v16796_v27 = vld [vmem:[%s17242_s29 + $0x230] sm:$0xff]  }
 0x11d   : > { %25181 = vst [vmem:[#allocation24_spill] sm:$0xff] %v17849_v14  ;;  %v17859_v13 = vmax.f32 %v25182_v45, %v9559_v11  ;;  %v10197_v20 = vmax.f32 %v8121_v19, 0.0  ;;  %v8142_v61 = vadd.f32 %v16033_v24, %v17577_v39  ;;  %v5573_v41 = vpop.f32.mrf.mxu0  ;;  %16131 = vmatprep.mubr.msk.bf16.mxu1 %vm3854_vm1, %v16793_v52  ;;  %v16794_v11 = vld [vmem:[%s17242_s29 + $0x228] sm:$0xff]   ;;  %v25184_v23 = vmax.f32 %v17630_v28, 0.0 }
 0x11e   : > { %v17870_v15 = vmax.f32 %v25183_v29, %v10199_v8  ;;  %v9562_v31 = vmax.f32 %v5582_v40, 0.0  ;;  %v5574_v5 = vadd.f32 %v17577_v39, %v5573_v41  ;;  %v8133_v22 = vpop.f32.mrf.mxu1  ;;  %v16795_v8 = vld [vmem:[%s17242_s29 + $0xc28] sm:$0xff]   ;;  %v17885_v19 = vadd.f32 %v17577_v39, %v17559_v33 }
 0x11f   : > { %v17878_v17 = vmax.f32 %v25184_v23, %v9557_v12  ;;  %v25185_v45 = vmax.f32 %v17634_v43, 0.0  ;;  %v10202_v24 = vmax.f32 %v8142_v61, 0.0  ;;  %v8134_v29 = vadd.f32 %v17577_v39, %v8133_v22  ;;  %v15394_v28 = vpop.f32.mrf.mxu0  ;;  %v16797_v12 = vld [vmem:[%s17242_s29 + $0xc30] sm:$0xff]  }
 0x120   : > { %v25187_v41 = vmax.f32 %v17642_v34, 0.0  ;;  %v9560_v18 = vmax.f32 %v5574_v5, 0.0  ;;  %v5585_v10 = vadd.f32 %v15394_v28, %v17577_v39  ;;  %v16034_v33 = vpop.f32.mrf.mxu1  ;;  %v25188_v43 = vmax.f32 %v17646_v47, 0.0 }
 0x121   : > { %v17889_v52 = vmax.f32 %v25185_v45, %v10197_v20  ;;  %v10200_v61 = vmax.f32 %v8134_v29, 0.0  ;;  %v8145_v22 = vadd.f32 %v16034_v33, %v17577_v39  ;;  %v5576_v45 = vpop.f32.mrf.mxu0  ;;  %v17907_v40 = vadd.f32 %v17577_v39, %v17562_v35 }
 0x122   : > { %v17896_v23 = vmax.f32 %v25187_v41, %v9562_v31  ;;  %v17902_v20 = vmax.f32 %v25188_v43, %v10202_v24  ;;  %v25190_v34 = vmax.f32 %v17655_v58, 0.0  ;;  %v9563_v5 = vmax.f32 %v5585_v10, 0.0  ;;  %v8136_v41 = vpop.f32.mrf.mxu1 }
 0x123   : > { %25186 = vst [vmem:[#allocation25_spill] sm:$0xff] %v17889_v52  ;;  %v5577_v28 = vadd.f32 %v17577_v39, %v5576_v45  ;;  %v25192_v24 = vmax.f32 %v17659_v62, 0.0  ;;  %v10203_v33 = vmax.f32 %v8145_v22, 0.0  ;;  %v8137_v43 = vadd.f32 %v17577_v39, %v8136_v41  ;;  %v15397_v35 = vpop.f32.mrf.mxu0  ;;  %15492 = vmatmul.mubr.msk.bf16.gmra.mxu0 %vm3854_vm1, %v16794_v11 }
 0x124   : > { %25189 = vst [vmem:[#allocation26_spill] sm:$0xff] %v17902_v20  ;;  %v17911_v31 = vmax.f32 %v25190_v34, %v9560_v18  ;;  %v17923_v58 = vadd.f32 %v17564_v36, %v17577_v39  ;;  %v25194_v10 = vmax.f32 %v17667_v49, 0.0  ;;  %v5598_v62 = vadd.f32 %v15397_v35, %v17577_v39  ;;  %16132 = vmatmul.mubr.msk.bf16.gmra.mxu1 %vm3854_vm1, %v16795_v8  ;;  %v16800_v35 = vld [vmem:[%s17242_s29 + $0x240] sm:$0xff]  }
 0x125   : > { %v17917_v29 = vmax.f32 %v25192_v24, %v10200_v61  ;;  %v9561_v45 = vmax.f32 %v5577_v28, 0.0  ;;  %v16037_v61 = vpop.f32.mrf.mxu1  ;;  %15495 = vmatprep.mubr.msk.bf16.mxu0 %vm3854_vm1, %v16796_v27  ;;  %v17934_v11 = vadd.f32 %v17567_v37, %v17577_v39  ;;  %v25196_v36 = vmax.f32 %v17671_v50, 0.0  ;;  %16135 = vmatprep.mubr.msk.bf16.mxu1 %vm3854_vm1, %v16797_v12  ;;  %v16798_v28 = vld [vmem:[%s17242_s29 + $0x238] sm:$0xff]  }
 0x126   : > { %25191 = vst [vmem:[#allocation27_spill] sm:$0xff] %v17911_v31  ;;  %v17927_v18 = vmax.f32 %v25194_v10, %v9563_v5  ;;  %v10201_v49 = vmax.f32 %v8137_v43, 0.0  ;;  %v8158_v34 = vadd.f32 %v16037_v61, %v17577_v39  ;;  %v5589_v5 = vpop.f32.mrf.mxu0  ;;  %v25198_v27 = vmax.f32 %v17681_v32, 0.0 }
 0x127   : > { %25193 = vst [vmem:[#allocation28_spill] sm:$0xff] %v17917_v29  ;;  %v17938_v22 = vmax.f32 %v25196_v36, %v10203_v33  ;;  %v9566_v37 = vmax.f32 %v5598_v62, 0.0  ;;  %v5590_v24 = vadd.f32 %v17577_v39, %v5589_v5  ;;  %v8149_v50 = vpop.f32.mrf.mxu1  ;;  %v16799_v33 = vld [vmem:[%s17242_s29 + $0xc38] sm:$0xff]   ;;  %v17953_v43 = vadd.f32 %v17577_v39, %v17571_v38 }
 0x128   : > { %25195 = vst [vmem:[#allocation29_spill] sm:$0xff] %v17927_v18  ;;  %v17946_v41 = vmax.f32 %v25198_v27, %v9561_v45  ;;  %v25200_v10 = vmax.f32 %v17689_v54, 0.0  ;;  %v10206_v61 = vmax.f32 %v8158_v34, 0.0  ;;  %v8150_v36 = vadd.f32 %v17577_v39, %v8149_v50  ;;  %v15398_v32 = vpop.f32.mrf.mxu0  ;;  %v16801_v45 = vld [vmem:[%s17242_s29 + $0xc40] sm:$0xff]  }
 0x129   : > { %25197 = vst [vmem:[#allocation30_spill] sm:$0xff] %v17938_v22  ;;  %v25202_v5 = vmax.f32 %v17693_v55, 0.0  ;;  %v9564_v8 = vmax.f32 %v5590_v24, 0.0  ;;  %v5601_v47 = vadd.f32 %v15398_v32, %v17577_v39  ;;  %v16038_v38 = vpop.f32.mrf.mxu1  ;;  %v25204_v54 = vmax.f32 %v17702_v59, 0.0 }
 0x12a   : > { %25199 = vst [vmem:[#allocation31_spill] sm:$0xff] %v17946_v41  ;;  %v17957_v12 = vmax.f32 %v25200_v10, %v10201_v49  ;;  %v10204_v34 = vmax.f32 %v8150_v36, 0.0  ;;  %v8161_v50 = vadd.f32 %v16038_v38, %v17577_v39  ;;  %v5592_v10 = vpop.f32.mrf.mxu0  ;;  %v17975_v62 = vadd.f32 %v17577_v39, %v17579_v44 }
 0x12b   : > { %v17964_v27 = vmax.f32 %v25202_v5, %v9566_v37  ;;  %v17970_v49 = vmax.f32 %v25204_v54, %v10206_v61  ;;  %v25206_v55 = vmax.f32 %v17706_v63, 0.0  ;;  %v9567_v24 = vmax.f32 %v5601_v47, 0.0  ;;  %v8152_v5 = vpop.f32.mrf.mxu1  ;;  %15496 = vmatmul.mubr.msk.bf16.gmra.mxu0 %vm3854_vm1, %v16798_v28 }
 0x12c   : > { %25201 = vst [vmem:[#allocation32_spill] sm:$0xff] %v17957_v12  ;;  %v5593_v32 = vadd.f32 %v17577_v39, %v5592_v10  ;;  %v25208_v61 = vmax.f32 %v17716_v1, 0.0  ;;  %v10207_v38 = vmax.f32 %v8161_v50, 0.0  ;;  %v8153_v54 = vadd.f32 %v17577_v39, %v8152_v5  ;;  %v15401_v44 = vpop.f32.mrf.mxu0  ;;  %16136 = vmatmul.mubr.msk.bf16.gmra.mxu1 %vm3854_vm1, %v16799_v33  ;;  %15499 = vmatprep.mubr.msk.bf16.mxu0 %vm3854_vm1, %v16800_v35 }
 0x12d   : > { %25203 = vst [vmem:[#allocation33_spill] sm:$0xff] %v17964_v27  ;;  %25205 = vst [vmem:[#allocation34_spill] sm:$0xff] %v17970_v49  ;;  %v17979_v37 = vmax.f32 %v25206_v55, %v9564_v8  ;;  %v17991_v63 = vadd.f32 %v17582_v48, %v17577_v39  ;;  %v25210_v47 = vmax.f32 %v17720_v2, 0.0  ;;  %v5614_v1 = vadd.f32 %v15401_v44, %v17577_v39  ;;  %v16804_v44 = vld [vmem:[%s17242_s29 + $0x250] sm:$0xff]  }
 0x12e   : > { %v17985_v36 = vmax.f32 %v25208_v61, %v10204_v34  ;;  %v9565_v10 = vmax.f32 %v5593_v32, 0.0  ;;  %v16041_v34 = vpop.f32.mrf.mxu1  ;;  %v18002_v28 = vadd.f32 %v17585_v56, %v17577_v39  ;;  %v25212_v48 = vmax.f32 %v17729_v46, 0.0  ;;  %16139 = vmatprep.mubr.msk.bf16.mxu1 %vm3854_vm1, %v16801_v45  ;;  %v16802_v32 = vld [vmem:[%s17242_s29 + $0x248] sm:$0xff]  }
 0x12f   : > { %25207 = vst [vmem:[#allocation35_spill] sm:$0xff] %v17979_v37  ;;  %v17995_v8 = vmax.f32 %v25210_v47, %v9567_v24  ;;  %v10205_v2 = vmax.f32 %v8153_v54, 0.0  ;;  %v8174_v55 = vadd.f32 %v16041_v34, %v17577_v39  ;;  %v5605_v24 = vpop.f32.mrf.mxu0  ;;  %v25214_v35 = vmax.f32 %v17733_v30, 0.0  ;;  %v16840_v37 = vld [vmem:[%s17242_s29 + $0x2e0] sm:$0xff]  }
 0x130   : > { %25209 = vst [vmem:[#allocation36_spill] sm:$0xff] %v17985_v36  ;;  %v18006_v50 = vmax.f32 %v25212_v48, %v10207_v38  ;;  %v9570_v56 = vmax.f32 %v5614_v1, 0.0  ;;  %v5606_v61 = vadd.f32 %v17577_v39, %v5605_v24  ;;  %v8165_v46 = vpop.f32.mrf.mxu1  ;;  %v16803_v38 = vld [vmem:[%s17242_s29 + $0xc48] sm:$0xff]   ;;  %v18021_v54 = vadd.f32 %v17577_v39, %v17588_v60 }
 0x131   : > { %25211 = vst [vmem:[#allocation37_spill] sm:$0xff] %v17995_v8  ;;  %v18014_v5 = vmax.f32 %v25214_v35, %v9565_v10  ;;  %v25216_v47 = vmax.f32 %v17737_v3, 0.0  ;;  %v10210_v34 = vmax.f32 %v8174_v55, 0.0  ;;  %v8166_v48 = vadd.f32 %v17577_v39, %v8165_v46  ;;  %v15402_v30 = vpop.f32.mrf.mxu0  ;;  %v16805_v10 = vld [vmem:[%s17242_s29 + $0xc50] sm:$0xff]  }
 0x132   : > { %25213 = vst [vmem:[#allocation38_spill] sm:$0xff] %v18006_v50  ;;  %v25218_v24 = vmax.f32 %v17747_v7, 0.0  ;;  %v9568_v33 = vmax.f32 %v5606_v61, 0.0  ;;  %v5617_v59 = vadd.f32 %v15402_v30, %v17577_v39  ;;  %v16042_v60 = vpop.f32.mrf.mxu1  ;;  %v25220_v3 = vmax.f32 %v17751_v9, 0.0  ;;  %v25222_v7 = vld [vmem:[#allocation15_spill] sm:$0xff] }
 0x133   : > { %25215 = vst [vmem:[#allocation39_spill] sm:$0xff] %v18014_v5  ;;  %v18025_v45 = vmax.f32 %v25216_v47, %v10205_v2  ;;  %v10208_v55 = vmax.f32 %v8166_v48, 0.0  ;;  %v8177_v46 = vadd.f32 %v16042_v60, %v17577_v39  ;;  %v5608_v47 = vpop.f32.mrf.mxu0  ;;  %v18043_v1 = vadd.f32 %v17577_v39, %v17591_v4  ;;  %15500 = vmatmul.mubr.msk.bf16.gmra.mxu0 %vm3854_vm1, %v16802_v32 }
 0x134   : > { %v18032_v35 = vmax.f32 %v25218_v24, %v9570_v56  ;;  %v18038_v2 = vmax.f32 %v25220_v3, %v10210_v34  ;;  %v25223_v56 = vmax.f32 %v25222_v7, 0.0  ;;  %v9571_v30 = vmax.f32 %v5617_v59, 0.0  ;;  %v8168_v0 = vpop.f32.mrf.mxu1  ;;  %v25225_v34 = vld [vmem:[#allocation16_spill] sm:$0xff]  ;;  %v25229_v59 = vld [vmem:[#allocation18_spill] sm:$0xff]  ;;  %16140 = vmatmul.mubr.msk.bf16.gmra.mxu1 %vm3854_vm1, %v16803_v38  ;;  %15503 = vmatprep.mubr.msk.bf16.mxu0 %vm3854_vm1, %v16804_v44 }
 0x135   : > { %25217 = vst [vmem:[#allocation40_spill] sm:$0xff] %v18025_v45  ;;  %v5609_v24 = vadd.f32 %v17577_v39, %v5608_v47  ;;  %v25226_v3 = vmax.f32 %v25225_v34, 0.0  ;;  %v10211_v60 = vmax.f32 %v8177_v46, 0.0  ;;  %v15405_v4 = vpop.f32.mrf.mxu0  ;;  %v25230_v47 = vmax.f32 %v25229_v59, 0.0  ;;  %v25233_v46 = vld [vmem:[#allocation19_spill] sm:$0xff]  ;;  %16143 = vmatprep.mubr.msk.bf16.mxu1 %vm3854_vm1, %v16805_v10  ;;  %v16806_v59 = vld [vmem:[%s17242_s29 + $0x258] sm:$0xff]  }
 0x136   : > { %25219 = vst [vmem:[#allocation41_spill] sm:$0xff] %v18032_v35  ;;  %25221 = vst [vmem:[#allocation42_spill] sm:$0xff] %v18038_v2  ;;  %v18047_v61 = vmax.f32 %v25223_v56, %v9568_v33  ;;  %v8169_v2 = vadd.f32 %v17577_v39, %v8168_v0  ;;  %v25228_v33 = vld [vmem:[#allocation2_spill] sm:$0xff]  ;;  %v5630_v34 = vadd.f32 %v15405_v4, %v17577_v39  ;;  %v25232_v0 = vld [vmem:[#allocation3_spill] sm:$0xff] }
 0x137   : > { %v18053_v48 = vmax.f32 %v25226_v3, %v10208_v55  ;;  %v18059_v7 = vadd.f32 %v25228_v33, %v17577_v39  ;;  %v18063_v56 = vmax.f32 %v25230_v47, %v9571_v30  ;;  %v9569_v9 = vmax.f32 %v5609_v24, 0.0  ;;  %v16045_v55 = vpop.f32.mrf.mxu1  ;;  %v5621_v4 = vpop.f32.mrf.mxu0  ;;  %v25236_v47 = vld [vmem:[#allocation21_spill] sm:$0xff] }
 0x138   : > { %25224 = vst [vmem:[#allocation15_spill] sm:$0xff] %v18047_v61  ;;  %v18070_v32 = vadd.f32 %v25232_v0, %v17577_v39  ;;  %v25234_v3 = vmax.f32 %v25233_v46, 0.0  ;;  %v10209_v30 = vmax.f32 %v8169_v2, 0.0  ;;  %v8190_v24 = vadd.f32 %v16045_v55, %v17577_v39  ;;  %v25239_v2 = vld [vmem:[#allocation4_spill] sm:$0xff] }
 0x139   : > { %25227 = vst [vmem:[#allocation16_spill] sm:$0xff] %v18053_v48  ;;  %25231 = vst [vmem:[#allocation2_spill] sm:$0xff] %v18063_v56  ;;  %v25237_v44 = vmax.f32 %v25236_v47, 0.0  ;;  %v9574_v0 = vmax.f32 %v5630_v34, 0.0  ;;  %v5622_v48 = vadd.f32 %v17577_v39, %v5621_v4  ;;  %v8181_v46 = vpop.f32.mrf.mxu1  ;;  %v18089_v55 = vadd.f32 %v17577_v39, %v25239_v2  ;;  %v15406_v47 = vpop.f32.mrf.mxu0 }
 0x13a   : > { %v18074_v33 = vmax.f32 %v25234_v3, %v10211_v60  ;;  %v16807_v60 = vld [vmem:[%s17242_s29 + $0xc58] sm:$0xff]   ;;  %v16808_v3 = vld [vmem:[%s17242_s29 + $0x260] sm:$0xff]   ;;  %v10214_v35 = vmax.f32 %v8190_v24, 0.0  ;;  %v8182_v38 = vadd.f32 %v17577_v39, %v8181_v46  ;;  %v25243_v4 = vmax.f32 %v17800_v21, 0.0 }
 0x13b   : > { %v18082_v56 = vmax.f32 %v25237_v44, %v9569_v9  ;;  %v16809_v9 = vld [vmem:[%s17242_s29 + $0xc60] sm:$0xff]   ;;  %v5633_v45 = vadd.f32 %v15406_v47, %v17577_v39  ;;  %v16046_v2 = vpop.f32.mrf.mxu1  ;;  %v5624_v46 = vpop.f32.mrf.mxu0  ;;  %v25248_v21 = vmax.f32 %v17821_v25, 0.0  ;;  %15504 = vmatmul.mubr.msk.bf16.gmra.mxu0 %vm3854_vm1, %v16806_v59  ;;  %v25255_v59 = vld [vmem:[#allocation7_spill] sm:$0xff] }
 0x13c   : > { %25235 = vst [vmem:[#allocation18_spill] sm:$0xff] %v18074_v33  ;;  %v25240_v33 = vld [vmem:[#allocation23_spill] sm:$0xff]  ;;  %v18100_v44 = vmax.f32 %v25243_v4, %v9574_v0  ;;  %v8193_v24 = vadd.f32 %v16046_v2, %v17577_v39  ;;  %v5625_v47 = vadd.f32 %v17577_v39, %v5624_v46  ;;  %v25252_v25 = vld [vmem:[#allocation6_spill] sm:$0xff]  ;;  %16144 = vmatmul.mubr.msk.bf16.gmra.mxu1 %vm3854_vm1, %v16807_v60 }
 0x13d   : > { %25238 = vst [vmem:[#allocation3_spill] sm:$0xff] %v18082_v56  ;;  %v25241_v61 = vmax.f32 %v25240_v33, 0.0  ;;  %v9572_v56 = vmax.f32 %v5622_v48, 0.0  ;;  %v9575_v0 = vmax.f32 %v5633_v45, 0.0  ;;  %v8184_v4 = vpop.f32.mrf.mxu1  ;;  %v25253_v45 = vmax.f32 %v17855_v16, 0.0  ;;  %15507 = vmatprep.mubr.msk.bf16.mxu0 %vm3854_vm1, %v16808_v3  ;;  %16147 = vmatprep.mubr.msk.bf16.mxu1 %vm3854_vm1, %v16809_v9 }
 0x13e   : > { %25244 = vst [vmem:[#allocation21_spill] sm:$0xff] %v18100_v44  ;;  %v10215_v2 = vmax.f32 %v8193_v24, 0.0  ;;  %v18138_v24 = vadd.f32 %v25255_v59, %v17577_v39  ;;  %v25258_v3 = vmax.f32 %v17885_v19, 0.0 }
 0x13f   : > { %v18093_v10 = vmax.f32 %v25241_v61, %v10209_v30  ;;  %v25245_v61 = vmax.f32 %v17809_v53, 0.0  ;;  %v10212_v30 = vmax.f32 %v8182_v38, 0.0  ;;  %v18115_v48 = vmax.f32 %v25248_v21, %v9572_v56 }
 0x140   : > { %v18127_v56 = vadd.f32 %v25252_v25, %v17577_v39  ;;  %v18131_v46 = vmax.f32 %v25253_v45, %v9575_v0  ;;  %v9573_v21 = vmax.f32 %v5625_v47, 0.0  ;;  %v25261_v53 = vmax.f32 %v17907_v40, 0.0 }
 0x141   : > { %25242 = vst [vmem:[#allocation19_spill] sm:$0xff] %v18093_v10  ;;  %v18106_v33 = vmax.f32 %v25245_v61, %v10214_v35  ;;  %v25247_v10 = vld [vmem:[#allocation5_spill] sm:$0xff]  ;;  %25249 = vst [vmem:[#allocation23_spill] sm:$0xff] %v18115_v48  ;;  %v25250_v35 = vmax.f32 %v17839_v6, 0.0  ;;  %v8185_v61 = vadd.f32 %v17577_v39, %v8184_v4  ;;  %v25256_v4 = vmax.f32 %v17866_v57, 0.0 }
 0x142   : > { %v18111_v34 = vadd.f32 %v17577_v39, %v25247_v10  ;;  %v15409_v10 = vpop.f32.mrf.mxu0  ;;  %25254 = vst [vmem:[#allocation6_spill] sm:$0xff] %v18131_v46  ;;  %v18150_v25 = vmax.f32 %v25258_v3, %v9573_v21  ;;  %v16813_v21 = vld [vmem:[%s17242_s29 + $0xc70] sm:$0xff]   ;;  %v25265_v40 = vmax.f32 %v17934_v11, 0.0 }
 0x143   : > { %25246 = vst [vmem:[#allocation4_spill] sm:$0xff] %v18106_v33  ;;  %v18121_v38 = vmax.f32 %v25250_v35, %v10212_v30  ;;  %v5646_v6 = vadd.f32 %v15409_v10, %v17577_v39  ;;  %v16049_v30 = vpop.f32.mrf.mxu1  ;;  %v18142_v35 = vmax.f32 %v25256_v4, %v10215_v2  ;;  %v10213_v16 = vmax.f32 %v8185_v61, 0.0  ;;  %v16810_v10 = vld [vmem:[%s17242_s29 + $0x268] sm:$0xff]   ;;  %v16812_v4 = vld [vmem:[%s17242_s29 + $0x270] sm:$0xff]  }
 0x144   : > { %v8206_v0 = vadd.f32 %v16049_v30, %v17577_v39  ;;  %v5637_v47 = vpop.f32.mrf.mxu0  ;;  %25259 = vst [vmem:[#allocation43_spill] sm:$0xff] %v18150_v25  ;;  %v16811_v2 = vld [vmem:[%s17242_s29 + $0xc68] sm:$0xff]   ;;  %v25260_v61 = vld [vmem:[#allocation8_spill] sm:$0xff]  ;;  %15508 = vmatmul.mubr.msk.bf16.gmra.mxu0 %vm3854_vm1, %v16810_v10 }
 0x145   : > { %25251 = vst [vmem:[#allocation5_spill] sm:$0xff] %v18121_v38  ;;  %25257 = vst [vmem:[#allocation7_spill] sm:$0xff] %v18142_v35  ;;  %v9578_v45 = vmax.f32 %v5646_v6, 0.0  ;;  %v5638_v59 = vadd.f32 %v17577_v39, %v5637_v47  ;;  %v8197_v57 = vpop.f32.mrf.mxu1  ;;  %v18157_v30 = vadd.f32 %v17577_v39, %v25260_v61  ;;  %v18161_v9 = vmax.f32 %v25261_v53, %v10213_v16  ;;  %v25275_v10 = vld [vmem:[#allocation11_spill] sm:$0xff]  ;;  %v16837_v38 = vld [vmem:[%s17242_s29 + $0xcd0] sm:$0xff]  }
 0x146   : > { %v10218_v5 = vmax.f32 %v8206_v0, 0.0  ;;  %v8198_v60 = vadd.f32 %v17577_v39, %v8197_v57  ;;  %v15410_v19 = vpop.f32.mrf.mxu0  ;;  %v25263_v47 = vmax.f32 %v17923_v58, 0.0  ;;  %v25268_v58 = vmax.f32 %v17953_v43, 0.0  ;;  %v18196_v43 = vld [vmem:[%s24956_s2] ss:$0 sm:$0xff]  ;;  %16148 = vmatmul.mubr.msk.bf16.gmra.mxu1 %vm3854_vm1, %v16811_v2  ;;  %15511 = vmatprep.mubr.msk.bf16.mxu0 %vm3854_vm1, %v16812_v4 }
 0x147   : > { %25262 = vst [vmem:[#allocation8_spill] sm:$0xff] %v18161_v9  ;;  %v9576_v25 = vmax.f32 %v5638_v59, 0.0  ;;  %v5649_v35 = vadd.f32 %v15410_v19, %v17577_v39  ;;  %v16050_v61 = vpop.f32.mrf.mxu1  ;;  %v25267_v9 = vld [vmem:[#allocation9_spill] sm:$0xff]  ;;  %16151 = vmatprep.mubr.msk.bf16.mxu1 %vm3854_vm1, %v16813_v21  ;;  %v25278_v4 = vmax.f32 %v18021_v54, 0.0 }
 0x148   : > { %v18168_v3 = vmax.f32 %v25263_v47, %v9578_v45  ;;  %v18174_v53 = vmax.f32 %v25265_v40, %v10218_v5  ;;  %v10216_v16 = vmax.f32 %v8198_v60, 0.0  ;;  %v8209_v0 = vadd.f32 %v16050_v61, %v17577_v39  ;;  %v5640_v57 = vpop.f32.mrf.mxu0 }
 0x149   : > { %v18179_v6 = vadd.f32 %v17577_v39, %v25267_v9  ;;  %v18183_v45 = vmax.f32 %v25268_v58, %v9576_v25  ;;  %v9579_v59 = vmax.f32 %v5649_v35, 0.0  ;;  %v5641_v19 = vadd.f32 %v17577_v39, %v5640_v57  ;;  %v8200_v47 = vpop.f32.mrf.mxu1  ;;  %v25272_v35 = vld [vmem:[#allocation10_spill] sm:$0xff] }
 0x14a   : > { %25264 = vst [vmem:[#allocation44_spill] sm:$0xff] %v18168_v3  ;;  %25266 = vst [vmem:[#allocation45_spill] sm:$0xff] %v18174_v53  ;;  %v25270_v5 = vmax.f32 %v17975_v62, 0.0  ;;  %v10219_v61 = vmax.f32 %v8209_v0, 0.0  ;;  %v8201_v40 = vadd.f32 %v17577_v39, %v8200_v47  ;;  %v15413_v46 = vpop.f32.mrf.mxu0  ;;  %v18200_v25 = vadd.f32 %v18196_v43, %v25272_v35 }
 0x14b   : > { %25269 = vst [vmem:[#allocation9_spill] sm:$0xff] %v18183_v45  ;;  %v25273_v62 = vmax.f32 %v17991_v63, 0.0  ;;  %v5662_v39 = vadd.f32 %v18196_v43, %v15413_v46  ;;  %v16053_v0 = vpop.f32.mrf.mxu1  ;;  %v18211_v57 = vadd.f32 %v18196_v43, %v25275_v10  ;;  %v25276_v58 = vmax.f32 %v18002_v28, 0.0  ;;  %v16816_v10 = vld [vmem:[%s17242_s29 + $0x280] sm:$0xff]   ;;  %v16835_v45 = vld [vmem:[%s17242_s29 + $0xcc8] sm:$0xff]  }
 0x14c   : > { %v18189_v60 = vmax.f32 %v25270_v5, %v10216_v16  ;;  %v9577_v16 = vmax.f32 %v5641_v19, 0.0  ;;  %v10217_v63 = vmax.f32 %v8201_v40, 0.0  ;;  %v5653_v46 = vpop.f32.mrf.mxu0  ;;  %v16814_v19 = vld [vmem:[%s17242_s29 + $0x278] sm:$0xff]   ;;  %v10189_v2 = vmax.f32 %v18179_v6, 0.0  ;;  %v25280_v40 = vld [vmem:[#allocation12_spill] sm:$0xff] }
 0x14d   : > { %v18204_v9 = vmax.f32 %v25273_v62, %v9579_v59  ;;  %v18215_v47 = vmax.f32 %v25276_v58, %v10219_v61  ;;  %v8222_v59 = vadd.f32 %v18196_v43, %v16053_v0  ;;  %v9582_v35 = vmax.f32 %v5662_v39, 0.0  ;;  %v8213_v28 = vpop.f32.mrf.mxu1  ;;  %v16815_v61 = vld [vmem:[%s17242_s29 + $0xc78] sm:$0xff]   ;;  %15512 = vmatmul.mubr.msk.bf16.gmra.mxu0 %vm3854_vm1, %v16814_v19 }
 0x14e   : > { %25271 = vst [vmem:[#allocation46_spill] sm:$0xff] %v18189_v60  ;;  %v18223_v5 = vmax.f32 %v25278_v4, %v9577_v16  ;;  %v5654_v62 = vadd.f32 %v18196_v43, %v5653_v46  ;;  %v18230_v0 = vadd.f32 %v18196_v43, %v25280_v40  ;;  %v25281_v58 = vmax.f32 %v18043_v1, 0.0  ;;  %v15414_v54 = vpop.f32.mrf.mxu0  ;;  %v16817_v16 = vld [vmem:[%s17242_s29 + $0xc80] sm:$0xff]   ;;  %16152 = vmatmul.mubr.msk.bf16.gmra.mxu1 %vm3854_vm1, %v16815_v61 }
 0x14f   : > { %25274 = vst [vmem:[#allocation10_spill] sm:$0xff] %v18204_v9  ;;  %25277 = vst [vmem:[#allocation11_spill] sm:$0xff] %v18215_v47  ;;  %v10222_v11 = vmax.f32 %v8222_v59, 0.0  ;;  %v8214_v6 = vadd.f32 %v18196_v43, %v8213_v28  ;;  %v9554_v39 = vmax.f32 %v18200_v25, 0.0  ;;  %v25283_v46 = vmax.f32 %v18059_v7, 0.0  ;;  %v16054_v40 = vpop.f32.mrf.mxu1  ;;  %15515 = vmatprep.mubr.msk.bf16.mxu0 %vm3854_vm1, %v16816_v10  ;;  %16155 = vmatprep.mubr.msk.bf16.mxu1 %vm3854_vm1, %v16817_v16 }
 0x150   : > { %25279 = vst [vmem:[#allocation47_spill] sm:$0xff] %v18223_v5  ;;  %v18234_v21 = vmax.f32 %v25281_v58, %v10217_v63  ;;  %v9580_v5 = vmax.f32 %v5654_v62, 0.0  ;;  %v5665_v47 = vadd.f32 %v18196_v43, %v15414_v54  ;;  %v10194_v9 = vmax.f32 %v18211_v57, 0.0  ;;  %v5656_v58 = vpop.f32.mrf.mxu0 }
 0x151   : > { %v18241_v4 = vmax.f32 %v25283_v46, %v9582_v35  ;;  %v25285_v1 = vmax.f32 %v18070_v32, 0.0  ;;  %v10220_v59 = vmax.f32 %v8214_v6, 0.0  ;;  %v8225_v28 = vadd.f32 %v18196_v43, %v16054_v40  ;;  %v8216_v46 = vpop.f32.mrf.mxu1 }
 0x152   : > { %25282 = vst [vmem:[#allocation12_spill] sm:$0xff] %v18234_v21  ;;  %v25287_v21 = vld [vmem:[#allocation13_spill] sm:$0xff]  ;;  %v25288_v7 = vmax.f32 %v18089_v55, 0.0  ;;  %v9583_v62 = vmax.f32 %v5665_v47, 0.0  ;;  %v5657_v54 = vadd.f32 %v18196_v43, %v5656_v58  ;;  %v9552_v57 = vmax.f32 %v18230_v0, 0.0 }
 0x153   : > { %25284 = vst [vmem:[#allocation48_spill] sm:$0xff] %v18241_v4  ;;  %v18247_v63 = vmax.f32 %v25285_v1, %v10222_v11  ;;  %v8102_v25 = vadd.f32 %v18196_v43, %v25287_v21  ;;  %v25290_v32 = vmax.f32 %v18111_v34, 0.0  ;;  %v10223_v6 = vmax.f32 %v8225_v28, 0.0  ;;  %v15417_v1 = vpop.f32.mrf.mxu0  ;;  %v25292_v21 = vld [vmem:[#allocation14_spill] sm:$0xff]  ;;  %v16057_v34 = vpop.f32.mrf.mxu1  ;;  %v16834_v4 = vld [vmem:[%s17242_s29 + $0x2c8] sm:$0xff]  }
 0x154   : > { %v18254_v35 = vmax.f32 %v25288_v7, %v9580_v5  ;;  %v8217_v40 = vadd.f32 %v18196_v43, %v8216_v46  ;;  %v5553_v55 = vadd.f32 %v18196_v43, %v25292_v21  ;;  %v25293_v47 = vmax.f32 %v18127_v56, 0.0  ;;  %v25300_v21 = vld [vmem:[#allocation22_spill] sm:$0xff] }
 0x155   : > { %25286 = vst [vmem:[#allocation49_spill] sm:$0xff] %v18247_v63  ;;  %v18260_v11 = vmax.f32 %v25290_v32, %v10220_v59  ;;  %v9581_v58 = vmax.f32 %v5657_v54, 0.0  ;;  %v5678_v0 = vadd.f32 %v18196_v43, %v15417_v1  ;;  %v25295_v59 = vld [vmem:[#allocation17_spill] sm:$0xff]  ;;  %v25296_v19 = vmax.f32 %v18138_v24, 0.0  ;;  %v5669_v54 = vpop.f32.mrf.mxu0  ;;  %v8229_v24 = vpop.f32.mrf.mxu1 }
 0x156   : > { %25289 = vst [vmem:[#allocation13_spill] sm:$0xff] %v18254_v35  ;;  %v18268_v5 = vmax.f32 %v25293_v47, %v9583_v62  ;;  %v8113_v28 = vadd.f32 %v18196_v43, %v25295_v59  ;;  %v10221_v56 = vmax.f32 %v8217_v40, 0.0  ;;  %v8238_v62 = vadd.f32 %v18196_v43, %v16057_v34 }
 0x157   : > { %25291 = vst [vmem:[#allocation50_spill] sm:$0xff] %v18260_v11  ;;  %v18277_v7 = vmax.f32 %v25296_v19, %v10223_v6  ;;  %v10192_v46 = vmax.f32 %v8102_v25, 0.0  ;;  %v25298_v61 = vmax.f32 %v18157_v30, 0.0  ;;  %v9586_v10 = vmax.f32 %v5678_v0, 0.0  ;;  %v16818_v6 = vld [vmem:[%s17242_s29 + $0x288] sm:$0xff]   ;;  %v15418_v16 = vpop.f32.mrf.mxu0  ;;  %v16820_v19 = vld [vmem:[%s17242_s29 + $0x290] sm:$0xff]  }
 0x158   : > { %25294 = vst [vmem:[#allocation14_spill] sm:$0xff] %v18268_v5  ;;  %v5670_v1 = vadd.f32 %v18196_v43, %v5669_v54  ;;  %v8105_v40 = vadd.f32 %v18196_v43, %v25300_v21  ;;  %v18289_v47 = vmax.f32 %v10189_v2, %v10221_v56  ;;  %v10226_v34 = vmax.f32 %v8238_v62, 0.0  ;;  %v16819_v25 = vld [vmem:[%s17242_s29 + $0xc88] sm:$0xff]   ;;  %v25302_v30 = vld [vmem:[#allocation20_spill] sm:$0xff]  ;;  %15516 = vmatmul.mubr.msk.bf16.gmra.mxu0 %vm3854_vm1, %v16818_v6 }
 0x159   : > { %25297 = vst [vmem:[#allocation17_spill] sm:$0xff] %v18277_v7  ;;  %v18283_v32 = vmax.f32 %v25298_v61, %v9581_v58  ;;  %v8230_v59 = vadd.f32 %v18196_v43, %v8229_v24  ;;  %v5545_v58 = vadd.f32 %v18196_v43, %v25302_v30  ;;  %v18296_v0 = vmax.f32 %v9554_v39, %v9586_v10  ;;  %v16821_v7 = vld [vmem:[%s17242_s29 + $0xc90] sm:$0xff]   ;;  %v5672_v62 = vpop.f32.mrf.mxu0 }
 0x15a   : > { %25301 = vst [vmem:[#allocation22_spill] sm:$0xff] %v18289_v47  ;;  %v9584_v61 = vmax.f32 %v5670_v1, 0.0  ;;  %v5681_v54 = vadd.f32 %v18196_v43, %v15418_v16  ;;  %v10195_v5 = vmax.f32 %v8113_v28, 0.0  ;;  %v18300_v21 = vmax.f32 %v10194_v9, %v10226_v34  ;;  %16156 = vmatmul.mubr.msk.bf16.gmra.mxu1 %vm3854_vm1, %v16819_v25  ;;  %15519 = vmatprep.mubr.msk.bf16.mxu0 %vm3854_vm1, %v16820_v19  ;;  %v16823_v25 = vld [vmem:[%s17242_s29 + $0xc98] sm:$0xff]  }
 0x15b   : > { %25299 = vst [vmem:[#allocation51_spill] sm:$0xff] %v18283_v32  ;;  %25303 = vst [vmem:[#allocation20_spill] sm:$0xff] %v18296_v0  ;;  %v16058_v32 = vpop.f32.mrf.mxu1  ;;  %v10224_v2 = vmax.f32 %v8230_v59, 0.0  ;;  %v9555_v24 = vmax.f32 %v5553_v55, 0.0  ;;  %v5673_v30 = vadd.f32 %v18196_v43, %v5672_v62  ;;  %v10193_v10 = vmax.f32 %v8105_v40, 0.0  ;;  %v18309_v28 = vpop.f32.mrf.mxu0  ;;  %16159 = vmatprep.mubr.msk.bf16.mxu1 %vm3854_vm1, %v16821_v7 }
 0x15c   : > { %25304 = vst [vmem:[#allocation52_spill] sm:$0xff] %v18300_v21  ;;  %v8241_v56 = vadd.f32 %v18196_v43, %v16058_v32  ;;  %v18303_v47 = vmax.f32 %v9552_v57, %v9584_v61  ;;  %v9587_v11 = vmax.f32 %v5681_v54, 0.0  ;;  %v9553_v9 = vmax.f32 %v5545_v58, 0.0  ;;  %v16822_v61 = vld [vmem:[%s17242_s29 + $0x298] sm:$0xff]   ;;  %v16825_v54 = vld [vmem:[%s17242_s29 + $0xca0] sm:$0xff]  }
 0x15d   : > { %v8232_v39 = vpop.f32.mrf.mxu1  ;;  %v18306_v1 = vmax.f32 %v10192_v46, %v10224_v2  ;;  %v9585_v57 = vmax.f32 %v5673_v30, 0.0  ;;  %v18320_v34 = vpop.f32.mrf.mxu0  ;;  %v18422_v48 = vadd.f32 %v18196_v43, %v18309_v28 }
 0x15e   : > { %25305 = vst [vmem:[#allocation53_spill] sm:$0xff] %v18303_v47  ;;  %v10227_v16 = vmax.f32 %v8241_v56, 0.0  ;;  %v8233_v0 = vadd.f32 %v18196_v43, %v8232_v39  ;;  %v18312_v55 = vmax.f32 %v9555_v24, %v9587_v11  ;;  %v16826_v39 = vld [vmem:[%s17242_s29 + $0x2a8] sm:$0xff]  }
 0x15f   : > { %25306 = vst [vmem:[#allocation54_spill] sm:$0xff] %v18306_v1  ;;  %v18314_v32 = vpop.f32.mrf.mxu1  ;;  %v18323_v6 = vmax.f32 %v9553_v9, %v9585_v57  ;;  %v18329_v58 = vpop.f32.mrf.mxu0  ;;  %v16828_v9 = vld [vmem:[%s17242_s29 + $0x2b0] sm:$0xff]  }
 0x160   : > { %25307 = vst [vmem:[#allocation55_spill] sm:$0xff] %v18312_v55  ;;  %v18318_v46 = vmax.f32 %v10195_v5, %v10227_v16  ;;  %v10225_v40 = vmax.f32 %v8233_v0, 0.0  ;;  %v16824_v5 = vld [vmem:[%s17242_s29 + $0x2a0] sm:$0xff]   ;;  %15520 = vmatmul.mubr.msk.bf16.gmra.mxu0 %vm3854_vm1, %v16822_v61  ;;  %v16831_v55 = vld [vmem:[%s17242_s29 + $0xcb8] sm:$0xff]   ;;  %v18429_v44 = vadd.f32 %v18196_v43, %v18314_v32  ;;  %v18444_v50 = vadd.f32 %v18196_v43, %v18329_v58 }
 0x161   : > { %25309 = vst [vmem:[#allocation57_spill] sm:$0xff] %v18323_v6  ;;  %v18325_v11 = vpop.f32.mrf.mxu1  ;;  %v18336_v0 = vpop.f32.mrf.mxu0  ;;  %15523 = vmatprep.mubr.msk.bf16.mxu0 %vm3854_vm1, %v16824_v5  ;;  %v16830_v6 = vld [vmem:[%s17242_s29 + $0x2b8] sm:$0xff]  }
 0x162   : > { %25308 = vst [vmem:[#allocation56_spill] sm:$0xff] %v18318_v46  ;;  %v18327_v59 = vmax.f32 %v10193_v10, %v10225_v40  ;;  %16160 = vmatmul.mubr.msk.bf16.gmra.mxu1 %vm3854_vm1, %v16823_v25  ;;  %v16827_v10 = vld [vmem:[%s17242_s29 + $0xca8] sm:$0xff]   ;;  %v16829_v40 = vld [vmem:[%s17242_s29 + $0xcb0] sm:$0xff]   ;;  %v18440_v28 = vadd.f32 %v18196_v43, %v18325_v11  ;;  %v16839_v32 = vld [vmem:[%s17242_s29 + $0xcd8] sm:$0xff]  }
 0x163   : > { %v18333_v19 = vpop.f32.mrf.mxu1  ;;  %v18341_v2 = vpop.f32.mrf.mxu0  ;;  %16163 = vmatprep.mubr.msk.bf16.mxu1 %vm3854_vm1, %v16825_v54 }
 0x164   : > { %25310 = vst [vmem:[#allocation58_spill] sm:$0xff] %v18327_v59  ;;  %v18451_v8 = vadd.f32 %v18196_v43, %v18333_v19  ;;  %v18467_v49 = vadd.f32 %v18196_v43, %v18341_v2 }
 0x165   : > { %v18339_v7 = vpop.f32.mrf.mxu1  ;;  %v18348_v62 = vpop.f32.mrf.mxu0 }
 0x166   : > { %v18463_v58 = vadd.f32 %v18196_v43, %v18339_v7  ;;  %v18480_v11 = vadd.f32 %v18196_v43, %v18348_v62 }
 0x167   : > { %v18344_v56 = vpop.f32.mrf.mxu1  ;;  %v18353_v30 = vpop.f32.mrf.mxu0 }
 0x168   : > { %15524 = vmatmul.mubr.msk.bf16.gmra.mxu0 %vm3854_vm1, %v16826_v39  ;;  %v16832_v39 = vld [vmem:[%s17242_s29 + $0x2c0] sm:$0xff]   ;;  %v18471_v19 = vadd.f32 %v18196_v43, %v18344_v56  ;;  %v18492_v18 = vadd.f32 %v18196_v43, %v18353_v30  ;;  %v16842_v56 = vld [vmem:[%s17242_s29 + $0x2e8] sm:$0xff]  }
 0x169   : > { %v18351_v24 = vpop.f32.mrf.mxu1  ;;  %v18360_v57 = vpop.f32.mrf.mxu0  ;;  %15527 = vmatprep.mubr.msk.bf16.mxu0 %vm3854_vm1, %v16828_v9 }
 0x16a   : > { %16164 = vmatmul.mubr.msk.bf16.gmra.mxu1 %vm3854_vm1, %v16827_v10  ;;  %v16833_v10 = vld [vmem:[%s17242_s29 + $0xcc0] sm:$0xff]   ;;  %v18484_v7 = vadd.f32 %v18196_v43, %v18351_v24  ;;  %v18505_v22 = vadd.f32 %v18196_v43, %v18360_v57 }
 0x16b   : > { %v18357_v16 = vpop.f32.mrf.mxu1  ;;  %v18365_v25 = vpop.f32.mrf.mxu0  ;;  %16167 = vmatprep.mubr.msk.bf16.mxu1 %vm3854_vm1, %v16829_v40 }
 0x16c   : > { %25311 = vst [vmem:[#allocation59_spill] sm:$0xff] %v18484_v7  ;;  %v18496_v41 = vadd.f32 %v18196_v43, %v18357_v16  ;;  %25313 = vst [vmem:[#allocation61_spill] sm:$0xff] %v18505_v22  ;;  %v18520_v57 = vadd.f32 %v18196_v43, %v18365_v25  ;;  %v16843_v25 = vld [vmem:[%s17242_s29 + $0xce8] sm:$0xff]  }
 0x16d   : > { %v18363_v61 = vpop.f32.mrf.mxu1  ;;  %v18372_v54 = vpop.f32.mrf.mxu0 }
 0x16e   : > { %25312 = vst [vmem:[#allocation60_spill] sm:$0xff] %v18496_v41  ;;  %v18509_v30 = vadd.f32 %v18196_v43, %v18363_v61  ;;  %25315 = vst [vmem:[#allocation63_spill] sm:$0xff] %v18520_v57  ;;  %v18534_v24 = vadd.f32 %v18196_v43, %v18372_v54 }
 0x16f   : > { %v18368_v5 = vpop.f32.mrf.mxu1  ;;  %v18378_v46 = vpop.f32.mrf.mxu0 }
 0x170   : > { %15528 = vmatmul.mubr.msk.bf16.gmra.mxu0 %vm3854_vm1, %v16830_v6  ;;  %v16836_v6 = vld [vmem:[%s17242_s29 + $0x2d0] sm:$0xff]   ;;  %25314 = vst [vmem:[#allocation62_spill] sm:$0xff] %v18509_v30 }
 0x171   : > { %v18375_v59 = vpop.f32.mrf.mxu1  ;;  %v18384_v47 = vpop.f32.mrf.mxu0  ;;  %15531 = vmatprep.mubr.msk.bf16.mxu0 %vm3854_vm1, %v16832_v39 }
 0x172   : > { %16168 = vmatmul.mubr.msk.bf16.gmra.mxu1 %vm3854_vm1, %v16831_v55  ;;  %v18560_v31 = vadd.f32 %v18196_v43, %v18384_v47  ;;  %v16845_v47 = vld [vmem:[%s17242_s29 + $0xcf0] sm:$0xff]  }
 0x173   : > { %v18381_v1 = vpop.f32.mrf.mxu1  ;;  %v18389_v21 = vpop.f32.mrf.mxu0  ;;  %16171 = vmatprep.mubr.msk.bf16.mxu1 %vm3854_vm1, %v16833_v10 }
 0x174   : > { %v18556_v20 = vadd.f32 %v18196_v43, %v18381_v1  ;;  %25316 = vst [vmem:[#allocation64_spill] sm:$0xff] %v18560_v31  ;;  %v18571_v54 = vadd.f32 %v18196_v43, %v18389_v21 }
 0x175   : > { %v18387_v9 = vpop.f32.mrf.mxu1  ;;  %v18396_v35 = vpop.f32.mrf.mxu0 }
 0x177   : > { %v18392_v40 = vpop.f32.mrf.mxu1  ;;  %v18402_v60 = vpop.f32.mrf.mxu0 }
 0x178   : > { %15532 = vmatmul.mubr.msk.bf16.gmra.mxu0 %vm3854_vm1, %v16834_v4  ;;  %v18433_v4 = vadd.f32 %v18196_v43, %v18320_v34  ;;  %v18455_v34 = vadd.f32 %v18196_v43, %v18336_v0  ;;  %v16841_v0 = vld [vmem:[%s17242_s29 + $0xce0] sm:$0xff]   ;;  %v18575_v1 = vadd.f32 %v18196_v43, %v18392_v40  ;;  %v18594_v41 = vadd.f32 %v18196_v43, %v18402_v60 }
 0x179   : > { %v18399_v63 = vpop.f32.mrf.mxu1  ;;  %v18408_v3 = vpop.f32.mrf.mxu0  ;;  %15535 = vmatprep.mubr.msk.bf16.mxu0 %vm3854_vm1, %v16836_v6  ;;  %v16838_v6 = vld [vmem:[%s17242_s29 + $0x2d8] sm:$0xff]  }
 0x17a   : > { %16172 = vmatmul.mubr.msk.bf16.gmra.mxu1 %vm3854_vm1, %v16835_v45  ;;  %25317 = vst [vmem:[#allocation65_spill] sm:$0xff] %v18575_v1  ;;  %v18605_v57 = vadd.f32 %v18196_v43, %v18408_v3 }
 0x17b   : > { %v18405_v53 = vpop.f32.mrf.mxu1  ;;  %v18413_v39 = vpop.f32.mrf.mxu0  ;;  %16175 = vmatprep.mubr.msk.bf16.mxu1 %vm3854_vm1, %v16837_v38 }
 0x17c   : > { %v18598_v22 = vadd.f32 %v18196_v43, %v18405_v53  ;;  %25321 = vst [vmem:[#allocation69_spill] sm:$0xff] %v18605_v57  ;;  %v18618_v3 = vadd.f32 %v18196_v43, %v18413_v39  ;;  %v16847_v53 = vld [vmem:[%s17242_s29 + $0xcf8] sm:$0xff]   ;;  %v16848_v39 = vld [vmem:[%s17242_s29 + $0x300] sm:$0xff]  }
 0x17d   : > { %v18411_v55 = vpop.f32.mrf.mxu1  ;;  %v18424_v33 = vpop.f32.mrf.mxu0 }
 0x17e   : > { %25320 = vst [vmem:[#allocation68_spill] sm:$0xff] %v18598_v22  ;;  %v18609_v60 = vadd.f32 %v18196_v43, %v18411_v55  ;;  %25323 = vst [vmem:[#allocation71_spill] sm:$0xff] %v18618_v3  ;;  %v16846_v55 = vld [vmem:[%s17242_s29 + $0x2f8] sm:$0xff]  }
 0x17f   : > { %v18416_v10 = vpop.f32.mrf.mxu1  ;;  %v18446_v38 = vpop.f32.mrf.mxu0 }
 0x180   : > { %15536 = vmatmul.mubr.msk.bf16.gmra.mxu0 %vm3854_vm1, %v16838_v6  ;;  %v16844_v6 = vld [vmem:[%s17242_s29 + $0x2f0] sm:$0xff]   ;;  %25322 = vst [vmem:[#allocation70_spill] sm:$0xff] %v18609_v60  ;;  %v16849_v60 = vld [vmem:[%s17242_s29 + $0xd00] sm:$0xff]  }
 0x181   : > { %v18435_v45 = vpop.f32.mrf.mxu1  ;;  %v18473_v27 = vpop.f32.mrf.mxu0  ;;  %15539 = vmatprep.mubr.msk.bf16.mxu0 %vm3854_vm1, %v16840_v37  ;;  %v18530_v37 = vadd.f32 %v18196_v43, %v18368_v5  ;;  %v18548_v5 = vadd.f32 %v18196_v43, %v18378_v46  ;;  %v18567_v46 = vadd.f32 %v18196_v43, %v18387_v9  ;;  %v18588_v9 = vadd.f32 %v18196_v43, %v18399_v63 }
 0x182   : > { %16176 = vmatmul.mubr.msk.bf16.gmra.mxu1 %vm3854_vm1, %v16839_v32  ;;  %v18544_v32 = vadd.f32 %v18196_v43, %v18375_v59  ;;  %v18638_v31 = vadd.f32 %v18196_v43, %v18435_v45 }
 0x183   : > { %v18457_v36 = vpop.f32.mrf.mxu1  ;;  %v18498_v62 = vpop.f32.mrf.mxu0  ;;  %16179 = vmatprep.mubr.msk.bf16.mxu1 %vm3854_vm1, %v16841_v0  ;;  %v18584_v0 = vadd.f32 %v18196_v43, %v18396_v35  ;;  %25319 = vst [vmem:[#allocation67_spill] sm:$0xff] %v18588_v9 }
 0x185   : > { %v18486_v2 = vpop.f32.mrf.mxu1  ;;  %v18522_v61 = vpop.f32.mrf.mxu0  ;;  %25318 = vst [vmem:[#allocation66_spill] sm:$0xff] %v18584_v0  ;;  %v18648_v0 = vadd.f32 %v18196_v43, %v18457_v36 }
 0x186   : > { %v18672_v45 = vadd.f32 %v18196_v43, %v18522_v61 }
 0x187   : > { %v18511_v16 = vpop.f32.mrf.mxu1  ;;  %v18550_v29 = vpop.f32.mrf.mxu0  ;;  %25324 = vst [vmem:[#allocation72_spill] sm:$0xff] %v18648_v0 }
 0x188   : > { %15540 = vmatmul.mubr.msk.bf16.gmra.mxu0 %vm3854_vm1, %v16842_v56  ;;  %v18630_v56 = vadd.f32 %v18196_v43, %v18424_v33  ;;  %v18661_v33 = vadd.f32 %v18196_v43, %v18498_v62  ;;  %v18665_v9 = vadd.f32 %v18196_v43, %v18511_v16  ;;  %25327 = vst [vmem:[#allocation75_spill] sm:$0xff] %v18672_v45 }
 0x189   : > { %v18536_v12 = vpop.f32.mrf.mxu1  ;;  %v18577_v7 = vpop.f32.mrf.mxu0  ;;  %15543 = vmatprep.mubr.msk.bf16.mxu0 %vm3854_vm1, %v16844_v6  ;;  %v18626_v6 = vadd.f32 %v18196_v43, %v18416_v10  ;;  %v18642_v10 = vadd.f32 %v18196_v43, %v18446_v38  ;;  %v18657_v38 = vadd.f32 %v18196_v43, %v18486_v2  ;;  %v18682_v22 = vadd.f32 %v18196_v43, %v18550_v29 }
 0x18a   : > { %16180 = vmatmul.mubr.msk.bf16.gmra.mxu1 %vm3854_vm1, %v16843_v25  ;;  %25326 = vst [vmem:[#allocation74_spill] sm:$0xff] %v18665_v9  ;;  %v18676_v2 = vadd.f32 %v18196_v43, %v18536_v12  ;;  %v18693_v3 = vadd.f32 %v18196_v43, %v18577_v7 }
 0x18b   : > { %v18562_v59 = vpop.f32.mrf.mxu1  ;;  %v15445_v35 = vpop.f32.mrf.mxu0  ;;  %16183 = vmatprep.mubr.msk.bf16.mxu1 %vm3854_vm1, %v16845_v47  ;;  %v18652_v47 = vadd.f32 %v18196_v43, %v18473_v27  ;;  %v16852_v27 = vld [vmem:[%s17242_s29 + $0x310] sm:$0xff]  }
 0x18c   : > { %25328 = vst [vmem:[#allocation76_spill] sm:$0xff] %v18676_v2  ;;  %v18686_v57 = vadd.f32 %v18196_v43, %v18562_v59  ;;  %25330 = vst [vmem:[#allocation78_spill] sm:$0xff] %v18693_v3  ;;  %v18704_v12 = vadd.f32 %v18196_v43, %v15445_v35  ;;  %v16851_v59 = vld [vmem:[%s17242_s29 + $0xd08] sm:$0xff]  }
 0x18d   : > { %v8328_v21 = vpop.f32.mrf.mxu1  ;;  %v5781_v63 = vpop.f32.mrf.mxu0  ;;  %25325 = vst [vmem:[#allocation73_spill] sm:$0xff] %v18652_v47 }
 0x18e   : > { %25329 = vst [vmem:[#allocation77_spill] sm:$0xff] %v18686_v57  ;;  %v18696_v16 = vadd.f32 %v18196_v43, %v8328_v21  ;;  %25332 = vst [vmem:[#allocation80_spill] sm:$0xff] %v18704_v12  ;;  %v16850_v21 = vld [vmem:[%s17242_s29 + $0x308] sm:$0xff]  }
 0x18f   : > { %v16085_v40 = vpop.f32.mrf.mxu1  ;;  %v15446_v25 = vpop.f32.mrf.mxu0 }
 0x190   : > { %15544 = vmatmul.mubr.msk.bf16.gmra.mxu0 %vm3854_vm1, %v16846_v55  ;;  %25331 = vst [vmem:[#allocation79_spill] sm:$0xff] %v18696_v16  ;;  %v18724_v47 = vadd.f32 %v18196_v43, %v15446_v25 }
 0x191   : > { %v8341_v30 = vpop.f32.mrf.mxu1  ;;  %v5784_v36 = vpop.f32.mrf.mxu0  ;;  %15547 = vmatprep.mubr.msk.bf16.mxu0 %vm3854_vm1, %v16848_v39  ;;  %v18714_v39 = vadd.f32 %v18196_v43, %v5781_v63  ;;  %v16853_v63 = vld [vmem:[%s17242_s29 + $0xd10] sm:$0xff]  }
 0x192   : > { %16184 = vmatmul.mubr.msk.bf16.gmra.mxu1 %vm3854_vm1, %v16847_v53  ;;  %v18711_v53 = vadd.f32 %v18196_v43, %v16085_v40  ;;  %v18732_v45 = vadd.f32 %v18196_v43, %v5784_v36 }
 0x193   : > { %v16086_v1 = vpop.f32.mrf.mxu1  ;;  %v15449_v61 = vpop.f32.mrf.mxu0  ;;  %16187 = vmatprep.mubr.msk.bf16.mxu1 %vm3854_vm1, %v16849_v60  ;;  %25333 = vst [vmem:[#allocation81_spill] sm:$0xff] %v18714_v39  ;;  %v18721_v60 = vadd.f32 %v18196_v43, %v8341_v30 }
 0x194   : > { %v18729_v2 = vadd.f32 %v18196_v43, %v16086_v1  ;;  %25334 = vst [vmem:[#allocation82_spill] sm:$0xff] %v18732_v45  ;;  %v18739_v25 = vadd.f32 %v18196_v43, %v15449_v61  ;;  %v16857_v45 = vld [vmem:[%s17242_s29 + $0xd20] sm:$0xff]  }
 0x195   : > { %v8344_v62 = vpop.f32.mrf.mxu1  ;;  %v5797_v7 = vpop.f32.mrf.mxu0 }
 0x196   : > { %v18736_v30 = vadd.f32 %v18196_v43, %v8344_v62  ;;  %25336 = vst [vmem:[#allocation84_spill] sm:$0xff] %v18739_v25  ;;  %v18748_v36 = vadd.f32 %v18196_v43, %v5797_v7 }
 0x197   : > { %v16089_v29 = vpop.f32.mrf.mxu1  ;;  %v15450_v0 = vpop.f32.mrf.mxu0 }
 0x198   : > { %25335 = vst [vmem:[#allocation83_spill] sm:$0xff] %v18736_v30  ;;  %v18742_v57 = vadd.f32 %v18196_v43, %v16089_v29  ;;  %25338 = vst [vmem:[#allocation86_spill] sm:$0xff] %v18748_v36  ;;  %15548 = vmatmul.mubr.msk.bf16.gmra.mxu0 %vm3854_vm1, %v16850_v21 }
 0x199   : > { %v8357_v55 = vpop.f32.mrf.mxu1  ;;  %v5800_v40 = vpop.f32.mrf.mxu0  ;;  %15551 = vmatprep.mubr.msk.bf16.mxu0 %vm3854_vm1, %v16852_v27 }
 0x19a   : > { %25337 = vst [vmem:[#allocation85_spill] sm:$0xff] %v18742_v57  ;;  %v18753_v61 = vadd.f32 %v18196_v43, %v8357_v55  ;;  %16188 = vmatmul.mubr.msk.bf16.gmra.mxu1 %vm3854_vm1, %v16851_v59  ;;  %v18772_v59 = vadd.f32 %v18196_v43, %v15450_v0 }
 0x19b   : > { %v16090_v35 = vpop.f32.mrf.mxu1  ;;  %v15453_v29 = vpop.f32.mrf.mxu0  ;;  %16191 = vmatprep.mubr.msk.bf16.mxu1 %vm3854_vm1, %v16853_v63 }
 0x19c   : > { %25339 = vst [vmem:[#allocation87_spill] sm:$0xff] %v18753_v61  ;;  %v18759_v16 = vadd.f32 %v18196_v43, %v16090_v35  ;;  %v5822_v7 = vadd.f32 %v18196_v43, %v15453_v29  ;;  %v16854_v35 = vld [vmem:[%s17242_s29 + $0x318] sm:$0xff]   ;;  %25340 = vst [vmem:[#allocation88_spill] sm:$0xff] %v18772_v59 }
 0x19d   : > { %v8360_v3 = vpop.f32.mrf.mxu1  ;;  %v5813_v1 = vpop.f32.mrf.mxu0  ;;  %v16855_v59 = vld [vmem:[%s17242_s29 + $0xd18] sm:$0xff]  }
 0x19e   : > { %v9622_v27 = vmax.f32 %v5822_v7, 0.0  ;;  %v5814_v55 = vadd.f32 %v18196_v43, %v5813_v1  ;;  %v16856_v7 = vld [vmem:[%s17242_s29 + $0x320] sm:$0xff]   ;;  %v25342_v1 = vmax.f32 %v18422_v48, 0.0  ;;  %v25344_v48 = vmax.f32 %v18433_v4, 0.0 }
 0x19f   : > { %v16093_v39 = vpop.f32.mrf.mxu1  ;;  %v15454_v0 = vpop.f32.mrf.mxu0  ;;  %v25347_v4 = vmax.f32 %v18444_v50, 0.0 }
 0x1a0   : > { %v8382_v12 = vadd.f32 %v18196_v43, %v16093_v39  ;;  %v18779_v39 = vld [vmem:[%s24956_s2] ss:$0 sm:$0xff]  ;;  %v10806_v62 = vmax.f32 %v25342_v1, %v9622_v27  ;;  %v9620_v61 = vmax.f32 %v5814_v55, 0.0  ;;  %15552 = vmatmul.mubr.msk.bf16.gmra.mxu0 %vm3854_vm1, %v16854_v35 }
 0x1a1   : > { %v8373_v9 = vpop.f32.mrf.mxu1  ;;  %v18782_v21 = vadd.f32 %v18779_v39, %v5800_v40  ;;  %v5825_v36 = vadd.f32 %v18779_v39, %v15454_v0  ;;  %v18792_v25 = vadd.f32 %v18779_v39, %v8360_v3  ;;  %v25343_v40 = vmax.f32 %v18429_v44, 0.0  ;;  %v5816_v30 = vpop.f32.mrf.mxu0  ;;  %15555 = vmatprep.mubr.msk.bf16.mxu0 %vm3854_vm1, %v16856_v7 }
 0x1a2   : > { %v10262_v63 = vmax.f32 %v8382_v12, 0.0  ;;  %v8374_v29 = vadd.f32 %v18779_v39, %v8373_v9  ;;  %v11062_v43 = vmax.f32 %v17827_v51, %v10806_v62  ;;  %v18801_v27 = vmax.f32 %v25344_v48, %v9620_v61  ;;  %16192 = vmatmul.mubr.msk.bf16.gmra.mxu1 %vm3854_vm1, %v16855_v59 }
 0x1a3   : > { %25341 = vst [vmem:[#allocation89_spill] sm:$0xff] %v18782_v21  ;;  %v16094_v57 = vpop.f32.mrf.mxu1  ;;  %v9623_v55 = vmax.f32 %v5825_v36, 0.0  ;;  %v5817_v0 = vadd.f32 %v18779_v39, %v5816_v30  ;;  %v25345_v44 = vmax.f32 %v18440_v28, 0.0  ;;  %v25348_v61 = vmax.f32 %v18451_v8, 0.0  ;;  %16195 = vmatprep.mubr.msk.bf16.mxu1 %vm3854_vm1, %v16857_v45 }
 0x1a4   : > { %v10966_v12 = vmax.f32 %v25343_v40, %v10262_v63  ;;  %v10260_v21 = vmax.f32 %v8374_v29, 0.0  ;;  %v8385_v9 = vadd.f32 %v18779_v39, %v16094_v57  ;;  %v15457_v40 = vpop.f32.mrf.mxu0  ;;  %v25349_v59 = vmax.f32 %v18455_v34, 0.0  ;;  %v16859_v34 = vld [vmem:[%s17242_s29 + $0xd28] sm:$0xff]  }
 0x1a5   : > { %v8376_v1 = vpop.f32.mrf.mxu1  ;;  %v10807_v36 = vmax.f32 %v25347_v4, %v9623_v55  ;;  %v9621_v30 = vmax.f32 %v5817_v0, 0.0  ;;  %v5838_v62 = vadd.f32 %v18779_v39, %v15457_v40  ;;  %v25377_v51 = vmax.f32 %v18530_v37, 0.0 }
 0x1a6   : > { %v11222_v3 = vmax.f32 %v17833_v26, %v10966_v12  ;;  %v18807_v63 = vmax.f32 %v25345_v44, %v10260_v21  ;;  %v10263_v29 = vmax.f32 %v8385_v9, 0.0  ;;  %v8377_v57 = vadd.f32 %v18779_v39, %v8376_v1  ;;  %v5829_v12 = vpop.f32.mrf.mxu0 }
 0x1a7   : > { %v16097_v26 = vpop.f32.mrf.mxu1  ;;  %v11063_v9 = vmax.f32 %v17859_v13, %v10807_v36  ;;  %v18827_v48 = vmax.f32 %v25349_v59, %v9621_v30  ;;  %v9626_v7 = vmax.f32 %v5838_v62, 0.0  ;;  %v5830_v55 = vadd.f32 %v18779_v39, %v5829_v12  ;;  %v16861_v12 = vld [vmem:[%s17242_s29 + $0xd30] sm:$0xff]  }
 0x1a8   : > { %25346 = vst [vmem:[#allocation90_spill] sm:$0xff] %v18807_v63  ;;  %v10967_v21 = vmax.f32 %v25348_v61, %v10263_v29  ;;  %v10261_v35 = vmax.f32 %v8377_v57, 0.0  ;;  %v8398_v50 = vadd.f32 %v18779_v39, %v16097_v26  ;;  %v25350_v1 = vmax.f32 %v18463_v58, 0.0  ;;  %v15458_v13 = vpop.f32.mrf.mxu0  ;;  %v16858_v57 = vld [vmem:[%s17242_s29 + $0x328] sm:$0xff]   ;;  %v16860_v58 = vld [vmem:[%s17242_s29 + $0x330] sm:$0xff]  }
 0x1a9   : > { %v8389_v8 = vpop.f32.mrf.mxu1  ;;  %v18838_v40 = vpack.c.bf16 %v11063_v9, %v11062_v43  ;;  %v25353_v36 = vmax.f32 %v18467_v49, 0.0  ;;  %v25356_v59 = vmax.f32 %v18480_v11, 0.0  ;;  %15556 = vmatmul.mubr.msk.bf16.gmra.mxu0 %vm3854_vm1, %v16858_v57  ;;  %v25361_v11 = vld [vmem:[#allocation27_spill] sm:$0xff]  ;;  %v25383_v37 = vmax.f32 %v18544_v32, 0.0 }
 0x1aa   : > { %v11223_v0 = vmax.f32 %v17870_v15, %v10967_v21  ;;  %v18833_v44 = vmax.f32 %v25350_v1, %v10261_v35  ;;  %v10266_v29 = vmax.f32 %v8398_v50, 0.0  ;;  %v8390_v45 = vadd.f32 %v18779_v39, %v8389_v8  ;;  %v5832_v43 = vpop.f32.mrf.mxu0  ;;  %v25357_v8 = vld [vmem:[#allocation26_spill] sm:$0xff]  ;;  %v25358_v1 = vld [vmem:[#allocation59_spill] sm:$0xff]  ;;  %16196 = vmatmul.mubr.msk.bf16.gmra.mxu1 %vm3854_vm1, %v16859_v34  ;;  %15559 = vmatprep.mubr.msk.bf16.mxu0 %vm3854_vm1, %v16860_v58 }
 0x1ab   : > { %25352 = vst [vmem:[#allocation92_spill] sm:$0xff] %v18838_v40  ;;  %v10810_v30 = vmax.f32 %v25353_v36, %v9626_v7  ;;  %v9624_v15 = vmax.f32 %v5830_v55, 0.0  ;;  %v16098_v62 = vpop.f32.mrf.mxu1  ;;  %v25355_v21 = vmax.f32 %v18471_v19, 0.0  ;;  %v5841_v7 = vadd.f32 %v18779_v39, %v15458_v13  ;;  %16199 = vmatprep.mubr.msk.bf16.mxu1 %vm3854_vm1, %v16861_v12 }
 0x1ac   : > { %25351 = vst [vmem:[#allocation91_spill] sm:$0xff] %v18833_v44  ;;  %v18845_v26 = vpack.c.bf16 %v11223_v0, %v11222_v3  ;;  %v10264_v50 = vmax.f32 %v8390_v45, 0.0  ;;  %v8401_v3 = vadd.f32 %v18779_v39, %v16098_v62  ;;  %v25359_v36 = vmax.f32 %v25358_v1, 0.0 }
 0x1ad   : > { %v10970_v35 = vmax.f32 %v25355_v21, %v10266_v29  ;;  %v11066_v9 = vmax.f32 %v17896_v23, %v10810_v30  ;;  %v18855_v49 = vmax.f32 %v25356_v59, %v9624_v15  ;;  %v8392_v55 = vpop.f32.mrf.mxu1  ;;  %v5833_v29 = vadd.f32 %v18779_v39, %v5832_v43  ;;  %v15461_v23 = vpop.f32.mrf.mxu0  ;;  %v25373_v30 = vld [vmem:[#allocation63_spill] sm:$0xff] }
 0x1ae   : > { %25354 = vst [vmem:[#allocation93_spill] sm:$0xff] %v18845_v26  ;;  %v18862_v19 = vmax.f32 %v25359_v36, %v10264_v50  ;;  %v8393_v45 = vadd.f32 %v18779_v39, %v8392_v55  ;;  %v9627_v13 = vmax.f32 %v5841_v7, 0.0  ;;  %v10267_v15 = vmax.f32 %v8401_v3, 0.0  ;;  %v25366_v50 = vld [vmem:[#allocation61_spill] sm:$0xff] }
 0x1af   : > { %v11226_v0 = vmax.f32 %v25357_v8, %v10970_v35  ;;  %v5854_v62 = vadd.f32 %v18779_v39, %v15461_v23  ;;  %v16101_v21 = vpop.f32.mrf.mxu1  ;;  %v9625_v43 = vmax.f32 %v5833_v29, 0.0  ;;  %v5845_v55 = vpop.f32.mrf.mxu0  ;;  %v25363_v7 = vmax.f32 %v18492_v18, 0.0  ;;  %v25364_v8 = vld [vmem:[#allocation60_spill] sm:$0xff] }
 0x1b0   : > { %25360 = vst [vmem:[#allocation26_spill] sm:$0xff] %v18862_v19  ;;  %v10265_v59 = vmax.f32 %v8393_v45, 0.0  ;;  %v8414_v57 = vadd.f32 %v18779_v39, %v16101_v21  ;;  %v25365_v1 = vmax.f32 %v25364_v8, 0.0  ;;  %v5846_v36 = vadd.f32 %v18779_v39, %v5845_v55  ;;  %v25368_v45 = vld [vmem:[#allocation62_spill] sm:$0xff]  ;;  %v25371_v8 = vld [vmem:[#allocation29_spill] sm:$0xff] }
 0x1b1   : > { %v10811_v3 = vmax.f32 %v25363_v7, %v9627_v13  ;;  %v9630_v58 = vmax.f32 %v5854_v62, 0.0  ;;  %v8405_v23 = vpop.f32.mrf.mxu1  ;;  %v25367_v29 = vmax.f32 %v25366_v50, 0.0  ;;  %v25369_v21 = vmax.f32 %v25368_v45, 0.0  ;;  %v15462_v13 = vpop.f32.mrf.mxu0  ;;  %v16862_v7 = vld [vmem:[%s17242_s29 + $0x338] sm:$0xff]   ;;  %v16864_v45 = vld [vmem:[%s17242_s29 + $0x340] sm:$0xff]  }
 0x1b2   : > { %v10971_v34 = vmax.f32 %v25365_v1, %v10267_v15  ;;  %v10270_v12 = vmax.f32 %v8414_v57, 0.0  ;;  %v8406_v18 = vadd.f32 %v18779_v39, %v8405_v23  ;;  %v16863_v15 = vld [vmem:[%s17242_s29 + $0xd38] sm:$0xff]   ;;  %v25372_v1 = vld [vmem:[#allocation30_spill] sm:$0xff]  ;;  %v25374_v4 = vmax.f32 %v25373_v30, 0.0  ;;  %15560 = vmatmul.mubr.msk.bf16.gmra.mxu0 %vm3854_vm1, %v16862_v7 }
 0x1b3   : > { %v18883_v61 = vmax.f32 %v25367_v29, %v9625_v43  ;;  %v18887_v28 = vmax.f32 %v25369_v21, %v10265_v59  ;;  %v11067_v62 = vmax.f32 %v25371_v8, %v10811_v3  ;;  %v9628_v43 = vmax.f32 %v5846_v36, 0.0  ;;  %v16102_v29 = vpop.f32.mrf.mxu1  ;;  %v25375_v59 = vld [vmem:[#allocation31_spill] sm:$0xff]  ;;  %v5848_v3 = vpop.f32.mrf.mxu0  ;;  %v16865_v8 = vld [vmem:[%s17242_s29 + $0xd40] sm:$0xff]   ;;  %16200 = vmatmul.mubr.msk.bf16.gmra.mxu1 %vm3854_vm1, %v16863_v15  ;;  %15563 = vmatprep.mubr.msk.bf16.mxu0 %vm3854_vm1, %v16864_v45 }
 0x1b4   : > { %v11227_v55 = vmax.f32 %v25372_v1, %v10971_v34  ;;  %v18896_v50 = vmax.f32 %v25374_v4, %v9630_v58  ;;  %v10974_v26 = vmax.f32 %v25377_v51, %v10270_v12  ;;  %v10268_v40 = vmax.f32 %v8406_v18, 0.0  ;;  %v25380_v4 = vld [vmem:[#allocation33_spill] sm:$0xff]  ;;  %v25382_v19 = vld [vmem:[#allocation34_spill] sm:$0xff]  ;;  %v25385_v18 = vld [vmem:[#allocation35_spill] sm:$0xff]  ;;  %16203 = vmatprep.mubr.msk.bf16.mxu1 %vm3854_vm1, %v16865_v8 }
 0x1b5   : > { %25370 = vst [vmem:[#allocation59_spill] sm:$0xff] %v18887_v28  ;;  %v18906_v34 = vpack.c.bf16 %v11067_v62, %v11066_v9  ;;  %v25381_v36 = vmax.f32 %v18534_v24, 0.0  ;;  %v8408_v57 = vpop.f32.mrf.mxu1  ;;  %v5857_v12 = vadd.f32 %v18779_v39, %v15462_v13  ;;  %v8417_v9 = vadd.f32 %v18779_v39, %v16102_v29  ;;  %v16867_v8 = vld [vmem:[%s17242_s29 + $0xd48] sm:$0xff]   ;;  %v25401_v21 = vld [vmem:[#allocation66_spill] sm:$0xff] }
 0x1b6   : > { %v18908_v30 = vpack.c.bf16 %v11227_v55, %v11226_v0  ;;  %v11070_v58 = vmax.f32 %v25380_v4, %v18896_v50  ;;  %v11230_v23 = vmax.f32 %v25382_v19, %v10974_v26  ;;  %v18919_v51 = vmax.f32 %v25383_v37, %v10268_v40  ;;  %v15465_v0 = vpop.f32.mrf.mxu0  ;;  %v16866_v40 = vld [vmem:[%s17242_s29 + $0x348] sm:$0xff]  }
 0x1b7   : > { %25378 = vst [vmem:[#allocation27_spill] sm:$0xff] %v18906_v34  ;;  %v18914_v1 = vmax.f32 %v25381_v36, %v9628_v43  ;;  %v5849_v24 = vadd.f32 %v18779_v39, %v5848_v3  ;;  %v8409_v55 = vadd.f32 %v18779_v39, %v8408_v57  ;;  %v5870_v26 = vadd.f32 %v18779_v39, %v15465_v0  ;;  %v16105_v19 = vpop.f32.mrf.mxu1  ;;  %v25396_v34 = vld [vmem:[#allocation65_spill] sm:$0xff] }
 0x1b8   : > { %25379 = vst [vmem:[#allocation60_spill] sm:$0xff] %v18908_v30  ;;  %25384 = vst [vmem:[#allocation61_spill] sm:$0xff] %v18919_v51  ;;  %v9631_v13 = vmax.f32 %v5857_v12, 0.0  ;;  %v10271_v50 = vmax.f32 %v8417_v9, 0.0  ;;  %v8430_v7 = vadd.f32 %v18779_v39, %v16105_v19  ;;  %v5861_v43 = vpop.f32.mrf.mxu0  ;;  %v25387_v36 = vmax.f32 %v18548_v5, 0.0 }
 0x1b9   : > { %v9629_v29 = vmax.f32 %v5849_v24, 0.0  ;;  %v10269_v57 = vmax.f32 %v8409_v55, 0.0  ;;  %v9634_v3 = vmax.f32 %v5870_v26, 0.0  ;;  %v5862_v15 = vadd.f32 %v18779_v39, %v5861_v43  ;;  %v8421_v4 = vpop.f32.mrf.mxu1  ;;  %v25389_v24 = vld [vmem:[#allocation64_spill] sm:$0xff] }
 0x1ba   : > { %v10815_v37 = vmax.f32 %v25387_v36, %v9631_v13  ;;  %v25388_v12 = vmax.f32 %v18556_v20, 0.0  ;;  %v10274_v0 = vmax.f32 %v8430_v7, 0.0  ;;  %v8422_v19 = vadd.f32 %v18779_v39, %v8421_v4  ;;  %v15466_v45 = vpop.f32.mrf.mxu0  ;;  %v16868_v7 = vld [vmem:[%s17242_s29 + $0x350] sm:$0xff]   ;;  %v25394_v36 = vld [vmem:[#allocation37_spill] sm:$0xff]  ;;  %15564 = vmatmul.mubr.msk.bf16.gmra.mxu0 %vm3854_vm1, %v16866_v40 }
 0x1bb   : > { %v25390_v55 = vmax.f32 %v25389_v24, 0.0  ;;  %v25391_v26 = vmax.f32 %v18567_v46, 0.0  ;;  %v25393_v5 = vmax.f32 %v18571_v54, 0.0  ;;  %v9632_v20 = vmax.f32 %v5862_v15, 0.0  ;;  %v16869_v46 = vld [vmem:[%s17242_s29 + $0xd50] sm:$0xff]   ;;  %v25400_v15 = vld [vmem:[#allocation41_spill] sm:$0xff]  ;;  %16204 = vmatmul.mubr.msk.bf16.gmra.mxu1 %vm3854_vm1, %v16867_v8  ;;  %15567 = vmatprep.mubr.msk.bf16.mxu0 %vm3854_vm1, %v16868_v7 }
 0x1bc   : > { %v10975_v9 = vmax.f32 %v25388_v12, %v10271_v50  ;;  %v16106_v50 = vpop.f32.mrf.mxu1  ;;  %v11071_v4 = vmax.f32 %v25394_v36, %v10815_v37  ;;  %v25395_v12 = vld [vmem:[#allocation38_spill] sm:$0xff]  ;;  %v25397_v28 = vmax.f32 %v25396_v34, 0.0  ;;  %v25402_v37 = vmax.f32 %v25401_v21, 0.0  ;;  %16207 = vmatprep.mubr.msk.bf16.mxu1 %vm3854_vm1, %v16869_v46  ;;  %v16871_v21 = vld [vmem:[%s17242_s29 + $0xd58] sm:$0xff]   ;;  %v25465_v54 = vld [vmem:[#allocation79_spill] sm:$0xff] }
 0x1bd   : > { %v18945_v62 = vmax.f32 %v25390_v55, %v9629_v29  ;;  %v18949_v43 = vmax.f32 %v25391_v26, %v10269_v57  ;;  %v18953_v13 = vmax.f32 %v25393_v5, %v9634_v3  ;;  %v10272_v29 = vmax.f32 %v8422_v19, 0.0  ;;  %v5864_v55 = vpop.f32.mrf.mxu0  ;;  %v25398_v57 = vld [vmem:[#allocation39_spill] sm:$0xff] }
 0x1be   : > { %v11231_v30 = vmax.f32 %v25395_v12, %v10975_v9  ;;  %v18960_v24 = vmax.f32 %v25397_v28, %v10274_v0  ;;  %v18971_v36 = vmax.f32 %v25402_v37, %v9632_v20  ;;  %v8424_v9 = vpop.f32.mrf.mxu1  ;;  %v18973_v34 = vpack.c.bf16 %v11071_v4, %v11070_v58  ;;  %v25405_v0 = vld [vmem:[#allocation42_spill] sm:$0xff]  ;;  %v25406_v12 = vld [vmem:[#allocation67_spill] sm:$0xff] }
 0x1bf   : > { %25392 = vst [vmem:[#allocation62_spill] sm:$0xff] %v18949_v43  ;;  %v11074_v5 = vmax.f32 %v25400_v15, %v18953_v13  ;;  %v25407_v26 = vmax.f32 %v25406_v12, 0.0  ;;  %v15469_v3 = vpop.f32.mrf.mxu0  ;;  %v25409_v13 = vld [vmem:[#allocation15_spill] sm:$0xff]  ;;  %v5873_v20 = vadd.f32 %v18779_v39, %v15466_v45  ;;  %v8433_v58 = vadd.f32 %v18779_v39, %v16106_v50  ;;  %v25463_v4 = vld [vmem:[#allocation78_spill] sm:$0xff] }
 0x1c0   : > { %25403 = vst [vmem:[#allocation29_spill] sm:$0xff] %v18973_v34  ;;  %v18975_v28 = vpack.c.bf16 %v11231_v30, %v11230_v23  ;;  %v11234_v19 = vmax.f32 %v25405_v0, %v18960_v24  ;;  %v5865_v23 = vadd.f32 %v18779_v39, %v5864_v55  ;;  %v16109_v30 = vpop.f32.mrf.mxu1  ;;  %v5886_v40 = vadd.f32 %v18779_v39, %v15469_v3  ;;  %v25414_v34 = vld [vmem:[#allocation69_spill] sm:$0xff] }
 0x1c1   : > { %v18981_v35 = vmax.f32 %v25407_v26, %v10272_v29  ;;  %v8425_v29 = vadd.f32 %v18779_v39, %v8424_v9  ;;  %v8446_v26 = vadd.f32 %v18779_v39, %v16109_v30  ;;  %v5877_v15 = vpop.f32.mrf.mxu0  ;;  %v9635_v45 = vmax.f32 %v5873_v20, 0.0  ;;  %v16870_v30 = vld [vmem:[%s17242_s29 + $0x358] sm:$0xff]  }
 0x1c2   : > { %25404 = vst [vmem:[#allocation30_spill] sm:$0xff] %v18975_v28  ;;  %v10275_v50 = vmax.f32 %v8433_v58, 0.0  ;;  %v9633_v55 = vmax.f32 %v5865_v23, 0.0  ;;  %v5878_v8 = vadd.f32 %v18779_v39, %v5877_v15  ;;  %v8437_v37 = vpop.f32.mrf.mxu1  ;;  %v9638_v9 = vmax.f32 %v5886_v40, 0.0  ;;  %v25412_v58 = vld [vmem:[#allocation68_spill] sm:$0xff]  ;;  %v16872_v40 = vld [vmem:[%s17242_s29 + $0x360] sm:$0xff]   ;;  %15568 = vmatmul.mubr.msk.bf16.gmra.mxu0 %vm3854_vm1, %v16870_v30 }
 0x1c3   : > { %25408 = vst [vmem:[#allocation63_spill] sm:$0xff] %v18981_v35  ;;  %v10273_v0 = vmax.f32 %v8425_v29, 0.0  ;;  %v10278_v12 = vmax.f32 %v8446_v26, 0.0  ;;  %v8438_v3 = vadd.f32 %v18779_v39, %v8437_v37  ;;  %v15470_v24 = vpop.f32.mrf.mxu0  ;;  %v25411_v7 = vmax.f32 %v18594_v41, 0.0  ;;  %v25416_v26 = vld [vmem:[#allocation70_spill] sm:$0xff]  ;;  %v25419_v37 = vld [vmem:[#allocation71_spill] sm:$0xff]  ;;  %16208 = vmatmul.mubr.msk.bf16.gmra.mxu1 %vm3854_vm1, %v16871_v21  ;;  %15571 = vmatprep.mubr.msk.bf16.mxu0 %vm3854_vm1, %v16872_v40 }
 0x1c4   : > { %v25413_v23 = vmax.f32 %v25412_v58, 0.0  ;;  %v25415_v15 = vmax.f32 %v25414_v34, 0.0  ;;  %v9636_v46 = vmax.f32 %v5878_v8, 0.0  ;;  %v16110_v29 = vpop.f32.mrf.mxu1  ;;  %v25417_v52 = vmax.f32 %v25416_v26, 0.0  ;;  %v16873_v34 = vld [vmem:[%s17242_s29 + $0xd60] sm:$0xff]   ;;  %v16875_v40 = vld [vmem:[%s17242_s29 + $0xd68] sm:$0xff]  }
 0x1c5   : > { %v10819_v20 = vmax.f32 %v25411_v7, %v9635_v45  ;;  %v25420_v14 = vmax.f32 %v25419_v37, 0.0  ;;  %v25421_v41 = vmax.f32 %v18626_v6, 0.0  ;;  %v5880_v7 = vpop.f32.mrf.mxu0  ;;  %v25423_v8 = vld [vmem:[#allocation18_spill] sm:$0xff]  ;;  %v25428_v37 = vld [vmem:[#allocation4_spill] sm:$0xff]  ;;  %v5889_v6 = vadd.f32 %v18779_v39, %v15470_v24  ;;  %16211 = vmatprep.mubr.msk.bf16.mxu1 %vm3854_vm1, %v16873_v34 }
 0x1c6   : > { %v10979_v28 = vmax.f32 %v25413_v23, %v10275_v50  ;;  %v19007_v44 = vmax.f32 %v25415_v15, %v9633_v55  ;;  %v19012_v63 = vmax.f32 %v25417_v52, %v10273_v0  ;;  %v10276_v50 = vmax.f32 %v8438_v3, 0.0  ;;  %v25422_v55 = vld [vmem:[#allocation2_spill] sm:$0xff]  ;;  %v25424_v15 = vld [vmem:[#allocation3_spill] sm:$0xff] }
 0x1c7   : > { %v19016_v35 = vmax.f32 %v25420_v14, %v9638_v9  ;;  %v19020_v45 = vmax.f32 %v25421_v41, %v10278_v12  ;;  %v11075_v58 = vmax.f32 %v25422_v55, %v10819_v20  ;;  %v25425_v52 = vmax.f32 %v18630_v56, 0.0  ;;  %v8440_v14 = vpop.f32.mrf.mxu1  ;;  %v25427_v12 = vld [vmem:[#allocation21_spill] sm:$0xff]  ;;  %v15473_v55 = vpop.f32.mrf.mxu0 }
 0x1c8   : > { %25418 = vst [vmem:[#allocation31_spill] sm:$0xff] %v19012_v63  ;;  %v11235_v23 = vmax.f32 %v25423_v8, %v10979_v28  ;;  %v25429_v20 = vmax.f32 %v18638_v31, 0.0  ;;  %v25433_v8 = vld [vmem:[#allocation23_spill] sm:$0xff]  ;;  %v5881_v30 = vadd.f32 %v18779_v39, %v5880_v7  ;;  %v5902_v24 = vadd.f32 %v18779_v39, %v15473_v55 }
 0x1c9   : > { %v19029_v0 = vmax.f32 %v25425_v52, %v9636_v46  ;;  %v11078_v3 = vmax.f32 %v25427_v12, %v19016_v35  ;;  %v11238_v41 = vmax.f32 %v25428_v37, %v19020_v45  ;;  %v19042_v56 = vpack.c.bf16 %v11075_v58, %v11074_v5  ;;  %v16113_v35 = vpop.f32.mrf.mxu1  ;;  %v16874_v31 = vld [vmem:[%s17242_s29 + $0x368] sm:$0xff]  }
 0x1ca   : > { %v19039_v28 = vmax.f32 %v25429_v20, %v10276_v50  ;;  %v19044_v46 = vpack.c.bf16 %v11235_v23, %v11234_v19  ;;  %v8449_v50 = vadd.f32 %v18779_v39, %v16110_v29  ;;  %v8441_v5 = vadd.f32 %v18779_v39, %v8440_v14  ;;  %v5893_v19 = vpop.f32.mrf.mxu0  ;;  %15572 = vmatmul.mubr.msk.bf16.gmra.mxu0 %vm3854_vm1, %v16874_v31 }
 0x1cb   : > { %25431 = vst [vmem:[#allocation34_spill] sm:$0xff] %v19042_v56  ;;  %v9639_v58 = vmax.f32 %v5889_v6, 0.0  ;;  %v8462_v23 = vadd.f32 %v18779_v39, %v16113_v35  ;;  %v5894_v21 = vadd.f32 %v18779_v39, %v5893_v19  ;;  %v8453_v12 = vpop.f32.mrf.mxu1  ;;  %v9637_v37 = vmax.f32 %v5881_v30, 0.0  ;;  %v16876_v19 = vld [vmem:[%s17242_s29 + $0x370] sm:$0xff]   ;;  %16212 = vmatmul.mubr.msk.bf16.gmra.mxu1 %vm3854_vm1, %v16875_v40 }
 0x1cc   : > { %25430 = vst [vmem:[#allocation33_spill] sm:$0xff] %v19039_v28  ;;  %25432 = vst [vmem:[#allocation35_spill] sm:$0xff] %v19044_v46  ;;  %v10279_v29 = vmax.f32 %v8449_v50, 0.0  ;;  %v10277_v7 = vmax.f32 %v8441_v5, 0.0  ;;  %v8454_v14 = vadd.f32 %v18779_v39, %v8453_v12  ;;  %v15474_v20 = vpop.f32.mrf.mxu0  ;;  %v25435_v6 = vmax.f32 %v18642_v10, 0.0  ;;  %v25436_v56 = vld [vmem:[#allocation72_spill] sm:$0xff]  ;;  %15575 = vmatprep.mubr.msk.bf16.mxu0 %vm3854_vm1, %v16876_v19 }
 0x1cd   : > { %v9642_v52 = vmax.f32 %v5902_v24, 0.0  ;;  %v10282_v35 = vmax.f32 %v8462_v23, 0.0  ;;  %v9640_v26 = vmax.f32 %v5894_v21, 0.0  ;;  %v16114_v46 = vpop.f32.mrf.mxu1  ;;  %v25437_v28 = vmax.f32 %v25436_v56, 0.0  ;;  %v25438_v50 = vld [vmem:[#allocation73_spill] sm:$0xff]  ;;  %v16877_v10 = vld [vmem:[%s17242_s29 + $0xd70] sm:$0xff]  }
 0x1ce   : > { %v10823_v55 = vmax.f32 %v25435_v6, %v9639_v58  ;;  %v25439_v30 = vmax.f32 %v25438_v50, 0.0  ;;  %v25440_v12 = vmax.f32 %v18657_v38, 0.0  ;;  %v10280_v63 = vmax.f32 %v8454_v14, 0.0  ;;  %v5896_v9 = vpop.f32.mrf.mxu0  ;;  %v25442_v58 = vld [vmem:[#allocation6_spill] sm:$0xff]  ;;  %v25449_v14 = vld [vmem:[#allocation43_spill] sm:$0xff]  ;;  %16215 = vmatprep.mubr.msk.bf16.mxu1 %vm3854_vm1, %v16877_v10  ;;  %v25461_v10 = vld [vmem:[#allocation77_spill] sm:$0xff] }
 0x1cf   : > { %v10983_v34 = vmax.f32 %v25437_v28, %v10279_v29  ;;  %v25443_v23 = vmax.f32 %v18661_v33, 0.0  ;;  %v25444_v6 = vld [vmem:[#allocation74_spill] sm:$0xff]  ;;  %v25446_v29 = vld [vmem:[#allocation75_spill] sm:$0xff]  ;;  %v8456_v38 = vpop.f32.mrf.mxu1  ;;  %v25451_v33 = vld [vmem:[#allocation76_spill] sm:$0xff] }
 0x1d0   : > { %v19070_v5 = vmax.f32 %v25439_v30, %v9637_v37  ;;  %v19074_v45 = vmax.f32 %v25440_v12, %v10277_v7  ;;  %v11079_v24 = vmax.f32 %v25442_v58, %v10823_v55  ;;  %v25445_v56 = vmax.f32 %v25444_v6, 0.0  ;;  %v25448_v7 = vld [vmem:[#allocation7_spill] sm:$0xff]  ;;  %v15477_v6 = vpop.f32.mrf.mxu0 }
 0x1d1   : > { %v19080_v21 = vmax.f32 %v25443_v23, %v9642_v52  ;;  %v25447_v37 = vmax.f32 %v25446_v29, 0.0  ;;  %v11239_v30 = vmax.f32 %v25448_v7, %v10983_v34  ;;  %v25452_v52 = vmax.f32 %v25451_v33, 0.0  ;;  %v25456_v34 = vld [vmem:[#allocation45_spill] sm:$0xff]  ;;  %v16117_v58 = vpop.f32.mrf.mxu1 }
 0x1d2   : > { %25441 = vst [vmem:[#allocation64_spill] sm:$0xff] %v19074_v45  ;;  %v19084_v28 = vmax.f32 %v25445_v56, %v10282_v35  ;;  %v19100_v35 = vpack.c.bf16 %v11079_v24, %v11078_v3  ;;  %v5905_v3 = vadd.f32 %v18779_v39, %v15474_v20  ;;  %v8465_v24 = vadd.f32 %v18779_v39, %v16114_v46  ;;  %v16878_v20 = vld [vmem:[%s17242_s29 + $0x378] sm:$0xff]  }
 0x1d3   : > { %v19088_v50 = vmax.f32 %v25447_v37, %v9640_v26  ;;  %v19097_v23 = vmax.f32 %v25452_v52, %v10280_v63  ;;  %v25455_v26 = vld [vmem:[#allocation44_spill] sm:$0xff]  ;;  %v25457_v37 = vld [vmem:[#allocation9_spill] sm:$0xff]  ;;  %v19109_v63 = vpack.c.bf16 %v11239_v30, %v11238_v41  ;;  %v8457_v52 = vadd.f32 %v18779_v39, %v8456_v38  ;;  %v8469_v30 = vpop.f32.mrf.mxu1  ;;  %15576 = vmatmul.mubr.msk.bf16.gmra.mxu0 %vm3854_vm1, %v16878_v20 }
 0x1d4   : > { %25454 = vst [vmem:[#allocation38_spill] sm:$0xff] %v19100_v35  ;;  %v11082_v56 = vmax.f32 %v25455_v26, %v19080_v21  ;;  %v11242_v29 = vmax.f32 %v25456_v34, %v19084_v28  ;;  %v5909_v21 = vpop.f32.mrf.mxu0  ;;  %v5897_v28 = vadd.f32 %v18779_v39, %v5896_v9  ;;  %v5918_v40 = vadd.f32 %v18779_v39, %v15477_v6  ;;  %v16879_v7 = vld [vmem:[%s17242_s29 + $0xd78] sm:$0xff]   ;;  %v16880_v9 = vld [vmem:[%s17242_s29 + $0x380] sm:$0xff]  }
 0x1d5   : > { %25453 = vst [vmem:[#allocation37_spill] sm:$0xff] %v19097_v23  ;;  %25458 = vst [vmem:[#allocation65_spill] sm:$0xff] %v19109_v63  ;;  %v8478_v41 = vadd.f32 %v18779_v39, %v16117_v58  ;;  %v9643_v26 = vmax.f32 %v5905_v3, 0.0  ;;  %v10283_v34 = vmax.f32 %v8465_v24, 0.0  ;;  %v5910_v46 = vadd.f32 %v18779_v39, %v5909_v21  ;;  %v16118_v35 = vpop.f32.mrf.mxu1  ;;  %v16881_v58 = vld [vmem:[%s17242_s29 + $0xd80] sm:$0xff]   ;;  %16216 = vmatmul.mubr.msk.bf16.gmra.mxu1 %vm3854_vm1, %v16879_v7  ;;  %v25484_v20 = vld [vmem:[#allocation13_spill] sm:$0xff] }
 0x1d6   : > { %v8470_v31 = vadd.f32 %v18779_v39, %v8469_v30  ;;  %v15478_v19 = vpop.f32.mrf.mxu0  ;;  %v9641_v12 = vmax.f32 %v5897_v28, 0.0  ;;  %v10281_v38 = vmax.f32 %v8457_v52, 0.0  ;;  %v9646_v63 = vmax.f32 %v5918_v40, 0.0  ;;  %v25468_v40 = vld [vmem:[#allocation80_spill] sm:$0xff]  ;;  %15579 = vmatprep.mubr.msk.bf16.mxu0 %vm3854_vm1, %v16880_v9  ;;  %16219 = vmatprep.mubr.msk.bf16.mxu1 %vm3854_vm1, %v16881_v58 }
 0x1d7   : > { %v10286_v6 = vmax.f32 %v8478_v41, 0.0  ;;  %v25460_v23 = vmax.f32 %v18682_v22, 0.0  ;;  %v25462_v45 = vmax.f32 %v25461_v10, 0.0  ;;  %v9644_v24 = vmax.f32 %v5910_v46, 0.0 }
 0x1d8   : > { %v10284_v55 = vmax.f32 %v8470_v31, 0.0  ;;  %v5912_v21 = vpop.f32.mrf.mxu0  ;;  %v25464_v30 = vmax.f32 %v25463_v4, 0.0  ;;  %v25466_v28 = vmax.f32 %v25465_v54, 0.0  ;;  %v25469_v41 = vmax.f32 %v25468_v40, 0.0  ;;  %v25473_v4 = vld [vmem:[#allocation81_spill] sm:$0xff] }
 0x1d9   : > { %v10827_v33 = vmax.f32 %v25460_v23, %v9643_v26  ;;  %v10987_v3 = vmax.f32 %v25462_v45, %v10283_v34  ;;  %v25470_v22 = vmax.f32 %v18711_v53, 0.0  ;;  %v8472_v45 = vpop.f32.mrf.mxu1  ;;  %v25471_v26 = vld [vmem:[#allocation10_spill] sm:$0xff]  ;;  %v25472_v34 = vld [vmem:[#allocation11_spill] sm:$0xff]  ;;  %v25476_v54 = vmax.f32 %v18721_v60, 0.0  ;;  %v25481_v40 = vld [vmem:[#allocation49_spill] sm:$0xff] }
 0x1da   : > { %v19133_v43 = vmax.f32 %v25464_v30, %v9641_v12  ;;  %v19137_v52 = vmax.f32 %v25466_v28, %v10281_v38  ;;  %v19141_v51 = vmax.f32 %v25469_v41, %v9646_v63  ;;  %v25474_v12 = vmax.f32 %v25473_v4, 0.0  ;;  %v15481_v30 = vpop.f32.mrf.mxu0  ;;  %v25478_v53 = vld [vmem:[#allocation47_spill] sm:$0xff] }
 0x1db   : > { %v19145_v23 = vmax.f32 %v25470_v22, %v10286_v6  ;;  %v11083_v31 = vmax.f32 %v25471_v26, %v10827_v33  ;;  %v11243_v46 = vmax.f32 %v25472_v34, %v10987_v3  ;;  %v19155_v38 = vmax.f32 %v25476_v54, %v10284_v55  ;;  %v25480_v33 = vld [vmem:[#allocation48_spill] sm:$0xff]  ;;  %v16121_v41 = vpop.f32.mrf.mxu1  ;;  %v25488_v26 = vld [vmem:[#allocation82_spill] sm:$0xff] }
 0x1dc   : > { %25467 = vst [vmem:[#allocation39_spill] sm:$0xff] %v19137_v52  ;;  %v19151_v10 = vmax.f32 %v25474_v12, %v9644_v24  ;;  %v11086_v3 = vmax.f32 %v25480_v33, %v19141_v51  ;;  %v5925_v51 = vpop.f32.mrf.mxu0  ;;  %v8481_v4 = vadd.f32 %v18779_v39, %v16118_v35  ;;  %v8494_v12 = vadd.f32 %v18779_v39, %v16121_v41  ;;  %v16883_v33 = vld [vmem:[%s17242_s29 + $0xd88] sm:$0xff]   ;;  %v16884_v35 = vld [vmem:[%s17242_s29 + $0x390] sm:$0xff]  }
 0x1dd   : > { %25477 = vst [vmem:[#allocation66_spill] sm:$0xff] %v19155_v38  ;;  %v11246_v24 = vmax.f32 %v25481_v40, %v19145_v23  ;;  %v19167_v60 = vpack.c.bf16 %v11083_v31, %v11082_v56  ;;  %v19169_v55 = vpack.c.bf16 %v11243_v46, %v11242_v29  ;;  %v5921_v23 = vadd.f32 %v18779_v39, %v15478_v19  ;;  %v8485_v7 = vpop.f32.mrf.mxu1  ;;  %v16882_v31 = vld [vmem:[%s17242_s29 + $0x388] sm:$0xff]   ;;  %v16885_v22 = vld [vmem:[%s17242_s29 + $0xd90] sm:$0xff]  }
 0x1de   : > { %25475 = vst [vmem:[#allocation41_spill] sm:$0xff] %v19151_v10  ;;  %v5913_v56 = vadd.f32 %v18779_v39, %v5912_v21  ;;  %v8473_v29 = vadd.f32 %v18779_v39, %v8472_v45  ;;  %v5934_v46 = vadd.f32 %v18779_v39, %v15481_v30  ;;  %v5926_v54 = vadd.f32 %v18779_v39, %v5925_v51  ;;  %v15482_v19 = vpop.f32.mrf.mxu0 }
 0x1df   : > { %25482 = vst [vmem:[#allocation42_spill] sm:$0xff] %v19167_v60  ;;  %25483 = vst [vmem:[#allocation67_spill] sm:$0xff] %v19169_v55  ;;  %v8486_v9 = vadd.f32 %v18779_v39, %v8485_v7  ;;  %v9647_v40 = vmax.f32 %v5921_v23, 0.0  ;;  %v10287_v21 = vmax.f32 %v8481_v4, 0.0  ;;  %v16122_v28 = vpop.f32.mrf.mxu1  ;;  %v10290_v58 = vmax.f32 %v8494_v12, 0.0  ;;  %v25490_v23 = vld [vmem:[#allocation83_spill] sm:$0xff]  ;;  %15580 = vmatmul.mubr.msk.bf16.gmra.mxu0 %vm3854_vm1, %v16882_v31  ;;  %16220 = vmatmul.mubr.msk.bf16.gmra.mxu1 %vm3854_vm1, %v16883_v33 }
 0x1e0   : > { %v9645_v34 = vmax.f32 %v5913_v56, 0.0  ;;  %v10285_v45 = vmax.f32 %v8473_v29, 0.0  ;;  %v9650_v63 = vmax.f32 %v5934_v46, 0.0  ;;  %v9648_v55 = vmax.f32 %v5926_v54, 0.0  ;;  %v5928_v30 = vpop.f32.mrf.mxu0  ;;  %v25493_v46 = vld [vmem:[#allocation84_spill] sm:$0xff]  ;;  %v25508_v31 = vld [vmem:[#allocation53_spill] sm:$0xff]  ;;  %15583 = vmatprep.mubr.msk.bf16.mxu0 %vm3854_vm1, %v16884_v35  ;;  %16223 = vmatprep.mubr.msk.bf16.mxu1 %vm3854_vm1, %v16885_v22 }
 0x1e1   : > { %v10288_v60 = vmax.f32 %v8486_v9, 0.0  ;;  %v25486_v41 = vmax.f32 %v18724_v47, 0.0  ;;  %v25487_v51 = vmax.f32 %v18729_v2, 0.0  ;;  %v25489_v52 = vmax.f32 %v25488_v26, 0.0  ;;  %v8488_v29 = vpop.f32.mrf.mxu1  ;;  %v25495_v9 = vld [vmem:[#allocation85_spill] sm:$0xff]  ;;  %v25497_v47 = vld [vmem:[#allocation86_spill] sm:$0xff] }
 0x1e2   : > { %v25491_v4 = vmax.f32 %v25490_v23, 0.0  ;;  %v25494_v12 = vmax.f32 %v25493_v46, 0.0  ;;  %v25496_v32 = vmax.f32 %v25495_v9, 0.0  ;;  %v25499_v2 = vld [vmem:[#allocation87_spill] sm:$0xff]  ;;  %v5937_v33 = vadd.f32 %v18779_v39, %v15482_v19  ;;  %v16888_v35 = vld [vmem:[%s17242_s29 + $0x3a0] sm:$0xff]  }
 0x1e3   : > { %v10831_v38 = vmax.f32 %v25486_v41, %v9647_v40  ;;  %v10991_v7 = vmax.f32 %v25487_v51, %v10287_v21  ;;  %v19195_v6 = vmax.f32 %v25489_v52, %v9645_v34  ;;  %v25498_v40 = vmax.f32 %v25497_v47, 0.0  ;;  %v19213_v52 = vpop.f32.mrf.mxu0  ;;  %v25502_v34 = vld [vmem:[#allocation14_spill] sm:$0xff]  ;;  %v25503_v51 = vld [vmem:[#allocation17_spill] sm:$0xff] }
 0x1e4   : > { %v19199_v56 = vmax.f32 %v25491_v4, %v10285_v45  ;;  %v10834_v54 = vmax.f32 %v25494_v12, %v9650_v63  ;;  %v10994_v10 = vmax.f32 %v25496_v32, %v10290_v58  ;;  %v25500_v21 = vmax.f32 %v25499_v2, 0.0  ;;  %v25504_v63 = vld [vmem:[#allocation51_spill] sm:$0xff]  ;;  %v19222_v58 = vpop.f32.mrf.mxu1  ;;  %v25507_v12 = vld [vmem:[#allocation52_spill] sm:$0xff]  ;;  %v16889_v4 = vld [vmem:[%s17242_s29 + $0xda0] sm:$0xff]  }
 0x1e5   : > { %v19207_v41 = vmax.f32 %v25498_v40, %v9648_v55  ;;  %v11087_v45 = vmax.f32 %v25502_v34, %v10831_v38  ;;  %v11247_v23 = vmax.f32 %v25503_v51, %v10991_v7  ;;  %v19231_v40 = vpop.f32.mrf.mxu0  ;;  %v16886_v34 = vld [vmem:[%s17242_s29 + $0x398] sm:$0xff]   ;;  %v25512_v51 = vld [vmem:[#allocation88_spill] sm:$0xff]  ;;  %v9651_v22 = vmax.f32 %v5937_v33, 0.0 }
 0x1e6   : > { %25492 = vst [vmem:[#allocation15_spill] sm:$0xff] %v19199_v56  ;;  %v19211_v26 = vmax.f32 %v25500_v21, %v10288_v60  ;;  %v25506_v60 = vld [vmem:[#allocation20_spill] sm:$0xff]  ;;  %v11250_v9 = vmax.f32 %v25507_v12, %v10994_v10  ;;  %v8497_v10 = vadd.f32 %v18779_v39, %v16122_v28  ;;  %v10257_v12 = vmax.f32 %v18792_v25, 0.0  ;;  %v16887_v28 = vld [vmem:[%s17242_s29 + $0xd98] sm:$0xff]  }
 0x1e7   : > { %v11090_v46 = vmax.f32 %v25506_v60, %v10834_v54  ;;  %v19234_v2 = vpack.c.bf16 %v11087_v45, %v11086_v3  ;;  %v19236_v21 = vpack.c.bf16 %v11247_v23, %v11246_v24  ;;  %v19240_v54 = vpop.f32.mrf.mxu1  ;;  %v9619_v60 = vmax.f32 %v25512_v51, 0.0  ;;  %v19249_v3 = vld [vmem:[%s24956_s2] ss:$0 sm:$0xff]  ;;  %v19253_v39 = vpop.f32.mrf.mxu0  ;;  %v25513_v51 = vld [vmem:[#allocation89_spill] sm:$0xff]  ;;  %15584 = vmatmul.mubr.msk.bf16.gmra.mxu0 %vm3854_vm1, %v16886_v34  ;;  %16224 = vmatmul.mubr.msk.bf16.gmra.mxu1 %vm3854_vm1, %v16887_v28  ;;  %v16891_v28 = vld [vmem:[%s17242_s29 + $0xda8] sm:$0xff]  }
 0x1e8   : > { %25501 = vst [vmem:[#allocation68_spill] sm:$0xff] %v19211_v26  ;;  %v5929_v24 = vadd.f32 %v19249_v3, %v5928_v30  ;;  %v8489_v19 = vadd.f32 %v19249_v3, %v8488_v29  ;;  %v10291_v45 = vmax.f32 %v8497_v10, 0.0  ;;  %v9617_v47 = vmax.f32 %v25513_v51, 0.0  ;;  %v25516_v10 = vld [vmem:[#allocation55_spill] sm:$0xff]  ;;  %15587 = vmatprep.mubr.msk.bf16.mxu0 %vm3854_vm1, %v16888_v35  ;;  %16227 = vmatprep.mubr.msk.bf16.mxu1 %vm3854_vm1, %v16889_v4 }
 0x1e9   : > { %25510 = vst [vmem:[#allocation69_spill] sm:$0xff] %v19234_v2  ;;  %25511 = vst [vmem:[#allocation70_spill] sm:$0xff] %v19236_v21  ;;  %v19257_v23 = vpop.f32.mrf.mxu1  ;;  %v19260_v38 = vpop.f32.mrf.mxu0  ;;  %v10835_v21 = vmax.f32 %v9619_v60, %v9651_v22  ;;  %v25514_v30 = vmax.f32 %v18759_v16, 0.0  ;;  %v25518_v16 = vld [vmem:[#allocation57_spill] sm:$0xff]  ;;  %v25523_v35 = vmax.f32 %v25398_v57, %v18945_v62  ;;  %v16893_v62 = vld [vmem:[%s17242_s29 + $0xdb0] sm:$0xff]  }
 0x1ea   : > { %v9649_v25 = vmax.f32 %v5929_v24, 0.0  ;;  %v10289_v55 = vmax.f32 %v8489_v19, 0.0  ;;  %v25517_v19 = vld [vmem:[#allocation56_spill] sm:$0xff] }
 0x1eb   : > { %v10995_v2 = vmax.f32 %v25514_v30, %v10291_v45  ;;  %v19265_v29 = vpop.f32.mrf.mxu1  ;;  %v19269_v33 = vpop.f32.mrf.mxu0  ;;  %v11091_v24 = vmax.f32 %v25516_v10, %v10835_v21  ;;  %v16890_v45 = vld [vmem:[%s17242_s29 + $0x3a8] sm:$0xff]   ;;  %v25522_v10 = vmax.f32 %v25385_v18, %v18914_v1 }
 0x1ec   : > { %v10833_v26 = vmax.f32 %v9617_v47, %v9649_v25  ;;  %v19267_v7 = vmax.f32 %v10257_v12, %v10289_v55  ;;  %v16913_v47 = vld [vmem:[%s17242_s29 + $0xe00] sm:$0xff]  }
 0x1ed   : > { %v11251_v51 = vmax.f32 %v25517_v19, %v10995_v2  ;;  %v19274_v60 = vpop.f32.mrf.mxu1  ;;  %v19280_v12 = vpop.f32.mrf.mxu0  ;;  %v19284_v34 = vpack.c.bf16 %v11091_v24, %v11090_v46  ;;  %v19303_v4 = vpack.c.bf16 %v25523_v35, %v25522_v10  ;;  %v25525_v46 = vmax.f32 %v25409_v13, %v18971_v36  ;;  %v16898_v35 = vld [vmem:[%s17242_s29 + $0x3c8] sm:$0xff]  }
 0x1ee   : > { %25515 = vst [vmem:[#allocation71_spill] sm:$0xff] %v19267_v7  ;;  %v11089_v22 = vmax.f32 %v25518_v16, %v10833_v26  ;;  %v16892_v26 = vld [vmem:[%s17242_s29 + $0x3b0] sm:$0xff]   ;;  %v25528_v19 = vmax.f32 %v17843_v42, %v18801_v27  ;;  %v25531_v36 = vmax.f32 %v25361_v11, %v18855_v49  ;;  %v25535_v27 = vmax.f32 %v25449_v14, %v19070_v5  ;;  %v16896_v16 = vld [vmem:[%s17242_s29 + $0x3c0] sm:$0xff]  }
 0x1ef   : > { %25520 = vst [vmem:[#allocation2_spill] sm:$0xff] %v19284_v34  ;;  %v19286_v21 = vpack.c.bf16 %v11251_v51, %v11250_v9  ;;  %v19288_v2 = vpop.f32.mrf.mxu1  ;;  %v19292_v25 = vpop.f32.mrf.mxu0  ;;  %25524 = vst [vmem:[#allocation3_spill] sm:$0xff] %v19303_v4  ;;  %v25526_v9 = vmax.f32 %v25424_v15, %v19007_v44  ;;  %v25529_v51 = vmax.f32 %v17878_v17, %v18827_v48  ;;  %15588 = vmatmul.mubr.msk.bf16.gmra.mxu0 %vm3854_vm1, %v16890_v45  ;;  %v16912_v4 = vld [vmem:[%s17242_s29 + $0x400] sm:$0xff]  }
 0x1f0   : > { %v25532_v44 = vmax.f32 %v25375_v59, %v18883_v61  ;;  %v25534_v17 = vmax.f32 %v25433_v8, %v19029_v0  ;;  %v25537_v49 = vmax.f32 %v25457_v37, %v19088_v50  ;;  %v25538_v61 = vmax.f32 %v25478_v53, %v19133_v43  ;;  %v25540_v59 = vld [vmem:[#allocation41_spill] sm:$0xff]  ;;  %16228 = vmatmul.mubr.msk.bf16.gmra.mxu1 %vm3854_vm1, %v16891_v28 }
 0x1f1   : > { %25521 = vst [vmem:[#allocation18_spill] sm:$0xff] %v19286_v21  ;;  %v19295_v30 = vpop.f32.mrf.mxu1  ;;  %v19311_v24 = vpack.c.bf16 %v25526_v9, %v25525_v46  ;;  %v19319_v1 = vpack.c.bf16 %v25529_v51, %v25528_v19  ;;  %v19321_v18 = vpop.f32.mrf.mxu0  ;;  %v25541_v15 = vmax.f32 %v25484_v20, %v25540_v59  ;;  %v25542_v0 = vmax.f32 %v25504_v63, %v19195_v6  ;;  %v16894_v53 = vld [vmem:[%s17242_s29 + $0x3b8] sm:$0xff]   ;;  %v16899_v9 = vld [vmem:[%s17242_s29 + $0xdc8] sm:$0xff]   ;;  %v16900_v51 = vld [vmem:[%s17242_s29 + $0x3d0] sm:$0xff]  }
 0x1f2   : > { %v19332_v13 = vpack.c.bf16 %v25532_v44, %v25531_v36  ;;  %v19343_v48 = vpack.c.bf16 %v25535_v27, %v25534_v17  ;;  %v19351_v11 = vpack.c.bf16 %v25538_v61, %v25537_v49  ;;  %15591 = vmatprep.mubr.msk.bf16.mxu0 %vm3854_vm1, %v16892_v26  ;;  %v25544_v43 = vmax.f32 %v25508_v31, %v19207_v41  ;;  %v16895_v20 = vld [vmem:[%s17242_s29 + $0xdb8] sm:$0xff]   ;;  %v16897_v41 = vld [vmem:[%s17242_s29 + $0xdc0] sm:$0xff]   ;;  %v16901_v36 = vld [vmem:[%s17242_s29 + $0xdd0] sm:$0xff]  }
 0x1f3   : > { %25527 = vst [vmem:[#allocation21_spill] sm:$0xff] %v19311_v24  ;;  %25530 = vst [vmem:[#allocation4_spill] sm:$0xff] %v19319_v1  ;;  %v19324_v57 = vpop.f32.mrf.mxu1  ;;  %v19334_v42 = vpop.f32.mrf.mxu0  ;;  %v19359_v8 = vpack.c.bf16 %v25542_v0, %v25541_v15  ;;  %16231 = vmatprep.mubr.msk.bf16.mxu1 %vm3854_vm1, %v16893_v62  ;;  %v16902_v59 = vld [vmem:[%s17242_s29 + $0x3d8] sm:$0xff]   ;;  %v16906_v21 = vld [vmem:[%s17242_s29 + $0x3e8] sm:$0xff]   ;;  %v19495_v24 = vadd.f32 %v19249_v3, %v19257_v23  ;;  %v19508_v7 = vadd.f32 %v19249_v3, %v19265_v29 }
 0x1f4   : > { %25533 = vst [vmem:[#allocation23_spill] sm:$0xff] %v19332_v13  ;;  %25536 = vst [vmem:[#allocation72_spill] sm:$0xff] %v19343_v48  ;;  %v19368_v50 = vpack.c.bf16 %v11089_v22, %v25544_v43  ;;  %v16903_v0 = vld [vmem:[%s17242_s29 + $0xdd8] sm:$0xff]   ;;  %v16964_v43 = vld [vmem:[%s24957_s3 + $0x8] sm:$0xff]   ;;  %v19471_v48 = vadd.f32 %v19249_v3, %v19222_v58  ;;  %v19475_v13 = vadd.f32 %v19249_v3, %v19231_v40 }
 0x1f5   : > { %25539 = vst [vmem:[#allocation73_spill] sm:$0xff] %v19351_v11  ;;  %25543 = vst [vmem:[#allocation6_spill] sm:$0xff] %v19359_v8  ;;  %v19361_v5 = vpop.f32.mrf.mxu1  ;;  %v19370_v14 = vpop.f32.mrf.mxu0  ;;  %16379 = vmatprep.subr.bf16.mxu1 %v16964_v43  ;;  %v16908_v8 = vld [vmem:[%s17242_s29 + $0x3f0] sm:$0xff]   ;;  %v16910_v40 = vld [vmem:[%s17242_s29 + $0x3f8] sm:$0xff]   ;;  %v19521_v32 = vadd.f32 %v19249_v3, %v19274_v60  ;;  %v19537_v56 = vadd.f32 %v19249_v3, %v19292_v25 }
 0x1f6   : > { %25545 = vst [vmem:[#allocation74_spill] sm:$0xff] %v19368_v50  ;;  %16380 = vmatpush3.bf16.msra.mxu1 %v16964_v43  ;;  %v16907_v43 = vld [vmem:[%s17242_s29 + $0xde8] sm:$0xff]   ;;  %v16909_v11 = vld [vmem:[%s17242_s29 + $0xdf0] sm:$0xff]   ;;  %v19570_v25 = vadd.f32 %v19249_v3, %v19361_v5 }
 0x1f7   : > { %v19373_v37 = vpop.f32.mrf.mxu1  ;;  %v19376_v6 = vpop.f32.mrf.mxu0  ;;  %15592 = vmatmul.mubr.msk.bf16.gmra.mxu0 %vm3854_vm1, %v16894_v53 }
 0x1f8   : > { %16232 = vmatmul.mubr.msk.bf16.gmra.mxu1 %vm3854_vm1, %v16895_v20  ;;  %15595 = vmatprep.mubr.msk.bf16.mxu0 %vm3854_vm1, %v16896_v16  ;;  %v16904_v20 = vld [vmem:[%s17242_s29 + $0x3e0] sm:$0xff]   ;;  %v19584_v5 = vadd.f32 %v19249_v3, %v19373_v37 }
 0x1f9   : > { %v19379_v63 = vpop.f32.mrf.mxu1  ;;  %v19382_v45 = vpop.f32.mrf.mxu0  ;;  %16235 = vmatprep.mubr.msk.bf16.mxu1 %vm3854_vm1, %v16897_v41  ;;  %v16905_v41 = vld [vmem:[%s17242_s29 + $0xde0] sm:$0xff]  }
 0x1fa   : > { %v19602_v37 = vadd.f32 %v19249_v3, %v19382_v45  ;;  %v16917_v45 = vld [vmem:[%s17242_s29 + $0xe10] sm:$0xff]  }
 0x1fb   : > { %v19385_v31 = vpop.f32.mrf.mxu1  ;;  %v19387_v22 = vpop.f32.mrf.mxu0 }
 0x1fd   : > { %v19390_v28 = vpop.f32.mrf.mxu1  ;;  %v19394_v26 = vpop.f32.mrf.mxu0 }
 0x1ff   : > { %v19397_v10 = vpop.f32.mrf.mxu1  ;;  %v19400_v46 = vpop.f32.mrf.mxu0  ;;  %15596 = vmatmul.mubr.msk.bf16.gmra.mxu0 %vm3854_vm1, %v16898_v35 }
 0x200   : > { %16236 = vmatmul.mubr.msk.bf16.gmra.mxu1 %vm3854_vm1, %v16899_v9  ;;  %15599 = vmatprep.mubr.msk.bf16.mxu0 %vm3854_vm1, %v16900_v51 }
 0x201   : > { %v19403_v19 = vpop.f32.mrf.mxu1  ;;  %v19406_v62 = vpop.f32.mrf.mxu0  ;;  %16239 = vmatprep.mubr.msk.bf16.mxu1 %vm3854_vm1, %v16901_v36 }
 0x203   : > { %v19409_v44 = vpop.f32.mrf.mxu1  ;;  %v19411_v17 = vpop.f32.mrf.mxu0 }
 0x205   : > { %v19414_v27 = vpop.f32.mrf.mxu1  ;;  %v19418_v49 = vpop.f32.mrf.mxu0 }
 0x207   : > { %v19421_v61 = vpop.f32.mrf.mxu1  ;;  %v19424_v15 = vpop.f32.mrf.mxu0  ;;  %15600 = vmatmul.mubr.msk.bf16.gmra.mxu0 %vm3854_vm1, %v16902_v59 }
 0x208   : > { %16240 = vmatmul.mubr.msk.bf16.gmra.mxu1 %vm3854_vm1, %v16903_v0  ;;  %15603 = vmatprep.mubr.msk.bf16.mxu0 %vm3854_vm1, %v16904_v20  ;;  %v19464_v20 = vadd.f32 %v19249_v3, %v19213_v52  ;;  %v19483_v52 = vadd.f32 %v19249_v3, %v19240_v54  ;;  %v16911_v54 = vld [vmem:[%s17242_s29 + $0xdf8] sm:$0xff]  }
 0x209   : > { %v19430_v53 = vpop.f32.mrf.mxu1  ;;  %v19433_v16 = vpop.f32.mrf.mxu0  ;;  %16243 = vmatprep.mubr.msk.bf16.mxu1 %vm3854_vm1, %v16905_v41 }
 0x20b   : > { %v19436_v35 = vpop.f32.mrf.mxu1  ;;  %v19438_v9 = vpop.f32.mrf.mxu0 }
 0x20d   : > { %v19441_v51 = vpop.f32.mrf.mxu1  ;;  %v19445_v36 = vpop.f32.mrf.mxu0 }
 0x20f   : > { %v19448_v55 = vpop.f32.mrf.mxu1  ;;  %v19451_v34 = vpop.f32.mrf.mxu0  ;;  %15604 = vmatmul.mubr.msk.bf16.gmra.mxu0 %vm3854_vm1, %v16906_v21  ;;  %v19487_v21 = vadd.f32 %v19249_v3, %v19253_v39  ;;  %v19525_v39 = vadd.f32 %v19249_v3, %v19280_v12  ;;  %v19561_v12 = vadd.f32 %v19249_v3, %v19334_v42 }
 0x210   : > { %16244 = vmatmul.mubr.msk.bf16.gmra.mxu1 %vm3854_vm1, %v16907_v43  ;;  %15607 = vmatprep.mubr.msk.bf16.mxu0 %vm3854_vm1, %v16908_v8  ;;  %v19499_v8 = vadd.f32 %v19249_v3, %v19260_v38  ;;  %v19598_v38 = vadd.f32 %v19249_v3, %v19379_v63  ;;  %v19616_v63 = vadd.f32 %v19249_v3, %v19387_v22 }
 0x211   : > { %v19454_v50 = vpop.f32.mrf.mxu1  ;;  %v19457_v59 = vpop.f32.mrf.mxu0  ;;  %16247 = vmatprep.mubr.msk.bf16.mxu1 %vm3854_vm1, %v16909_v11  ;;  %v19512_v11 = vadd.f32 %v19249_v3, %v19269_v33  ;;  %v16915_v33 = vld [vmem:[%s17242_s29 + $0xe08] sm:$0xff]  }
 0x213   : > { %v19460_v0 = vpop.f32.mrf.mxu1  ;;  %v19466_v41 = vpop.f32.mrf.mxu0 }
 0x214   : > { %25546 = vst [vmem:[#allocation75_spill] sm:$0xff] %v19466_v41 }
 0x215   : > { %v19477_v1 = vpop.f32.mrf.mxu1  ;;  %v19489_v58 = vpop.f32.mrf.mxu0 }
 0x216   : > { %25547 = vst [vmem:[#allocation7_spill] sm:$0xff] %v19477_v1  ;;  %25548 = vst [vmem:[#allocation43_spill] sm:$0xff] %v19489_v58  ;;  %v16920_v1 = vld [vmem:[%s17242_s29 + $0x420] sm:$0xff]  }
 0x217   : > { %v19501_v43 = vpop.f32.mrf.mxu1  ;;  %v19514_v23 = vpop.f32.mrf.mxu0  ;;  %15608 = vmatmul.mubr.msk.bf16.gmra.mxu0 %vm3854_vm1, %v16910_v40 }
 0x218   : > { %25549 = vst [vmem:[#allocation76_spill] sm:$0xff] %v19501_v43  ;;  %25550 = vst [vmem:[#allocation44_spill] sm:$0xff] %v19514_v23  ;;  %v19533_v23 = vadd.f32 %v19249_v3, %v19288_v2  ;;  %v19549_v43 = vadd.f32 %v19249_v3, %v19321_v18  ;;  %16248 = vmatmul.mubr.msk.bf16.gmra.mxu1 %vm3854_vm1, %v16911_v54  ;;  %15611 = vmatprep.mubr.msk.bf16.mxu0 %vm3854_vm1, %v16912_v4  ;;  %v16914_v54 = vld [vmem:[%s17242_s29 + $0x408] sm:$0xff]  }
 0x219   : > { %v19527_v29 = vpop.f32.mrf.mxu1  ;;  %v19539_v60 = vpop.f32.mrf.mxu0  ;;  %16251 = vmatprep.mubr.msk.bf16.mxu1 %vm3854_vm1, %v16913_v47  ;;  %v19612_v4 = vadd.f32 %v19249_v3, %v19385_v31  ;;  %v19629_v47 = vadd.f32 %v19249_v3, %v19394_v26 }
 0x21a   : > { %25551 = vst [vmem:[#allocation45_spill] sm:$0xff] %v19527_v29  ;;  %25552 = vst [vmem:[#allocation9_spill] sm:$0xff] %v19539_v60  ;;  %v19545_v29 = vadd.f32 %v19249_v3, %v19295_v30  ;;  %v19557_v60 = vadd.f32 %v19249_v3, %v19324_v57  ;;  %v19574_v57 = vadd.f32 %v19249_v3, %v19370_v14 }
 0x21b   : > { %v19551_v2 = vpop.f32.mrf.mxu1  ;;  %v19563_v30 = vpop.f32.mrf.mxu0  ;;  %v19588_v14 = vadd.f32 %v19249_v3, %v19376_v6 }
 0x21c   : > { %25553 = vst [vmem:[#allocation77_spill] sm:$0xff] %v19551_v2  ;;  %25554 = vst [vmem:[#allocation78_spill] sm:$0xff] %v19563_v30  ;;  %v19653_v2 = vadd.f32 %v19249_v3, %v19406_v62  ;;  %v19668_v62 = vadd.f32 %v19249_v3, %v19411_v17 }
 0x21d   : > { %v19576_v42 = vpop.f32.mrf.mxu1  ;;  %v19590_v18 = vpop.f32.mrf.mxu0 }
 0x21e   : > { %25555 = vst [vmem:[#allocation79_spill] sm:$0xff] %v19576_v42  ;;  %25556 = vst [vmem:[#allocation80_spill] sm:$0xff] %v19590_v18  ;;  %v16916_v42 = vld [vmem:[%s17242_s29 + $0x410] sm:$0xff]   ;;  %v19625_v18 = vadd.f32 %v19249_v3, %v19390_v28 }
 0x21f   : > { %v19604_v6 = vpop.f32.mrf.mxu1  ;;  %v19618_v40 = vpop.f32.mrf.mxu0  ;;  %25563 = vst [vmem:[#allocation13_spill] sm:$0xff] %v19653_v2  ;;  %15612 = vmatmul.mubr.msk.bf16.gmra.mxu0 %vm3854_vm1, %v16914_v54  ;;  %25566 = vst [vmem:[#allocation84_spill] sm:$0xff] %v19668_v62  ;;  %v16921_v62 = vld [vmem:[%s17242_s29 + $0xe20] sm:$0xff]  }
 0x220   : > { %25557 = vst [vmem:[#allocation10_spill] sm:$0xff] %v19604_v6  ;;  %25558 = vst [vmem:[#allocation11_spill] sm:$0xff] %v19618_v40  ;;  %v19637_v40 = vadd.f32 %v19249_v3, %v19397_v10  ;;  %v19641_v6 = vadd.f32 %v19249_v3, %v19400_v46  ;;  %16252 = vmatmul.mubr.msk.bf16.gmra.mxu1 %vm3854_vm1, %v16915_v33  ;;  %15615 = vmatprep.mubr.msk.bf16.mxu0 %vm3854_vm1, %v16916_v42  ;;  %v25567_v33 = vmax.f32 %v19464_v20, 0.0 }
 0x221   : > { %v19631_v31 = vpop.f32.mrf.mxu1  ;;  %v19643_v28 = vpop.f32.mrf.mxu0  ;;  %16255 = vmatprep.mubr.msk.bf16.mxu1 %vm3854_vm1, %v16917_v45  ;;  %v19708_v20 = vadd.f32 %v19249_v3, %v19421_v61  ;;  %v25573_v61 = vmax.f32 %v19487_v21, 0.0 }
 0x222   : > { %25559 = vst [vmem:[#allocation81_spill] sm:$0xff] %v19631_v31  ;;  %25560 = vst [vmem:[#allocation47_spill] sm:$0xff] %v19641_v6  ;;  %v19649_v31 = vadd.f32 %v19249_v3, %v19403_v19  ;;  %v19677_v19 = vadd.f32 %v19249_v3, %v19414_v27  ;;  %v19687_v27 = vadd.f32 %v19249_v3, %v19418_v49 }
 0x223   : > { %25561 = vst [vmem:[#allocation48_spill] sm:$0xff] %v19643_v28  ;;  %v19655_v10 = vpop.f32.mrf.mxu1  ;;  %v19661_v28 = vadd.f32 %v19249_v3, %v19409_v44  ;;  %v15517_v30 = vpop.f32.mrf.mxu0 }
 0x224   : > { %25562 = vst [vmem:[#allocation49_spill] sm:$0xff] %v19649_v31  ;;  %25564 = vst [vmem:[#allocation82_spill] sm:$0xff] %v19655_v10  ;;  %v6078_v10 = vadd.f32 %v19249_v3, %v15517_v30  ;;  %v16918_v30 = vld [vmem:[%s17242_s29 + $0x418] sm:$0xff]  }
 0x225   : > { %25565 = vst [vmem:[#allocation83_spill] sm:$0xff] %v19661_v28  ;;  %v16157_v22 = vpop.f32.mrf.mxu1  ;;  %v6069_v17 = vpop.f32.mrf.mxu0  ;;  %v16919_v28 = vld [vmem:[%s17242_s29 + $0xe18] sm:$0xff]  }
 0x226   : > { %v8638_v26 = vadd.f32 %v19249_v3, %v16157_v22  ;;  %v9686_v42 = vmax.f32 %v6078_v10, 0.0  ;;  %v6070_v44 = vadd.f32 %v19249_v3, %v6069_v17 }
 0x227   : > { %v8629_v46 = vpop.f32.mrf.mxu1  ;;  %v15518_v58 = vpop.f32.mrf.mxu0  ;;  %15616 = vmatmul.mubr.msk.bf16.gmra.mxu0 %vm3854_vm1, %v16918_v30  ;;  %v25574_v30 = vmax.f32 %v19495_v24, 0.0 }
 0x228   : > { %v10326_v22 = vmax.f32 %v8638_v26, 0.0  ;;  %v8630_v45 = vadd.f32 %v19249_v3, %v8629_v46  ;;  %v19694_v10 = vmax.f32 %v25567_v33, %v9686_v42  ;;  %v9684_v17 = vmax.f32 %v6070_v44, 0.0  ;;  %16256 = vmatmul.mubr.msk.bf16.gmra.mxu1 %vm3854_vm1, %v16919_v28  ;;  %15619 = vmatprep.mubr.msk.bf16.mxu0 %vm3854_vm1, %v16920_v1 }
 0x229   : > { %v6081_v2 = vadd.f32 %v19249_v3, %v15518_v58  ;;  %v16158_v54 = vpop.f32.mrf.mxu1  ;;  %v25568_v26 = vmax.f32 %v19471_v48, 0.0  ;;  %v6072_v31 = vpop.f32.mrf.mxu0  ;;  %v25570_v58 = vmax.f32 %v19475_v13, 0.0  ;;  %v19724_v13 = vadd.f32 %v19249_v3, %v19424_v15  ;;  %16259 = vmatprep.mubr.msk.bf16.mxu1 %vm3854_vm1, %v16921_v62 }
 0x22a   : > { %v10324_v46 = vmax.f32 %v8630_v45, 0.0  ;;  %v8641_v41 = vadd.f32 %v19249_v3, %v16158_v54  ;;  %v6073_v42 = vadd.f32 %v19249_v3, %v6072_v31  ;;  %v25575_v28 = vmax.f32 %v19499_v8, 0.0 }
 0x22b   : > { %v19702_v6 = vmax.f32 %v25568_v26, %v10326_v22  ;;  %v19712_v44 = vmax.f32 %v25570_v58, %v9684_v17  ;;  %v9687_v33 = vmax.f32 %v6081_v2, 0.0  ;;  %v8632_v49 = vpop.f32.mrf.mxu1  ;;  %v25571_v22 = vmax.f32 %v19483_v52, 0.0 }
 0x22c   : > { %v10327_v54 = vmax.f32 %v8641_v41, 0.0  ;;  %v8633_v26 = vadd.f32 %v19249_v3, %v8632_v49  ;;  %v9685_v31 = vmax.f32 %v6073_v42, 0.0  ;;  %v19735_v41 = vadd.f32 %v19249_v3, %v19430_v53 }
 0x22d   : > { %25569 = vst [vmem:[#allocation85_spill] sm:$0xff] %v19702_v6  ;;  %v19718_v45 = vmax.f32 %v25571_v22, %v10324_v46  ;;  %v15521_v6 = vpop.f32.mrf.mxu0  ;;  %v19728_v2 = vmax.f32 %v25573_v61, %v9687_v33  ;;  %v16161_v52 = vpop.f32.mrf.mxu1  ;;  %v19751_v33 = vadd.f32 %v19249_v3, %v19433_v16  ;;  %v25576_v42 = vmax.f32 %v19508_v7, 0.0  ;;  %v16924_v7 = vld [vmem:[%s17242_s29 + $0x430] sm:$0xff]  }
 0x22e   : > { %v6094_v17 = vadd.f32 %v19249_v3, %v15521_v6  ;;  %v19739_v15 = vmax.f32 %v25574_v30, %v10327_v54  ;;  %v10325_v21 = vmax.f32 %v8633_v26, 0.0  ;;  %v8654_v49 = vadd.f32 %v19249_v3, %v16161_v52  ;;  %v16922_v26 = vld [vmem:[%s17242_s29 + $0x428] sm:$0xff]   ;;  %v16925_v6 = vld [vmem:[%s17242_s29 + $0xe30] sm:$0xff]  }
 0x22f   : > { %25572 = vst [vmem:[#allocation86_spill] sm:$0xff] %v19718_v45  ;;  %v6085_v46 = vpop.f32.mrf.mxu0  ;;  %v19746_v1 = vmax.f32 %v25575_v28, %v9685_v31  ;;  %v8645_v58 = vpop.f32.mrf.mxu1  ;;  %v25578_v31 = vmax.f32 %v19512_v11, 0.0  ;;  %v19776_v11 = vadd.f32 %v19249_v3, %v19436_v35  ;;  %15620 = vmatmul.mubr.msk.bf16.gmra.mxu0 %vm3854_vm1, %v16922_v26  ;;  %v19792_v35 = vadd.f32 %v19249_v3, %v19438_v9 }
 0x230   : > { %v9690_v53 = vmax.f32 %v6094_v17, 0.0  ;;  %v6086_v24 = vadd.f32 %v19249_v3, %v6085_v46  ;;  %v19755_v22 = vmax.f32 %v25576_v42, %v10325_v21  ;;  %v10330_v62 = vmax.f32 %v8654_v49, 0.0  ;;  %v16923_v46 = vld [vmem:[%s17242_s29 + $0xe28] sm:$0xff]   ;;  %15623 = vmatprep.mubr.msk.bf16.mxu0 %vm3854_vm1, %v16924_v7 }
 0x231   : > { %v8646_v8 = vadd.f32 %v19249_v3, %v8645_v58  ;;  %v15522_v54 = vpop.f32.mrf.mxu0  ;;  %v16162_v30 = vpop.f32.mrf.mxu1  ;;  %v25579_v49 = vmax.f32 %v19521_v32, 0.0  ;;  %16260 = vmatmul.mubr.msk.bf16.gmra.mxu1 %vm3854_vm1, %v16923_v46  ;;  %v25587_v26 = vmax.f32 %v19545_v29, 0.0  ;;  %v25589_v46 = vmax.f32 %v19549_v43, 0.0 }
 0x232   : > { %25577 = vst [vmem:[#allocation87_spill] sm:$0xff] %v19755_v22  ;;  %v19762_v17 = vmax.f32 %v25578_v31, %v9690_v53  ;;  %v9688_v52 = vmax.f32 %v6086_v24, 0.0  ;;  %v6097_v16 = vadd.f32 %v19249_v3, %v15522_v54  ;;  %v8657_v42 = vadd.f32 %v19249_v3, %v16162_v30  ;;  %16263 = vmatprep.mubr.msk.bf16.mxu1 %vm3854_vm1, %v16925_v6 }
 0x233   : > { %v19770_v28 = vmax.f32 %v25579_v49, %v10330_v62  ;;  %v10328_v58 = vmax.f32 %v8646_v8, 0.0  ;;  %v6088_v61 = vpop.f32.mrf.mxu0  ;;  %v25581_v53 = vmax.f32 %v19525_v39, 0.0  ;;  %v8648_v21 = vpop.f32.mrf.mxu1  ;;  %v25583_v62 = vmax.f32 %v19533_v23, 0.0 }
 0x234   : > { %v9691_v54 = vmax.f32 %v6097_v16, 0.0  ;;  %v6089_v31 = vadd.f32 %v19249_v3, %v6088_v61  ;;  %v10331_v30 = vmax.f32 %v8657_v42, 0.0  ;;  %v8649_v49 = vadd.f32 %v19249_v3, %v8648_v21 }
 0x235   : > { %25580 = vst [vmem:[#allocation14_spill] sm:$0xff] %v19770_v28  ;;  %v19780_v24 = vmax.f32 %v25581_v53, %v9688_v52  ;;  %v19786_v8 = vmax.f32 %v25583_v62, %v10328_v58  ;;  %v15525_v48 = vpop.f32.mrf.mxu0  ;;  %v25585_v39 = vmax.f32 %v19537_v56, 0.0  ;;  %v16165_v23 = vpop.f32.mrf.mxu1  ;;  %v19803_v21 = vadd.f32 %v19249_v3, %v19441_v51 }
 0x236   : > { %v9689_v52 = vmax.f32 %v6089_v31, 0.0  ;;  %v6110_v16 = vadd.f32 %v19249_v3, %v15525_v48  ;;  %v19807_v9 = vmax.f32 %v25587_v26, %v10331_v30  ;;  %v10329_v56 = vmax.f32 %v8649_v49, 0.0  ;;  %v16926_v49 = vld [vmem:[%s17242_s29 + $0x438] sm:$0xff]   ;;  %v16929_v48 = vld [vmem:[%s17242_s29 + $0xe40] sm:$0xff]  }
 0x237   : > { %25582 = vst [vmem:[#allocation17_spill] sm:$0xff] %v19780_v24  ;;  %25584 = vst [vmem:[#allocation51_spill] sm:$0xff] %v19786_v8  ;;  %v19796_v61 = vmax.f32 %v25585_v39, %v9691_v54  ;;  %v8670_v58 = vadd.f32 %v19249_v3, %v16165_v23  ;;  %v6101_v42 = vpop.f32.mrf.mxu0  ;;  %v8661_v53 = vpop.f32.mrf.mxu1  ;;  %v19819_v54 = vadd.f32 %v19249_v3, %v19445_v36  ;;  %v25591_v31 = vmax.f32 %v19557_v60, 0.0  ;;  %v16928_v60 = vld [vmem:[%s17242_s29 + $0x440] sm:$0xff]   ;;  %v16972_v8 = vld [vmem:[%s17242_s29 + $0xee8] sm:$0xff]  }
 0x238   : > { %25588 = vst [vmem:[#allocation52_spill] sm:$0xff] %v19807_v9  ;;  %v19814_v7 = vmax.f32 %v25589_v46, %v9689_v52  ;;  %v9694_v51 = vmax.f32 %v6110_v16, 0.0  ;;  %v6102_v29 = vadd.f32 %v19249_v3, %v6101_v42  ;;  %v8662_v43 = vadd.f32 %v19249_v3, %v8661_v53  ;;  %v16927_v42 = vld [vmem:[%s17242_s29 + $0xe38] sm:$0xff]   ;;  %15624 = vmatmul.mubr.msk.bf16.gmra.mxu0 %vm3854_vm1, %v16926_v49 }
 0x239   : > { %25586 = vst [vmem:[#allocation20_spill] sm:$0xff] %v19796_v61  ;;  %v19823_v62 = vmax.f32 %v25591_v31, %v10329_v56  ;;  %v10334_v6 = vmax.f32 %v8670_v58, 0.0  ;;  %v15526_v30 = vpop.f32.mrf.mxu0  ;;  %v25593_v52 = vmax.f32 %v19561_v12, 0.0  ;;  %v16166_v26 = vpop.f32.mrf.mxu1  ;;  %v25595_v58 = vmax.f32 %v19570_v25, 0.0  ;;  %16264 = vmatmul.mubr.msk.bf16.gmra.mxu1 %vm3854_vm1, %v16927_v42  ;;  %15627 = vmatprep.mubr.msk.bf16.mxu0 %vm3854_vm1, %v16928_v60 }
 0x23a   : > { %25590 = vst [vmem:[#allocation53_spill] sm:$0xff] %v19814_v7  ;;  %v9692_v23 = vmax.f32 %v6102_v29, 0.0  ;;  %v6113_v36 = vadd.f32 %v19249_v3, %v15526_v30  ;;  %v10332_v53 = vmax.f32 %v8662_v43, 0.0  ;;  %v8673_v31 = vadd.f32 %v19249_v3, %v16166_v26  ;;  %16267 = vmatprep.mubr.msk.bf16.mxu1 %vm3854_vm1, %v16929_v48 }
 0x23b   : > { %25592 = vst [vmem:[#allocation88_spill] sm:$0xff] %v19823_v62  ;;  %v19830_v16 = vmax.f32 %v25593_v52, %v9694_v51  ;;  %v19838_v46 = vmax.f32 %v25595_v58, %v10334_v6  ;;  %v6104_v39 = vpop.f32.mrf.mxu0  ;;  %v19844_v12 = vadd.f32 %v19249_v3, %v19448_v55  ;;  %v25597_v51 = vmax.f32 %v19574_v57, 0.0  ;;  %v8664_v56 = vpop.f32.mrf.mxu1 }
 0x23c   : > { %v9695_v30 = vmax.f32 %v6113_v36, 0.0  ;;  %v6105_v52 = vadd.f32 %v19249_v3, %v6104_v39  ;;  %v25599_v6 = vmax.f32 %v19584_v5, 0.0  ;;  %v10335_v26 = vmax.f32 %v8673_v31, 0.0 }
 0x23d   : > { %25594 = vst [vmem:[#allocation89_spill] sm:$0xff] %v19830_v16  ;;  %25596 = vst [vmem:[#allocation55_spill] sm:$0xff] %v19838_v46  ;;  %v19848_v29 = vmax.f32 %v25597_v51, %v9692_v23  ;;  %v8665_v58 = vadd.f32 %v19249_v3, %v8664_v56  ;;  %v15529_v32 = vpop.f32.mrf.mxu0  ;;  %v19860_v55 = vadd.f32 %v19249_v3, %v19451_v34  ;;  %v25601_v57 = vmax.f32 %v19588_v14, 0.0  ;;  %v16169_v5 = vpop.f32.mrf.mxu1 }
 0x23e   : > { %v19854_v43 = vmax.f32 %v25599_v6, %v10332_v53  ;;  %v9693_v23 = vmax.f32 %v6105_v52, 0.0  ;;  %v6126_v36 = vadd.f32 %v19249_v3, %v15529_v32  ;;  %v19871_v56 = vadd.f32 %v19249_v3, %v19454_v50  ;;  %v16933_v32 = vld [vmem:[%s17242_s29 + $0xe50] sm:$0xff]  }
 0x23f   : > { %25598 = vst [vmem:[#allocation56_spill] sm:$0xff] %v19848_v29  ;;  %v19864_v39 = vmax.f32 %v25601_v57, %v9695_v30  ;;  %v25603_v49 = vmax.f32 %v19598_v38, 0.0  ;;  %v10333_v14 = vmax.f32 %v8665_v58, 0.0  ;;  %v8686_v53 = vadd.f32 %v19249_v3, %v16169_v5  ;;  %v6117_v31 = vpop.f32.mrf.mxu0  ;;  %v8677_v51 = vpop.f32.mrf.mxu1  ;;  %v16930_v58 = vld [vmem:[%s17242_s29 + $0x448] sm:$0xff]  }
 0x240   : > { %25600 = vst [vmem:[#allocation57_spill] sm:$0xff] %v19854_v43  ;;  %v25605_v42 = vmax.f32 %v19602_v37, 0.0  ;;  %v9698_v50 = vmax.f32 %v6126_v36, 0.0  ;;  %v6118_v38 = vadd.f32 %v19249_v3, %v6117_v31  ;;  %v19887_v30 = vadd.f32 %v19249_v3, %v19457_v59  ;;  %v16931_v31 = vld [vmem:[%s17242_s29 + $0xe48] sm:$0xff]   ;;  %15628 = vmatmul.mubr.msk.bf16.gmra.mxu0 %vm3854_vm1, %v16930_v58  ;;  %v25622_v58 = vld [vmem:[#allocation49_spill] sm:$0xff] }
 0x241   : > { %25602 = vst [vmem:[#allocation41_spill] sm:$0xff] %v19864_v39  ;;  %v19875_v34 = vmax.f32 %v25603_v49, %v10335_v26  ;;  %v25607_v52 = vmax.f32 %v19612_v4, 0.0  ;;  %v10338_v48 = vmax.f32 %v8686_v53, 0.0  ;;  %v8678_v37 = vadd.f32 %v19249_v3, %v8677_v51  ;;  %v15530_v26 = vpop.f32.mrf.mxu0  ;;  %v16170_v49 = vpop.f32.mrf.mxu1  ;;  %v16932_v4 = vld [vmem:[%s17242_s29 + $0x450] sm:$0xff]   ;;  %16268 = vmatmul.mubr.msk.bf16.gmra.mxu1 %vm3854_vm1, %v16931_v31  ;;  %v25625_v31 = vld [vmem:[#allocation13_spill] sm:$0xff] }
 0x242   : > { %v19882_v60 = vmax.f32 %v25605_v42, %v9693_v23  ;;  %v25609_v23 = vmax.f32 %v19616_v63, 0.0  ;;  %v9696_v5 = vmax.f32 %v6118_v38, 0.0  ;;  %v6129_v59 = vadd.f32 %v19249_v3, %v15530_v26  ;;  %15631 = vmatprep.mubr.msk.bf16.mxu0 %vm3854_vm1, %v16932_v4  ;;  %16271 = vmatprep.mubr.msk.bf16.mxu1 %vm3854_vm1, %v16933_v32  ;;  %v16968_v39 = vld [vmem:[%s17242_s29 + $0xed8] sm:$0xff]  }
 0x243   : > { %25604 = vst [vmem:[#allocation94_spill] sm:$0xff] %v19875_v34  ;;  %v19891_v6 = vmax.f32 %v25607_v52, %v10333_v14  ;;  %v25611_v53 = vmax.f32 %v19625_v18, 0.0  ;;  %v10336_v51 = vmax.f32 %v8678_v37, 0.0  ;;  %v8689_v52 = vadd.f32 %v19249_v3, %v16170_v49  ;;  %v6120_v57 = vpop.f32.mrf.mxu0  ;;  %v8680_v14 = vpop.f32.mrf.mxu1 }
 0x244   : > { %25606 = vst [vmem:[#allocation95_spill] sm:$0xff] %v19882_v60  ;;  %v19898_v36 = vmax.f32 %v25609_v23, %v9698_v50  ;;  %v19912_v63 = vadd.f32 %v19249_v3, %v19460_v0  ;;  %v25613_v50 = vmax.f32 %v19629_v47, 0.0  ;;  %v9699_v26 = vmax.f32 %v6129_v59, 0.0  ;;  %v19927_v0 = vld [vmem:[%s24956_s2] ss:$0 sm:$0xff]  ;;  %v25617_v59 = vld [vmem:[#allocation75_spill] sm:$0xff] }
 0x245   : > { %25608 = vst [vmem:[#allocation96_spill] sm:$0xff] %v19891_v6  ;;  %v19906_v42 = vmax.f32 %v25611_v53, %v10338_v48  ;;  %v6121_v23 = vadd.f32 %v19249_v3, %v6120_v57  ;;  %v25615_v48 = vmax.f32 %v19637_v40, 0.0  ;;  %v10339_v49 = vmax.f32 %v8689_v52, 0.0  ;;  %v25618_v57 = vld [vmem:[#allocation47_spill] sm:$0xff]  ;;  %v16967_v60 = vld [vmem:[%s17242_s29 + $0x4d8] sm:$0xff]  }
 0x246   : > { %25610 = vst [vmem:[#allocation97_spill] sm:$0xff] %v19898_v36  ;;  %v19916_v38 = vmax.f32 %v25613_v50, %v9696_v5  ;;  %v8681_v47 = vadd.f32 %v19927_v0, %v8680_v14  ;;  %v15533_v5 = vpop.f32.mrf.mxu0  ;;  %v19933_v3 = vadd.f32 %v19927_v0, %v25617_v59  ;;  %v25619_v53 = vmax.f32 %v25618_v57, 0.0  ;;  %v16173_v50 = vpop.f32.mrf.mxu1  ;;  %v25621_v14 = vld [vmem:[#allocation7_spill] sm:$0xff] }
 0x247   : > { %25612 = vst [vmem:[#allocation98_spill] sm:$0xff] %v19906_v42  ;;  %v19922_v37 = vmax.f32 %v25615_v48, %v10336_v51  ;;  %v9697_v51 = vmax.f32 %v6121_v23, 0.0  ;;  %v6142_v52 = vadd.f32 %v19927_v0, %v15533_v5  ;;  %v19944_v48 = vadd.f32 %v19927_v0, %v25621_v14  ;;  %v16937_v42 = vld [vmem:[%s17242_s29 + $0xe60] sm:$0xff]  }
 0x248   : > { %25614 = vst [vmem:[#allocation99_spill] sm:$0xff] %v19916_v38  ;;  %v19937_v40 = vmax.f32 %v25619_v53, %v9699_v26  ;;  %v25623_v18 = vmax.f32 %v25622_v58, 0.0  ;;  %v10337_v57 = vmax.f32 %v8681_v47, 0.0  ;;  %v8702_v26 = vadd.f32 %v19927_v0, %v16173_v50  ;;  %v6133_v23 = vpop.f32.mrf.mxu0  ;;  %v8693_v25 = vpop.f32.mrf.mxu1  ;;  %v25629_v47 = vld [vmem:[#allocation83_spill] sm:$0xff]  ;;  %v16935_v38 = vld [vmem:[%s17242_s29 + $0xe58] sm:$0xff]  }
 0x249   : > { %25616 = vst [vmem:[#allocation100_spill] sm:$0xff] %v19922_v37  ;;  %v25626_v53 = vmax.f32 %v25625_v31, 0.0  ;;  %v9702_v14 = vmax.f32 %v6142_v52, 0.0  ;;  %v6134_v58 = vadd.f32 %v19927_v0, %v6133_v23  ;;  %v25630_v50 = vmax.f32 %v25629_v47, 0.0  ;;  %v25632_v52 = vld [vmem:[#allocation84_spill] sm:$0xff]  ;;  %v16936_v47 = vld [vmem:[%s17242_s29 + $0x460] sm:$0xff]   ;;  %16272 = vmatmul.mubr.msk.bf16.gmra.mxu1 %vm3854_vm1, %v16935_v38 }
 0x24a   : > { %25620 = vst [vmem:[#allocation75_spill] sm:$0xff] %v19937_v40  ;;  %v19948_v59 = vmax.f32 %v25623_v18, %v10339_v49  ;;  %v25628_v18 = vld [vmem:[#allocation43_spill] sm:$0xff]  ;;  %v10342_v32 = vmax.f32 %v8702_v26, 0.0  ;;  %v8694_v31 = vadd.f32 %v19927_v0, %v8693_v25  ;;  %v15534_v5 = vpop.f32.mrf.mxu0  ;;  %v16174_v37 = vpop.f32.mrf.mxu1  ;;  %v25635_v26 = vmax.f32 %v19677_v19, 0.0  ;;  %16275 = vmatprep.mubr.msk.bf16.mxu1 %vm3854_vm1, %v16937_v42 }
 0x24b   : > { %v19955_v4 = vmax.f32 %v25626_v53, %v9697_v51  ;;  %v19960_v49 = vadd.f32 %v19927_v0, %v25628_v18  ;;  %v16934_v51 = vld [vmem:[%s17242_s29 + $0x458] sm:$0xff]   ;;  %v9700_v40 = vmax.f32 %v6134_v58, 0.0  ;;  %v6145_v18 = vadd.f32 %v19927_v0, %v15534_v5  ;;  %v16939_v19 = vld [vmem:[%s17242_s29 + $0xe68] sm:$0xff]  }
 0x24c   : > { %25624 = vst [vmem:[#allocation47_spill] sm:$0xff] %v19948_v59  ;;  %v19964_v59 = vmax.f32 %v25630_v50, %v10337_v57  ;;  %v19979_v50 = vmax.f32 %v25635_v26, %v10342_v32  ;;  %v10340_v25 = vmax.f32 %v8694_v31, 0.0  ;;  %v6136_v53 = vpop.f32.mrf.mxu0  ;;  %v25638_v5 = vmax.f32 %v19687_v27, 0.0  ;;  %15632 = vmatmul.mubr.msk.bf16.gmra.mxu0 %vm3854_vm1, %v16934_v51 }
 0x24d   : > { %25627 = vst [vmem:[#allocation7_spill] sm:$0xff] %v19955_v4  ;;  %v25633_v4 = vmax.f32 %v25632_v52, 0.0  ;;  %v25637_v52 = vld [vmem:[#allocation76_spill] sm:$0xff]  ;;  %v9703_v58 = vmax.f32 %v6145_v18, 0.0  ;;  %v6137_v57 = vadd.f32 %v19927_v0, %v6136_v53  ;;  %v25640_v32 = vmax.f32 %v19708_v20, 0.0  ;;  %15635 = vmatprep.mubr.msk.bf16.mxu0 %vm3854_vm1, %v16936_v47 }
 0x24e   : > { %25631 = vst [vmem:[#allocation49_spill] sm:$0xff] %v19964_v59  ;;  %25636 = vst [vmem:[#allocation43_spill] sm:$0xff] %v19979_v50  ;;  %v8705_v59 = vadd.f32 %v19927_v0, %v16174_v37  ;;  %v15537_v50 = vpop.f32.mrf.mxu0  ;;  %v25646_v51 = vmax.f32 %v19735_v41, 0.0  ;;  %v25648_v38 = vmax.f32 %v19751_v33, 0.0 }
 0x24f   : > { %v19971_v23 = vmax.f32 %v25633_v4, %v9702_v14  ;;  %v19985_v4 = vadd.f32 %v19927_v0, %v25637_v52  ;;  %v19989_v14 = vmax.f32 %v25638_v5, %v9700_v40  ;;  %v19995_v31 = vmax.f32 %v25640_v32, %v10340_v25  ;;  %v25642_v52 = vld [vmem:[#allocation44_spill] sm:$0xff] }
 0x250   : > { %v10343_v37 = vmax.f32 %v8705_v59, 0.0  ;;  %v20001_v27 = vadd.f32 %v19927_v0, %v25642_v52  ;;  %v25643_v40 = vmax.f32 %v19724_v13, 0.0  ;;  %v9701_v18 = vmax.f32 %v6137_v57, 0.0  ;;  %v25645_v59 = vld [vmem:[#allocation45_spill] sm:$0xff]  ;;  %v6149_v57 = vpop.f32.mrf.mxu0 }
 0x251   : > { %25634 = vst [vmem:[#allocation13_spill] sm:$0xff] %v19971_v23  ;;  %25639 = vst [vmem:[#allocation83_spill] sm:$0xff] %v19989_v14  ;;  %v8696_v23 = vpop.f32.mrf.mxu1  ;;  %v6158_v5 = vadd.f32 %v19927_v0, %v15537_v50  ;;  %v6150_v41 = vadd.f32 %v19927_v0, %v6149_v57  ;;  %16276 = vmatmul.mubr.msk.bf16.gmra.mxu1 %vm3854_vm1, %v16939_v19  ;;  %v25668_v19 = vmax.f32 %v19887_v30, 0.0 }
 0x252   : > { %25641 = vst [vmem:[#allocation84_spill] sm:$0xff] %v19995_v31  ;;  %v8697_v26 = vadd.f32 %v19927_v0, %v8696_v23  ;;  %v20005_v53 = vmax.f32 %v25643_v40, %v9703_v58  ;;  %v20012_v23 = vadd.f32 %v19927_v0, %v25645_v59  ;;  %v20016_v25 = vmax.f32 %v25646_v51, %v10343_v37  ;;  %v25650_v37 = vld [vmem:[#allocation9_spill] sm:$0xff]  ;;  %v15538_v59 = vpop.f32.mrf.mxu0  ;;  %v16966_v31 = vld [vmem:[%s17242_s29 + $0xed0] sm:$0xff]  }
 0x253   : > { %v16177_v20 = vpop.f32.mrf.mxu1  ;;  %v20023_v47 = vmax.f32 %v25648_v38, %v9701_v18  ;;  %v9706_v32 = vmax.f32 %v6158_v5, 0.0  ;;  %v25651_v40 = vmax.f32 %v19776_v11, 0.0  ;;  %v16938_v18 = vld [vmem:[%s17242_s29 + $0x468] sm:$0xff]   ;;  %v25653_v5 = vmax.f32 %v19792_v35, 0.0  ;;  %v16940_v11 = vld [vmem:[%s17242_s29 + $0x470] sm:$0xff]   ;;  %v25657_v35 = vld [vmem:[#allocation77_spill] sm:$0xff] }
 0x254   : > { %25644 = vst [vmem:[#allocation76_spill] sm:$0xff] %v20005_v53  ;;  %25647 = vst [vmem:[#allocation44_spill] sm:$0xff] %v20016_v25  ;;  %v10341_v13 = vmax.f32 %v8697_v26, 0.0  ;;  %v8718_v58 = vadd.f32 %v19927_v0, %v16177_v20  ;;  %v20028_v26 = vadd.f32 %v19927_v0, %v25650_v37  ;;  %v9704_v38 = vmax.f32 %v6150_v41, 0.0  ;;  %v6152_v51 = vpop.f32.mrf.mxu0  ;;  %15636 = vmatmul.mubr.msk.bf16.gmra.mxu0 %vm3854_vm1, %v16938_v18  ;;  %v16963_v25 = vld [vmem:[%s17242_s29 + $0xec8] sm:$0xff]   ;;  %v16965_v53 = vld [vmem:[%s17242_s29 + $0x4d0] sm:$0xff]  }
 0x255   : > { %25649 = vst [vmem:[#allocation45_spill] sm:$0xff] %v20023_v47  ;;  %v8709_v52 = vpop.f32.mrf.mxu1  ;;  %v20039_v57 = vmax.f32 %v25653_v5, %v9706_v32  ;;  %v6161_v37 = vadd.f32 %v19927_v0, %v15538_v59  ;;  %v16941_v47 = vld [vmem:[%s17242_s29 + $0xe70] sm:$0xff]   ;;  %v20053_v32 = vadd.f32 %v19927_v0, %v25657_v35  ;;  %v25658_v41 = vmax.f32 %v19819_v54, 0.0  ;;  %v25662_v35 = vld [vmem:[#allocation78_spill] sm:$0xff]  ;;  %15639 = vmatprep.mubr.msk.bf16.mxu0 %vm3854_vm1, %v16940_v11 }
 0x256   : > { %v20032_v20 = vmax.f32 %v25651_v40, %v10341_v13  ;;  %v10346_v42 = vmax.f32 %v8718_v58, 0.0  ;;  %v8710_v33 = vadd.f32 %v19927_v0, %v8709_v52  ;;  %v25655_v58 = vmax.f32 %v19803_v21, 0.0  ;;  %16279 = vmatprep.mubr.msk.bf16.mxu1 %vm3854_vm1, %v16941_v47  ;;  %v16943_v21 = vld [vmem:[%s17242_s29 + $0xe78] sm:$0xff]  }
 0x257   : > { %25654 = vst [vmem:[#allocation101_spill] sm:$0xff] %v20039_v57  ;;  %v16178_v50 = vpop.f32.mrf.mxu1  ;;  %v20057_v59 = vmax.f32 %v25658_v41, %v9704_v38  ;;  %v9707_v5 = vmax.f32 %v6161_v37, 0.0  ;;  %v6153_v13 = vadd.f32 %v19927_v0, %v6152_v51  ;;  %v20069_v54 = vadd.f32 %v19927_v0, %v25662_v35 }
 0x258   : > { %25652 = vst [vmem:[#allocation9_spill] sm:$0xff] %v20032_v20  ;;  %v20047_v40 = vmax.f32 %v25655_v58, %v10346_v42  ;;  %v10344_v52 = vmax.f32 %v8710_v33, 0.0  ;;  %v8721_v20 = vadd.f32 %v19927_v0, %v16178_v50  ;;  %v25660_v42 = vmax.f32 %v19844_v12, 0.0 }
 0x259   : > { %25659 = vst [vmem:[#allocation77_spill] sm:$0xff] %v20057_v59  ;;  %v8712_v57 = vpop.f32.mrf.mxu1  ;;  %v25663_v38 = vmax.f32 %v19860_v55, 0.0  ;;  %v9705_v37 = vmax.f32 %v6153_v13, 0.0  ;;  %v25666_v18 = vmax.f32 %v19871_v56, 0.0  ;;  %16280 = vmatmul.mubr.msk.bf16.gmra.mxu1 %vm3854_vm1, %v16943_v21 }
 0x25a   : > { %25656 = vst [vmem:[#allocation102_spill] sm:$0xff] %v20047_v40  ;;  %v20063_v33 = vmax.f32 %v25660_v42, %v10344_v52  ;;  %v10347_v50 = vmax.f32 %v8721_v20, 0.0  ;;  %v8713_v58 = vadd.f32 %v19927_v0, %v8712_v57  ;;  %v15541_v40 = vpop.f32.mrf.mxu0  ;;  %v25665_v20 = vld [vmem:[#allocation79_spill] sm:$0xff] }
 0x25b   : > { %v20073_v51 = vmax.f32 %v25663_v38, %v9707_v5  ;;  %v6174_v41 = vadd.f32 %v19927_v0, %v15541_v40  ;;  %v16181_v12 = vpop.f32.mrf.mxu1  ;;  %v20080_v57 = vadd.f32 %v19927_v0, %v25665_v20  ;;  %v10317_v40 = vmax.f32 %v20053_v32, 0.0 }
 0x25c   : > { %25661 = vst [vmem:[#allocation103_spill] sm:$0xff] %v20063_v33  ;;  %v20084_v52 = vmax.f32 %v25666_v18, %v10347_v50  ;;  %v10345_v55 = vmax.f32 %v8713_v58, 0.0  ;;  %v8734_v5 = vadd.f32 %v19927_v0, %v16181_v12  ;;  %v6165_v13 = vpop.f32.mrf.mxu0  ;;  %v20091_v11 = vmax.f32 %v25668_v19, %v9705_v37  ;;  %v25670_v50 = vld [vmem:[#allocation80_spill] sm:$0xff]  ;;  %v16942_v37 = vld [vmem:[%s17242_s29 + $0x478] sm:$0xff]   ;;  %v16962_v33 = vld [vmem:[%s17242_s29 + $0x4c8] sm:$0xff]  }
 0x25d   : > { %25664 = vst [vmem:[#allocation78_spill] sm:$0xff] %v20073_v51  ;;  %v9710_v42 = vmax.f32 %v6174_v41, 0.0  ;;  %v6166_v56 = vadd.f32 %v19927_v0, %v6165_v13  ;;  %v8725_v35 = vpop.f32.mrf.mxu1  ;;  %v20096_v58 = vadd.f32 %v19927_v0, %v25670_v50  ;;  %v25671_v38 = vmax.f32 %v19912_v63, 0.0  ;;  %v16944_v63 = vld [vmem:[%s17242_s29 + $0x480] sm:$0xff]   ;;  %15640 = vmatmul.mubr.msk.bf16.gmra.mxu0 %vm3854_vm1, %v16942_v37 }
 0x25e   : > { %25667 = vst [vmem:[#allocation79_spill] sm:$0xff] %v20084_v52  ;;  %25669 = vst [vmem:[#allocation104_spill] sm:$0xff] %v20091_v11  ;;  %v10350_v47 = vmax.f32 %v8734_v5, 0.0  ;;  %v8726_v30 = vadd.f32 %v19927_v0, %v8725_v35  ;;  %v15542_v32 = vpop.f32.mrf.mxu0  ;;  %v9682_v20 = vmax.f32 %v20069_v54, 0.0  ;;  %v25673_v41 = vmax.f32 %v19933_v3, 0.0  ;;  %v16945_v11 = vld [vmem:[%s17242_s29 + $0xe80] sm:$0xff]   ;;  %15643 = vmatprep.mubr.msk.bf16.mxu0 %vm3854_vm1, %v16944_v63 }
 0x25f   : > { %v20100_v12 = vmax.f32 %v25671_v38, %v10345_v55  ;;  %v9708_v13 = vmax.f32 %v6166_v56, 0.0  ;;  %v6177_v19 = vadd.f32 %v19927_v0, %v15542_v32  ;;  %v16182_v50 = vpop.f32.mrf.mxu1  ;;  %v10322_v55 = vmax.f32 %v20080_v57, 0.0  ;;  %v25677_v3 = vld [vmem:[#allocation10_spill] sm:$0xff]  ;;  %16283 = vmatprep.mubr.msk.bf16.mxu1 %vm3854_vm1, %v16945_v11 }
 0x260   : > { %v20107_v18 = vmax.f32 %v25673_v41, %v9710_v42  ;;  %v25675_v5 = vmax.f32 %v19944_v48, 0.0  ;;  %v10348_v35 = vmax.f32 %v8726_v30, 0.0  ;;  %v6168_v54 = vpop.f32.mrf.mxu0  ;;  %v8614_v42 = vadd.f32 %v19927_v0, %v25677_v3  ;;  %v25682_v3 = vld [vmem:[#allocation11_spill] sm:$0xff] }
 0x261   : > { %25672 = vst [vmem:[#allocation80_spill] sm:$0xff] %v20100_v12  ;;  %v8737_v12 = vadd.f32 %v19927_v0, %v16182_v50  ;;  %v25678_v56 = vmax.f32 %v19960_v49, 0.0  ;;  %v9711_v41 = vmax.f32 %v6177_v19, 0.0  ;;  %v8728_v57 = vpop.f32.mrf.mxu1  ;;  %v9680_v48 = vmax.f32 %v20096_v58, 0.0 }
 0x262   : > { %25674 = vst [vmem:[#allocation105_spill] sm:$0xff] %v20107_v18  ;;  %v20115_v38 = vmax.f32 %v25675_v5, %v10350_v47  ;;  %v6169_v18 = vadd.f32 %v19927_v0, %v6168_v54  ;;  %v25680_v47 = vmax.f32 %v19985_v4, 0.0  ;;  %v8729_v5 = vadd.f32 %v19927_v0, %v8728_v57  ;;  %v25685_v4 = vld [vmem:[#allocation81_spill] sm:$0xff] }
 0x263   : > { %v20123_v32 = vmax.f32 %v25678_v56, %v9708_v13  ;;  %v10351_v50 = vmax.f32 %v8737_v12, 0.0  ;;  %v6065_v49 = vadd.f32 %v19927_v0, %v25682_v3  ;;  %v25683_v13 = vmax.f32 %v20001_v27, 0.0  ;;  %v16185_v56 = vpop.f32.mrf.mxu1  ;;  %v25690_v3 = vld [vmem:[#allocation82_spill] sm:$0xff] }
 0x264   : > { %25676 = vst [vmem:[#allocation106_spill] sm:$0xff] %v20115_v38  ;;  %v20129_v30 = vmax.f32 %v25680_v47, %v10348_v35  ;;  %v15545_v38 = vpop.f32.mrf.mxu0  ;;  %v9709_v54 = vmax.f32 %v6169_v18, 0.0  ;;  %v8625_v12 = vadd.f32 %v19927_v0, %v25685_v4  ;;  %v25686_v37 = vmax.f32 %v20012_v23, 0.0 }
 0x265   : > { %25679 = vst [vmem:[#allocation10_spill] sm:$0xff] %v20123_v32  ;;  %v20137_v19 = vmax.f32 %v25683_v13, %v9711_v41  ;;  %v6190_v58 = vadd.f32 %v19927_v0, %v15545_v38  ;;  %v10349_v57 = vmax.f32 %v8729_v5, 0.0  ;;  %v8750_v27 = vadd.f32 %v19927_v0, %v16185_v56  ;;  %v8741_v23 = vpop.f32.mrf.mxu1  ;;  %v16946_v56 = vld [vmem:[%s17242_s29 + $0x488] sm:$0xff]  }
 0x266   : > { %25681 = vst [vmem:[#allocation107_spill] sm:$0xff] %v20129_v30  ;;  %v20146_v35 = vmax.f32 %v25686_v37, %v10351_v50  ;;  %v6181_v41 = vpop.f32.mrf.mxu0  ;;  %v10320_v18 = vmax.f32 %v8614_v42, 0.0  ;;  %v25688_v38 = vmax.f32 %v20028_v26, 0.0  ;;  %v8617_v50 = vadd.f32 %v19927_v0, %v25690_v3  ;;  %v25692_v26 = vld [vmem:[#allocation48_spill] sm:$0xff]  ;;  %15644 = vmatmul.mubr.msk.bf16.gmra.mxu0 %vm3854_vm1, %v16946_v56 }
 0x267   : > { %25684 = vst [vmem:[#allocation11_spill] sm:$0xff] %v20137_v19  ;;  %v9714_v63 = vmax.f32 %v6190_v58, 0.0  ;;  %v6182_v47 = vadd.f32 %v19927_v0, %v6181_v41  ;;  %v20157_v5 = vmax.f32 %v10317_v40, %v10349_v57  ;;  %v10354_v13 = vmax.f32 %v8750_v27, 0.0  ;;  %v16186_v41 = vpop.f32.mrf.mxu1 }
 0x268   : > { %25687 = vst [vmem:[#allocation81_spill] sm:$0xff] %v20146_v35  ;;  %v20152_v21 = vmax.f32 %v25688_v38, %v9709_v54  ;;  %v8742_v11 = vadd.f32 %v19927_v0, %v8741_v23  ;;  %v15546_v42 = vpop.f32.mrf.mxu0  ;;  %v6057_v54 = vadd.f32 %v19927_v0, %v25692_v26  ;;  %v16947_v38 = vld [vmem:[%s17242_s29 + $0xe88] sm:$0xff]   ;;  %v10323_v3 = vmax.f32 %v8625_v12, 0.0 }
 0x269   : > { %25691 = vst [vmem:[#allocation82_spill] sm:$0xff] %v20157_v5  ;;  %v20163_v4 = vmax.f32 %v9682_v20, %v9714_v63  ;;  %v9712_v58 = vmax.f32 %v6182_v47, 0.0  ;;  %v6193_v37 = vadd.f32 %v19927_v0, %v15546_v42  ;;  %v20168_v40 = vmax.f32 %v10322_v55, %v10354_v13  ;;  %v16949_v5 = vld [vmem:[%s17242_s29 + $0xe90] sm:$0xff]   ;;  %v8744_v63 = vpop.f32.mrf.mxu1  ;;  %16284 = vmatmul.mubr.msk.bf16.gmra.mxu1 %vm3854_vm1, %v16947_v38 }
 0x26a   : > { %25689 = vst [vmem:[#allocation108_spill] sm:$0xff] %v20152_v21  ;;  %v16948_v21 = vld [vmem:[%s17242_s29 + $0x490] sm:$0xff]   ;;  %v10352_v57 = vmax.f32 %v8742_v11, 0.0  ;;  %v8753_v27 = vadd.f32 %v19927_v0, %v16186_v41  ;;  %v6184_v23 = vpop.f32.mrf.mxu0  ;;  %v9683_v35 = vmax.f32 %v6065_v49, 0.0  ;;  %v10321_v47 = vmax.f32 %v8617_v50, 0.0  ;;  %16287 = vmatprep.mubr.msk.bf16.mxu1 %vm3854_vm1, %v16949_v5  ;;  %v16950_v41 = vld [vmem:[%s17242_s29 + $0x498] sm:$0xff]  }
 0x26b   : > { %25693 = vst [vmem:[#allocation48_spill] sm:$0xff] %v20163_v4  ;;  %25694 = vst [vmem:[#allocation109_spill] sm:$0xff] %v20168_v40  ;;  %v20172_v19 = vmax.f32 %v9680_v48, %v9712_v58  ;;  %v9715_v26 = vmax.f32 %v6193_v37, 0.0  ;;  %v6185_v20 = vadd.f32 %v19927_v0, %v6184_v23  ;;  %v8745_v12 = vadd.f32 %v19927_v0, %v8744_v63  ;;  %v20183_v11 = vpop.f32.mrf.mxu1 }
 0x26c   : > { %v20175_v42 = vmax.f32 %v10320_v18, %v10352_v57  ;;  %v10355_v4 = vmax.f32 %v8753_v27, 0.0  ;;  %v20178_v55 = vpop.f32.mrf.mxu0  ;;  %v9681_v13 = vmax.f32 %v6057_v54, 0.0  ;;  %15647 = vmatprep.mubr.msk.bf16.mxu0 %vm3854_vm1, %v16948_v21  ;;  %v16951_v21 = vld [vmem:[%s17242_s29 + $0xe98] sm:$0xff]   ;;  %v16953_v57 = vld [vmem:[%s17242_s29 + $0xea0] sm:$0xff]   ;;  %v20298_v6 = vadd.f32 %v19927_v0, %v20183_v11 }
 0x26d   : > { %25695 = vst [vmem:[#allocation110_spill] sm:$0xff] %v20172_v19  ;;  %v20181_v49 = vmax.f32 %v9683_v35, %v9715_v26  ;;  %v9713_v48 = vmax.f32 %v6185_v20, 0.0  ;;  %v10353_v50 = vmax.f32 %v8745_v12, 0.0  ;;  %v20194_v35 = vpop.f32.mrf.mxu1  ;;  %v16959_v19 = vld [vmem:[%s17242_s29 + $0xeb8] sm:$0xff]   ;;  %v20294_v36 = vadd.f32 %v19927_v0, %v20178_v55 }
 0x26e   : > { %25696 = vst [vmem:[#allocation111_spill] sm:$0xff] %v20175_v42  ;;  %v20187_v18 = vmax.f32 %v10323_v3, %v10355_v4  ;;  %v20189_v58 = vpop.f32.mrf.mxu0  ;;  %v16952_v4 = vld [vmem:[%s17242_s29 + $0x4a0] sm:$0xff]   ;;  %15648 = vmatmul.mubr.msk.bf16.gmra.mxu0 %vm3854_vm1, %v16950_v41  ;;  %v16957_v41 = vld [vmem:[%s17242_s29 + $0xeb0] sm:$0xff]  }
 0x26f   : > { %25697 = vst [vmem:[#allocation112_spill] sm:$0xff] %v20181_v49  ;;  %v20192_v56 = vmax.f32 %v9681_v13, %v9713_v48  ;;  %v20196_v54 = vmax.f32 %v10321_v47, %v10353_v50  ;;  %v20201_v38 = vpop.f32.mrf.mxu1  ;;  %15651 = vmatprep.mubr.msk.bf16.mxu0 %vm3854_vm1, %v16952_v4  ;;  %v16954_v47 = vld [vmem:[%s17242_s29 + $0x4a8] sm:$0xff]   ;;  %v16956_v48 = vld [vmem:[%s17242_s29 + $0x4b0] sm:$0xff]   ;;  %v16958_v49 = vld [vmem:[%s17242_s29 + $0x4b8] sm:$0xff]  }
 0x270   : > { %25698 = vst [vmem:[#allocation113_spill] sm:$0xff] %v20187_v18  ;;  %v20198_v37 = vpop.f32.mrf.mxu0  ;;  %v16955_v13 = vld [vmem:[%s17242_s29 + $0xea8] sm:$0xff]   ;;  %v20319_v11 = vadd.f32 %v19927_v0, %v20201_v38 }
 0x271   : > { %25699 = vst [vmem:[#allocation114_spill] sm:$0xff] %v20192_v56  ;;  %25700 = vst [vmem:[#allocation115_spill] sm:$0xff] %v20196_v54  ;;  %v20208_v5 = vpop.f32.mrf.mxu1  ;;  %16288 = vmatmul.mubr.msk.bf16.gmra.mxu1 %vm3854_vm1, %v16951_v21 }
 0x272   : > { %v20205_v3 = vpop.f32.mrf.mxu0  ;;  %16291 = vmatprep.mubr.msk.bf16.mxu1 %vm3854_vm1, %v16953_v57  ;;  %v20331_v43 = vadd.f32 %v19927_v0, %v20208_v5 }
 0x273   : > { %v20213_v23 = vpop.f32.mrf.mxu1  ;;  %v20323_v34 = vadd.f32 %v19927_v0, %v20205_v3  ;;  %v16970_v3 = vld [vmem:[%s17242_s29 + $0xee0] sm:$0xff]  }
 0x274   : > { %v20210_v27 = vpop.f32.mrf.mxu0  ;;  %v20339_v38 = vadd.f32 %v19927_v0, %v20213_v23 }
 0x275   : > { %v20220_v20 = vpop.f32.mrf.mxu1 }
 0x276   : > { %v20217_v26 = vpop.f32.mrf.mxu0  ;;  %15652 = vmatmul.mubr.msk.bf16.gmra.mxu0 %vm3854_vm1, %v16954_v47  ;;  %v16960_v47 = vld [vmem:[%s17242_s29 + $0x4c0] sm:$0xff]   ;;  %v20357_v9 = vadd.f32 %v19927_v0, %v20220_v20 }
 0x277   : > { %v20225_v12 = vpop.f32.mrf.mxu1  ;;  %15655 = vmatprep.mubr.msk.bf16.mxu0 %vm3854_vm1, %v16956_v48  ;;  %v20348_v62 = vadd.f32 %v19927_v0, %v20217_v26 }
 0x278   : > { %v20222_v63 = vpop.f32.mrf.mxu0  ;;  %25702 = vst [vmem:[#allocation117_spill] sm:$0xff] %v20357_v9  ;;  %v20370_v7 = vadd.f32 %v19927_v0, %v20225_v12 }
 0x279   : > { %v20232_v21 = vpop.f32.mrf.mxu1  ;;  %16292 = vmatmul.mubr.msk.bf16.gmra.mxu1 %vm3854_vm1, %v16955_v13  ;;  %v16961_v13 = vld [vmem:[%s17242_s29 + $0xec0] sm:$0xff]   ;;  %25701 = vst [vmem:[#allocation116_spill] sm:$0xff] %v20348_v62  ;;  %v20366_v46 = vadd.f32 %v19927_v0, %v20222_v63 }
 0x27a   : > { %v20229_v50 = vpop.f32.mrf.mxu0  ;;  %16295 = vmatprep.mubr.msk.bf16.mxu1 %vm3854_vm1, %v16957_v41  ;;  %25704 = vst [vmem:[#allocation119_spill] sm:$0xff] %v20370_v7 }
 0x27b   : > { %v20237_v57 = vpop.f32.mrf.mxu1  ;;  %25703 = vst [vmem:[#allocation118_spill] sm:$0xff] %v20366_v46  ;;  %v20381_v63 = vadd.f32 %v19927_v0, %v20229_v50 }
 0x27c   : > { %v20234_v4 = vpop.f32.mrf.mxu0  ;;  %v20397_v50 = vadd.f32 %v19927_v0, %v20237_v57  ;;  %v16971_v57 = vld [vmem:[%s17242_s29 + $0x4e8] sm:$0xff]  }
 0x27d   : > { %v20244_v56 = vpop.f32.mrf.mxu1  ;;  %25705 = vst [vmem:[#allocation120_spill] sm:$0xff] %v20381_v63 }
 0x27e   : > { %v20241_v54 = vpop.f32.mrf.mxu0  ;;  %15656 = vmatmul.mubr.msk.bf16.gmra.mxu0 %vm3854_vm1, %v16958_v49 }
 0x27f   : > { %v20249_v42 = vpop.f32.mrf.mxu1  ;;  %15659 = vmatprep.mubr.msk.bf16.mxu0 %vm3854_vm1, %v16960_v47  ;;  %v20404_v12 = vadd.f32 %v19927_v0, %v20241_v54 }
 0x280   : > { %v20246_v18 = vpop.f32.mrf.mxu0  ;;  %v20421_v54 = vadd.f32 %v19927_v0, %v20249_v42 }
 0x281   : > { %v20256_v48 = vpop.f32.mrf.mxu1  ;;  %16296 = vmatmul.mubr.msk.bf16.gmra.mxu1 %vm3854_vm1, %v16959_v19 }
 0x282   : > { %v20253_v40 = vpop.f32.mrf.mxu0  ;;  %16299 = vmatprep.mubr.msk.bf16.mxu1 %vm3854_vm1, %v16961_v13  ;;  %v20434_v9 = vadd.f32 %v19927_v0, %v20256_v48 }
 0x283   : > { %v20261_v41 = vpop.f32.mrf.mxu1 }
 0x284   : > { %v20258_v30 = vpop.f32.mrf.mxu0  ;;  %25706 = vst [vmem:[#allocation121_spill] sm:$0xff] %v20434_v9  ;;  %v20442_v42 = vadd.f32 %v19927_v0, %v20261_v41 }
 0x285   : > { %v20268_v52 = vpop.f32.mrf.mxu1 }
 0x286   : > { %v20265_v32 = vpop.f32.mrf.mxu0  ;;  %15660 = vmatmul.mubr.msk.bf16.gmra.mxu0 %vm3854_vm1, %v16962_v33  ;;  %25708 = vst [vmem:[#allocation123_spill] sm:$0xff] %v20442_v42  ;;  %v20461_v62 = vadd.f32 %v19927_v0, %v20268_v52  ;;  %v16975_v52 = vld [vmem:[%s17242_s29 + $0x4f8] sm:$0xff]  }
 0x287   : > { %v20273_v59 = vpop.f32.mrf.mxu1  ;;  %15663 = vmatprep.mubr.msk.bf16.mxu0 %vm3854_vm1, %v16965_v53  ;;  %v20308_v53 = vadd.f32 %v19927_v0, %v20194_v35  ;;  %v16969_v35 = vld [vmem:[%s17242_s29 + $0x4e0] sm:$0xff]   ;;  %v20452_v48 = vadd.f32 %v19927_v0, %v20265_v32 }
 0x288   : > { %v20270_v51 = vpop.f32.mrf.mxu0  ;;  %25710 = vst [vmem:[#allocation125_spill] sm:$0xff] %v20461_v62  ;;  %v20474_v41 = vadd.f32 %v19927_v0, %v20273_v59  ;;  %v16976_v62 = vld [vmem:[%s17242_s29 + $0xef8] sm:$0xff]  }
 0x289   : > { %v20280_v19 = vpop.f32.mrf.mxu1  ;;  %16300 = vmatmul.mubr.msk.bf16.gmra.mxu1 %vm3854_vm1, %v16963_v25  ;;  %v20304_v25 = vadd.f32 %v19927_v0, %v20189_v58  ;;  %25709 = vst [vmem:[#allocation124_spill] sm:$0xff] %v20452_v48  ;;  %v20470_v46 = vadd.f32 %v19927_v0, %v20270_v51  ;;  %v16977_v48 = vld [vmem:[%s17242_s29 + $0x500] sm:$0xff]  }
 0x28a   : > { %v20277_v49 = vpop.f32.mrf.mxu0  ;;  %16303 = vmatprep.mubr.msk.bf16.mxu1 %vm3854_vm1, %v16966_v31  ;;  %v20312_v31 = vadd.f32 %v19927_v0, %v20198_v37  ;;  %v20335_v37 = vadd.f32 %v19927_v0, %v20210_v27  ;;  %25712 = vst [vmem:[#allocation127_spill] sm:$0xff] %v20474_v41 }
 0x28b   : > { %v20285_v13 = vpop.f32.mrf.mxu1  ;;  %25711 = vst [vmem:[#allocation126_spill] sm:$0xff] %v20470_v46  ;;  %v20483_v51 = vadd.f32 %v19927_v0, %v20277_v49 }
 0x28c   : > { %v20282_v47 = vpop.f32.mrf.mxu0  ;;  %v20497_v32 = vadd.f32 %v19927_v0, %v20285_v13 }
 0x28d   : > { %v20300_v33 = vpop.f32.mrf.mxu1  ;;  %25713 = vst [vmem:[#allocation128_spill] sm:$0xff] %v20483_v51 }
 0x28e   : > { %v20289_v14 = vpop.f32.mrf.mxu0  ;;  %15664 = vmatmul.mubr.msk.bf16.gmra.mxu0 %vm3854_vm1, %v16967_v60  ;;  %v16974_v60 = vld [vmem:[%s17242_s29 + $0xef0] sm:$0xff]  }
 0x28f   : > { %v20325_v58 = vpop.f32.mrf.mxu1  ;;  %15667 = vmatprep.mubr.msk.bf16.mxu0 %vm3854_vm1, %v16969_v35  ;;  %v20393_v35 = vadd.f32 %v19927_v0, %v20234_v4  ;;  %v20412_v4 = vadd.f32 %v19927_v0, %v20246_v18  ;;  %v16973_v18 = vld [vmem:[%s17242_s29 + $0x4f0] sm:$0xff]  }
 0x290   : > { %v20314_v55 = vpop.f32.mrf.mxu0 }
 0x291   : > { %v20350_v5 = vpop.f32.mrf.mxu1  ;;  %16304 = vmatmul.mubr.msk.bf16.gmra.mxu1 %vm3854_vm1, %v16968_v39  ;;  %v20389_v39 = vadd.f32 %v19927_v0, %v20232_v21  ;;  %v20408_v21 = vadd.f32 %v19927_v0, %v20244_v56  ;;  %v20425_v56 = vadd.f32 %v19927_v0, %v20253_v40 }
 0x292   : > { %v20341_v29 = vpop.f32.mrf.mxu0  ;;  %16307 = vmatprep.mubr.msk.bf16.mxu1 %vm3854_vm1, %v16970_v3  ;;  %v20438_v3 = vadd.f32 %v19927_v0, %v20258_v30  ;;  %v20528_v42 = vadd.f32 %v19927_v0, %v20350_v5 }
 0x293   : > { %v20372_v23 = vpop.f32.mrf.mxu1 }
 0x294   : > { %v20359_v61 = vpop.f32.mrf.mxu0  ;;  %25707 = vst [vmem:[#allocation122_spill] sm:$0xff] %v20438_v3  ;;  %25715 = vst [vmem:[#allocation130_spill] sm:$0xff] %v20528_v42 }
 0x295   : > { %v20399_v26 = vpop.f32.mrf.mxu1  ;;  %v20532_v30 = vadd.f32 %v19927_v0, %v20359_v61  ;;  %v16979_v61 = vld [vmem:[%s17242_s29 + $0x508] sm:$0xff]  }
 0x296   : > { %v20383_v16 = vpop.f32.mrf.mxu0  ;;  %15668 = vmatmul.mubr.msk.bf16.gmra.mxu0 %vm3854_vm1, %v16971_v57  ;;  %v20517_v57 = vadd.f32 %v19927_v0, %v20325_v58  ;;  %v20536_v58 = vadd.f32 %v19927_v0, %v20372_v23  ;;  %v20551_v9 = vadd.f32 %v19927_v0, %v20399_v26 }
 0x297   : > { %v20427_v27 = vpop.f32.mrf.mxu1  ;;  %15671 = vmatprep.mubr.msk.bf16.mxu0 %vm3854_vm1, %v16973_v18  ;;  %v20493_v18 = vadd.f32 %v19927_v0, %v20282_v47  ;;  %v20510_v47 = vadd.f32 %v19927_v0, %v20314_v55  ;;  %25716 = vst [vmem:[#allocation131_spill] sm:$0xff] %v20532_v30  ;;  %v20544_v5 = vadd.f32 %v19927_v0, %v20383_v16 }
 0x298   : > { %v20414_v20 = vpop.f32.mrf.mxu0  ;;  %25717 = vst [vmem:[#allocation132_spill] sm:$0xff] %v20536_v58  ;;  %25719 = vst [vmem:[#allocation134_spill] sm:$0xff] %v20551_v9  ;;  %v20562_v3 = vadd.f32 %v19927_v0, %v20427_v27  ;;  %v16980_v9 = vld [vmem:[%s17242_s29 + $0xf08] sm:$0xff]  }
 0x299   : > { %v20454_v63 = vpop.f32.mrf.mxu1  ;;  %16308 = vmatmul.mubr.msk.bf16.gmra.mxu1 %vm3854_vm1, %v16972_v8  ;;  %v20489_v8 = vadd.f32 %v19927_v0, %v20280_v19  ;;  %v20506_v19 = vadd.f32 %v19927_v0, %v20300_v33  ;;  %25718 = vst [vmem:[#allocation133_spill] sm:$0xff] %v20544_v5  ;;  %v20558_v16 = vadd.f32 %v19927_v0, %v20414_v20 }
 0x29a   : > { %v20444_v40 = vpop.f32.mrf.mxu0  ;;  %16311 = vmatprep.mubr.msk.bf16.mxu1 %vm3854_vm1, %v16974_v60  ;;  %v20502_v60 = vadd.f32 %v19927_v0, %v20289_v14  ;;  %v20521_v14 = vadd.f32 %v19927_v0, %v20341_v29  ;;  %v16978_v29 = vld [vmem:[%s17242_s29 + $0xf00] sm:$0xff]   ;;  %25721 = vst [vmem:[#allocation136_spill] sm:$0xff] %v20562_v3 }
 0x29b   : > { %v16213_v28 = vpop.f32.mrf.mxu1  ;;  %25720 = vst [vmem:[#allocation135_spill] sm:$0xff] %v20558_v16  ;;  %v20571_v20 = vadd.f32 %v19927_v0, %v20444_v40 }
 0x29c   : > { %v20463_v7 = vpop.f32.mrf.mxu0  ;;  %25714 = vst [vmem:[#allocation129_spill] sm:$0xff] %v20521_v14  ;;  %v20584_v46 = vadd.f32 %v19927_v0, %v16213_v28 }
 0x29d   : > { %v8853_v49 = vpop.f32.mrf.mxu1  ;;  %25722 = vst [vmem:[#allocation137_spill] sm:$0xff] %v20571_v20  ;;  %v16985_v20 = vld [vmem:[%s17242_s29 + $0x520] sm:$0xff]  }
 0x29e   : > { %v6293_v24 = vpop.f32.mrf.mxu0  ;;  %15672 = vmatmul.mubr.msk.bf16.gmra.mxu0 %vm3854_vm1, %v16975_v52  ;;  %v20591_v27 = vadd.f32 %v19927_v0, %v8853_v49  ;;  %v16981_v49 = vld [vmem:[%s17242_s29 + $0x510] sm:$0xff]  }
 0x29f   : > { %v16214_v33 = vpop.f32.mrf.mxu1  ;;  %15675 = vmatprep.mubr.msk.bf16.mxu0 %vm3854_vm1, %v16977_v48  ;;  %v20581_v48 = vadd.f32 %v19927_v0, %v20463_v7 }
 0x2a0   : > { %v15574_v59 = vpop.f32.mrf.mxu0  ;;  %v20600_v5 = vadd.f32 %v19927_v0, %v16214_v33  ;;  %v16982_v33 = vld [vmem:[%s17242_s29 + $0xf10] sm:$0xff]  }
 0x2a1   : > { %v8856_v51 = vpop.f32.mrf.mxu1  ;;  %16312 = vmatmul.mubr.msk.bf16.gmra.mxu1 %vm3854_vm1, %v16976_v62  ;;  %v20577_v62 = vadd.f32 %v19927_v0, %v20454_v63  ;;  %v20594_v63 = vadd.f32 %v19927_v0, %v15574_v59 }
 0x2a2   : > { %v6296_v13 = vpop.f32.mrf.mxu0  ;;  %16315 = vmatprep.mubr.msk.bf16.mxu1 %vm3854_vm1, %v16978_v29  ;;  %v20588_v29 = vadd.f32 %v19927_v0, %v6293_v24  ;;  %v20609_v59 = vadd.f32 %v19927_v0, %v8856_v51 }
 0x2a3   : > { %v16217_v23 = vpop.f32.mrf.mxu1  ;;  %v20603_v52 = vadd.f32 %v19927_v0, %v6296_v13 }
 0x2a4   : > { %v15577_v41 = vpop.f32.mrf.mxu0  ;;  %25723 = vst [vmem:[#allocation138_spill] sm:$0xff] %v20609_v59  ;;  %v20615_v7 = vadd.f32 %v19927_v0, %v16217_v23 }
 0x2a5   : > { %v8869_v40 = vpop.f32.mrf.mxu1  ;;  %v20612_v30 = vadd.f32 %v19927_v0, %v15577_v41 }
 0x2a6   : > { %v6309_v55 = vpop.f32.mrf.mxu0  ;;  %25725 = vst [vmem:[#allocation140_spill] sm:$0xff] %v20615_v7  ;;  %v20628_v23 = vadd.f32 %v19927_v0, %v8869_v40  ;;  %15676 = vmatmul.mubr.msk.bf16.gmra.mxu0 %vm3854_vm1, %v16979_v61 }
 0x2a7   : > { %v16218_v24 = vpop.f32.mrf.mxu1  ;;  %25724 = vst [vmem:[#allocation139_spill] sm:$0xff] %v20612_v30  ;;  %v20622_v42 = vadd.f32 %v19927_v0, %v6309_v55  ;;  %15679 = vmatprep.mubr.msk.bf16.mxu0 %vm3854_vm1, %v16981_v49  ;;  %v16984_v30 = vld [vmem:[%s17242_s29 + $0xf18] sm:$0xff]  }
 0x2a8   : > { %v15578_v26 = vpop.f32.mrf.mxu0  ;;  %25727 = vst [vmem:[#allocation142_spill] sm:$0xff] %v20628_v23  ;;  %v20634_v55 = vadd.f32 %v19927_v0, %v16218_v24  ;;  %v16983_v24 = vld [vmem:[%s17242_s29 + $0x518] sm:$0xff]  }
 0x2a9   : > { %25726 = vst [vmem:[#allocation141_spill] sm:$0xff] %v20622_v42  ;;  %v8872_v58 = vpop.f32.mrf.mxu1  ;;  %16316 = vmatmul.mubr.msk.bf16.gmra.mxu1 %vm3854_vm1, %v16980_v9  ;;  %v16986_v42 = vld [vmem:[%s17242_s29 + $0xf20] sm:$0xff]  }
 0x2aa   : > { %v6312_v28 = vpop.f32.mrf.mxu0  ;;  %25728 = vst [vmem:[#allocation143_spill] sm:$0xff] %v20634_v55  ;;  %16319 = vmatprep.mubr.msk.bf16.mxu1 %vm3854_vm1, %v16982_v33 }
 0x2ab   : > { %v16221_v51 = vpop.f32.mrf.mxu1  ;;  %v20651_v61 = vadd.f32 %v19927_v0, %v6312_v28  ;;  %v20662_v28 = vadd.f32 %v19927_v0, %v8872_v58  ;;  %v25735_v58 = vld [vmem:[#allocation85_spill] sm:$0xff] }
 0x2ac   : > { %v15581_v14 = vpop.f32.mrf.mxu0  ;;  %v8894_v13 = vadd.f32 %v19927_v0, %v16221_v51 }
 0x2ad   : > { %v6334_v3 = vadd.f32 %v19927_v0, %v15581_v14  ;;  %v20646_v14 = vadd.f32 %v19927_v0, %v15578_v26  ;;  %v8885_v40 = vpop.f32.mrf.mxu1  ;;  %25730 = vst [vmem:[#allocation145_spill] sm:$0xff] %v20651_v61  ;;  %v25731_v26 = vmax.f32 %v20294_v36, 0.0  ;;  %25732 = vst [vmem:[#allocation146_spill] sm:$0xff] %v20662_v28 }
 0x2ae   : > { %v6325_v16 = vpop.f32.mrf.mxu0  ;;  %v10390_v51 = vmax.f32 %v8894_v13, 0.0  ;;  %v8886_v33 = vadd.f32 %v19927_v0, %v8885_v40  ;;  %v25733_v13 = vmax.f32 %v20298_v6, 0.0  ;;  %v25736_v6 = vmax.f32 %v20308_v53, 0.0  ;;  %15680 = vmatmul.mubr.msk.bf16.gmra.mxu0 %vm3854_vm1, %v16983_v24 }
 0x2af   : > { %25729 = vst [vmem:[#allocation144_spill] sm:$0xff] %v20646_v14  ;;  %v9750_v9 = vmax.f32 %v6334_v3, 0.0  ;;  %v6326_v49 = vadd.f32 %v19927_v0, %v6325_v16  ;;  %v16222_v7 = vpop.f32.mrf.mxu1  ;;  %15683 = vmatprep.mubr.msk.bf16.mxu0 %vm3854_vm1, %v16985_v20 }
 0x2b0   : > { %v15582_v41 = vpop.f32.mrf.mxu0  ;;  %v10998_v61 = vmax.f32 %v25733_v13, %v10390_v51  ;;  %v10388_v40 = vmax.f32 %v8886_v33, 0.0  ;;  %v8897_v23 = vadd.f32 %v19927_v0, %v16222_v7 }
 0x2b1   : > { %v10838_v14 = vmax.f32 %v25731_v26, %v9750_v9  ;;  %v9748_v3 = vmax.f32 %v6326_v49, 0.0  ;;  %v6337_v16 = vadd.f32 %v19927_v0, %v15582_v41  ;;  %v25734_v9 = vmax.f32 %v20304_v25, 0.0  ;;  %v8888_v55 = vpop.f32.mrf.mxu1  ;;  %16320 = vmatmul.mubr.msk.bf16.gmra.mxu1 %vm3854_vm1, %v16984_v30 }
 0x2b2   : > { %v6328_v59 = vpop.f32.mrf.mxu0  ;;  %v11254_v28 = vmax.f32 %v25735_v58, %v10998_v61  ;;  %v20677_v51 = vmax.f32 %v25736_v6, %v10388_v40  ;;  %v10391_v33 = vmax.f32 %v8897_v23, 0.0  ;;  %v8889_v7 = vadd.f32 %v19927_v0, %v8888_v55  ;;  %16323 = vmatprep.mubr.msk.bf16.mxu1 %vm3854_vm1, %v16986_v42 }
 0x2b3   : > { %v11094_v36 = vmax.f32 %v19694_v10, %v10838_v14  ;;  %v20671_v49 = vmax.f32 %v25734_v9, %v9748_v3  ;;  %v9751_v41 = vmax.f32 %v6337_v16, 0.0  ;;  %v6329_v26 = vadd.f32 %v19927_v0, %v6328_v59  ;;  %v16225_v61 = vpop.f32.mrf.mxu1 }
 0x2b4   : > { %25737 = vst [vmem:[#allocation85_spill] sm:$0xff] %v20677_v51  ;;  %v15585_v13 = vpop.f32.mrf.mxu0  ;;  %v25738_v25 = vmax.f32 %v20312_v31, 0.0  ;;  %v25739_v23 = vmax.f32 %v20319_v11, 0.0  ;;  %v10389_v24 = vmax.f32 %v8889_v7, 0.0  ;;  %v8910_v16 = vadd.f32 %v19927_v0, %v16225_v61  ;;  %v16987_v7 = vld [vmem:[%s17242_s29 + $0x528] sm:$0xff]  }
 0x2b5   : > { %v9749_v59 = vmax.f32 %v6329_v26, 0.0  ;;  %v6350_v3 = vadd.f32 %v19927_v0, %v15585_v13  ;;  %v25740_v9 = vmax.f32 %v20323_v34, 0.0  ;;  %v8901_v11 = vpop.f32.mrf.mxu1  ;;  %v25741_v58 = vmax.f32 %v20331_v43, 0.0 }
 0x2b6   : > { %v10839_v14 = vmax.f32 %v25738_v25, %v9751_v41  ;;  %v10999_v55 = vmax.f32 %v25739_v23, %v10391_v33  ;;  %v6341_v31 = vpop.f32.mrf.mxu0  ;;  %v10394_v33 = vmax.f32 %v8910_v16, 0.0  ;;  %v25744_v43 = vmax.f32 %v20335_v37, 0.0  ;;  %15684 = vmatmul.mubr.msk.bf16.gmra.mxu0 %vm3854_vm1, %v16987_v7 }
 0x2b7   : > { %v20697_v30 = vmax.f32 %v25740_v9, %v9749_v59  ;;  %v9754_v20 = vmax.f32 %v6350_v3, 0.0  ;;  %v6342_v41 = vadd.f32 %v19927_v0, %v6341_v31  ;;  %v20703_v6 = vmax.f32 %v25741_v58, %v10389_v24  ;;  %v16988_v59 = vld [vmem:[%s17242_s29 + $0xf28] sm:$0xff]   ;;  %v16989_v3 = vld [vmem:[%s17242_s29 + $0x530] sm:$0xff]  }
 0x2b8   : > { %v11095_v40 = vmax.f32 %v19728_v2, %v10839_v14  ;;  %v11255_v26 = vmax.f32 %v19739_v15, %v10999_v55  ;;  %v20708_v2 = vld [vmem:[%s24956_s2] ss:$0 sm:$0xff]  ;;  %v15586_v42 = vpop.f32.mrf.mxu0  ;;  %v16226_v14 = vpop.f32.mrf.mxu1  ;;  %v25746_v55 = vmax.f32 %v20339_v38, 0.0  ;;  %v16990_v31 = vld [vmem:[%s17242_s29 + $0xf30] sm:$0xff]   ;;  %15687 = vmatprep.mubr.msk.bf16.mxu0 %vm3854_vm1, %v16989_v3  ;;  %v25773_v15 = vld [vmem:[#allocation55_spill] sm:$0xff] }
 0x2b9   : > { %25742 = vst [vmem:[#allocation147_spill] sm:$0xff] %v20703_v6  ;;  %v8902_v34 = vadd.f32 %v20708_v2, %v8901_v11  ;;  %v10842_v0 = vmax.f32 %v25744_v43, %v9754_v20  ;;  %v9752_v25 = vmax.f32 %v6342_v41, 0.0  ;;  %v25747_v9 = vld [vmem:[#allocation116_spill] sm:$0xff]  ;;  %v6353_v41 = vadd.f32 %v20708_v2, %v15586_v42  ;;  %v25750_v43 = vld [vmem:[#allocation117_spill] sm:$0xff]  ;;  %16324 = vmatmul.mubr.msk.bf16.gmra.mxu1 %vm3854_vm1, %v16988_v59 }
 0x2ba   : > { %v20712_v13 = vpack.c.bf16 %v11095_v40, %v11094_v36  ;;  %v20720_v61 = vpack.c.bf16 %v11255_v26, %v11254_v28  ;;  %v11002_v24 = vmax.f32 %v25746_v55, %v10394_v33  ;;  %v6344_v16 = vpop.f32.mrf.mxu0  ;;  %v25748_v37 = vmax.f32 %v25747_v9, 0.0  ;;  %v8904_v11 = vpop.f32.mrf.mxu1  ;;  %v25749_v26 = vld [vmem:[#allocation14_spill] sm:$0xff]  ;;  %16327 = vmatprep.mubr.msk.bf16.mxu1 %vm3854_vm1, %v16990_v31 }
 0x2bb   : > { %v10392_v36 = vmax.f32 %v8902_v34, 0.0  ;;  %v11098_v40 = vmax.f32 %v19762_v17, %v10842_v0  ;;  %v8913_v28 = vadd.f32 %v20708_v2, %v16226_v14  ;;  %v25751_v23 = vmax.f32 %v25750_v43, 0.0  ;;  %v25753_v0 = vld [vmem:[#allocation17_spill] sm:$0xff] }
 0x2bc   : > { %25743 = vst [vmem:[#allocation148_spill] sm:$0xff] %v20712_v13  ;;  %25745 = vst [vmem:[#allocation149_spill] sm:$0xff] %v20720_v61  ;;  %v20730_v20 = vmax.f32 %v25748_v37, %v9752_v25  ;;  %v11258_v58 = vmax.f32 %v25749_v26, %v11002_v24  ;;  %v6345_v33 = vadd.f32 %v20708_v2, %v6344_v16  ;;  %v15589_v17 = vpop.f32.mrf.mxu0  ;;  %v9755_v42 = vmax.f32 %v6353_v41, 0.0  ;;  %v16229_v9 = vpop.f32.mrf.mxu1  ;;  %v25755_v41 = vld [vmem:[#allocation118_spill] sm:$0xff]  ;;  %v25757_v26 = vld [vmem:[#allocation119_spill] sm:$0xff] }
 0x2bd   : > { %v20737_v38 = vmax.f32 %v25751_v23, %v10392_v36  ;;  %v8905_v34 = vadd.f32 %v20708_v2, %v8904_v11  ;;  %v10395_v55 = vmax.f32 %v8913_v28, 0.0  ;;  %v6366_v14 = vadd.f32 %v20708_v2, %v15589_v17  ;;  %v25759_v24 = vld [vmem:[#allocation120_spill] sm:$0xff] }
 0x2be   : > { %v9753_v36 = vmax.f32 %v6345_v33, 0.0  ;;  %v8926_v7 = vadd.f32 %v20708_v2, %v16229_v9  ;;  %v6357_v37 = vpop.f32.mrf.mxu0  ;;  %v25756_v28 = vmax.f32 %v25755_v41, 0.0  ;;  %v25758_v43 = vmax.f32 %v25757_v26, 0.0  ;;  %v8917_v53 = vpop.f32.mrf.mxu1  ;;  %v25764_v26 = vld [vmem:[#allocation52_spill] sm:$0xff] }
 0x2bf   : > { %25752 = vst [vmem:[#allocation116_spill] sm:$0xff] %v20737_v38  ;;  %v10393_v16 = vmax.f32 %v8905_v34, 0.0  ;;  %v9758_v17 = vmax.f32 %v6366_v14, 0.0  ;;  %v6358_v3 = vadd.f32 %v20708_v2, %v6357_v37  ;;  %v25760_v25 = vmax.f32 %v25759_v24, 0.0  ;;  %v25793_v38 = vld [vmem:[#allocation124_spill] sm:$0xff] }
 0x2c0   : > { %v10843_v11 = vmax.f32 %v25756_v28, %v9755_v42  ;;  %v11003_v59 = vmax.f32 %v25758_v43, %v10395_v55  ;;  %v25761_v34 = vmax.f32 %v20389_v39, 0.0  ;;  %v10398_v31 = vmax.f32 %v8926_v7, 0.0  ;;  %v15590_v41 = vpop.f32.mrf.mxu0  ;;  %v16991_v28 = vld [vmem:[%s17242_s29 + $0x538] sm:$0xff]   ;;  %v25763_v55 = vld [vmem:[#allocation20_spill] sm:$0xff] }
 0x2c1   : > { %v20758_v33 = vmax.f32 %v25760_v25, %v9753_v36  ;;  %v8918_v42 = vadd.f32 %v20708_v2, %v8917_v53  ;;  %v25765_v43 = vmax.f32 %v20393_v35, 0.0  ;;  %v9756_v25 = vmax.f32 %v6358_v3, 0.0  ;;  %v16230_v36 = vpop.f32.mrf.mxu1  ;;  %v16992_v39 = vld [vmem:[%s17242_s29 + $0xf38] sm:$0xff]   ;;  %15688 = vmatmul.mubr.msk.bf16.gmra.mxu0 %vm3854_vm1, %v16991_v28 }
 0x2c2   : > { %v20762_v9 = vmax.f32 %v25761_v34, %v10393_v16  ;;  %v11099_v14 = vmax.f32 %v25763_v55, %v10843_v11  ;;  %v11259_v37 = vmax.f32 %v25764_v26, %v11003_v59  ;;  %v25766_v16 = vld [vmem:[#allocation53_spill] sm:$0xff]  ;;  %v25768_v53 = vmax.f32 %v20397_v50, 0.0  ;;  %v6360_v11 = vpop.f32.mrf.mxu0  ;;  %v16993_v55 = vld [vmem:[%s17242_s29 + $0x540] sm:$0xff]   ;;  %16328 = vmatmul.mubr.msk.bf16.gmra.mxu1 %vm3854_vm1, %v16992_v39 }
 0x2c3   : > { %v20770_v24 = vmax.f32 %v25765_v43, %v9758_v17  ;;  %v10396_v61 = vmax.f32 %v8918_v42, 0.0  ;;  %v16994_v59 = vld [vmem:[%s17242_s29 + $0xf40] sm:$0xff]   ;;  %v25771_v17 = vld [vmem:[#allocation89_spill] sm:$0xff]  ;;  %v25772_v43 = vmax.f32 %v20404_v12, 0.0  ;;  %v8920_v13 = vpop.f32.mrf.mxu1  ;;  %v25774_v50 = vmax.f32 %v20408_v21, 0.0  ;;  %15691 = vmatprep.mubr.msk.bf16.mxu0 %vm3854_vm1, %v16993_v55 }
 0x2c4   : > { %25762 = vst [vmem:[#allocation14_spill] sm:$0xff] %v20762_v9  ;;  %v11006_v10 = vmax.f32 %v25768_v53, %v10398_v31  ;;  %v20781_v26 = vpack.c.bf16 %v11099_v14, %v11098_v40  ;;  %v20783_v35 = vpack.c.bf16 %v11259_v37, %v11258_v58  ;;  %v6369_v42 = vadd.f32 %v20708_v2, %v15590_v41  ;;  %v15593_v58 = vpop.f32.mrf.mxu0  ;;  %v25776_v14 = vld [vmem:[#allocation56_spill] sm:$0xff]  ;;  %v25784_v37 = vld [vmem:[#allocation122_spill] sm:$0xff] }
 0x2c5   : > { %v11102_v3 = vmax.f32 %v25771_v17, %v20770_v24  ;;  %v20789_v34 = vmax.f32 %v25772_v43, %v9756_v25  ;;  %v20794_v31 = vmax.f32 %v25774_v50, %v10396_v61  ;;  %v8929_v40 = vadd.f32 %v20708_v2, %v16230_v36  ;;  %16331 = vmatprep.mubr.msk.bf16.mxu1 %vm3854_vm1, %v16994_v59  ;;  %v16995_v61 = vld [vmem:[%s17242_s29 + $0x548] sm:$0xff]  }
 0x2c6   : > { %25769 = vst [vmem:[#allocation117_spill] sm:$0xff] %v20781_v26  ;;  %25770 = vst [vmem:[#allocation17_spill] sm:$0xff] %v20783_v35  ;;  %v11262_v9 = vmax.f32 %v25773_v15, %v11006_v10  ;;  %v6361_v12 = vadd.f32 %v20708_v2, %v6360_v11  ;;  %v8921_v24 = vadd.f32 %v20708_v2, %v8920_v13  ;;  %v16233_v15 = vpop.f32.mrf.mxu1  ;;  %v9759_v41 = vmax.f32 %v6369_v42, 0.0  ;;  %v6373_v36 = vpop.f32.mrf.mxu0  ;;  %v25788_v26 = vld [vmem:[#allocation123_spill] sm:$0xff] }
 0x2c7   : > { %25775 = vst [vmem:[#allocation118_spill] sm:$0xff] %v20794_v31  ;;  %v6382_v10 = vadd.f32 %v20708_v2, %v15593_v58  ;;  %v10399_v25 = vmax.f32 %v8929_v40, 0.0  ;;  %v8942_v28 = vadd.f32 %v20708_v2, %v16233_v15  ;;  %v6374_v17 = vadd.f32 %v20708_v2, %v6373_v36 }
 0x2c8   : > { %v9757_v53 = vmax.f32 %v6361_v12, 0.0  ;;  %v10397_v13 = vmax.f32 %v8921_v24, 0.0  ;;  %v8933_v39 = vpop.f32.mrf.mxu1  ;;  %v25778_v43 = vmax.f32 %v20412_v4, 0.0  ;;  %v25779_v42 = vmax.f32 %v20421_v54, 0.0  ;;  %v15594_v55 = vpop.f32.mrf.mxu0  ;;  %v25781_v24 = vld [vmem:[#allocation121_spill] sm:$0xff] }
 0x2c9   : > { %v9762_v11 = vmax.f32 %v6382_v10, 0.0  ;;  %v10402_v58 = vmax.f32 %v8942_v28, 0.0  ;;  %v8934_v15 = vadd.f32 %v20708_v2, %v8933_v39  ;;  %v25780_v59 = vmax.f32 %v20425_v56, 0.0  ;;  %v16996_v28 = vld [vmem:[%s17242_s29 + $0xf48] sm:$0xff]   ;;  %15692 = vmatmul.mubr.msk.bf16.gmra.mxu0 %vm3854_vm1, %v16995_v61 }
 0x2ca   : > { %v10847_v50 = vmax.f32 %v25778_v43, %v9759_v41  ;;  %v11007_v40 = vmax.f32 %v25779_v42, %v10399_v25  ;;  %v25782_v10 = vmax.f32 %v25781_v24, 0.0  ;;  %v25785_v4 = vmax.f32 %v25784_v37, 0.0  ;;  %v16234_v25 = vpop.f32.mrf.mxu1  ;;  %v25786_v43 = vld [vmem:[#allocation41_spill] sm:$0xff]  ;;  %v25787_v42 = vld [vmem:[#allocation94_spill] sm:$0xff]  ;;  %v6376_v24 = vpop.f32.mrf.mxu0  ;;  %16332 = vmatmul.mubr.msk.bf16.gmra.mxu1 %vm3854_vm1, %v16996_v28 }
 0x2cb   : > { %v20819_v12 = vmax.f32 %v25780_v59, %v9757_v53  ;;  %v9760_v54 = vmax.f32 %v6374_v17, 0.0  ;;  %v25789_v56 = vmax.f32 %v25788_v26, 0.0  ;;  %v10400_v59 = vmax.f32 %v8934_v15, 0.0  ;;  %v25792_v17 = vld [vmem:[#allocation97_spill] sm:$0xff]  ;;  %v16998_v26 = vld [vmem:[%s17242_s29 + $0xf50] sm:$0xff]  }
 0x2cc   : > { %v20823_v36 = vmax.f32 %v25782_v10, %v10397_v13  ;;  %v20827_v41 = vmax.f32 %v25785_v4, %v9762_v11  ;;  %v11103_v39 = vmax.f32 %v25786_v43, %v10847_v50  ;;  %v11263_v35 = vmax.f32 %v25787_v42, %v11007_v40  ;;  %v16997_v13 = vld [vmem:[%s17242_s29 + $0x550] sm:$0xff]   ;;  %v25790_v10 = vld [vmem:[#allocation95_spill] sm:$0xff]  ;;  %v8936_v40 = vpop.f32.mrf.mxu1  ;;  %v25796_v42 = vld [vmem:[#allocation98_spill] sm:$0xff]  ;;  %v15597_v4 = vpop.f32.mrf.mxu0  ;;  %16335 = vmatprep.mubr.msk.bf16.mxu1 %vm3854_vm1, %v16998_v26 }
 0x2cd   : > { %v20834_v53 = vmax.f32 %v25789_v56, %v10402_v58  ;;  %v25794_v50 = vmax.f32 %v25793_v38, 0.0  ;;  %v25797_v37 = vld [vmem:[#allocation125_spill] sm:$0xff]  ;;  %v25800_v38 = vld [vmem:[#allocation99_spill] sm:$0xff]  ;;  %v6398_v61 = vadd.f32 %v20708_v2, %v15597_v4  ;;  %15695 = vmatprep.mubr.msk.bf16.mxu0 %vm3854_vm1, %v16997_v13 }
 0x2ce   : > { %25783 = vst [vmem:[#allocation119_spill] sm:$0xff] %v20823_v36  ;;  %v11106_v7 = vmax.f32 %v25792_v17, %v20827_v41  ;;  %v20848_v58 = vpack.c.bf16 %v11103_v39, %v11102_v3  ;;  %v20850_v15 = vpack.c.bf16 %v11263_v35, %v11262_v9  ;;  %v25798_v23 = vmax.f32 %v25797_v37, 0.0  ;;  %v16237_v35 = vpop.f32.mrf.mxu1  ;;  %v6389_v37 = vpop.f32.mrf.mxu0  ;;  %v25802_v41 = vld [vmem:[#allocation126_spill] sm:$0xff]  ;;  %v25835_v36 = vld [vmem:[#allocation132_spill] sm:$0xff] }
 0x2cf   : > { %v20845_v43 = vmax.f32 %v25794_v50, %v9760_v54  ;;  %v11266_v56 = vmax.f32 %v25796_v42, %v20834_v53  ;;  %v6385_v54 = vadd.f32 %v20708_v2, %v15594_v55  ;;  %v8945_v3 = vadd.f32 %v20708_v2, %v16234_v25 }
 0x2d0   : > { %25795 = vst [vmem:[#allocation120_spill] sm:$0xff] %v20850_v15  ;;  %v20856_v6 = vmax.f32 %v25798_v23, %v10400_v59  ;;  %v6377_v9 = vadd.f32 %v20708_v2, %v6376_v24  ;;  %v8937_v23 = vadd.f32 %v20708_v2, %v8936_v40  ;;  %v8958_v59 = vadd.f32 %v20708_v2, %v16237_v35  ;;  %v8949_v28 = vpop.f32.mrf.mxu1  ;;  %v15598_v53 = vpop.f32.mrf.mxu0  ;;  %v16999_v35 = vld [vmem:[%s17242_s29 + $0x558] sm:$0xff]  }
 0x2d1   : > { %v9763_v55 = vmax.f32 %v6385_v54, 0.0  ;;  %v10403_v25 = vmax.f32 %v8945_v3, 0.0  ;;  %v6390_v17 = vadd.f32 %v20708_v2, %v6389_v37  ;;  %v9766_v42 = vmax.f32 %v6398_v61, 0.0  ;;  %v25804_v54 = vld [vmem:[#allocation127_spill] sm:$0xff]  ;;  %v17000_v61 = vld [vmem:[%s17242_s29 + $0xf58] sm:$0xff]   ;;  %15696 = vmatmul.mubr.msk.bf16.gmra.mxu0 %vm3854_vm1, %v16999_v35 }
 0x2d2   : > { %25799 = vst [vmem:[#allocation20_spill] sm:$0xff] %v20856_v6  ;;  %v9761_v24 = vmax.f32 %v6377_v9, 0.0  ;;  %v10401_v50 = vmax.f32 %v8937_v23, 0.0  ;;  %v10406_v40 = vmax.f32 %v8958_v59, 0.0  ;;  %v8950_v4 = vadd.f32 %v20708_v2, %v8949_v28  ;;  %v25806_v9 = vld [vmem:[#allocation128_spill] sm:$0xff]  ;;  %v16238_v23 = vpop.f32.mrf.mxu1  ;;  %16336 = vmatmul.mubr.msk.bf16.gmra.mxu1 %vm3854_vm1, %v17000_v61 }
 0x2d3   : > { %v25803_v15 = vmax.f32 %v25802_v41, 0.0  ;;  %v25805_v3 = vmax.f32 %v25804_v54, 0.0  ;;  %v25807_v51 = vmax.f32 %v25806_v9, 0.0  ;;  %v9764_v26 = vmax.f32 %v6390_v17, 0.0  ;;  %v17001_v54 = vld [vmem:[%s17242_s29 + $0x560] sm:$0xff]   ;;  %v25813_v17 = vld [vmem:[#allocation47_spill] sm:$0xff] }
 0x2d4   : > { %v25808_v59 = vmax.f32 %v20489_v8, 0.0  ;;  %v25810_v28 = vmax.f32 %v20493_v18, 0.0  ;;  %v25814_v9 = vld [vmem:[#allocation7_spill] sm:$0xff]  ;;  %v8952_v18 = vpop.f32.mrf.mxu1  ;;  %v6401_v8 = vadd.f32 %v20708_v2, %v15598_v53  ;;  %15699 = vmatprep.mubr.msk.bf16.mxu0 %vm3854_vm1, %v17001_v54  ;;  %v25825_v54 = vmax.f32 %v20510_v47, 0.0 }
 0x2d5   : > { %v10851_v13 = vmax.f32 %v25803_v15, %v9763_v55  ;;  %v11011_v22 = vmax.f32 %v25805_v3, %v10403_v25  ;;  %v20881_v37 = vmax.f32 %v25807_v51, %v9761_v24  ;;  %v25811_v15 = vmax.f32 %v20497_v32, 0.0  ;;  %v6392_v25 = vpop.f32.mrf.mxu0  ;;  %v25812_v51 = vld [vmem:[#allocation75_spill] sm:$0xff] }
 0x2d6   : > { %v20886_v45 = vmax.f32 %v25808_v59, %v10401_v50  ;;  %v20890_v6 = vmax.f32 %v25810_v28, %v9766_v42  ;;  %v10404_v55 = vmax.f32 %v8950_v4, 0.0  ;;  %v25815_v50 = vmax.f32 %v20502_v60, 0.0  ;;  %v17002_v42 = vld [vmem:[%s17242_s29 + $0xf60] sm:$0xff]   ;;  %v25817_v4 = vld [vmem:[#allocation13_spill] sm:$0xff] }
 0x2d7   : > { %v20894_v41 = vmax.f32 %v25811_v15, %v10406_v40  ;;  %v11107_v24 = vmax.f32 %v25812_v51, %v10851_v13  ;;  %v11267_v3 = vmax.f32 %v25813_v17, %v11011_v22  ;;  %v25818_v15 = vld [vmem:[#allocation43_spill] sm:$0xff]  ;;  %v25819_v22 = vmax.f32 %v20506_v19, 0.0  ;;  %v15601_v17 = vpop.f32.mrf.mxu0  ;;  %16339 = vmatprep.mubr.msk.bf16.mxu1 %vm3854_vm1, %v17002_v42 }
 0x2d8   : > { %25809 = vst [vmem:[#allocation52_spill] sm:$0xff] %v20886_v45  ;;  %v20903_v59 = vmax.f32 %v25815_v50, %v9764_v26  ;;  %v11110_v28 = vmax.f32 %v25817_v4, %v20890_v6  ;;  %v25823_v50 = vld [vmem:[#allocation83_spill] sm:$0xff]  ;;  %v16241_v6 = vpop.f32.mrf.mxu1  ;;  %v6393_v35 = vadd.f32 %v20708_v2, %v6392_v25 }
 0x2d9   : > { %v11270_v13 = vmax.f32 %v25818_v15, %v20894_v41  ;;  %v20914_v51 = vmax.f32 %v25819_v22, %v10404_v55  ;;  %v20917_v60 = vpack.c.bf16 %v11107_v24, %v11106_v7  ;;  %v20919_v26 = vpack.c.bf16 %v11267_v3, %v11266_v56  ;;  %v6405_v56 = vpop.f32.mrf.mxu0  ;;  %v17003_v19 = vld [vmem:[%s17242_s29 + $0x568] sm:$0xff]  }
 0x2da   : > { %v8961_v55 = vadd.f32 %v20708_v2, %v16238_v23  ;;  %v8953_v7 = vadd.f32 %v20708_v2, %v8952_v18  ;;  %v9767_v24 = vmax.f32 %v6401_v8, 0.0  ;;  %v6414_v3 = vadd.f32 %v20708_v2, %v15601_v17  ;;  %v8965_v4 = vpop.f32.mrf.mxu1  ;;  %15700 = vmatmul.mubr.msk.bf16.gmra.mxu0 %vm3854_vm1, %v17003_v19 }
 0x2db   : > { %25820 = vst [vmem:[#allocation53_spill] sm:$0xff] %v20914_v51  ;;  %25821 = vst [vmem:[#allocation89_spill] sm:$0xff] %v20917_v60  ;;  %v8974_v53 = vadd.f32 %v20708_v2, %v16241_v6  ;;  %v6406_v61 = vadd.f32 %v20708_v2, %v6405_v56  ;;  %v9765_v15 = vmax.f32 %v6393_v35, 0.0  ;;  %v8966_v18 = vadd.f32 %v20708_v2, %v8965_v4  ;;  %v15602_v22 = vpop.f32.mrf.mxu0  ;;  %v17004_v56 = vld [vmem:[%s17242_s29 + $0xf68] sm:$0xff]  }
 0x2dc   : > { %25822 = vst [vmem:[#allocation55_spill] sm:$0xff] %v20919_v26  ;;  %v10407_v23 = vmax.f32 %v8961_v55, 0.0  ;;  %v10405_v25 = vmax.f32 %v8953_v7, 0.0  ;;  %v10855_v8 = vmax.f32 %v25825_v54, %v9767_v24  ;;  %v9770_v17 = vmax.f32 %v6414_v3, 0.0  ;;  %v16242_v26 = vpop.f32.mrf.mxu1  ;;  %v25827_v55 = vld [vmem:[#allocation129_spill] sm:$0xff]  ;;  %v25829_v7 = vld [vmem:[#allocation130_spill] sm:$0xff]  ;;  %16340 = vmatmul.mubr.msk.bf16.gmra.mxu1 %vm3854_vm1, %v17004_v56 }
 0x2dd   : > { %v10410_v40 = vmax.f32 %v8974_v53, 0.0  ;;  %v9768_v6 = vmax.f32 %v6406_v61, 0.0  ;;  %v25826_v51 = vmax.f32 %v20517_v57, 0.0  ;;  %v25828_v35 = vmax.f32 %v25827_v55, 0.0  ;;  %v6408_v47 = vpop.f32.mrf.mxu0  ;;  %v17005_v24 = vld [vmem:[%s17242_s29 + $0x570] sm:$0xff]   ;;  %v25833_v53 = vld [vmem:[#allocation131_spill] sm:$0xff] }
 0x2de   : > { %v25830_v4 = vmax.f32 %v25829_v7, 0.0  ;;  %v10408_v32 = vmax.f32 %v8966_v18, 0.0  ;;  %v25832_v3 = vld [vmem:[#allocation76_spill] sm:$0xff]  ;;  %v25834_v61 = vmax.f32 %v25833_v53, 0.0  ;;  %v25836_v57 = vmax.f32 %v25835_v36, 0.0  ;;  %15703 = vmatprep.mubr.msk.bf16.mxu0 %vm3854_vm1, %v17005_v24 }
 0x2df   : > { %v11015_v42 = vmax.f32 %v25826_v51, %v10407_v23  ;;  %v20944_v41 = vmax.f32 %v25828_v35, %v9765_v15  ;;  %v11111_v54 = vmax.f32 %v25832_v3, %v10855_v8  ;;  %v25837_v23 = vld [vmem:[#allocation133_spill] sm:$0xff]  ;;  %v8968_v35 = vpop.f32.mrf.mxu1  ;;  %v25839_v7 = vld [vmem:[#allocation44_spill] sm:$0xff]  ;;  %v15605_v36 = vpop.f32.mrf.mxu0  ;;  %v8977_v19 = vadd.f32 %v20708_v2, %v16242_v26  ;;  %v17009_v8 = vld [vmem:[%s17242_s29 + $0x580] sm:$0xff]  }
 0x2e0   : > { %v20948_v45 = vmax.f32 %v25830_v4, %v10405_v25  ;;  %v20954_v39 = vmax.f32 %v25834_v61, %v9770_v17  ;;  %v20958_v51 = vmax.f32 %v25836_v57, %v10410_v40  ;;  %v25838_v15 = vmax.f32 %v25837_v23, 0.0  ;;  %v17006_v25 = vld [vmem:[%s17242_s29 + $0xf70] sm:$0xff]   ;;  %v25840_v4 = vld [vmem:[#allocation45_spill] sm:$0xff]  ;;  %v25842_v17 = vld [vmem:[#allocation134_spill] sm:$0xff] }
 0x2e1   : > { %v11271_v18 = vmax.f32 %v25839_v7, %v11015_v42  ;;  %v25843_v53 = vmax.f32 %v25842_v17, 0.0  ;;  %v20975_v40 = vpack.c.bf16 %v11111_v54, %v11110_v28  ;;  %v25847_v42 = vld [vmem:[#allocation102_spill] sm:$0xff]  ;;  %v16245_v11 = vpop.f32.mrf.mxu1  ;;  %v6417_v28 = vadd.f32 %v20708_v2, %v15602_v22  ;;  %16343 = vmatprep.mubr.msk.bf16.mxu1 %vm3854_vm1, %v17006_v25  ;;  %v25853_v25 = vld [vmem:[#allocation136_spill] sm:$0xff] }
 0x2e2   : > { %25831 = vst [vmem:[#allocation56_spill] sm:$0xff] %v20948_v45  ;;  %v20962_v55 = vmax.f32 %v25838_v15, %v9768_v6  ;;  %v25846_v6 = vld [vmem:[#allocation101_spill] sm:$0xff]  ;;  %v11274_v23 = vmax.f32 %v25847_v42, %v20958_v51  ;;  %v6409_v54 = vadd.f32 %v20708_v2, %v6408_v47  ;;  %v8969_v51 = vadd.f32 %v20708_v2, %v8968_v35 }
 0x2e3   : > { %v20972_v61 = vmax.f32 %v25843_v53, %v10408_v32  ;;  %25845 = vst [vmem:[#allocation122_spill] sm:$0xff] %v20975_v40  ;;  %v11114_v57 = vmax.f32 %v25846_v6, %v20954_v39  ;;  %v25848_v15 = vld [vmem:[#allocation77_spill] sm:$0xff]  ;;  %v20984_v17 = vpack.c.bf16 %v11271_v18, %v11270_v13  ;;  %v6421_v39 = vpop.f32.mrf.mxu0  ;;  %v6430_v56 = vadd.f32 %v20708_v2, %v15605_v36  ;;  %v8981_v18 = vpop.f32.mrf.mxu1 }
 0x2e4   : > { %v8990_v13 = vadd.f32 %v20708_v2, %v16245_v11  ;;  %v9771_v6 = vmax.f32 %v6417_v28, 0.0  ;;  %v10411_v42 = vmax.f32 %v8977_v19, 0.0  ;;  %v6422_v26 = vadd.f32 %v20708_v2, %v6421_v39  ;;  %v17007_v53 = vld [vmem:[%s17242_s29 + $0x578] sm:$0xff]   ;;  %v25851_v11 = vld [vmem:[#allocation135_spill] sm:$0xff] }
 0x2e5   : > { %25844 = vst [vmem:[#allocation121_spill] sm:$0xff] %v20972_v61  ;;  %25849 = vst [vmem:[#allocation41_spill] sm:$0xff] %v20984_v17  ;;  %v8982_v22 = vadd.f32 %v20708_v2, %v8981_v18  ;;  %v15606_v24 = vpop.f32.mrf.mxu0  ;;  %v9769_v47 = vmax.f32 %v6409_v54, 0.0  ;;  %v10409_v3 = vmax.f32 %v8969_v51, 0.0  ;;  %v9774_v35 = vmax.f32 %v6430_v56, 0.0  ;;  %v16246_v36 = vpop.f32.mrf.mxu1  ;;  %v17008_v17 = vld [vmem:[%s17242_s29 + $0xf78] sm:$0xff]   ;;  %15704 = vmatmul.mubr.msk.bf16.gmra.mxu0 %vm3854_vm1, %v17007_v53 }
 0x2e6   : > { %v10414_v7 = vmax.f32 %v8990_v13, 0.0  ;;  %v25852_v40 = vmax.f32 %v25851_v11, 0.0  ;;  %v25854_v28 = vmax.f32 %v25853_v25, 0.0  ;;  %v9772_v32 = vmax.f32 %v6422_v26, 0.0  ;;  %v25855_v18 = vld [vmem:[#allocation137_spill] sm:$0xff]  ;;  %v17010_v26 = vld [vmem:[%s17242_s29 + $0xf80] sm:$0xff]   ;;  %16344 = vmatmul.mubr.msk.bf16.gmra.mxu1 %vm3854_vm1, %v17008_v17  ;;  %15707 = vmatprep.mubr.msk.bf16.mxu0 %vm3854_vm1, %v17009_v8 }
 0x2e7   : > { %v10412_v45 = vmax.f32 %v8982_v22, 0.0  ;;  %v6424_v39 = vpop.f32.mrf.mxu0  ;;  %v25856_v31 = vmax.f32 %v25855_v18, 0.0  ;;  %v25857_v54 = vmax.f32 %v20577_v62, 0.0  ;;  %v25859_v56 = vmax.f32 %v20581_v48, 0.0  ;;  %v25861_v22 = vld [vmem:[#allocation78_spill] sm:$0xff]  ;;  %v25862_v25 = vld [vmem:[#allocation79_spill] sm:$0xff]  ;;  %16347 = vmatprep.mubr.msk.bf16.mxu1 %vm3854_vm1, %v17010_v26 }
 0x2e8   : > { %v10859_v61 = vmax.f32 %v25852_v40, %v9771_v6  ;;  %v11019_v19 = vmax.f32 %v25854_v28, %v10411_v42  ;;  %v25860_v40 = vmax.f32 %v20584_v46, 0.0  ;;  %v8984_v42 = vpop.f32.mrf.mxu1  ;;  %v25864_v62 = vmax.f32 %v20591_v27, 0.0  ;;  %v25866_v46 = vld [vmem:[#allocation104_spill] sm:$0xff]  ;;  %v25872_v53 = vld [vmem:[#allocation10_spill] sm:$0xff] }
 0x2e9   : > { %v21007_v21 = vmax.f32 %v25856_v31, %v9769_v47  ;;  %v21011_v51 = vmax.f32 %v25857_v54, %v10409_v3  ;;  %v21015_v13 = vmax.f32 %v25859_v56, %v9774_v35  ;;  %v25863_v31 = vmax.f32 %v20588_v29, 0.0  ;;  %v15609_v48 = vpop.f32.mrf.mxu0  ;;  %v25869_v29 = vld [vmem:[#allocation106_spill] sm:$0xff] }
 0x2ea   : > { %v21019_v6 = vmax.f32 %v25860_v40, %v10414_v7  ;;  %v11115_v11 = vmax.f32 %v25861_v22, %v10859_v61  ;;  %v11275_v28 = vmax.f32 %v25862_v25, %v11019_v19  ;;  %v21030_v3 = vmax.f32 %v25864_v62, %v10412_v45  ;;  %v25868_v61 = vld [vmem:[#allocation105_spill] sm:$0xff]  ;;  %v16249_v54 = vpop.f32.mrf.mxu1  ;;  %v17011_v62 = vld [vmem:[%s17242_s29 + $0x588] sm:$0xff]  }
 0x2eb   : > { %25858 = vst [vmem:[#allocation94_spill] sm:$0xff] %v21011_v51  ;;  %v21026_v47 = vmax.f32 %v25863_v31, %v9772_v32  ;;  %v11118_v19 = vmax.f32 %v25868_v61, %v21015_v13  ;;  %v6437_v25 = vpop.f32.mrf.mxu0  ;;  %v6433_v13 = vadd.f32 %v20708_v2, %v15606_v24  ;;  %v17012_v22 = vld [vmem:[%s17242_s29 + $0xf88] sm:$0xff]   ;;  %v25882_v51 = vld [vmem:[#allocation140_spill] sm:$0xff] }
 0x2ec   : > { %25865 = vst [vmem:[#allocation123_spill] sm:$0xff] %v21030_v3  ;;  %v11278_v32 = vmax.f32 %v25869_v29, %v21019_v6  ;;  %v21042_v45 = vpack.c.bf16 %v11115_v11, %v11114_v57  ;;  %v21044_v27 = vpack.c.bf16 %v11275_v28, %v11274_v23  ;;  %v8993_v6 = vadd.f32 %v20708_v2, %v16246_v36  ;;  %v8997_v17 = vpop.f32.mrf.mxu1 }
 0x2ed   : > { %v6425_v57 = vadd.f32 %v20708_v2, %v6424_v39  ;;  %v8985_v23 = vadd.f32 %v20708_v2, %v8984_v42  ;;  %v6446_v11 = vadd.f32 %v20708_v2, %v15609_v48  ;;  %v9006_v28 = vadd.f32 %v20708_v2, %v16249_v54  ;;  %v15610_v24 = vpop.f32.mrf.mxu0  ;;  %v17013_v54 = vld [vmem:[%s17242_s29 + $0x590] sm:$0xff]   ;;  %15708 = vmatmul.mubr.msk.bf16.gmra.mxu0 %vm3854_vm1, %v17011_v62  ;;  %v25895_v62 = vld [vmem:[#allocation110_spill] sm:$0xff] }
 0x2ee   : > { %25870 = vst [vmem:[#allocation95_spill] sm:$0xff] %v21042_v45  ;;  %25871 = vst [vmem:[#allocation97_spill] sm:$0xff] %v21044_v27  ;;  %v6438_v31 = vadd.f32 %v20708_v2, %v6437_v25  ;;  %v8998_v8 = vadd.f32 %v20708_v2, %v8997_v17  ;;  %v9775_v36 = vmax.f32 %v6433_v13, 0.0  ;;  %v10415_v61 = vmax.f32 %v8993_v6, 0.0  ;;  %v16250_v42 = vpop.f32.mrf.mxu1  ;;  %16348 = vmatmul.mubr.msk.bf16.gmra.mxu1 %vm3854_vm1, %v17012_v22 }
 0x2ef   : > { %v9773_v39 = vmax.f32 %v6425_v57, 0.0  ;;  %v10413_v29 = vmax.f32 %v8985_v23, 0.0  ;;  %v9778_v18 = vmax.f32 %v6446_v11, 0.0  ;;  %v10418_v26 = vmax.f32 %v9006_v28, 0.0  ;;  %v6440_v7 = vpop.f32.mrf.mxu0  ;;  %v25877_v57 = vld [vmem:[#allocation138_spill] sm:$0xff]  ;;  %v17014_v28 = vld [vmem:[%s17242_s29 + $0xf90] sm:$0xff]   ;;  %15711 = vmatprep.mubr.msk.bf16.mxu0 %vm3854_vm1, %v17013_v54 }
 0x2f0   : > { %v9776_v56 = vmax.f32 %v6438_v31, 0.0  ;;  %v10416_v48 = vmax.f32 %v8998_v8, 0.0  ;;  %v25874_v27 = vmax.f32 %v20594_v63, 0.0  ;;  %v25875_v17 = vmax.f32 %v20600_v5, 0.0  ;;  %v9000_v11 = vpop.f32.mrf.mxu1  ;;  %v25880_v31 = vld [vmem:[#allocation139_spill] sm:$0xff]  ;;  %16351 = vmatprep.mubr.msk.bf16.mxu1 %vm3854_vm1, %v17014_v28 }
 0x2f1   : > { %v25876_v13 = vmax.f32 %v20603_v52, 0.0  ;;  %v25878_v23 = vmax.f32 %v25877_v57, 0.0  ;;  %v25881_v8 = vmax.f32 %v25880_v31, 0.0  ;;  %v25883_v35 = vmax.f32 %v25882_v51, 0.0  ;;  %v25890_v57 = vld [vmem:[#allocation81_spill] sm:$0xff] }
 0x2f2   : > { %v10863_v25 = vmax.f32 %v25874_v27, %v9775_v36  ;;  %v11023_v45 = vmax.f32 %v25875_v17, %v10415_v61  ;;  %v25884_v27 = vld [vmem:[#allocation141_spill] sm:$0xff]  ;;  %v25886_v61 = vld [vmem:[#allocation142_spill] sm:$0xff]  ;;  %v21088_v17 = vpop.f32.mrf.mxu0  ;;  %v9009_v22 = vadd.f32 %v20708_v2, %v16250_v42  ;;  %v9001_v54 = vadd.f32 %v20708_v2, %v9000_v11  ;;  %v25902_v11 = vld [vmem:[#allocation143_spill] sm:$0xff] }
 0x2f3   : > { %v21069_v6 = vmax.f32 %v25876_v13, %v9773_v39  ;;  %v21073_v3 = vmax.f32 %v25878_v23, %v10413_v29  ;;  %v10866_v40 = vmax.f32 %v25881_v8, %v9778_v18  ;;  %v11026_v63 = vmax.f32 %v25883_v35, %v10418_v26  ;;  %v25889_v29 = vld [vmem:[#allocation11_spill] sm:$0xff]  ;;  %v25891_v18 = vld [vmem:[#allocation108_spill] sm:$0xff]  ;;  %v25894_v8 = vld [vmem:[#allocation109_spill] sm:$0xff] }
 0x2f4   : > { %v25885_v36 = vmax.f32 %v25884_v27, 0.0  ;;  %v25887_v52 = vmax.f32 %v25886_v61, 0.0  ;;  %v11119_v13 = vmax.f32 %v25889_v29, %v10863_v25  ;;  %v11279_v23 = vmax.f32 %v25890_v57, %v11023_v45  ;;  %v21106_v61 = vpop.f32.mrf.mxu0  ;;  %v25899_v57 = vld [vmem:[#allocation146_spill] sm:$0xff]  ;;  %v17016_v26 = vld [vmem:[%s17242_s29 + $0xf98] sm:$0xff]  }
 0x2f5   : > { %25879 = vst [vmem:[#allocation124_spill] sm:$0xff] %v21073_v3  ;;  %v11282_v27 = vmax.f32 %v25894_v8, %v11026_v63  ;;  %v6441_v8 = vadd.f32 %v20708_v2, %v6440_v7  ;;  %v25901_v25 = vld [vmem:[#allocation145_spill] sm:$0xff]  ;;  %v17018_v7 = vld [vmem:[%s17242_s29 + $0xfa0] sm:$0xff]   ;;  %v25903_v45 = vmax.f32 %v25902_v11, 0.0  ;;  %v17020_v11 = vld [vmem:[%s17242_s29 + $0xfa8] sm:$0xff]  }
 0x2f6   : > { %v21082_v5 = vmax.f32 %v25885_v36, %v9776_v56  ;;  %v21086_v39 = vmax.f32 %v25887_v52, %v10416_v48  ;;  %v21097_v56 = vpop.f32.mrf.mxu1  ;;  %v25893_v48 = vld [vmem:[#allocation48_spill] sm:$0xff]  ;;  %v21109_v52 = vpack.c.bf16 %v11119_v13, %v11118_v19  ;;  %v21111_v29 = vpack.c.bf16 %v11279_v23, %v11278_v32  ;;  %v21121_v19 = vpop.f32.mrf.mxu0  ;;  %v17015_v32 = vld [vmem:[%s17242_s29 + $0x598] sm:$0xff]   ;;  %16352 = vmatmul.mubr.msk.bf16.gmra.mxu1 %vm3854_vm1, %v17016_v26  ;;  %v17019_v26 = vld [vmem:[%s17242_s29 + $0x5a8] sm:$0xff]  }
 0x2f7   : > { %v11122_v31 = vmax.f32 %v25893_v48, %v10866_v40  ;;  %v6449_v40 = vadd.f32 %v20708_v2, %v15610_v24  ;;  %v10385_v48 = vmax.f32 %v25899_v57, 0.0  ;;  %v25900_v13 = vld [vmem:[#allocation144_spill] sm:$0xff]  ;;  %v10419_v36 = vmax.f32 %v9009_v22, 0.0  ;;  %v17017_v57 = vld [vmem:[%s17242_s29 + $0x5a0] sm:$0xff]   ;;  %15712 = vmatmul.mubr.msk.bf16.gmra.mxu0 %vm3854_vm1, %v17015_v32  ;;  %16355 = vmatprep.mubr.msk.bf16.mxu1 %vm3854_vm1, %v17018_v7 }
 0x2f8   : > { %25888 = vst [vmem:[#allocation98_spill] sm:$0xff] %v21086_v39  ;;  %25897 = vst [vmem:[#allocation125_spill] sm:$0xff] %v21109_v52  ;;  %v21115_v63 = vpop.f32.mrf.mxu1  ;;  %v9747_v23 = vmax.f32 %v25900_v13, 0.0  ;;  %v9745_v51 = vmax.f32 %v25901_v25, 0.0  ;;  %v9777_v28 = vmax.f32 %v6441_v8, 0.0  ;;  %v21129_v52 = vpop.f32.mrf.mxu0  ;;  %v25906_v25 = vld [vmem:[#allocation112_spill] sm:$0xff]  ;;  %15715 = vmatprep.mubr.msk.bf16.mxu0 %vm3854_vm1, %v17017_v57  ;;  %v25913_v57 = vmax.f32 %v25790_v10, %v20819_v12 }
 0x2f9   : > { %25898 = vst [vmem:[#allocation99_spill] sm:$0xff] %v21111_v29  ;;  %v9779_v24 = vmax.f32 %v6449_v40, 0.0  ;;  %v10417_v29 = vmax.f32 %v9001_v54, 0.0  ;;  %v11027_v3 = vmax.f32 %v25903_v45, %v10419_v36  ;;  %v25907_v54 = vld [vmem:[#allocation113_spill] sm:$0xff]  ;;  %v25908_v45 = vld [vmem:[#allocation114_spill] sm:$0xff]  ;;  %v17022_v12 = vld [vmem:[%s17242_s29 + $0xfb0] sm:$0xff]  }
 0x2fa   : > { %v21125_v42 = vpop.f32.mrf.mxu1  ;;  %v10865_v13 = vmax.f32 %v9745_v51, %v9777_v28  ;;  %v21139_v22 = vpop.f32.mrf.mxu0 }
 0x2fb   : > { %v10867_v39 = vmax.f32 %v9747_v23, %v9779_v24  ;;  %v21137_v40 = vmax.f32 %v10385_v48, %v10417_v29  ;;  %v11283_v60 = vmax.f32 %v25907_v54, %v11027_v3  ;;  %v25917_v54 = vld [vmem:[#allocation61_spill] sm:$0xff]  ;;  %v25919_v29 = vld [vmem:[#allocation40_spill] sm:$0xff] }
 0x2fc   : > { %v21135_v35 = vpop.f32.mrf.mxu1  ;;  %v11121_v36 = vmax.f32 %v25908_v45, %v10865_v13  ;;  %v21150_v48 = vpop.f32.mrf.mxu0  ;;  %v17021_v13 = vld [vmem:[%s17242_s29 + $0x5b0] sm:$0xff]  }
 0x2fd   : > { %25904 = vst [vmem:[#allocation126_spill] sm:$0xff] %v21135_v35  ;;  %25905 = vst [vmem:[#allocation127_spill] sm:$0xff] %v21137_v40  ;;  %v11123_v8 = vmax.f32 %v25906_v25, %v10867_v39  ;;  %v21156_v32 = vpack.c.bf16 %v11283_v60, %v11282_v27  ;;  %v25912_v25 = vmax.f32 %v25776_v14, %v20789_v34  ;;  %v17039_v35 = vld [vmem:[%s17242_s29 + $0x5f8] sm:$0xff]   ;;  %v17041_v40 = vld [vmem:[%s17242_s29 + $0x600] sm:$0xff]  }
 0x2fe   : > { %v21144_v23 = vpop.f32.mrf.mxu1  ;;  %v21160_v24 = vpop.f32.mrf.mxu0  ;;  %v25914_v60 = vmax.f32 %v25800_v38, %v20845_v43  ;;  %v25925_v43 = vld [vmem:[#allocation63_spill] sm:$0xff]  ;;  %16356 = vmatmul.mubr.msk.bf16.gmra.mxu1 %vm3854_vm1, %v17020_v11  ;;  %v25952_v11 = vmax.f32 %v25840_v4, %v20944_v41  ;;  %v25960_v41 = vmax.f32 %v25895_v62, %v21082_v5 }
 0x2ff   : > { %v21154_v39 = vpack.c.bf16 %v11123_v8, %v11122_v31  ;;  %25911 = vst [vmem:[#allocation75_spill] sm:$0xff] %v21156_v32  ;;  %v21173_v7 = vpack.c.bf16 %v25913_v57, %v25912_v25  ;;  %v25915_v31 = vmax.f32 %v25814_v9, %v20881_v37  ;;  %v25916_v8 = vld [vmem:[#allocation36_spill] sm:$0xff]  ;;  %v25920_v32 = vld [vmem:[#allocation62_spill] sm:$0xff]  ;;  %v25927_v57 = vld [vmem:[#allocation19_spill] sm:$0xff]  ;;  %15716 = vmatmul.mubr.msk.bf16.gmra.mxu0 %vm3854_vm1, %v17019_v26 }
 0x300   : > { %v21158_v3 = vpop.f32.mrf.mxu1  ;;  %v25918_v45 = vmax.f32 %v25916_v8, %v25917_v54  ;;  %v21191_v14 = vpop.f32.mrf.mxu0  ;;  %v25924_v25 = vld [vmem:[#allocation16_spill] sm:$0xff]  ;;  %v25928_v37 = vld [vmem:[#allocation31_spill] sm:$0xff]  ;;  %v25934_v8 = vmax.f32 %v25753_v0, %v20730_v20  ;;  %v25935_v54 = vmax.f32 %v25766_v16, %v20758_v33  ;;  %15719 = vmatprep.mubr.msk.bf16.mxu0 %vm3854_vm1, %v17021_v13  ;;  %v25945_v20 = vld [vmem:[#allocation26_spill] sm:$0xff]  ;;  %16359 = vmatprep.mubr.msk.bf16.mxu1 %vm3854_vm1, %v17022_v12 }
 0x301   : > { %25910 = vst [vmem:[#allocation128_spill] sm:$0xff] %v21154_v39  ;;  %v21181_v27 = vpack.c.bf16 %v25915_v31, %v25914_v60  ;;  %v25921_v39 = vmax.f32 %v25919_v29, %v25920_v32  ;;  %v25926_v38 = vmax.f32 %v25924_v25, %v25925_v43  ;;  %v25929_v9 = vmax.f32 %v25927_v57, %v25928_v37  ;;  %v25937_v25 = vld [vmem:[#allocation24_spill] sm:$0xff]  ;;  %v25938_v43 = vld [vmem:[#allocation90_spill] sm:$0xff]  ;;  %v25941_v57 = vld [vmem:[#allocation91_spill] sm:$0xff] }
 0x302   : > { %v21163_v28 = vpop.f32.mrf.mxu1  ;;  %v21204_v31 = vpop.f32.mrf.mxu0  ;;  %v25931_v29 = vmax.f32 %v19712_v44, %v20671_v49  ;;  %v25939_v26 = vmax.f32 %v25937_v25, %v25938_v43  ;;  %v25947_v33 = vld [vmem:[#allocation32_spill] sm:$0xff]  ;;  %v25948_v16 = vld [vmem:[#allocation59_spill] sm:$0xff]  ;;  %v25954_v13 = vmax.f32 %v25848_v15, %v20962_v55  ;;  %v25957_v12 = vmax.f32 %v25872_v53, %v21026_v47  ;;  %v17026_v53 = vld [vmem:[%s17242_s29 + $0xfc0] sm:$0xff]  }
 0x303   : > { %v21189_v34 = vpack.c.bf16 %v25921_v39, %v25918_v45  ;;  %v21202_v60 = vpack.c.bf16 %v25929_v9, %v25926_v38  ;;  %v25932_v39 = vmax.f32 %v19746_v1, %v20697_v30  ;;  %v21221_v45 = vpack.c.bf16 %v25935_v54, %v25934_v8  ;;  %v25940_v38 = vld [vmem:[#allocation25_spill] sm:$0xff]  ;;  %v25944_v30 = vld [vmem:[#allocation28_spill] sm:$0xff] }
 0x304   : > { %v21194_v10 = vpop.f32.mrf.mxu1  ;;  %v25942_v44 = vmax.f32 %v25940_v38, %v25941_v57  ;;  %v25946_v0 = vmax.f32 %v25944_v30, %v25945_v20  ;;  %v25949_v37 = vmax.f32 %v25947_v33, %v25948_v16  ;;  %v25955_v54 = vmax.f32 %v25866_v46, %v21007_v21  ;;  %v17023_v21 = vld [vmem:[%s17242_s29 + $0x5b8] sm:$0xff]   ;;  %v25967_v30 = vld [vmem:[#allocation64_spill] sm:$0xff] }
 0x305   : > { %25922 = vst [vmem:[#allocation47_spill] sm:$0xff] %v21189_v34  ;;  %25923 = vst [vmem:[#allocation7_spill] sm:$0xff] %v21194_v10  ;;  %v21213_v32 = vpack.c.bf16 %v25932_v39, %v25931_v29  ;;  %v21243_v29 = vpop.f32.mrf.mxu0  ;;  %v25951_v39 = vmax.f32 %v25823_v50, %v20903_v59  ;;  %v25958_v59 = vmax.f32 %v25891_v18, %v21069_v6  ;;  %v17024_v46 = vld [vmem:[%s17242_s29 + $0xfb8] sm:$0xff]  }
 0x306   : > { %25930 = vst [vmem:[#allocation13_spill] sm:$0xff] %v21202_v60  ;;  %25936 = vst [vmem:[#allocation83_spill] sm:$0xff] %v21221_v45  ;;  %v21229_v49 = vpack.c.bf16 %v25942_v44, %v25939_v26  ;;  %v21231_v1 = vpop.f32.mrf.mxu1  ;;  %v21241_v9 = vpack.c.bf16 %v25949_v37, %v25946_v0  ;;  %v21260_v25 = vpack.c.bf16 %v25955_v54, %v25954_v13  ;;  %v17025_v26 = vld [vmem:[%s17242_s29 + $0x5c0] sm:$0xff]   ;;  %16360 = vmatmul.mubr.msk.bf16.gmra.mxu1 %vm3854_vm1, %v17024_v46  ;;  %v25964_v38 = vld [vmem:[#allocation33_spill] sm:$0xff] }
 0x307   : > { %25933 = vst [vmem:[#allocation43_spill] sm:$0xff] %v21213_v32  ;;  %v21252_v8 = vpack.c.bf16 %v25952_v11, %v25951_v39  ;;  %v21270_v50 = vpack.c.bf16 %v25958_v59, %v25957_v12  ;;  %v21275_v4 = vpack.c.bf16 %v11121_v36, %v25960_v41  ;;  %v21277_v55 = vpop.f32.mrf.mxu0  ;;  %15720 = vmatmul.mubr.msk.bf16.gmra.mxu0 %vm3854_vm1, %v17023_v21  ;;  %v25963_v36 = vld [vmem:[#allocation5_spill] sm:$0xff]  ;;  %v25966_v44 = vld [vmem:[#allocation8_spill] sm:$0xff]  ;;  %v17027_v37 = vld [vmem:[%s17242_s29 + $0x5c8] sm:$0xff]  }
 0x308   : > { %25943 = vst [vmem:[#allocation129_spill] sm:$0xff] %v21229_v49  ;;  %25950 = vst [vmem:[#allocation130_spill] sm:$0xff] %v21241_v9  ;;  %v21262_v43 = vpop.f32.mrf.mxu1  ;;  %15723 = vmatprep.mubr.msk.bf16.mxu0 %vm3854_vm1, %v17025_v26  ;;  %16363 = vmatprep.mubr.msk.bf16.mxu1 %vm3854_vm1, %v17026_v53  ;;  %v25965_v57 = vmax.f32 %v25963_v36, %v25964_v38  ;;  %v25968_v20 = vmax.f32 %v25966_v44, %v25967_v30  ;;  %v17028_v11 = vld [vmem:[%s17242_s29 + $0xfc8] sm:$0xff]   ;;  %v17029_v13 = vld [vmem:[%s17242_s29 + $0x5d0] sm:$0xff]  }
 0x309   : > { %25953 = vst [vmem:[#allocation76_spill] sm:$0xff] %v21252_v8  ;;  %25956 = vst [vmem:[#allocation131_spill] sm:$0xff] %v21260_v25  ;;  %v21284_v47 = vpop.f32.mrf.mxu0  ;;  %v17030_v12 = vld [vmem:[%s17242_s29 + $0xfd0] sm:$0xff]   ;;  %v25971_v26 = vld [vmem:[#allocation46_spill] sm:$0xff] }
 0x30a   : > { %25959 = vst [vmem:[#allocation132_spill] sm:$0xff] %v21270_v50  ;;  %25961 = vst [vmem:[#allocation133_spill] sm:$0xff] %v21275_v4  ;;  %v21280_v15 = vpop.f32.mrf.mxu1  ;;  %v21305_v0 = vpack.c.bf16 %v25968_v20, %v25965_v57  ;;  %v25972_v53 = vld [vmem:[#allocation37_spill] sm:$0xff]  ;;  %v25974_v38 = vld [vmem:[#allocation12_spill] sm:$0xff] }
 0x30b   : > { %v21289_v18 = vpop.f32.mrf.mxu0  ;;  %v25973_v36 = vmax.f32 %v25971_v26, %v25972_v53  ;;  %v25975_v57 = vld [vmem:[#allocation39_spill] sm:$0xff]  ;;  %v17031_v4 = vld [vmem:[%s17242_s29 + $0x5d8] sm:$0xff]   ;;  %v17033_v50 = vld [vmem:[%s17242_s29 + $0x5e0] sm:$0xff]  }
 0x30c   : > { %v21287_v6 = vpop.f32.mrf.mxu1  ;;  %25969 = vst [vmem:[#allocation45_spill] sm:$0xff] %v21305_v0  ;;  %v25976_v44 = vmax.f32 %v25974_v38, %v25975_v57  ;;  %v17034_v26 = vld [vmem:[%s17242_s29 + $0xfe0] sm:$0xff]   ;;  %v25983_v8 = vld [vmem:[#allocation15_spill] sm:$0xff]  ;;  %v17037_v60 = vld [vmem:[%s17242_s29 + $0x5f0] sm:$0xff]  }
 0x30d   : > { %25962 = vst [vmem:[#allocation44_spill] sm:$0xff] %v21287_v6  ;;  %v21296_v62 = vpop.f32.mrf.mxu0  ;;  %v25982_v25 = vld [vmem:[#allocation22_spill] sm:$0xff]  ;;  %v17035_v32 = vld [vmem:[%s17242_s29 + $0x5e8] sm:$0xff]  }
 0x30e   : > { %v21292_v5 = vpop.f32.mrf.mxu1  ;;  %16364 = vmatmul.mubr.msk.bf16.gmra.mxu1 %vm3854_vm1, %v17028_v11  ;;  %v21337_v30 = vpack.c.bf16 %v25976_v44, %v25973_v36  ;;  %v25979_v44 = vld [vmem:[#allocation50_spill] sm:$0xff]  ;;  %v25984_v9 = vmax.f32 %v25982_v25, %v25983_v8 }
 0x30f   : > { %v21309_v16 = vpop.f32.mrf.mxu0  ;;  %15724 = vmatmul.mubr.msk.bf16.gmra.mxu0 %vm3854_vm1, %v17027_v37  ;;  %16367 = vmatprep.mubr.msk.bf16.mxu1 %vm3854_vm1, %v17030_v12 }
 0x310   : > { %v21307_v33 = vpop.f32.mrf.mxu1  ;;  %15727 = vmatprep.mubr.msk.bf16.mxu0 %vm3854_vm1, %v17029_v13  ;;  %25977 = vst [vmem:[#allocation101_spill] sm:$0xff] %v21337_v30  ;;  %v17032_v13 = vld [vmem:[%s17242_s29 + $0xfd8] sm:$0xff]   ;;  %v25980_v30 = vld [vmem:[#allocation66_spill] sm:$0xff] }
 0x311   : > { %v21316_v54 = vpop.f32.mrf.mxu0  ;;  %v25981_v0 = vmax.f32 %v25979_v44, %v25980_v30  ;;  %v17038_v30 = vld [vmem:[%s17242_s29 + $0xff0] sm:$0xff]  }
 0x312   : > { %v21312_v39 = vpop.f32.mrf.mxu1 }
 0x313   : > { %v21321_v41 = vpop.f32.mrf.mxu0  ;;  %v21369_v49 = vpack.c.bf16 %v25984_v9, %v25981_v0  ;;  %v25990_v0 = vld [vmem:[#allocation54_spill] sm:$0xff] }
 0x314   : > { %v21319_v59 = vpop.f32.mrf.mxu1 }
 0x315   : > { %25970 = vst [vmem:[#allocation134_spill] sm:$0xff] %v21319_v59  ;;  %v21328_v46 = vpop.f32.mrf.mxu0  ;;  %25985 = vst [vmem:[#allocation77_spill] sm:$0xff] %v21369_v49  ;;  %v25991_v49 = vld [vmem:[#allocation68_spill] sm:$0xff]  ;;  %v25994_v59 = vld [vmem:[#allocation71_spill] sm:$0xff] }
 0x316   : > { %v21324_v21 = vpop.f32.mrf.mxu1  ;;  %16368 = vmatmul.mubr.msk.bf16.gmra.mxu1 %vm3854_vm1, %v17032_v13  ;;  %v25992_v34 = vmax.f32 %v25990_v0, %v25991_v49  ;;  %v9022_v0 = vadd.f32 %v20708_v2, %v21097_v56  ;;  %v21451_v56 = vadd.f32 %v20708_v2, %v21129_v52  ;;  %v21473_v52 = vadd.f32 %v20708_v2, %v21158_v3 }
 0x317   : > { %v21341_v37 = vpop.f32.mrf.mxu0  ;;  %15728 = vmatmul.mubr.msk.bf16.gmra.mxu0 %vm3854_vm1, %v17031_v4  ;;  %16371 = vmatprep.mubr.msk.bf16.mxu1 %vm3854_vm1, %v17034_v26 }
 0x318   : > { %v21339_v20 = vpop.f32.mrf.mxu1  ;;  %15731 = vmatprep.mubr.msk.bf16.mxu0 %vm3854_vm1, %v17033_v50  ;;  %v17036_v50 = vld [vmem:[%s17242_s29 + $0xfe8] sm:$0xff]  }
 0x319   : > { %v21348_v12 = vpop.f32.mrf.mxu0 }
 0x31a   : > { %v21344_v11 = vpop.f32.mrf.mxu1 }
 0x31b   : > { %v21353_v36 = vpop.f32.mrf.mxu0 }
 0x31c   : > { %v21351_v53 = vpop.f32.mrf.mxu1 }
 0x31d   : > { %25978 = vst [vmem:[#allocation102_spill] sm:$0xff] %v21351_v53  ;;  %v21360_v57 = vpop.f32.mrf.mxu0  ;;  %v25993_v53 = vld [vmem:[#allocation58_spill] sm:$0xff] }
 0x31e   : > { %v21356_v38 = vpop.f32.mrf.mxu1  ;;  %16372 = vmatmul.mubr.msk.bf16.gmra.mxu1 %vm3854_vm1, %v17036_v50 }
 0x31f   : > { %v21373_v4 = vpop.f32.mrf.mxu0  ;;  %15732 = vmatmul.mubr.msk.bf16.gmra.mxu0 %vm3854_vm1, %v17035_v32  ;;  %16375 = vmatprep.mubr.msk.bf16.mxu1 %vm3854_vm1, %v17038_v30 }
 0x320   : > { %v21371_v45 = vpop.f32.mrf.mxu1  ;;  %15735 = vmatprep.mubr.msk.bf16.mxu0 %vm3854_vm1, %v17037_v60  ;;  %v17040_v60 = vld [vmem:[%s17242_s29 + $0xff8] sm:$0xff]  }
 0x321   : > { %v21380_v26 = vpop.f32.mrf.mxu0 }
 0x322   : > { %v21376_v13 = vpop.f32.mrf.mxu1 }
 0x323   : > { %v21385_v8 = vpop.f32.mrf.mxu0 }
 0x324   : > { %v21383_v44 = vpop.f32.mrf.mxu1  ;;  %25987 = vst [vmem:[#allocation136_spill] sm:$0xff] %v21385_v8 }
 0x325   : > { %25986 = vst [vmem:[#allocation135_spill] sm:$0xff] %v21383_v44  ;;  %v21392_v25 = vpop.f32.mrf.mxu0  ;;  %v25995_v44 = vmax.f32 %v25993_v53, %v25994_v59  ;;  %v26004_v59 = vld [vmem:[#allocation3_spill] sm:$0xff] }
 0x326   : > { %v21388_v9 = vpop.f32.mrf.mxu1  ;;  %25989 = vst [vmem:[#allocation78_spill] sm:$0xff] %v21392_v25  ;;  %16376 = vmatmul.mubr.msk.bf16.gmra.mxu1 %vm3854_vm1, %v17040_v60  ;;  %v21443_v60 = vadd.f32 %v20708_v2, %v21121_v19  ;;  %v21466_v19 = vadd.f32 %v20708_v2, %v21150_v48  ;;  %v10422_v48 = vmax.f32 %v9022_v0, 0.0 }
 0x327   : > { %25988 = vst [vmem:[#allocation137_spill] sm:$0xff] %v21388_v9  ;;  %v21401_v6 = vpack.c.bf16 %v25995_v44, %v25992_v34  ;;  %v21405_v32 = vpop.f32.mrf.mxu0  ;;  %15736 = vmatmul.mubr.msk.bf16.gmra.mxu0 %vm3854_vm1, %v17039_v35  ;;  %16381 = vmatprep.mubr.msk.bf16.mxu1 %vm11455_vm2, %v26004_v59  ;;  %v6462_v44 = vadd.f32 %v20708_v2, %v21088_v17  ;;  %v17042_v59 = vld [vmem:[%s17242_s29 + $0x608] sm:$0xff]  }
 0x328   : > { %v21403_v10 = vpop.f32.mrf.mxu1  ;;  %25998 = vst [vmem:[#allocation105_spill] sm:$0xff] %v21405_v32  ;;  %15739 = vmatprep.mubr.msk.bf16.mxu0 %vm3854_vm1, %v17041_v40  ;;  %v21433_v35 = vadd.f32 %v20708_v2, %v21106_v61  ;;  %v21439_v40 = vadd.f32 %v20708_v2, %v21115_v63  ;;  %v21447_v17 = vadd.f32 %v20708_v2, %v21125_v42 }
 0x329   : > { %25996 = vst [vmem:[#allocation79_spill] sm:$0xff] %v21401_v6  ;;  %25997 = vst [vmem:[#allocation104_spill] sm:$0xff] %v21403_v10  ;;  %v21412_v51 = vpop.f32.mrf.mxu0  ;;  %v21462_v63 = vadd.f32 %v20708_v2, %v21144_v23  ;;  %v17045_v10 = vld [vmem:[%s17242_s29 + $0x620] sm:$0xff]  }
 0x32a   : > { %v21408_v50 = vpop.f32.mrf.mxu1  ;;  %26000 = vst [vmem:[#allocation10_spill] sm:$0xff] %v21412_v51  ;;  %v10423_v51 = vmax.f32 %v21447_v17, 0.0 }
 0x32b   : > { %25999 = vst [vmem:[#allocation106_spill] sm:$0xff] %v21408_v50  ;;  %v21416_v49 = vpop.f32.mrf.mxu0 }
 0x32c   : > { %v21414_v30 = vpop.f32.mrf.mxu1  ;;  %26002 = vst [vmem:[#allocation139_spill] sm:$0xff] %v21416_v49  ;;  %v10420_v49 = vmax.f32 %v21439_v40, 0.0 }
 0x32d   : > { %26001 = vst [vmem:[#allocation138_spill] sm:$0xff] %v21414_v30  ;;  %v21425_v53 = vpop.f32.mrf.mxu0  ;;  %v21458_v30 = vadd.f32 %v20708_v2, %v21139_v22  ;;  %v21481_v22 = vadd.f32 %v20708_v2, %v21163_v28 }
 0x32e   : > { %v21419_v34 = vpop.f32.mrf.mxu1  ;;  %26005 = vst [vmem:[#allocation141_spill] sm:$0xff] %v21425_v53  ;;  %v9782_v53 = vmax.f32 %v6462_v44, 0.0  ;;  %v26012_v44 = vld [vmem:[#allocation21_spill] sm:$0xff] }
 0x32f   : > { %26003 = vst [vmem:[#allocation140_spill] sm:$0xff] %v21419_v34  ;;  %v21453_v61 = vpop.f32.mrf.mxu0  ;;  %v9780_v34 = vmax.f32 %v21433_v35, 0.0  ;;  %15740 = vmatmul.mubr.msk.bf16.gmra.mxu0 %vm3854_vm1, %v17042_v59 }
 0x330   : > { %v21435_v6 = vpop.f32.mrf.mxu1  ;;  %26007 = vst [vmem:[#allocation11_spill] sm:$0xff] %v21453_v61  ;;  %v21477_v61 = vadd.f32 %v20708_v2, %v21160_v24  ;;  %v9783_v24 = vmax.f32 %v21443_v60, 0.0  ;;  %v26011_v60 = vld [vmem:[#allocation29_spill] sm:$0xff] }
 0x331   : > { %26006 = vst [vmem:[#allocation142_spill] sm:$0xff] %v21435_v6  ;;  %v17043_v6 = vld [vmem:[%s17242_s29 + $0x610] sm:$0xff]   ;;  %v21483_v23 = vpop.f32.mrf.mxu0  ;;  %16382 = vmatmul.mubr.msk.bf16.vlgmr.msra.gmra.mxu1 %vm11455_vm2, %v26011_v60 }
 0x332   : > { %v21468_v42 = vpop.f32.mrf.mxu1  ;;  %26009 = vst [vmem:[#allocation108_spill] sm:$0xff] %v21483_v23  ;;  %15743 = vmatprep.mubr.msk.bf16.mxu0 %vm3854_vm1, %v17043_v6  ;;  %16385 = vmatprep.mubr.msk.bf16.mxu1 %vm11455_vm2, %v26012_v44  ;;  %v17044_v23 = vld [vmem:[%s17242_s29 + $0x618] sm:$0xff]  }
 0x333   : > { %26008 = vst [vmem:[#allocation81_spill] sm:$0xff] %v21468_v42  ;;  %v21488_v42 = vadd.f32 %v20708_v2, %v21191_v14  ;;  %v15645_v50 = vpop.f32.mrf.mxu0  ;;  %v21503_v14 = vld [vmem:[%s24956_s2] ss:$0 sm:$0xff] }
 0x334   : > { %v21490_v3 = vpop.f32.mrf.mxu1  ;;  %v6590_v35 = vadd.f32 %v21503_v14, %v15645_v50  ;;  %v21518_v60 = vadd.f32 %v21503_v14, %v21204_v31  ;;  %v21523_v2 = vadd.f32 %v21503_v14, %v21231_v1  ;;  %v21533_v31 = vadd.f32 %v21503_v14, %v21262_v43  ;;  %v26015_v43 = vld [vmem:[#allocation34_spill] sm:$0xff] }
 0x335   : > { %26010 = vst [vmem:[#allocation48_spill] sm:$0xff] %v21490_v3  ;;  %v6581_v28 = vpop.f32.mrf.mxu0 }
 0x336   : > { %v16285_v40 = vpop.f32.mrf.mxu1  ;;  %v9814_v6 = vmax.f32 %v6590_v35, 0.0  ;;  %v6582_v17 = vadd.f32 %v21503_v14, %v6581_v28 }
 0x337   : > { %v9150_v0 = vadd.f32 %v21503_v14, %v16285_v40  ;;  %v21527_v40 = vadd.f32 %v21503_v14, %v21243_v29  ;;  %v15646_v59 = vpop.f32.mrf.mxu0  ;;  %v21541_v29 = vadd.f32 %v21503_v14, %v21277_v55  ;;  %v21555_v55 = vadd.f32 %v21503_v14, %v21280_v15  ;;  %15744 = vmatmul.mubr.msk.bf16.gmra.mxu0 %vm3854_vm1, %v17044_v23  ;;  %v17047_v15 = vld [vmem:[%s17242_s29 + $0x630] sm:$0xff]  }
 0x338   : > { %v9141_v3 = vpop.f32.mrf.mxu1  ;;  %v21535_v35 = vmax.f32 %v9782_v53, %v9814_v6  ;;  %v9812_v28 = vmax.f32 %v6582_v17, 0.0  ;;  %v6593_v32 = vadd.f32 %v21503_v14, %v15646_v59  ;;  %15747 = vmatprep.mubr.msk.bf16.mxu0 %vm3854_vm1, %v17045_v10 }
 0x339   : > { %v10454_v44 = vmax.f32 %v9150_v0, 0.0  ;;  %v9142_v50 = vadd.f32 %v21503_v14, %v9141_v3  ;;  %v6584_v9 = vpop.f32.mrf.mxu0  ;;  %16386 = vmatmul.mubr.msk.bf16.gmra.mxu1 %vm11455_vm2, %v26015_v43  ;;  %v26016_v43 = vmax.f32 %v21451_v56, 0.0  ;;  %v21592_v56 = vadd.f32 %v21503_v14, %v21292_v5 }
 0x33a   : > { %v16286_v1 = vpop.f32.mrf.mxu1  ;;  %v21547_v8 = vmax.f32 %v9780_v34, %v9812_v28  ;;  %v9815_v53 = vmax.f32 %v6593_v32, 0.0  ;;  %v6585_v17 = vadd.f32 %v21503_v14, %v6584_v9  ;;  %16389 = vmatprep.mubr.msk.bf16.mxu1 %vm11455_vm2, %v21173_v7 }
 0x33b   : > { %v21543_v0 = vmax.f32 %v10422_v48, %v10454_v44  ;;  %v10452_v3 = vmax.f32 %v9142_v50, 0.0  ;;  %v9153_v25 = vadd.f32 %v21503_v14, %v16286_v1  ;;  %v15649_v44 = vpop.f32.mrf.mxu0 }
 0x33c   : > { %v21550_v59 = vpop.f32.mrf.mxu1  ;;  %v21561_v28 = vmax.f32 %v9783_v24, %v9815_v53  ;;  %v9813_v32 = vmax.f32 %v6585_v17, 0.0  ;;  %v6606_v9 = vadd.f32 %v21503_v14, %v15649_v44  ;;  %v21586_v44 = vadd.f32 %v21503_v14, %v21289_v18 }
 0x33d   : > { %26013 = vst [vmem:[#allocation109_spill] sm:$0xff] %v21550_v59  ;;  %v21557_v48 = vmax.f32 %v10420_v49, %v10452_v3  ;;  %v10455_v50 = vmax.f32 %v9153_v25, 0.0  ;;  %v6597_v24 = vpop.f32.mrf.mxu0  ;;  %v21576_v3 = vadd.f32 %v21503_v14, %v21284_v47  ;;  %v17046_v25 = vld [vmem:[%s17242_s29 + $0x628] sm:$0xff]   ;;  %v21602_v18 = vadd.f32 %v21503_v14, %v21296_v62 }
 0x33e   : > { %v16289_v1 = vpop.f32.mrf.mxu1  ;;  %v21580_v10 = vmax.f32 %v26016_v43, %v9813_v32  ;;  %v9818_v53 = vmax.f32 %v6606_v9, 0.0  ;;  %v6598_v17 = vadd.f32 %v21503_v14, %v6597_v24  ;;  %v26017_v32 = vmax.f32 %v21458_v30, 0.0 }
 0x33f   : > { %26014 = vst [vmem:[#allocation110_spill] sm:$0xff] %v21557_v48  ;;  %v21569_v49 = vmax.f32 %v10423_v51, %v10455_v50  ;;  %v9166_v23 = vadd.f32 %v21503_v14, %v16289_v1  ;;  %v15650_v47 = vpop.f32.mrf.mxu0  ;;  %v21611_v30 = vadd.f32 %v21503_v14, %v21307_v33  ;;  %15748 = vmatmul.mubr.msk.bf16.gmra.mxu0 %vm3854_vm1, %v17046_v25  ;;  %v17137_v48 = vld [vmem:[%s17242_s29 + $0x900] sm:$0xff]  }
 0x340   : > { %v9157_v51 = vpop.f32.mrf.mxu1  ;;  %v21596_v9 = vmax.f32 %v26017_v32, %v9818_v53  ;;  %v9816_v24 = vmax.f32 %v6598_v17, 0.0  ;;  %v6609_v43 = vadd.f32 %v21503_v14, %v15650_v47  ;;  %v26019_v53 = vmax.f32 %v21466_v19, 0.0  ;;  %15751 = vmatprep.mubr.msk.bf16.mxu0 %vm3854_vm1, %v17047_v15 }
 0x341   : > { %v10458_v7 = vmax.f32 %v9166_v23, 0.0  ;;  %v9158_v1 = vadd.f32 %v21503_v14, %v9157_v51  ;;  %v26018_v23 = vmax.f32 %v21462_v63, 0.0  ;;  %v6600_v6 = vpop.f32.mrf.mxu0  ;;  %16390 = vmatmul.mubr.msk.bf16.gmra.mxu1 %vm11455_vm2, %v20848_v58  ;;  %v26028_v15 = vmax.f32 %v21488_v42, 0.0  ;;  %v17048_v42 = vld [vmem:[%s17242_s29 + $0x638] sm:$0xff]   ;;  %v17049_v58 = vld [vmem:[%s17242_s29 + $0x640] sm:$0xff]  }
 0x342   : > { %v16290_v50 = vpop.f32.mrf.mxu1  ;;  %v21615_v17 = vmax.f32 %v26019_v53, %v9816_v24  ;;  %v9819_v47 = vmax.f32 %v6609_v43, 0.0  ;;  %v6601_v62 = vadd.f32 %v21503_v14, %v6600_v6  ;;  %v26024_v24 = vmax.f32 %v21477_v61, 0.0  ;;  %16393 = vmatprep.mubr.msk.bf16.mxu1 %vm11455_vm2, %v21181_v27 }
 0x343   : > { %v21606_v51 = vmax.f32 %v26018_v23, %v10458_v7  ;;  %v10456_v34 = vmax.f32 %v9158_v1, 0.0  ;;  %v9169_v5 = vadd.f32 %v21503_v14, %v16290_v50  ;;  %v26022_v50 = vmax.f32 %v21473_v52, 0.0  ;;  %v15653_v33 = vpop.f32.mrf.mxu0 }
 0x344   : > { %26020 = vst [vmem:[#allocation146_spill] sm:$0xff] %v21615_v17  ;;  %v21618_v32 = vpop.f32.mrf.mxu1  ;;  %v21630_v43 = vmax.f32 %v26024_v24, %v9819_v47  ;;  %v9817_v6 = vmax.f32 %v6601_v62, 0.0  ;;  %v6622_v53 = vadd.f32 %v21503_v14, %v15653_v33  ;;  %v26026_v61 = vmax.f32 %v21481_v22, 0.0 }
 0x345   : > { %26021 = vst [vmem:[#allocation144_spill] sm:$0xff] %v21618_v32  ;;  %v21624_v1 = vmax.f32 %v26022_v50, %v10456_v34  ;;  %v10459_v23 = vmax.f32 %v9169_v5, 0.0  ;;  %v21639_v34 = vadd.f32 %v21503_v14, %v21309_v16  ;;  %v6613_v47 = vpop.f32.mrf.mxu0  ;;  %v21656_v22 = vadd.f32 %v21503_v14, %v21312_v39  ;;  %v26071_v32 = vld [vmem:[#allocation104_spill] sm:$0xff] }
 0x346   : > { %26025 = vst [vmem:[#allocation143_spill] sm:$0xff] %v21630_v43  ;;  %v16293_v63 = vpop.f32.mrf.mxu1  ;;  %v21651_v62 = vmax.f32 %v26028_v15, %v9817_v6  ;;  %v9822_v50 = vmax.f32 %v6622_v53, 0.0  ;;  %v6614_v16 = vadd.f32 %v21503_v14, %v6613_v47  ;;  %v21666_v6 = vadd.f32 %v21503_v14, %v21321_v41 }
 0x347   : > { %26023 = vst [vmem:[#allocation145_spill] sm:$0xff] %v21624_v1  ;;  %v21643_v25 = vmax.f32 %v26026_v61, %v10459_v23  ;;  %v9182_v5 = vadd.f32 %v21503_v14, %v16293_v63  ;;  %v21660_v63 = vadd.f32 %v21503_v14, %v21316_v54  ;;  %v15654_v24 = vpop.f32.mrf.mxu0  ;;  %v26030_v53 = vmax.f32 %v21518_v60, 0.0  ;;  %15752 = vmatmul.mubr.msk.bf16.gmra.mxu0 %vm3854_vm1, %v17048_v42 }
 0x348   : > { %26029 = vst [vmem:[#allocation113_spill] sm:$0xff] %v21651_v62  ;;  %v9173_v33 = vpop.f32.mrf.mxu1  ;;  %v9820_v47 = vmax.f32 %v6614_v16, 0.0  ;;  %v6625_v39 = vadd.f32 %v21503_v14, %v15654_v24  ;;  %v21676_v54 = vadd.f32 %v21503_v14, %v21324_v21  ;;  %v9795_v60 = vmax.f32 %v21639_v34, 0.0  ;;  %15755 = vmatprep.mubr.msk.bf16.mxu0 %vm3854_vm1, %v17049_v58 }
 0x349   : > { %26027 = vst [vmem:[#allocation112_spill] sm:$0xff] %v21643_v25  ;;  %v10462_v27 = vmax.f32 %v9182_v5, 0.0  ;;  %v9174_v23 = vadd.f32 %v21503_v14, %v9173_v33  ;;  %v21670_v61 = vmax.f32 %v26030_v53, %v9822_v50  ;;  %v26032_v5 = vmax.f32 %v21523_v2, 0.0  ;;  %v6616_v19 = vpop.f32.mrf.mxu0 }
 0x34a   : > { %v16294_v15 = vpop.f32.mrf.mxu1  ;;  %v26034_v50 = vmax.f32 %v21527_v40, 0.0  ;;  %v9823_v24 = vmax.f32 %v6625_v39, 0.0  ;;  %v6617_v53 = vadd.f32 %v21503_v14, %v6616_v19  ;;  %v10435_v21 = vmax.f32 %v21656_v22, 0.0 }
 0x34b   : > { %26031 = vst [vmem:[#allocation114_spill] sm:$0xff] %v21670_v61  ;;  %v21680_v33 = vmax.f32 %v26032_v5, %v10462_v27  ;;  %v10460_v52 = vmax.f32 %v9174_v23, 0.0  ;;  %v9185_v41 = vadd.f32 %v21503_v14, %v16294_v15  ;;  %v21694_v2 = vadd.f32 %v21503_v14, %v21328_v46  ;;  %v15657_v15 = vpop.f32.mrf.mxu0  ;;  %v26041_v46 = vld [vmem:[#allocation89_spill] sm:$0xff] }
 0x34c   : > { %v21686_v16 = vmax.f32 %v26034_v50, %v9820_v47  ;;  %v21689_v7 = vpop.f32.mrf.mxu1  ;;  %v26037_v27 = vmax.f32 %v21533_v31, 0.0  ;;  %v9793_v40 = vmax.f32 %v21660_v63, 0.0  ;;  %v26039_v19 = vmax.f32 %v21541_v29, 0.0  ;;  %16394 = vmatmul.mubr.msk.bf16.gmra.mxu1 %vm11455_vm2, %v26041_v46 }
 0x34d   : > { %26033 = vst [vmem:[#allocation36_spill] sm:$0xff] %v21680_v33  ;;  %26036 = vst [vmem:[#allocation40_spill] sm:$0xff] %v21689_v7  ;;  %v10463_v34 = vmax.f32 %v9185_v41, 0.0  ;;  %v9821_v39 = vmax.f32 %v6617_v53, 0.0  ;;  %v6638_v22 = vadd.f32 %v21503_v14, %v15657_v15  ;;  %v9798_v31 = vmax.f32 %v21666_v6, 0.0  ;;  %v6629_v41 = vpop.f32.mrf.mxu0 }
 0x34e   : > { %26035 = vst [vmem:[#allocation61_spill] sm:$0xff] %v21686_v16  ;;  %v21698_v23 = vmax.f32 %v26037_v27, %v10460_v52  ;;  %v21704_v47 = vmax.f32 %v26039_v19, %v9823_v24  ;;  %v16297_v5 = vpop.f32.mrf.mxu1  ;;  %v26042_v63 = vmax.f32 %v21555_v55, 0.0  ;;  %v21719_v50 = vadd.f32 %v21503_v14, %v21339_v20 }
 0x34f   : > { %v9198_v29 = vadd.f32 %v21503_v14, %v16297_v5  ;;  %v26044_v24 = vmax.f32 %v21576_v3, 0.0  ;;  %v9826_v53 = vmax.f32 %v6638_v22, 0.0  ;;  %v6630_v6 = vadd.f32 %v21503_v14, %v6629_v41  ;;  %v15658_v20 = vpop.f32.mrf.mxu0  ;;  %v17050_v5 = vld [vmem:[%s17242_s29 + $0x648] sm:$0xff]   ;;  %v17051_v41 = vld [vmem:[%s17242_s29 + $0x650] sm:$0xff]  }
 0x350   : > { %26038 = vst [vmem:[#allocation62_spill] sm:$0xff] %v21698_v23  ;;  %26040 = vst [vmem:[#allocation16_spill] sm:$0xff] %v21704_v47  ;;  %v21714_v42 = vmax.f32 %v26042_v63, %v10463_v34  ;;  %v9189_v27 = vpop.f32.mrf.mxu1  ;;  %v9796_v55 = vmax.f32 %v21694_v2, 0.0  ;;  %v21729_v34 = vadd.f32 %v21503_v14, %v21341_v37  ;;  %v21735_v3 = vadd.f32 %v21503_v14, %v21344_v11  ;;  %v17071_v23 = vld [vmem:[%s17242_s29 + $0x6f0] sm:$0xff]  }
 0x351   : > { %v21723_v58 = vmax.f32 %v26044_v24, %v9821_v39  ;;  %v10466_v15 = vmax.f32 %v9198_v29, 0.0  ;;  %v9190_v19 = vadd.f32 %v21503_v14, %v9189_v27  ;;  %v26046_v39 = vmax.f32 %v21586_v44, 0.0  ;;  %v6632_v52 = vpop.f32.mrf.mxu0  ;;  %15756 = vmatmul.mubr.msk.bf16.gmra.mxu0 %vm3854_vm1, %v17050_v5 }
 0x352   : > { %26043 = vst [vmem:[#allocation63_spill] sm:$0xff] %v21714_v42  ;;  %v9824_v46 = vmax.f32 %v6630_v6, 0.0  ;;  %v6641_v2 = vadd.f32 %v21503_v14, %v15658_v20  ;;  %v16298_v63 = vpop.f32.mrf.mxu1  ;;  %v21745_v37 = vadd.f32 %v21503_v14, %v21348_v12  ;;  %v26048_v29 = vmax.f32 %v21592_v56, 0.0  ;;  %15759 = vmatprep.mubr.msk.bf16.mxu0 %vm3854_vm1, %v17051_v41  ;;  %v17070_v42 = vld [vmem:[%s17242_s29 + $0x6e8] sm:$0xff]  }
 0x353   : > { %26045 = vst [vmem:[#allocation19_spill] sm:$0xff] %v21723_v58  ;;  %v21739_v22 = vmax.f32 %v26046_v39, %v9826_v53  ;;  %v10464_v27 = vmax.f32 %v9190_v19, 0.0  ;;  %v9201_v11 = vadd.f32 %v21503_v14, %v16298_v63  ;;  %v21754_v44 = vadd.f32 %v21503_v14, %v21353_v36  ;;  %v15661_v36 = vpop.f32.mrf.mxu0 }
 0x354   : > { %v21749_v24 = vmax.f32 %v26048_v29, %v10466_v15  ;;  %v26050_v53 = vmax.f32 %v21602_v18, 0.0  ;;  %v9827_v20 = vmax.f32 %v6641_v2, 0.0  ;;  %v6633_v12 = vadd.f32 %v21503_v14, %v6632_v52  ;;  %v21761_v39 = vpop.f32.mrf.mxu1 }
 0x355   : > { %26047 = vst [vmem:[#allocation31_spill] sm:$0xff] %v21739_v22  ;;  %26052 = vst [vmem:[#allocation25_spill] sm:$0xff] %v21761_v39  ;;  %v10436_v56 = vmax.f32 %v21719_v50, 0.0  ;;  %v9799_v15 = vmax.f32 %v21729_v34, 0.0  ;;  %v26053_v19 = vmax.f32 %v21611_v30, 0.0  ;;  %v10467_v29 = vmax.f32 %v9201_v11, 0.0 }
 0x356   : > { %26049 = vst [vmem:[#allocation24_spill] sm:$0xff] %v21749_v24  ;;  %v21758_v6 = vmax.f32 %v26050_v53, %v9824_v46  ;;  %v10439_v18 = vmax.f32 %v21735_v3, 0.0  ;;  %v21771_v46 = vmax.f32 %v9795_v60, %v9827_v20  ;;  %v9825_v2 = vmax.f32 %v6633_v12, 0.0  ;;  %v16301_v53 = vpop.f32.mrf.mxu1  ;;  %v6645_v3 = vpop.f32.mrf.mxu0 }
 0x357   : > { %v21767_v63 = vmax.f32 %v26053_v19, %v10464_v27  ;;  %v6654_v52 = vadd.f32 %v21503_v14, %v15661_v36  ;;  %v9797_v50 = vmax.f32 %v21745_v37, 0.0  ;;  %v21778_v30 = vadd.f32 %v21503_v14, %v21356_v38 }
 0x358   : > { %26051 = vst [vmem:[#allocation90_spill] sm:$0xff] %v21758_v6  ;;  %26055 = vst [vmem:[#allocation28_spill] sm:$0xff] %v21771_v46  ;;  %v21780_v34 = vmax.f32 %v10435_v21, %v10467_v29  ;;  %v9214_v5 = vadd.f32 %v21503_v14, %v16301_v53  ;;  %v9802_v60 = vmax.f32 %v21754_v44, 0.0  ;;  %v21784_v27 = vmax.f32 %v9793_v40, %v9825_v2  ;;  %v9205_v20 = vpop.f32.mrf.mxu1  ;;  %v15662_v19 = vpop.f32.mrf.mxu0  ;;  %v17052_v44 = vld [vmem:[%s17242_s29 + $0x658] sm:$0xff]  }
 0x359   : > { %26054 = vst [vmem:[#allocation91_spill] sm:$0xff] %v21767_v63  ;;  %v9830_v11 = vmax.f32 %v6654_v52, 0.0  ;;  %v6646_v41 = vadd.f32 %v21503_v14, %v6645_v3  ;;  %v21789_v37 = vadd.f32 %v21503_v14, %v21360_v57  ;;  %v21793_v38 = vadd.f32 %v21503_v14, %v21371_v45  ;;  %v17053_v52 = vld [vmem:[%s17242_s29 + $0x660] sm:$0xff]   ;;  %15760 = vmatmul.mubr.msk.bf16.gmra.mxu0 %vm3854_vm1, %v17052_v44 }
 0x35a   : > { %26056 = vst [vmem:[#allocation26_spill] sm:$0xff] %v21780_v34  ;;  %26057 = vst [vmem:[#allocation32_spill] sm:$0xff] %v21784_v27  ;;  %v10470_v21 = vmax.f32 %v9214_v5, 0.0  ;;  %v9206_v12 = vadd.f32 %v21503_v14, %v9205_v20  ;;  %v21799_v40 = vadd.f32 %v21503_v14, %v21373_v4  ;;  %v6657_v2 = vadd.f32 %v21503_v14, %v15662_v19  ;;  %v16302_v57 = vpop.f32.mrf.mxu1  ;;  %v6648_v4 = vpop.f32.mrf.mxu0  ;;  %v17068_v34 = vld [vmem:[%s17242_s29 + $0x6d8] sm:$0xff]  }
 0x35b   : > { %v21801_v29 = vmax.f32 %v9798_v31, %v9830_v11  ;;  %v9828_v36 = vmax.f32 %v6646_v41, 0.0  ;;  %v21807_v45 = vadd.f32 %v21503_v14, %v21376_v13  ;;  %v26059_v53 = vmax.f32 %v21676_v54, 0.0  ;;  %15763 = vmatprep.mubr.msk.bf16.mxu0 %vm3854_vm1, %v17053_v52 }
 0x35c   : > { %v10468_v3 = vmax.f32 %v9206_v12, 0.0  ;;  %v9217_v20 = vadd.f32 %v21503_v14, %v16302_v57  ;;  %v10442_v31 = vmax.f32 %v21778_v30, 0.0  ;;  %v9831_v41 = vmax.f32 %v6657_v2, 0.0  ;;  %v21818_v39 = vpop.f32.mrf.mxu1 }
 0x35d   : > { %26058 = vst [vmem:[#allocation59_spill] sm:$0xff] %v21801_v29  ;;  %v21811_v5 = vmax.f32 %v26059_v53, %v10470_v21  ;;  %v21815_v11 = vmax.f32 %v9796_v55, %v9828_v36  ;;  %v6649_v19 = vadd.f32 %v21503_v14, %v6648_v4  ;;  %26062 = vst [vmem:[#allocation8_spill] sm:$0xff] %v21818_v39  ;;  %v9800_v13 = vmax.f32 %v21789_v37, 0.0  ;;  %v15665_v53 = vpop.f32.mrf.mxu0  ;;  %v26069_v39 = vld [vmem:[#allocation78_spill] sm:$0xff] }
 0x35e   : > { %v6537_v54 = vadd.f32 %v21503_v14, %v21380_v26  ;;  %v21823_v21 = vmax.f32 %v10436_v56, %v10468_v3  ;;  %v10471_v12 = vmax.f32 %v9217_v20, 0.0  ;;  %v10440_v30 = vmax.f32 %v21793_v38, 0.0  ;;  %v16305_v57 = vpop.f32.mrf.mxu1  ;;  %v26066_v20 = vld [vmem:[#allocation136_spill] sm:$0xff] }
 0x35f   : > { %26060 = vst [vmem:[#allocation5_spill] sm:$0xff] %v21811_v5  ;;  %26061 = vst [vmem:[#allocation33_spill] sm:$0xff] %v21815_v11  ;;  %v21827_v55 = vmax.f32 %v9799_v15, %v9831_v41  ;;  %v9829_v36 = vmax.f32 %v6649_v19, 0.0  ;;  %v6670_v2 = vadd.f32 %v21503_v14, %v15665_v53  ;;  %v9803_v37 = vmax.f32 %v21799_v40, 0.0  ;;  %v6661_v44 = vpop.f32.mrf.mxu0  ;;  %v26068_v53 = vld [vmem:[#allocation137_spill] sm:$0xff] }
 0x360   : > { %26063 = vst [vmem:[#allocation64_spill] sm:$0xff] %v21823_v21  ;;  %v10443_v26 = vmax.f32 %v21807_v45, 0.0  ;;  %v21833_v56 = vmax.f32 %v10439_v18, %v10471_v12  ;;  %v9230_v3 = vadd.f32 %v21503_v14, %v16305_v57  ;;  %v6558_v15 = vadd.f32 %v21503_v14, %v26066_v20  ;;  %v9221_v52 = vpop.f32.mrf.mxu1  ;;  %v17054_v57 = vld [vmem:[%s17242_s29 + $0x668] sm:$0xff]  }
 0x361   : > { %26064 = vst [vmem:[#allocation46_spill] sm:$0xff] %v21827_v55  ;;  %v21838_v38 = vmax.f32 %v9797_v50, %v9829_v36  ;;  %v9834_v4 = vmax.f32 %v6670_v2, 0.0  ;;  %v6662_v41 = vadd.f32 %v21503_v14, %v6661_v44  ;;  %v9801_v19 = vmax.f32 %v6537_v54, 0.0  ;;  %v15666_v12 = vpop.f32.mrf.mxu0  ;;  %v17055_v44 = vld [vmem:[%s17242_s29 + $0x670] sm:$0xff]   ;;  %15764 = vmatmul.mubr.msk.bf16.gmra.mxu0 %vm3854_vm1, %v17054_v57 }
 0x362   : > { %26065 = vst [vmem:[#allocation37_spill] sm:$0xff] %v21833_v56  ;;  %v9118_v40 = vadd.f32 %v21503_v14, %v26068_v53  ;;  %v10474_v45 = vmax.f32 %v9230_v3, 0.0  ;;  %v9222_v18 = vadd.f32 %v21503_v14, %v9221_v52  ;;  %v6550_v7 = vadd.f32 %v21503_v14, %v26069_v39  ;;  %v16306_v2 = vpop.f32.mrf.mxu1  ;;  %15767 = vmatprep.mubr.msk.bf16.mxu0 %vm3854_vm1, %v17055_v44 }
 0x363   : > { %26067 = vst [vmem:[#allocation12_spill] sm:$0xff] %v21838_v38  ;;  %v21847_v20 = vmax.f32 %v9802_v60, %v9834_v4  ;;  %v9832_v50 = vmax.f32 %v6662_v41, 0.0  ;;  %v6673_v36 = vadd.f32 %v21503_v14, %v15666_v12  ;;  %v9110_v54 = vadd.f32 %v21503_v14, %v26071_v32  ;;  %v6664_v53 = vpop.f32.mrf.mxu0  ;;  %v26075_v41 = vld [vmem:[#allocation105_spill] sm:$0xff] }
 0x364   : > { %v21853_v59 = vmax.f32 %v10442_v31, %v10474_v45  ;;  %v10472_v3 = vmax.f32 %v9222_v18, 0.0  ;;  %v9233_v52 = vadd.f32 %v21503_v14, %v16306_v2  ;;  %v9806_v38 = vmax.f32 %v6558_v15, 0.0  ;;  %v21859_v4 = vpop.f32.mrf.mxu1 }
 0x365   : > { %26070 = vst [vmem:[#allocation39_spill] sm:$0xff] %v21847_v20  ;;  %v21856_v56 = vmax.f32 %v9800_v13, %v9832_v50  ;;  %v9835_v39 = vmax.f32 %v6673_v36, 0.0  ;;  %v6665_v60 = vadd.f32 %v21503_v14, %v6664_v53  ;;  %26074 = vst [vmem:[#allocation22_spill] sm:$0xff] %v21859_v4  ;;  %v6561_v12 = vadd.f32 %v21503_v14, %v26075_v41  ;;  %v26076_v20 = vld [vmem:[#allocation106_spill] sm:$0xff]  ;;  %v15669_v18 = vpop.f32.mrf.mxu0 }
 0x366   : > { %26072 = vst [vmem:[#allocation50_spill] sm:$0xff] %v21853_v59  ;;  %v9121_v32 = vadd.f32 %v21503_v14, %v26076_v20  ;;  %v21865_v31 = vmax.f32 %v10440_v30, %v10472_v3  ;;  %v10475_v45 = vmax.f32 %v9233_v52, 0.0  ;;  %v10446_v15 = vmax.f32 %v9118_v40, 0.0  ;;  %v16309_v2 = vpop.f32.mrf.mxu1  ;;  %v26080_v3 = vld [vmem:[#allocation10_spill] sm:$0xff]  ;;  %v17066_v59 = vld [vmem:[%s17242_s29 + $0x6c8] sm:$0xff]  }
 0x367   : > { %26073 = vst [vmem:[#allocation66_spill] sm:$0xff] %v21856_v56  ;;  %v21868_v13 = vmax.f32 %v9803_v37, %v9835_v39  ;;  %v9833_v50 = vmax.f32 %v6665_v60, 0.0  ;;  %v6686_v36 = vadd.f32 %v21503_v14, %v15669_v18  ;;  %v9804_v53 = vmax.f32 %v6550_v7, 0.0  ;;  %v6677_v20 = vpop.f32.mrf.mxu0 }
 0x368   : > { %26077 = vst [vmem:[#allocation15_spill] sm:$0xff] %v21865_v31  ;;  %v10444_v41 = vmax.f32 %v9110_v54, 0.0  ;;  %v21872_v4 = vmax.f32 %v10443_v26, %v10475_v45  ;;  %v9246_v30 = vadd.f32 %v21503_v14, %v16309_v2  ;;  %v6553_v57 = vadd.f32 %v21503_v14, %v26080_v3  ;;  %v9237_v39 = vpop.f32.mrf.mxu1  ;;  %v17056_v54 = vld [vmem:[%s17242_s29 + $0x678] sm:$0xff]   ;;  %v26082_v45 = vld [vmem:[#allocation139_spill] sm:$0xff] }
 0x369   : > { %26078 = vst [vmem:[#allocation54_spill] sm:$0xff] %v21868_v13  ;;  %v21877_v37 = vmax.f32 %v9801_v19, %v9833_v50  ;;  %v9838_v40 = vmax.f32 %v6686_v36, 0.0  ;;  %v6678_v52 = vadd.f32 %v21503_v14, %v6677_v20  ;;  %v9807_v60 = vmax.f32 %v6561_v12, 0.0  ;;  %v15670_v26 = vpop.f32.mrf.mxu0  ;;  %v17057_v36 = vld [vmem:[%s17242_s29 + $0x680] sm:$0xff]   ;;  %15768 = vmatmul.mubr.msk.bf16.gmra.mxu0 %vm3854_vm1, %v17056_v54  ;;  %v26094_v54 = vld [vmem:[#allocation11_spill] sm:$0xff] }
 0x36a   : > { %26079 = vst [vmem:[#allocation68_spill] sm:$0xff] %v21872_v4  ;;  %v10447_v44 = vmax.f32 %v9121_v32, 0.0  ;;  %v10478_v18 = vmax.f32 %v9246_v30, 0.0  ;;  %v9238_v7 = vadd.f32 %v21503_v14, %v9237_v39  ;;  %v6574_v2 = vadd.f32 %v21503_v14, %v26082_v45  ;;  %v16310_v50 = vpop.f32.mrf.mxu1  ;;  %15771 = vmatprep.mubr.msk.bf16.mxu0 %vm3854_vm1, %v17057_v36 }
 0x36b   : > { %26081 = vst [vmem:[#allocation58_spill] sm:$0xff] %v21877_v37  ;;  %v21884_v4 = vmax.f32 %v9806_v38, %v9838_v40  ;;  %v9836_v3 = vmax.f32 %v6678_v52, 0.0  ;;  %v6689_v19 = vadd.f32 %v21503_v14, %v15670_v26  ;;  %v26084_v37 = vld [vmem:[#allocation140_spill] sm:$0xff]  ;;  %v9249_v30 = vadd.f32 %v21503_v14, %v16310_v50  ;;  %v6680_v39 = vpop.f32.mrf.mxu0  ;;  %v26088_v52 = vld [vmem:[#allocation141_spill] sm:$0xff] }
 0x36c   : > { %v9134_v20 = vadd.f32 %v21503_v14, %v26084_v37  ;;  %v21890_v12 = vmax.f32 %v10446_v15, %v10478_v18  ;;  %v10476_v32 = vmax.f32 %v9238_v7, 0.0  ;;  %v9805_v13 = vmax.f32 %v6553_v57, 0.0  ;;  %v21896_v40 = vpop.f32.mrf.mxu1 }
 0x36d   : > { %26083 = vst [vmem:[#allocation71_spill] sm:$0xff] %v21884_v4  ;;  %v21893_v31 = vmax.f32 %v9804_v53, %v9836_v3  ;;  %v9839_v45 = vmax.f32 %v6689_v19, 0.0  ;;  %v6681_v38 = vadd.f32 %v21503_v14, %v6680_v39  ;;  %26087 = vst [vmem:[#allocation21_spill] sm:$0xff] %v21896_v40  ;;  %v6566_v26 = vadd.f32 %v21503_v14, %v26088_v52  ;;  %v26089_v4 = vld [vmem:[#allocation142_spill] sm:$0xff]  ;;  %v15673_v7 = vpop.f32.mrf.mxu0  ;;  %v26092_v52 = vld [vmem:[#allocation81_spill] sm:$0xff] }
 0x36e   : > { %26085 = vst [vmem:[#allocation3_spill] sm:$0xff] %v21890_v12  ;;  %v9126_v37 = vadd.f32 %v21503_v14, %v26089_v4  ;;  %v21902_v15 = vmax.f32 %v10444_v41, %v10476_v32  ;;  %v10479_v18 = vmax.f32 %v9249_v30, 0.0  ;;  %v9810_v57 = vmax.f32 %v6574_v2, 0.0  ;;  %v16313_v50 = vpop.f32.mrf.mxu1 }
 0x36f   : > { %26086 = vst [vmem:[#allocation29_spill] sm:$0xff] %v21893_v31  ;;  %v21905_v53 = vmax.f32 %v9807_v60, %v9839_v45  ;;  %v9837_v3 = vmax.f32 %v6681_v38, 0.0  ;;  %v6702_v19 = vadd.f32 %v21503_v14, %v15673_v7  ;;  %v10450_v39 = vmax.f32 %v9134_v20, 0.0  ;;  %v6693_v30 = vpop.f32.mrf.mxu0 }
 0x370   : > { %26090 = vst [vmem:[#allocation34_spill] sm:$0xff] %v21902_v15  ;;  %v9137_v4 = vadd.f32 %v21503_v14, %v26092_v52  ;;  %v21911_v41 = vmax.f32 %v10447_v44, %v10479_v18  ;;  %v9262_v32 = vadd.f32 %v21503_v14, %v16313_v50  ;;  %v6577_v60 = vadd.f32 %v21503_v14, %v26094_v54  ;;  %v9253_v36 = vpop.f32.mrf.mxu1  ;;  %v17058_v18 = vld [vmem:[%s17242_s29 + $0x688] sm:$0xff]  }
 0x371   : > { %26091 = vst [vmem:[#allocation89_spill] sm:$0xff] %v21905_v53  ;;  %v21916_v2 = vmax.f32 %v9805_v13, %v9837_v3  ;;  %v9842_v45 = vmax.f32 %v6702_v19, 0.0  ;;  %v6694_v38 = vadd.f32 %v21503_v14, %v6693_v30  ;;  %v9808_v7 = vmax.f32 %v6566_v26, 0.0  ;;  %v15674_v44 = vpop.f32.mrf.mxu0  ;;  %v17059_v19 = vld [vmem:[%s17242_s29 + $0x690] sm:$0xff]   ;;  %15772 = vmatmul.mubr.msk.bf16.gmra.mxu0 %vm3854_vm1, %v17058_v18  ;;  %v17060_v18 = vld [vmem:[%s17242_s29 + $0x698] sm:$0xff]  }
 0x372   : > { %26093 = vst [vmem:[#allocation136_spill] sm:$0xff] %v21911_v41  ;;  %v10448_v20 = vmax.f32 %v9126_v37, 0.0  ;;  %v10482_v40 = vmax.f32 %v9262_v32, 0.0  ;;  %v9254_v52 = vadd.f32 %v21503_v14, %v9253_v36  ;;  %v26096_v41 = vld [vmem:[#allocation108_spill] sm:$0xff]  ;;  %v6705_v13 = vadd.f32 %v21503_v14, %v15674_v44  ;;  %v16314_v3 = vpop.f32.mrf.mxu1  ;;  %15775 = vmatprep.mubr.msk.bf16.mxu0 %vm3854_vm1, %v17059_v19 }
 0x373   : > { %26095 = vst [vmem:[#allocation137_spill] sm:$0xff] %v21916_v2  ;;  %v6569_v50 = vadd.f32 %v21503_v14, %v26096_v41  ;;  %v21923_v53 = vmax.f32 %v9810_v57, %v9842_v45  ;;  %v9840_v54 = vmax.f32 %v6694_v38, 0.0  ;;  %v10451_v2 = vmax.f32 %v9137_v4, 0.0  ;;  %v6696_v32 = vpop.f32.mrf.mxu0 }
 0x374   : > { %v21927_v30 = vmax.f32 %v10450_v39, %v10482_v40  ;;  %v10480_v26 = vmax.f32 %v9254_v52, 0.0  ;;  %v9265_v37 = vadd.f32 %v21503_v14, %v16314_v3  ;;  %v9811_v36 = vmax.f32 %v6577_v60, 0.0  ;;  %v21933_v57 = vpop.f32.mrf.mxu1 }
 0x375   : > { %26097 = vst [vmem:[#allocation78_spill] sm:$0xff] %v21923_v53  ;;  %v21930_v15 = vmax.f32 %v9808_v7, %v9840_v54  ;;  %v9843_v31 = vmax.f32 %v6705_v13, 0.0  ;;  %v6697_v41 = vadd.f32 %v21503_v14, %v6696_v32  ;;  %26100 = vst [vmem:[#allocation106_spill] sm:$0xff] %v21933_v57  ;;  %v21937_v4 = vpop.f32.mrf.mxu0  ;;  %v9809_v40 = vmax.f32 %v6569_v50, 0.0  ;;  %v17061_v50 = vld [vmem:[%s17242_s29 + $0x6a0] sm:$0xff]  }
 0x376   : > { %26098 = vst [vmem:[#allocation104_spill] sm:$0xff] %v21927_v30  ;;  %v21935_v45 = vmax.f32 %v10448_v20, %v10480_v26  ;;  %v10483_v38 = vmax.f32 %v9265_v37, 0.0  ;;  %v21942_v7 = vpop.f32.mrf.mxu1  ;;  %v22058_v47 = vadd.f32 %v21503_v14, %v21937_v4 }
 0x377   : > { %26099 = vst [vmem:[#allocation105_spill] sm:$0xff] %v21930_v15  ;;  %v21940_v39 = vmax.f32 %v9811_v36, %v9843_v31  ;;  %v9841_v60 = vmax.f32 %v6697_v41, 0.0  ;;  %v21947_v44 = vpop.f32.mrf.mxu0  ;;  %v17062_v41 = vld [vmem:[%s17242_s29 + $0x6a8] sm:$0xff]  }
 0x378   : > { %26101 = vst [vmem:[#allocation10_spill] sm:$0xff] %v21935_v45  ;;  %v21945_v52 = vmax.f32 %v10451_v2, %v10483_v38  ;;  %v21951_v54 = vpop.f32.mrf.mxu1 }
 0x379   : > { %26102 = vst [vmem:[#allocation139_spill] sm:$0xff] %v21940_v39  ;;  %v21949_v20 = vmax.f32 %v9809_v40, %v9841_v60  ;;  %v21953_v13 = vpop.f32.mrf.mxu0  ;;  %15776 = vmatmul.mubr.msk.bf16.gmra.mxu0 %vm3854_vm1, %v17060_v18  ;;  %v17063_v40 = vld [vmem:[%s17242_s29 + $0x6b0] sm:$0xff]   ;;  %v17064_v39 = vld [vmem:[%s17242_s29 + $0x6b8] sm:$0xff]   ;;  %v22075_v33 = vadd.f32 %v21503_v14, %v21951_v54 }
 0x37a   : > { %26103 = vst [vmem:[#allocation140_spill] sm:$0xff] %v21945_v52  ;;  %v21956_v31 = vpop.f32.mrf.mxu1  ;;  %15779 = vmatprep.mubr.msk.bf16.mxu0 %vm3854_vm1, %v17061_v50  ;;  %v22079_v4 = vadd.f32 %v21503_v14, %v21953_v13 }
 0x37b   : > { %26104 = vst [vmem:[#allocation141_spill] sm:$0xff] %v21949_v20  ;;  %v21959_v3 = vpop.f32.mrf.mxu0 }
 0x37c   : > { %v21961_v26 = vpop.f32.mrf.mxu1 }
 0x37d   : > { %26105 = vst [vmem:[#allocation142_spill] sm:$0xff] %v21961_v26  ;;  %v21963_v2 = vpop.f32.mrf.mxu0 }
 0x37e   : > { %v21966_v19 = vpop.f32.mrf.mxu1  ;;  %v22097_v13 = vadd.f32 %v21503_v14, %v21963_v2 }
 0x37f   : > { %v21969_v37 = vpop.f32.mrf.mxu0 }
 0x380   : > { %v21971_v32 = vpop.f32.mrf.mxu1 }
 0x381   : > { %v21973_v36 = vpop.f32.mrf.mxu0  ;;  %15780 = vmatmul.mubr.msk.bf16.gmra.mxu0 %vm3854_vm1, %v17062_v41 }
 0x382   : > { %v21976_v38 = vpop.f32.mrf.mxu1  ;;  %15783 = vmatprep.mubr.msk.bf16.mxu0 %vm3854_vm1, %v17063_v40 }
 0x383   : > { %v21979_v60 = vpop.f32.mrf.mxu0  ;;  %v22130_v2 = vadd.f32 %v21503_v14, %v21976_v38 }
 0x384   : > { %v21981_v57 = vpop.f32.mrf.mxu1 }
 0x385   : > { %26106 = vst [vmem:[#allocation81_spill] sm:$0xff] %v21981_v57  ;;  %v21983_v18 = vpop.f32.mrf.mxu0  ;;  %v17065_v57 = vld [vmem:[%s17242_s29 + $0x6c0] sm:$0xff]  }
 0x386   : > { %v21986_v50 = vpop.f32.mrf.mxu1 }
 0x387   : > { %v21989_v26 = vpop.f32.mrf.mxu0  ;;  %v22146_v43 = vadd.f32 %v21503_v14, %v21986_v50 }
 0x388   : > { %v21991_v20 = vpop.f32.mrf.mxu1  ;;  %v22150_v38 = vadd.f32 %v21503_v14, %v21989_v26 }
 0x389   : > { %v21993_v52 = vpop.f32.mrf.mxu0  ;;  %15784 = vmatmul.mubr.msk.bf16.gmra.mxu0 %vm3854_vm1, %v17064_v39 }
 0x38a   : > { %v21996_v45 = vpop.f32.mrf.mxu1  ;;  %15787 = vmatprep.mubr.msk.bf16.mxu0 %vm3854_vm1, %v17065_v57 }
 0x38b   : > { %v21999_v15 = vpop.f32.mrf.mxu0 }
 0x38c   : > { %v22001_v30 = vpop.f32.mrf.mxu1  ;;  %v22175_v1 = vadd.f32 %v21503_v14, %v21999_v15 }
 0x38d   : > { %26107 = vst [vmem:[#allocation11_spill] sm:$0xff] %v22001_v30  ;;  %v22003_v41 = vpop.f32.mrf.mxu0  ;;  %v17067_v30 = vld [vmem:[%s17242_s29 + $0x6d0] sm:$0xff]  }
 0x38e   : > { %v22006_v40 = vpop.f32.mrf.mxu1 }
 0x38f   : > { %v22009_v53 = vpop.f32.mrf.mxu0  ;;  %v22187_v17 = vadd.f32 %v21503_v14, %v22006_v40 }
 0x390   : > { %v22011_v12 = vpop.f32.mrf.mxu1 }
 0x391   : > { %v22013_v56 = vpop.f32.mrf.mxu0  ;;  %15788 = vmatmul.mubr.msk.bf16.gmra.mxu0 %vm3854_vm1, %v17066_v59 }
 0x392   : > { %v22016_v55 = vpop.f32.mrf.mxu1  ;;  %15791 = vmatprep.mubr.msk.bf16.mxu0 %vm3854_vm1, %v17067_v30 }
 0x393   : > { %v22019_v21 = vpop.f32.mrf.mxu0  ;;  %v22218_v40 = vadd.f32 %v21503_v14, %v22016_v55 }
 0x394   : > { %v22021_v11 = vpop.f32.mrf.mxu1 }
 0x395   : > { %26108 = vst [vmem:[#allocation108_spill] sm:$0xff] %v22021_v11  ;;  %v22023_v39 = vpop.f32.mrf.mxu0  ;;  %v17069_v11 = vld [vmem:[%s17242_s29 + $0x6e0] sm:$0xff]  }
 0x396   : > { %v22026_v57 = vpop.f32.mrf.mxu1 }
 0x397   : > { %v22029_v5 = vpop.f32.mrf.mxu0 }
 0x398   : > { %v22031_v29 = vpop.f32.mrf.mxu1 }
 0x399   : > { %v22033_v27 = vpop.f32.mrf.mxu0  ;;  %15792 = vmatmul.mubr.msk.bf16.gmra.mxu0 %vm3854_vm1, %v17068_v34  ;;  %v22065_v34 = vadd.f32 %v21503_v14, %v21942_v7  ;;  %v22085_v7 = vadd.f32 %v21503_v14, %v21956_v31  ;;  %v22118_v31 = vadd.f32 %v21503_v14, %v21971_v32  ;;  %v22246_v15 = vadd.f32 %v21503_v14, %v22031_v29 }
 0x39a   : > { %v22036_v46 = vpop.f32.mrf.mxu1  ;;  %15795 = vmatprep.mubr.msk.bf16.mxu0 %vm3854_vm1, %v17069_v11  ;;  %v22069_v11 = vadd.f32 %v21503_v14, %v21947_v44  ;;  %v22089_v44 = vadd.f32 %v21503_v14, %v21959_v3  ;;  %v22122_v3 = vadd.f32 %v21503_v14, %v21973_v36  ;;  %v22159_v36 = vadd.f32 %v21503_v14, %v21991_v20 }
 0x39b   : > { %v22039_v63 = vpop.f32.mrf.mxu0  ;;  %26124 = vst [vmem:[#allocation165_spill] sm:$0xff] %v22246_v15  ;;  %v17076_v15 = vld [vmem:[%s17242_s29 + $0x718] sm:$0xff]  }
 0x39c   : > { %v22041_v6 = vpop.f32.mrf.mxu1 }
 0x39d   : > { %26109 = vst [vmem:[#allocation150_spill] sm:$0xff] %v22041_v6  ;;  %v22043_v59 = vpop.f32.mrf.mxu0 }
 0x39e   : > { %v22046_v30 = vpop.f32.mrf.mxu1 }
 0x39f   : > { %v22049_v24 = vpop.f32.mrf.mxu0 }
 0x3a0   : > { %v22051_v22 = vpop.f32.mrf.mxu1 }
 0x3a1   : > { %v22053_v58 = vpop.f32.mrf.mxu0  ;;  %15796 = vmatmul.mubr.msk.bf16.gmra.mxu0 %vm3854_vm1, %v17070_v42  ;;  %v22110_v42 = vadd.f32 %v21503_v14, %v21969_v37 }
 0x3a2   : > { %v22060_v6 = vpop.f32.mrf.mxu1  ;;  %15799 = vmatprep.mubr.msk.bf16.mxu0 %vm3854_vm1, %v17071_v23  ;;  %v22134_v23 = vadd.f32 %v21503_v14, %v21979_v60  ;;  %v17073_v60 = vld [vmem:[%s17242_s29 + $0x700] sm:$0xff]  }
 0x3a3   : > { %v22071_v16 = vpop.f32.mrf.mxu0 }
 0x3a4   : > { %v22081_v61 = vpop.f32.mrf.mxu1 }
 0x3a5   : > { %26110 = vst [vmem:[#allocation151_spill] sm:$0xff] %v22081_v61  ;;  %v22091_v62 = vpop.f32.mrf.mxu0  ;;  %v22106_v61 = vadd.f32 %v21503_v14, %v21966_v19 }
 0x3a6   : > { %v22099_v25 = vpop.f32.mrf.mxu1 }
 0x3a7   : > { %v22112_v54 = vpop.f32.mrf.mxu0 }
 0x3a8   : > { %26111 = vst [vmem:[#allocation152_spill] sm:$0xff] %v22112_v54  ;;  %v22124_v19 = vpop.f32.mrf.mxu1  ;;  %v17072_v54 = vld [vmem:[%s17242_s29 + $0x6f8] sm:$0xff]  }
 0x3a9   : > { %26112 = vst [vmem:[#allocation153_spill] sm:$0xff] %v22124_v19  ;;  %v22136_v32 = vpop.f32.mrf.mxu0  ;;  %v22142_v19 = vadd.f32 %v21503_v14, %v21983_v18  ;;  %v22163_v18 = vadd.f32 %v21503_v14, %v21993_v52  ;;  %15800 = vmatmul.mubr.msk.bf16.gmra.mxu0 %vm3854_vm1, %v17072_v54  ;;  %v22197_v52 = vadd.f32 %v21503_v14, %v22009_v53 }
 0x3aa   : > { %26113 = vst [vmem:[#allocation154_spill] sm:$0xff] %v22136_v32  ;;  %v22152_v37 = vpop.f32.mrf.mxu1  ;;  %15803 = vmatprep.mubr.msk.bf16.mxu0 %vm3854_vm1, %v17073_v60  ;;  %v22206_v54 = vadd.f32 %v21503_v14, %v22011_v12  ;;  %v22210_v32 = vadd.f32 %v21503_v14, %v22013_v56  ;;  %v22230_v53 = vadd.f32 %v21503_v14, %v22023_v39 }
 0x3ab   : > { %26114 = vst [vmem:[#allocation155_spill] sm:$0xff] %v22152_v37  ;;  %v22165_v50 = vpop.f32.mrf.mxu0  ;;  %v22171_v37 = vadd.f32 %v21503_v14, %v21996_v45  ;;  %v22234_v60 = vadd.f32 %v21503_v14, %v22026_v57  ;;  %v22250_v39 = vadd.f32 %v21503_v14, %v22033_v27  ;;  %v17075_v57 = vld [vmem:[%s17242_s29 + $0x710] sm:$0xff]  }
 0x3ac   : > { %26115 = vst [vmem:[#allocation156_spill] sm:$0xff] %v22165_v50  ;;  %v22177_v20 = vpop.f32.mrf.mxu1  ;;  %v22183_v50 = vadd.f32 %v21503_v14, %v22003_v41 }
 0x3ad   : > { %26116 = vst [vmem:[#allocation157_spill] sm:$0xff] %v22177_v20  ;;  %v22189_v45 = vpop.f32.mrf.mxu0  ;;  %v22222_v20 = vadd.f32 %v21503_v14, %v22019_v21  ;;  %26121 = vst [vmem:[#allocation162_spill] sm:$0xff] %v22234_v60  ;;  %v22259_v21 = vadd.f32 %v21503_v14, %v22036_v46 }
 0x3ae   : > { %26117 = vst [vmem:[#allocation158_spill] sm:$0xff] %v22189_v45  ;;  %v22199_v41 = vpop.f32.mrf.mxu1  ;;  %26125 = vst [vmem:[#allocation166_spill] sm:$0xff] %v22250_v39 }
 0x3af   : > { %26118 = vst [vmem:[#allocation159_spill] sm:$0xff] %v22199_v41  ;;  %v22212_v26 = vpop.f32.mrf.mxu0  ;;  %26127 = vst [vmem:[#allocation168_spill] sm:$0xff] %v22259_v21 }
 0x3b0   : > { %26119 = vst [vmem:[#allocation160_spill] sm:$0xff] %v22212_v26  ;;  %v22224_v12 = vpop.f32.mrf.mxu1  ;;  %v17074_v26 = vld [vmem:[%s17242_s29 + $0x708] sm:$0xff]  }
 0x3b1   : > { %26120 = vst [vmem:[#allocation161_spill] sm:$0xff] %v22224_v12  ;;  %v22236_v55 = vpop.f32.mrf.mxu0  ;;  %v22242_v12 = vadd.f32 %v21503_v14, %v22029_v5  ;;  %v22263_v5 = vadd.f32 %v21503_v14, %v22039_v63  ;;  %15804 = vmatmul.mubr.msk.bf16.gmra.mxu0 %vm3854_vm1, %v17074_v26 }
 0x3b2   : > { %26122 = vst [vmem:[#allocation163_spill] sm:$0xff] %v22236_v55  ;;  %v22252_v56 = vpop.f32.mrf.mxu1  ;;  %v22272_v55 = vld [vmem:[%s24956_s2] ss:$0 sm:$0xff]  ;;  %15807 = vmatprep.mubr.msk.bf16.mxu0 %vm3854_vm1, %v17075_v57 }
 0x3b3   : > { %26123 = vst [vmem:[#allocation164_spill] sm:$0xff] %v22242_v12  ;;  %26126 = vst [vmem:[#allocation167_spill] sm:$0xff] %v22252_v56  ;;  %v22265_v29 = vpop.f32.mrf.mxu0  ;;  %v22276_v41 = vadd.f32 %v22272_v55, %v22043_v59  ;;  %v22280_v46 = vadd.f32 %v22272_v55, %v22046_v30  ;;  %v22288_v45 = vadd.f32 %v22272_v55, %v22049_v24  ;;  %v26135_v56 = vmax.f32 %v22058_v47, 0.0 }
 0x3b4   : > { %26128 = vst [vmem:[#allocation169_spill] sm:$0xff] %v22263_v5  ;;  %26129 = vst [vmem:[#allocation170_spill] sm:$0xff] %v22265_v29  ;;  %v22282_v14 = vpop.f32.mrf.mxu1  ;;  %v22292_v29 = vadd.f32 %v22272_v55, %v22051_v22  ;;  %v22304_v60 = vadd.f32 %v22272_v55, %v22053_v58  ;;  %v26137_v12 = vmax.f32 %v22069_v11, 0.0 }
 0x3b5   : > { %26130 = vst [vmem:[#allocation171_spill] sm:$0xff] %v22276_v41  ;;  %26131 = vst [vmem:[#allocation172_spill] sm:$0xff] %v22280_v46  ;;  %v15709_v59 = vpop.f32.mrf.mxu0  ;;  %v17077_v41 = vld [vmem:[%s17242_s29 + $0x720] sm:$0xff]  }
 0x3b6   : > { %26132 = vst [vmem:[#allocation173_spill] sm:$0xff] %v22282_v14  ;;  %26133 = vst [vmem:[#allocation174_spill] sm:$0xff] %v22288_v45  ;;  %v6846_v63 = vadd.f32 %v22272_v55, %v15709_v59  ;;  %v16349_v27 = vpop.f32.mrf.mxu1 }
 0x3b7   : > { %26134 = vst [vmem:[#allocation175_spill] sm:$0xff] %v22292_v29  ;;  %v9406_v26 = vadd.f32 %v22272_v55, %v16349_v27  ;;  %v6837_v30 = vpop.f32.mrf.mxu0  ;;  %v22316_v27 = vadd.f32 %v22272_v55, %v22060_v6 }
 0x3b8   : > { %v9878_v14 = vmax.f32 %v6846_v63, 0.0  ;;  %v6838_v57 = vadd.f32 %v22272_v55, %v6837_v30  ;;  %v9397_v39 = vpop.f32.mrf.mxu1 }
 0x3b9   : > { %v10518_v5 = vmax.f32 %v9406_v26, 0.0  ;;  %v9398_v58 = vadd.f32 %v22272_v55, %v9397_v39  ;;  %v15710_v21 = vpop.f32.mrf.mxu0  ;;  %v26136_v26 = vmax.f32 %v22065_v34, 0.0  ;;  %15808 = vmatmul.mubr.msk.bf16.gmra.mxu0 %vm3854_vm1, %v17076_v15  ;;  %v26141_v15 = vmax.f32 %v22085_v7, 0.0 }
 0x3ba   : > { %v10870_v59 = vmax.f32 %v26135_v56, %v9878_v14  ;;  %v9876_v63 = vmax.f32 %v6838_v57, 0.0  ;;  %v6849_v30 = vadd.f32 %v22272_v55, %v15710_v21  ;;  %v16350_v46 = vpop.f32.mrf.mxu1  ;;  %v22336_v57 = vadd.f32 %v22272_v55, %v22071_v16  ;;  %15811 = vmatprep.mubr.msk.bf16.mxu0 %vm3854_vm1, %v17077_v41 }
 0x3bb   : > { %v11030_v22 = vmax.f32 %v26136_v26, %v10518_v5  ;;  %v10516_v39 = vmax.f32 %v9398_v58, 0.0  ;;  %v9409_v29 = vadd.f32 %v22272_v55, %v16350_v46  ;;  %v6840_v45 = vpop.f32.mrf.mxu0  ;;  %v26138_v5 = vmax.f32 %v22075_v33, 0.0 }
 0x3bc   : > { %v11126_v6 = vmax.f32 %v21535_v35, %v10870_v59  ;;  %v22329_v47 = vmax.f32 %v26137_v12, %v9876_v63  ;;  %v9879_v56 = vmax.f32 %v6849_v30, 0.0  ;;  %v6841_v21 = vadd.f32 %v22272_v55, %v6840_v45  ;;  %v22332_v14 = vpop.f32.mrf.mxu1 }
 0x3bd   : > { %v11286_v34 = vmax.f32 %v21543_v0, %v11030_v22  ;;  %v22341_v46 = vmax.f32 %v26138_v5, %v10516_v39  ;;  %v10519_v35 = vmax.f32 %v9409_v29, 0.0  ;;  %v15713_v59 = vpop.f32.mrf.mxu0  ;;  %v26140_v45 = vmax.f32 %v22079_v4, 0.0 }
 0x3be   : > { %v9877_v58 = vmax.f32 %v6841_v21, 0.0  ;;  %v6862_v16 = vadd.f32 %v22272_v55, %v15713_v59  ;;  %v16353_v63 = vpop.f32.mrf.mxu1  ;;  %v26142_v26 = vmax.f32 %v22089_v44, 0.0  ;;  %v26144_v44 = vmax.f32 %v22097_v13, 0.0 }
 0x3bf   : > { %26139 = vst [vmem:[#allocation176_spill] sm:$0xff] %v22341_v46  ;;  %v10871_v12 = vmax.f32 %v26140_v45, %v9879_v56  ;;  %v11031_v29 = vmax.f32 %v26141_v15, %v10519_v35  ;;  %v9422_v22 = vadd.f32 %v22272_v55, %v16353_v63  ;;  %v6853_v30 = vpop.f32.mrf.mxu0  ;;  %v17078_v63 = vld [vmem:[%s17242_s29 + $0x728] sm:$0xff]   ;;  %v26147_v33 = vmax.f32 %v22110_v42, 0.0 }
 0x3c0   : > { %v22359_v39 = vmax.f32 %v26142_v26, %v9877_v58  ;;  %v9882_v41 = vmax.f32 %v6862_v16, 0.0  ;;  %v6854_v56 = vadd.f32 %v22272_v55, %v6853_v30  ;;  %v9413_v21 = vpop.f32.mrf.mxu1  ;;  %v17079_v30 = vld [vmem:[%s17242_s29 + $0x730] sm:$0xff]   ;;  %v22375_v26 = vadd.f32 %v22272_v55, %v22091_v62 }
 0x3c1   : > { %v11127_v4 = vmax.f32 %v21561_v28, %v10871_v12  ;;  %v11287_v59 = vmax.f32 %v21569_v49, %v11031_v29  ;;  %v10522_v7 = vmax.f32 %v9422_v22, 0.0  ;;  %v9414_v35 = vadd.f32 %v22272_v55, %v9413_v21  ;;  %v15714_v45 = vpop.f32.mrf.mxu0  ;;  %15812 = vmatmul.mubr.msk.bf16.gmra.mxu0 %vm3854_vm1, %v17078_v63 }
 0x3c2   : > { %v10874_v12 = vmax.f32 %v26144_v44, %v9882_v41  ;;  %v9880_v58 = vmax.f32 %v6854_v56, 0.0  ;;  %v16354_v16 = vpop.f32.mrf.mxu1  ;;  %v26146_v29 = vmax.f32 %v22106_v61, 0.0  ;;  %v6865_v41 = vadd.f32 %v22272_v55, %v15714_v45  ;;  %15815 = vmatprep.mubr.msk.bf16.mxu0 %vm3854_vm1, %v17079_v30 }
 0x3c3   : > { %v22366_v15 = vpack.c.bf16 %v11127_v4, %v11126_v6  ;;  %v22377_v49 = vpack.c.bf16 %v11287_v59, %v11286_v34  ;;  %v10520_v6 = vmax.f32 %v9414_v35, 0.0  ;;  %v6856_v4 = vpop.f32.mrf.mxu0  ;;  %v9425_v56 = vadd.f32 %v22272_v55, %v16354_v16 }
 0x3c4   : > { %v11034_v22 = vmax.f32 %v26146_v29, %v10522_v7  ;;  %v11130_v21 = vmax.f32 %v21596_v9, %v10874_v12  ;;  %v22384_v13 = vmax.f32 %v26147_v33, %v9880_v58  ;;  %v22388_v44 = vpop.f32.mrf.mxu1  ;;  %v22392_v62 = vadd.f32 %v22272_v55, %v22099_v25  ;;  %v26151_v33 = vld [vmem:[#allocation146_spill] sm:$0xff] }
 0x3c5   : > { %26143 = vst [vmem:[#allocation177_spill] sm:$0xff] %v22366_v15  ;;  %26145 = vst [vmem:[#allocation178_spill] sm:$0xff] %v22377_v49  ;;  %v26149_v34 = vmax.f32 %v22118_v31, 0.0  ;;  %v6857_v9 = vadd.f32 %v22272_v55, %v6856_v4  ;;  %v15717_v42 = vpop.f32.mrf.mxu0  ;;  %v9883_v35 = vmax.f32 %v6865_v41, 0.0  ;;  %v10523_v45 = vmax.f32 %v9425_v56, 0.0 }
 0x3c6   : > { %26148 = vst [vmem:[#allocation179_spill] sm:$0xff] %v22388_v44  ;;  %v11290_v61 = vmax.f32 %v21606_v51, %v11034_v22  ;;  %v6878_v12 = vadd.f32 %v22272_v55, %v15717_v42  ;;  %v16357_v25 = vpop.f32.mrf.mxu1  ;;  %v26153_v22 = vmax.f32 %v22122_v3, 0.0  ;;  %v26154_v4 = vmax.f32 %v22130_v2, 0.0  ;;  %v26155_v42 = vld [vmem:[#allocation152_spill] sm:$0xff]  ;;  %v26157_v2 = vld [vmem:[#allocation143_spill] sm:$0xff] }
 0x3c7   : > { %v22397_v59 = vmax.f32 %v26149_v34, %v10520_v6  ;;  %v9881_v16 = vmax.f32 %v6857_v9, 0.0  ;;  %v9438_v29 = vadd.f32 %v22272_v55, %v16357_v25  ;;  %v6869_v63 = vpop.f32.mrf.mxu0  ;;  %v22416_v7 = vadd.f32 %v22272_v55, %v26155_v42  ;;  %v17081_v42 = vld [vmem:[%s17242_s29 + $0x740] sm:$0xff]  }
 0x3c8   : > { %v10875_v6 = vmax.f32 %v26153_v22, %v9883_v35  ;;  %v11035_v41 = vmax.f32 %v26154_v4, %v10523_v45  ;;  %v9886_v56 = vmax.f32 %v6878_v12, 0.0  ;;  %v6870_v30 = vadd.f32 %v22272_v55, %v6869_v63  ;;  %v9429_v34 = vpop.f32.mrf.mxu1  ;;  %v17080_v22 = vld [vmem:[%s17242_s29 + $0x738] sm:$0xff]   ;;  %v26158_v45 = vld [vmem:[#allocation112_spill] sm:$0xff] }
 0x3c9   : > { %26150 = vst [vmem:[#allocation180_spill] sm:$0xff] %v22397_v59  ;;  %v26156_v9 = vmax.f32 %v22134_v23, 0.0  ;;  %v10526_v25 = vmax.f32 %v9438_v29, 0.0  ;;  %v9430_v3 = vadd.f32 %v22272_v55, %v9429_v34  ;;  %v15718_v35 = vpop.f32.mrf.mxu0  ;;  %v26159_v63 = vmax.f32 %v22142_v19, 0.0  ;;  %v26160_v23 = vld [vmem:[#allocation113_spill] sm:$0xff]  ;;  %15816 = vmatmul.mubr.msk.bf16.gmra.mxu0 %vm3854_vm1, %v17080_v22  ;;  %v26224_v59 = vld [vmem:[#allocation172_spill] sm:$0xff] }
 0x3ca   : > { %v11131_v28 = vmax.f32 %v26157_v2, %v10875_v6  ;;  %v11291_v12 = vmax.f32 %v26158_v45, %v11035_v41  ;;  %v9884_v11 = vmax.f32 %v6870_v30, 0.0  ;;  %v16358_v51 = vpop.f32.mrf.mxu1  ;;  %v26161_v29 = vmax.f32 %v22146_v43, 0.0  ;;  %v26164_v41 = vld [vmem:[#allocation114_spill] sm:$0xff]  ;;  %v26166_v45 = vld [vmem:[#allocation36_spill] sm:$0xff]  ;;  %15819 = vmatprep.mubr.msk.bf16.mxu0 %vm3854_vm1, %v17081_v42 }
 0x3cb   : > { %v22420_v58 = vmax.f32 %v26156_v9, %v9881_v16  ;;  %v10878_v4 = vmax.f32 %v26159_v63, %v9886_v56  ;;  %v10524_v9 = vmax.f32 %v9430_v3, 0.0  ;;  %v6872_v0 = vpop.f32.mrf.mxu0  ;;  %v26165_v56 = vmax.f32 %v22150_v38, 0.0 }
 0x3cc   : > { %v11038_v34 = vmax.f32 %v26161_v29, %v10526_v25  ;;  %v22434_v24 = vpack.c.bf16 %v11131_v28, %v11130_v21  ;;  %v22436_v6 = vpack.c.bf16 %v11291_v12, %v11290_v61  ;;  %v22443_v2 = vpop.f32.mrf.mxu1  ;;  %v26167_v16 = vmax.f32 %v22159_v36, 0.0  ;;  %v26169_v61 = vld [vmem:[#allocation153_spill] sm:$0xff] }
 0x3cd   : > { %v11134_v19 = vmax.f32 %v26164_v41, %v10878_v4  ;;  %v22441_v30 = vmax.f32 %v26165_v56, %v9884_v11  ;;  %v6881_v25 = vadd.f32 %v22272_v55, %v15718_v35  ;;  %v9441_v28 = vadd.f32 %v22272_v55, %v16358_v51  ;;  %v15721_v21 = vpop.f32.mrf.mxu0  ;;  %v26170_v11 = vld [vmem:[#allocation61_spill] sm:$0xff]  ;;  %v26174_v51 = vld [vmem:[#allocation154_spill] sm:$0xff] }
 0x3ce   : > { %26162 = vst [vmem:[#allocation146_spill] sm:$0xff] %v22434_v24  ;;  %26163 = vst [vmem:[#allocation152_spill] sm:$0xff] %v22436_v6  ;;  %v11294_v63 = vmax.f32 %v26166_v45, %v11038_v34  ;;  %v22448_v43 = vmax.f32 %v26167_v16, %v10524_v9  ;;  %v22455_v38 = vadd.f32 %v22272_v55, %v26169_v61  ;;  %v16361_v4 = vpop.f32.mrf.mxu1  ;;  %v26172_v45 = vmax.f32 %v22163_v18, 0.0  ;;  %v17084_v24 = vld [vmem:[%s17242_s29 + $0x758] sm:$0xff]  }
 0x3cf   : > { %v11132_v3 = vmax.f32 %v26170_v11, %v22441_v30  ;;  %v6873_v12 = vadd.f32 %v22272_v55, %v6872_v0  ;;  %v6894_v36 = vadd.f32 %v22272_v55, %v15721_v21  ;;  %v9887_v16 = vmax.f32 %v6881_v25, 0.0  ;;  %v6885_v34 = vpop.f32.mrf.mxu0 }
 0x3d0   : > { %26168 = vst [vmem:[#allocation143_spill] sm:$0xff] %v22448_v43  ;;  %v10527_v22 = vmax.f32 %v9441_v28, 0.0  ;;  %v9454_v29 = vadd.f32 %v22272_v55, %v16361_v4  ;;  %v6886_v0 = vadd.f32 %v22272_v55, %v6885_v34  ;;  %v9445_v30 = vpop.f32.mrf.mxu1  ;;  %v26173_v21 = vmax.f32 %v22171_v37, 0.0  ;;  %v17082_v4 = vld [vmem:[%s17242_s29 + $0x748] sm:$0xff]   ;;  %v17083_v37 = vld [vmem:[%s17242_s29 + $0x750] sm:$0xff]  }
 0x3d1   : > { %v9885_v41 = vmax.f32 %v6873_v12, 0.0  ;;  %v9890_v56 = vmax.f32 %v6894_v36, 0.0  ;;  %v10879_v42 = vmax.f32 %v26172_v45, %v9887_v16  ;;  %v9446_v25 = vadd.f32 %v22272_v55, %v9445_v30  ;;  %v15722_v28 = vpop.f32.mrf.mxu0  ;;  %v26178_v45 = vld [vmem:[#allocation63_spill] sm:$0xff]  ;;  %15820 = vmatmul.mubr.msk.bf16.gmra.mxu0 %vm3854_vm1, %v17082_v4 }
 0x3d2   : > { %v11039_v61 = vmax.f32 %v26173_v21, %v10527_v22  ;;  %v10530_v11 = vmax.f32 %v9454_v29, 0.0  ;;  %v22475_v9 = vadd.f32 %v22272_v55, %v26174_v51  ;;  %v26175_v12 = vmax.f32 %v22175_v1, 0.0  ;;  %v16362_v16 = vpop.f32.mrf.mxu1  ;;  %v26177_v22 = vld [vmem:[#allocation16_spill] sm:$0xff]  ;;  %v26180_v1 = vld [vmem:[#allocation19_spill] sm:$0xff]  ;;  %15823 = vmatprep.mubr.msk.bf16.mxu0 %vm3854_vm1, %v17083_v37 }
 0x3d3   : > { %v26176_v34 = vmax.f32 %v22183_v50, 0.0  ;;  %v9888_v18 = vmax.f32 %v6886_v0, 0.0  ;;  %v11135_v29 = vmax.f32 %v26177_v22, %v10879_v42  ;;  %v26179_v21 = vmax.f32 %v22187_v17, 0.0  ;;  %v6888_v51 = vpop.f32.mrf.mxu0  ;;  %v26181_v50 = vld [vmem:[#allocation31_spill] sm:$0xff]  ;;  %v26185_v17 = vld [vmem:[#allocation24_spill] sm:$0xff] }
 0x3d4   : > { %v10877_v36 = vmax.f32 %v26175_v12, %v9885_v41  ;;  %v11295_v30 = vmax.f32 %v26178_v45, %v11039_v61  ;;  %v10528_v49 = vmax.f32 %v9446_v25, 0.0  ;;  %v26182_v0 = vmax.f32 %v22197_v52, 0.0 }
 0x3d5   : > { %v22481_v5 = vmax.f32 %v26176_v34, %v9890_v56  ;;  %v11042_v6 = vmax.f32 %v26179_v21, %v10530_v11  ;;  %v22496_v34 = vpop.f32.mrf.mxu1  ;;  %v11353_v42 = vpack.c.bf16 %v11135_v29, %v11134_v19  ;;  %v26186_v25 = vmax.f32 %v22206_v54, 0.0  ;;  %v15725_v45 = vpop.f32.mrf.mxu0 }
 0x3d6   : > { %v11133_v41 = vmax.f32 %v26180_v1, %v10877_v36  ;;  %v22494_v12 = vmax.f32 %v26182_v0, %v9888_v18  ;;  %26183 = vst [vmem:[#allocation112_spill] sm:$0xff] %v22496_v34  ;;  %v22498_v61 = vpack.c.bf16 %v11295_v30, %v11294_v63  ;;  %v6897_v52 = vadd.f32 %v22272_v55, %v15722_v28  ;;  %v26379_v34 = vld [vmem:[#allocation44_spill] sm:$0xff] }
 0x3d7   : > { %v11138_v56 = vmax.f32 %v26181_v50, %v22481_v5  ;;  %v11298_v11 = vmax.f32 %v26185_v17, %v11042_v6  ;;  %v22503_v22 = vmax.f32 %v26186_v25, %v10528_v49  ;;  %v26188_v5 = vld [vmem:[#allocation90_spill] sm:$0xff]  ;;  %v9457_v18 = vadd.f32 %v22272_v55, %v16362_v16  ;;  %v16365_v63 = vpop.f32.mrf.mxu1  ;;  %v26189_v6 = vld [vmem:[#allocation155_spill] sm:$0xff]  ;;  %v6901_v28 = vpop.f32.mrf.mxu0 }
 0x3d8   : > { %26184 = vst [vmem:[#allocation113_spill] sm:$0xff] %v22498_v61  ;;  %v6889_v19 = vadd.f32 %v22272_v55, %v6888_v51  ;;  %v22514_v54 = vadd.f32 %v22272_v55, %v26189_v6  ;;  %v6910_v29 = vadd.f32 %v22272_v55, %v15725_v45  ;;  %v9470_v30 = vadd.f32 %v22272_v55, %v16365_v63 }
 0x3d9   : > { %26187 = vst [vmem:[#allocation114_spill] sm:$0xff] %v22503_v22  ;;  %v9891_v21 = vmax.f32 %v6897_v52, 0.0  ;;  %v10531_v16 = vmax.f32 %v9457_v18, 0.0  ;;  %v11352_v1 = vpack.c.bf16 %v11133_v41, %v11132_v3  ;;  %v9461_v50 = vpop.f32.mrf.mxu1  ;;  %v6902_v25 = vadd.f32 %v22272_v55, %v6901_v28  ;;  %v15726_v6 = vpop.f32.mrf.mxu0  ;;  %15824 = vmatmul.mubr.msk.bf16.gmra.mxu0 %vm3854_vm1, %v17084_v24 }
 0x3da   : > { %v9889_v51 = vmax.f32 %v6889_v19, 0.0  ;;  %v9894_v0 = vmax.f32 %v6910_v29, 0.0  ;;  %v10534_v17 = vmax.f32 %v9470_v30, 0.0  ;;  %v26191_v4 = vmax.f32 %v22210_v32, 0.0  ;;  %v17085_v19 = vld [vmem:[%s17242_s29 + $0x760] sm:$0xff]   ;;  %v26194_v29 = vld [vmem:[#allocation156_spill] sm:$0xff] }
 0x3db   : > { %v26192_v63 = vmax.f32 %v22218_v40, 0.0  ;;  %v26193_v52 = vmax.f32 %v22222_v20, 0.0  ;;  %16397 = vmatprep.mubr.msk.bf16.mxu1 %vm11455_vm2, %v11352_v1  ;;  %v9462_v3 = vadd.f32 %v22272_v55, %v9461_v50  ;;  %v16366_v41 = vpop.f32.mrf.mxu1  ;;  %v22534_v30 = vadd.f32 %v22272_v55, %v26194_v29  ;;  %v26199_v50 = vld [vmem:[#allocation26_spill] sm:$0xff]  ;;  %15827 = vmatprep.mubr.msk.bf16.mxu0 %vm3854_vm1, %v17085_v19 }
 0x3dc   : > { %v10883_v45 = vmax.f32 %v26191_v4, %v9891_v21  ;;  %v26195_v28 = vmax.f32 %v22230_v53, 0.0  ;;  %v26196_v4 = vld [vmem:[#allocation162_spill] sm:$0xff]  ;;  %v9892_v20 = vmax.f32 %v6902_v25, 0.0  ;;  %16398 = vmatmul.mubr.msk.bf16.gmra.mxu1 %vm11455_vm2, %v11353_v42  ;;  %v9473_v24 = vadd.f32 %v22272_v55, %v16366_v41 }
 0x3dd   : > { %v11043_v36 = vmax.f32 %v26192_v63, %v10531_v16  ;;  %v10881_v18 = vmax.f32 %v26193_v52, %v9889_v51  ;;  %v26197_v40 = vmax.f32 %v26196_v4, 0.0  ;;  %v6904_v16 = vpop.f32.mrf.mxu0  ;;  %v26198_v51 = vld [vmem:[#allocation28_spill] sm:$0xff]  ;;  %v10532_v29 = vmax.f32 %v9462_v3, 0.0  ;;  %v22548_v15 = vpop.f32.mrf.mxu1  ;;  %v26207_v3 = vld [vmem:[#allocation165_spill] sm:$0xff] }
 0x3de   : > { %v22538_v32 = vmax.f32 %v26195_v28, %v9894_v0  ;;  %v11139_v1 = vmax.f32 %v26198_v51, %v10883_v45  ;;  %v26200_v52 = vld [vmem:[#allocation32_spill] sm:$0xff]  ;;  %26201 = vst [vmem:[#allocation36_spill] sm:$0xff] %v22548_v15  ;;  %v26202_v0 = vld [vmem:[#allocation59_spill] sm:$0xff]  ;;  %v26208_v51 = vmax.f32 %v26207_v3, 0.0  ;;  %v10535_v3 = vmax.f32 %v9473_v24, 0.0 }
 0x3df   : > { %v22542_v21 = vmax.f32 %v26197_v40, %v10534_v17  ;;  %v11299_v63 = vmax.f32 %v26199_v50, %v11043_v36  ;;  %v11137_v37 = vmax.f32 %v26200_v52, %v10881_v18  ;;  %v26203_v17 = vld [vmem:[#allocation5_spill] sm:$0xff]  ;;  %v26204_v4 = vld [vmem:[#allocation164_spill] sm:$0xff]  ;;  %v15729_v45 = vpop.f32.mrf.mxu0  ;;  %v6913_v52 = vadd.f32 %v22272_v55, %v15726_v6 }
 0x3e0   : > { %v11142_v28 = vmax.f32 %v26202_v0, %v22538_v32  ;;  %v26205_v42 = vmax.f32 %v26204_v4, 0.0  ;;  %v11355_v36 = vpack.c.bf16 %v11139_v1, %v11138_v56  ;;  %v22564_v50 = vmax.f32 %v26208_v51, %v10532_v29  ;;  %v16369_v32 = vpop.f32.mrf.mxu1  ;;  %v26212_v4 = vld [vmem:[#allocation158_spill] sm:$0xff]  ;;  %v26216_v1 = vld [vmem:[#allocation159_spill] sm:$0xff]  ;;  %v26217_v24 = vld [vmem:[#allocation168_spill] sm:$0xff] }
 0x3e1   : > { %v11302_v25 = vmax.f32 %v26203_v17, %v22542_v21  ;;  %v22560_v18 = vpack.c.bf16 %v11299_v63, %v11298_v11  ;;  %v6905_v56 = vadd.f32 %v22272_v55, %v6904_v16  ;;  %v6917_v11 = vpop.f32.mrf.mxu0  ;;  %v9895_v29 = vmax.f32 %v6913_v52, 0.0  ;;  %v17086_v21 = vld [vmem:[%s17242_s29 + $0x768] sm:$0xff]   ;;  %v26214_v63 = vld [vmem:[#allocation166_spill] sm:$0xff] }
 0x3e2   : > { %v22557_v40 = vmax.f32 %v26205_v42, %v9892_v20  ;;  %26209 = vst [vmem:[#allocation61_spill] sm:$0xff] %v22564_v50  ;;  %v26210_v20 = vld [vmem:[#allocation33_spill] sm:$0xff]  ;;  %v6926_v6 = vadd.f32 %v22272_v55, %v15729_v45  ;;  %v9486_v19 = vadd.f32 %v22272_v55, %v16369_v32  ;;  %v9477_v17 = vpop.f32.mrf.mxu1  ;;  %v22579_v42 = vadd.f32 %v22272_v55, %v26212_v4  ;;  %v17087_v50 = vld [vmem:[%s17242_s29 + $0x770] sm:$0xff]  }
 0x3e3   : > { %26206 = vst [vmem:[#allocation153_spill] sm:$0xff] %v22560_v18  ;;  %v9893_v51 = vmax.f32 %v6905_v56, 0.0  ;;  %v26213_v41 = vmax.f32 %v26188_v5, %v22494_v12  ;;  %v15730_v0 = vpop.f32.mrf.mxu0  ;;  %v26215_v53 = vmax.f32 %v26214_v63, 0.0  ;;  %v6918_v32 = vadd.f32 %v22272_v55, %v6917_v11  ;;  %v26219_v12 = vld [vmem:[#allocation169_spill] sm:$0xff]  ;;  %15828 = vmatmul.mubr.msk.bf16.gmra.mxu0 %vm3854_vm1, %v17086_v21 }
 0x3e4   : > { %v9898_v18 = vmax.f32 %v6926_v6, 0.0  ;;  %v10538_v45 = vmax.f32 %v9486_v19, 0.0  ;;  %v16370_v61 = vpop.f32.mrf.mxu1  ;;  %v22591_v4 = vadd.f32 %v22272_v55, %v26216_v1  ;;  %v26218_v56 = vmax.f32 %v26217_v24, 0.0  ;;  %v26222_v6 = vld [vmem:[#allocation171_spill] sm:$0xff]  ;;  %v26227_v24 = vld [vmem:[#allocation37_spill] sm:$0xff]  ;;  %15831 = vmatprep.mubr.msk.bf16.mxu0 %vm3854_vm1, %v17087_v50 }
 0x3e5   : > { %v11354_v16 = vpack.c.bf16 %v11137_v37, %v26213_v41  ;;  %v10887_v52 = vmax.f32 %v26215_v53, %v9895_v29  ;;  %v26220_v5 = vmax.f32 %v26219_v12, 0.0  ;;  %v9478_v53 = vadd.f32 %v22272_v55, %v9477_v17  ;;  %v6920_v63 = vpop.f32.mrf.mxu0  ;;  %v26221_v29 = vld [vmem:[#allocation46_spill] sm:$0xff]  ;;  %v26228_v17 = vld [vmem:[#allocation12_spill] sm:$0xff] }
 0x3e6   : > { %v11047_v15 = vmax.f32 %v26218_v56, %v10535_v3  ;;  %v26223_v19 = vmax.f32 %v26222_v6, 0.0  ;;  %v26225_v1 = vmax.f32 %v26224_v59, 0.0  ;;  %v9896_v22 = vmax.f32 %v6918_v32, 0.0  ;;  %v22607_v3 = vpop.f32.mrf.mxu1  ;;  %v26230_v59 = vld [vmem:[#allocation39_spill] sm:$0xff]  ;;  %v26231_v32 = vld [vmem:[#allocation50_spill] sm:$0xff] }
 0x3e7   : > { %v22597_v37 = vmax.f32 %v26220_v5, %v9893_v51  ;;  %16401 = vmatprep.mubr.msk.bf16.mxu1 %vm11455_vm2, %v11354_v16  ;;  %v11143_v11 = vmax.f32 %v26221_v29, %v10887_v52  ;;  %26226 = vst [vmem:[#allocation154_spill] sm:$0xff] %v22607_v3  ;;  %v10536_v12 = vmax.f32 %v9478_v53, 0.0  ;;  %v15733_v52 = vpop.f32.mrf.mxu0  ;;  %v26235_v53 = vld [vmem:[#allocation175_spill] sm:$0xff]  ;;  %v9489_v21 = vadd.f32 %v22272_v55, %v16370_v61 }
 0x3e8   : > { %v10890_v41 = vmax.f32 %v26223_v19, %v9898_v18  ;;  %v11050_v31 = vmax.f32 %v26225_v1, %v10538_v45  ;;  %16402 = vmatmul.mubr.msk.bf16.gmra.mxu1 %vm11455_vm2, %v11355_v36  ;;  %v11303_v16 = vmax.f32 %v26227_v24, %v11047_v15  ;;  %v26232_v36 = vld [vmem:[#allocation174_spill] sm:$0xff]  ;;  %v16373_v19 = vpop.f32.mrf.mxu1  ;;  %v26236_v1 = vmax.f32 %v26235_v53, 0.0  ;;  %v17088_v53 = vld [vmem:[%s17242_s29 + $0x778] sm:$0xff]  }
 0x3e9   : > { %v22614_v18 = vpack.c.bf16 %v11143_v11, %v11142_v28  ;;  %v26233_v29 = vmax.f32 %v26232_v36, 0.0  ;;  %v6929_v28 = vadd.f32 %v22272_v55, %v15730_v0  ;;  %v6933_v11 = vpop.f32.mrf.mxu0  ;;  %v10539_v36 = vmax.f32 %v9489_v21, 0.0 }
 0x3ea   : > { %v11146_v45 = vmax.f32 %v26230_v59, %v10890_v41  ;;  %v11306_v5 = vmax.f32 %v26231_v32, %v11050_v31  ;;  %v22623_v15 = vpack.c.bf16 %v11303_v16, %v11302_v25  ;;  %v22627_v24 = vmax.f32 %v26236_v1, %v10536_v12  ;;  %v26238_v31 = vld [vmem:[#allocation160_spill] sm:$0xff]  ;;  %v9493_v59 = vpop.f32.mrf.mxu1 }
 0x3eb   : > { %26229 = vst [vmem:[#allocation16_spill] sm:$0xff] %v22614_v18  ;;  %v22620_v6 = vmax.f32 %v26233_v29, %v9896_v22  ;;  %v22633_v41 = vadd.f32 %v22272_v55, %v26238_v31  ;;  %v26239_v22 = vld [vmem:[#allocation66_spill] sm:$0xff]  ;;  %v6921_v25 = vadd.f32 %v22272_v55, %v6920_v63  ;;  %v6942_v16 = vadd.f32 %v22272_v55, %v15733_v52  ;;  %v15734_v29 = vpop.f32.mrf.mxu0 }
 0x3ec   : > { %26234 = vst [vmem:[#allocation63_spill] sm:$0xff] %v22623_v15  ;;  %26237 = vst [vmem:[#allocation19_spill] sm:$0xff] %v22627_v24  ;;  %v9899_v0 = vmax.f32 %v6929_v28, 0.0  ;;  %v9502_v61 = vadd.f32 %v22272_v55, %v16373_v19  ;;  %v10514_v1 = vmax.f32 %v22591_v4, 0.0  ;;  %v6934_v50 = vadd.f32 %v22272_v55, %v6933_v11  ;;  %v16374_v51 = vpop.f32.mrf.mxu1  ;;  %v17089_v63 = vld [vmem:[%s17242_s29 + $0x780] sm:$0xff]   ;;  %v26243_v24 = vld [vmem:[#allocation161_spill] sm:$0xff]  ;;  %15832 = vmatmul.mubr.msk.bf16.gmra.mxu0 %vm3854_vm1, %v17088_v53 }
 0x3ed   : > { %v9897_v31 = vmax.f32 %v6921_v25, 0.0  ;;  %v9902_v56 = vmax.f32 %v6942_v16, 0.0  ;;  %v26241_v52 = vmax.f32 %v22304_v60, 0.0  ;;  %v26242_v18 = vmax.f32 %v22316_v27, 0.0  ;;  %v6936_v19 = vpop.f32.mrf.mxu0  ;;  %15835 = vmatprep.mubr.msk.bf16.mxu0 %vm3854_vm1, %v17089_v63  ;;  %v26255_v53 = vld [vmem:[#allocation3_spill] sm:$0xff] }
 0x3ee   : > { %v10542_v28 = vmax.f32 %v9502_v61, 0.0  ;;  %v9494_v21 = vadd.f32 %v22272_v55, %v9493_v59  ;;  %v9382_v12 = vadd.f32 %v22272_v55, %v26243_v24  ;;  %v26244_v4 = vmax.f32 %v22336_v57, 0.0  ;;  %v22659_v60 = vpop.f32.mrf.mxu1  ;;  %v26250_v24 = vld [vmem:[#allocation58_spill] sm:$0xff]  ;;  %v26259_v63 = vld [vmem:[#allocation163_spill] sm:$0xff] }
 0x3ef   : > { %v10891_v15 = vmax.f32 %v26241_v52, %v9899_v0  ;;  %v11051_v32 = vmax.f32 %v26242_v18, %v10539_v36  ;;  %v26245_v11 = vmax.f32 %v22375_v26, 0.0  ;;  %v9900_v3 = vmax.f32 %v6934_v50, 0.0  ;;  %26246 = vst [vmem:[#allocation31_spill] sm:$0xff] %v22659_v60  ;;  %v26247_v0 = vld [vmem:[#allocation54_spill] sm:$0xff]  ;;  %v26248_v18 = vld [vmem:[#allocation68_spill] sm:$0xff]  ;;  %v15737_v49 = vpop.f32.mrf.mxu0 }
 0x3f0   : > { %v22655_v25 = vmax.f32 %v26244_v4, %v9897_v31  ;;  %v26249_v59 = vmax.f32 %v22392_v62, 0.0  ;;  %v10540_v52 = vmax.f32 %v9494_v21, 0.0  ;;  %v9872_v57 = vmax.f32 %v22633_v41, 0.0  ;;  %v17133_v60 = vld [vmem:[%s17242_s29 + $0x8e0] sm:$0xff]  }
 0x3f1   : > { %v10894_v16 = vmax.f32 %v26245_v11, %v9902_v56  ;;  %v11147_v27 = vmax.f32 %v26247_v0, %v10891_v15  ;;  %v11307_v36 = vmax.f32 %v26248_v18, %v11051_v32  ;;  %v26251_v56 = vld [vmem:[#allocation71_spill] sm:$0xff]  ;;  %v26252_v31 = vmax.f32 %v22416_v7, 0.0  ;;  %v16377_v15 = vpop.f32.mrf.mxu1  ;;  %v6949_v11 = vpop.f32.mrf.mxu0 }
 0x3f2   : > { %v11054_v61 = vmax.f32 %v26249_v59, %v10542_v28  ;;  %v26256_v41 = vmax.f32 %v22455_v38, 0.0  ;;  %v9505_v0 = vadd.f32 %v22272_v55, %v16374_v51  ;;  %v6958_v38 = vadd.f32 %v22272_v55, %v15737_v49 }
 0x3f3   : > { %v11150_v50 = vmax.f32 %v26251_v56, %v10894_v16  ;;  %v22672_v4 = vmax.f32 %v26252_v31, %v9900_v3  ;;  %v22675_v62 = vpack.c.bf16 %v11147_v27, %v11146_v45  ;;  %v22677_v32 = vpack.c.bf16 %v11307_v36, %v11306_v5  ;;  %v26258_v16 = vld [vmem:[#allocation29_spill] sm:$0xff]  ;;  %v15738_v59 = vpop.f32.mrf.mxu0  ;;  %v9509_v51 = vpop.f32.mrf.mxu1 }
 0x3f4   : > { %v11310_v28 = vmax.f32 %v26255_v53, %v11054_v61  ;;  %v22682_v21 = vmax.f32 %v26256_v41, %v10540_v52  ;;  %v6945_v3 = vadd.f32 %v22272_v55, %v15734_v29  ;;  %v6937_v45 = vadd.f32 %v22272_v55, %v6936_v19  ;;  %v17090_v61 = vld [vmem:[%s17242_s29 + $0x788] sm:$0xff]   ;;  %v17091_v53 = vld [vmem:[%s17242_s29 + $0x790] sm:$0xff]  }
 0x3f5   : > { %26253 = vst [vmem:[#allocation24_spill] sm:$0xff] %v22675_v62  ;;  %26254 = vst [vmem:[#allocation90_spill] sm:$0xff] %v22677_v32  ;;  %v6833_v5 = vadd.f32 %v22272_v55, %v26259_v63  ;;  %v9518_v36 = vadd.f32 %v22272_v55, %v16377_v15  ;;  %v10543_v56 = vmax.f32 %v9505_v0, 0.0  ;;  %v6950_v29 = vadd.f32 %v22272_v55, %v6949_v11  ;;  %v6952_v26 = vpop.f32.mrf.mxu0  ;;  %v26264_v62 = vld [vmem:[#allocation167_spill] sm:$0xff] }
 0x3f6   : > { %26257 = vst [vmem:[#allocation155_spill] sm:$0xff] %v22682_v21  ;;  %v9903_v52 = vmax.f32 %v6945_v3, 0.0  ;;  %v9901_v31 = vmax.f32 %v6937_v45, 0.0  ;;  %v10512_v19 = vmax.f32 %v9382_v12, 0.0  ;;  %v9906_v41 = vmax.f32 %v6958_v38, 0.0  ;;  %15836 = vmatmul.mubr.msk.bf16.gmra.mxu0 %vm3854_vm1, %v17090_v61 }
 0x3f7   : > { %v10546_v7 = vmax.f32 %v9518_v36, 0.0  ;;  %v9510_v63 = vadd.f32 %v22272_v55, %v9509_v51  ;;  %v26261_v18 = vmax.f32 %v22475_v9, 0.0  ;;  %v26262_v15 = vmax.f32 %v22514_v54, 0.0  ;;  %v22709_v51 = vpop.f32.mrf.mxu0  ;;  %v26266_v9 = vld [vmem:[#allocation89_spill] sm:$0xff]  ;;  %v26267_v54 = vld [vmem:[#allocation136_spill] sm:$0xff]  ;;  %15839 = vmatprep.mubr.msk.bf16.mxu0 %vm3854_vm1, %v17091_v53 }
 0x3f8   : > { %v26263_v3 = vmax.f32 %v22534_v30, 0.0  ;;  %v9904_v45 = vmax.f32 %v6950_v29, 0.0  ;;  %v9393_v11 = vadd.f32 %v22272_v55, %v26264_v62  ;;  %v26265_v12 = vmax.f32 %v22579_v42, 0.0  ;;  %v26269_v29 = vld [vmem:[#allocation170_spill] sm:$0xff] }
 0x3f9   : > { %v10895_v49 = vmax.f32 %v26261_v18, %v9903_v52  ;;  %v11055_v32 = vmax.f32 %v26262_v15, %v10543_v56  ;;  %v11058_v36 = vmax.f32 %v10514_v1, %v10546_v7  ;;  %v10544_v21 = vmax.f32 %v9510_v63, 0.0  ;;  %v26268_v56 = vld [vmem:[#allocation137_spill] sm:$0xff]  ;;  %v26270_v62 = vld [vmem:[#allocation78_spill] sm:$0xff]  ;;  %v26271_v7 = vld [vmem:[#allocation104_spill] sm:$0xff]  ;;  %v22722_v61 = vpop.f32.mrf.mxu0 }
 0x3fa   : > { %v10893_v0 = vmax.f32 %v26263_v3, %v9901_v31  ;;  %v10898_v38 = vmax.f32 %v26265_v12, %v9906_v41  ;;  %v10896_v31 = vmax.f32 %v9872_v57, %v9904_v45  ;;  %v6825_v42 = vadd.f32 %v22272_v55, %v26269_v29  ;;  %v26275_v57 = vld [vmem:[#allocation105_spill] sm:$0xff]  ;;  %v16378_v3 = vpop.f32.mrf.mxu1  ;;  %v26280_v29 = vld [vmem:[#allocation96_spill] sm:$0xff] }
 0x3fb   : > { %v11151_v18 = vmax.f32 %v26266_v9, %v10895_v49  ;;  %v11311_v52 = vmax.f32 %v26267_v54, %v11055_v32  ;;  %v11314_v41 = vmax.f32 %v26271_v7, %v11058_v36  ;;  %v22720_v63 = vmax.f32 %v10512_v19, %v10544_v21  ;;  %v22734_v19 = vpop.f32.mrf.mxu0  ;;  %v17092_v36 = vld [vmem:[%s17242_s29 + $0x798] sm:$0xff]  }
 0x3fc   : > { %v11149_v30 = vmax.f32 %v26268_v56, %v10893_v0  ;;  %v11154_v1 = vmax.f32 %v26270_v62, %v10898_v38  ;;  %v11152_v15 = vmax.f32 %v26275_v57, %v10896_v31  ;;  %v6961_v53 = vadd.f32 %v22272_v55, %v15738_v59  ;;  %v26277_v59 = vld [vmem:[#allocation57_spill] sm:$0xff]  ;;  %v26281_v62 = vld [vmem:[#allocation119_spill] sm:$0xff] }
 0x3fd   : > { %26272 = vst [vmem:[#allocation156_spill] sm:$0xff] %v22720_v63  ;;  %v22724_v49 = vpack.c.bf16 %v11151_v18, %v11150_v50  ;;  %v22726_v32 = vpack.c.bf16 %v11311_v52, %v11310_v28  ;;  %v10515_v0 = vmax.f32 %v9393_v11, 0.0  ;;  %v9521_v38 = vadd.f32 %v22272_v55, %v16378_v3  ;;  %v17093_v28 = vld [vmem:[%s17242_s29 + $0x7a0] sm:$0xff]   ;;  %v22738_v56 = vpop.f32.mrf.mxu0 }
 0x3fe   : > { %v6953_v21 = vadd.f32 %v22272_v55, %v6952_v26  ;;  %v9875_v50 = vmax.f32 %v6833_v5, 0.0  ;;  %v9907_v9 = vmax.f32 %v6961_v53, 0.0  ;;  %v9873_v18 = vmax.f32 %v6825_v42, 0.0  ;;  %v26278_v11 = vld [vmem:[#allocation118_spill] sm:$0xff]  ;;  %15840 = vmatmul.mubr.msk.bf16.gmra.mxu0 %vm3854_vm1, %v17092_v36  ;;  %v26284_v42 = vld [vmem:[#allocation139_spill] sm:$0xff] }
 0x3ff   : > { %26273 = vst [vmem:[#allocation162_spill] sm:$0xff] %v22724_v49  ;;  %26274 = vst [vmem:[#allocation28_spill] sm:$0xff] %v22726_v32  ;;  %v10547_v54 = vmax.f32 %v9521_v38, 0.0  ;;  %v26279_v31 = vmax.f32 %v26277_v59, %v26278_v11  ;;  %v26282_v7 = vmax.f32 %v26280_v29, %v26281_v62  ;;  %v22748_v5 = vpop.f32.mrf.mxu0  ;;  %15843 = vmatprep.mubr.msk.bf16.mxu0 %vm3854_vm1, %v17093_v28  ;;  %v26285_v38 = vld [vmem:[#allocation100_spill] sm:$0xff]  ;;  %v26288_v11 = vld [vmem:[#allocation49_spill] sm:$0xff] }
 0x400   : > { %v9905_v52 = vmax.f32 %v6953_v21, 0.0  ;;  %v10899_v26 = vmax.f32 %v9875_v50, %v9907_v9  ;;  %v26286_v21 = vld [vmem:[#allocation20_spill] sm:$0xff]  ;;  %v26293_v50 = vmax.f32 %v21580_v10, %v22359_v39  ;;  %v17094_v39 = vld [vmem:[%s17242_s29 + $0x7a8] sm:$0xff]  }
 0x401   : > { %v22746_v57 = vpack.c.bf16 %v26282_v7, %v26279_v31  ;;  %v11059_v3 = vmax.f32 %v10515_v0, %v10547_v54  ;;  %v26287_v59 = vmax.f32 %v26285_v38, %v26286_v21  ;;  %v26289_v29 = vld [vmem:[#allocation52_spill] sm:$0xff]  ;;  %v26292_v0 = vmax.f32 %v21547_v8, %v22329_v47  ;;  %v26296_v54 = vld [vmem:[#allocation141_spill] sm:$0xff] }
 0x402   : > { %v10897_v12 = vmax.f32 %v9873_v18, %v9905_v52  ;;  %v11155_v53 = vmax.f32 %v26284_v42, %v10899_v26  ;;  %v26290_v31 = vmax.f32 %v26288_v11, %v26289_v29  ;;  %v26295_v9 = vld [vmem:[#allocation140_spill] sm:$0xff]  ;;  %v22771_v52 = vpop.f32.mrf.mxu0  ;;  %v26298_v26 = vmax.f32 %v26151_v33, %v22384_v13  ;;  %v26309_v13 = vld [vmem:[#allocation51_spill] sm:$0xff]  ;;  %v26313_v11 = vld [vmem:[#allocation14_spill] sm:$0xff] }
 0x403   : > { %26283 = vst [vmem:[#allocation26_spill] sm:$0xff] %v22746_v57  ;;  %v22767_v36 = vpack.c.bf16 %v26293_v50, %v26292_v0  ;;  %v11315_v18 = vmax.f32 %v26295_v9, %v11059_v3  ;;  %v26299_v42 = vmax.f32 %v26160_v23, %v22420_v58  ;;  %v26303_v3 = vld [vmem:[#allocation85_spill] sm:$0xff]  ;;  %v26310_v33 = vld [vmem:[#allocation116_spill] sm:$0xff]  ;;  %v26317_v0 = vmax.f32 %v26228_v17, %v22597_v37 }
 0x404   : > { %v22759_v62 = vpack.c.bf16 %v26290_v31, %v26287_v59  ;;  %v11153_v28 = vmax.f32 %v26296_v54, %v10897_v12  ;;  %v22773_v7 = vpack.c.bf16 %v11155_v53, %v11154_v1  ;;  %v22785_v10 = vpop.f32.mrf.mxu0  ;;  %v26302_v12 = vld [vmem:[#allocation86_spill] sm:$0xff]  ;;  %v26305_v1 = vld [vmem:[#allocation87_spill] sm:$0xff]  ;;  %v26311_v58 = vmax.f32 %v26309_v13, %v26310_v33  ;;  %v26312_v23 = vld [vmem:[#allocation88_spill] sm:$0xff] }
 0x405   : > { %26294 = vst [vmem:[#allocation59_spill] sm:$0xff] %v22767_v36  ;;  %v22781_v8 = vpack.c.bf16 %v26299_v42, %v26298_v26  ;;  %v22783_v47 = vpack.c.bf16 %v11315_v18, %v11314_v41  ;;  %v26304_v38 = vmax.f32 %v26302_v12, %v26303_v3  ;;  %v26306_v53 = vld [vmem:[#allocation147_spill] sm:$0xff]  ;;  %v26314_v41 = vmax.f32 %v26312_v23, %v26313_v11  ;;  %v17095_v9 = vld [vmem:[%s17242_s29 + $0x7b0] sm:$0xff]  }
 0x406   : > { %26291 = vst [vmem:[#allocation32_spill] sm:$0xff] %v22759_v62  ;;  %26297 = vst [vmem:[#allocation5_spill] sm:$0xff] %v22773_v7  ;;  %v26307_v21 = vmax.f32 %v26305_v1, %v26306_v53  ;;  %v26316_v31 = vmax.f32 %v26210_v20, %v22557_v40  ;;  %v26319_v18 = vmax.f32 %v26239_v22, %v22620_v6  ;;  %v22826_v40 = vpop.f32.mrf.mxu0  ;;  %15844 = vmatmul.mubr.msk.bf16.gmra.mxu0 %vm3854_vm1, %v17094_v39  ;;  %v17096_v22 = vld [vmem:[%s17242_s29 + $0x7b8] sm:$0xff]   ;;  %v26329_v3 = vld [vmem:[#allocation56_spill] sm:$0xff] }
 0x407   : > { %26300 = vst [vmem:[#allocation164_spill] sm:$0xff] %v22781_v8  ;;  %26301 = vst [vmem:[#allocation165_spill] sm:$0xff] %v22783_v47  ;;  %v22802_v29 = vpack.c.bf16 %v26314_v41, %v26311_v58  ;;  %v26320_v54 = vmax.f32 %v26250_v24, %v22655_v25  ;;  %v26322_v42 = vmax.f32 %v26258_v16, %v22672_v4  ;;  %15847 = vmatprep.mubr.msk.bf16.mxu0 %vm3854_vm1, %v17095_v9  ;;  %v17097_v25 = vld [vmem:[%s17242_s29 + $0x7c0] sm:$0xff]   ;;  %v26328_v39 = vld [vmem:[#allocation9_spill] sm:$0xff] }
 0x408   : > { %v22794_v59 = vpack.c.bf16 %v26307_v21, %v26304_v38  ;;  %v22810_v50 = vpack.c.bf16 %v26317_v0, %v26316_v31  ;;  %v22828_v20 = vpack.c.bf16 %v11153_v28, %v11152_v15  ;;  %v22830_v37 = vpop.f32.mrf.mxu0  ;;  %v26326_v15 = vld [vmem:[#allocation53_spill] sm:$0xff]  ;;  %v26330_v38 = vmax.f32 %v26328_v39, %v26329_v3  ;;  %v17098_v21 = vld [vmem:[%s17242_s29 + $0x7c8] sm:$0xff]   ;;  %v17099_v13 = vld [vmem:[%s17242_s29 + $0x7d0] sm:$0xff]  }
 0x409   : > { %26315 = vst [vmem:[#allocation158_spill] sm:$0xff] %v22802_v29  ;;  %v22819_v26 = vpack.c.bf16 %v26320_v54, %v26319_v18  ;;  %v22824_v12 = vpack.c.bf16 %v11149_v30, %v26322_v42  ;;  %v26325_v30 = vld [vmem:[#allocation84_spill] sm:$0xff]  ;;  %v26332_v11 = vld [vmem:[#allocation103_spill] sm:$0xff]  ;;  %v26333_v41 = vld [vmem:[#allocation121_spill] sm:$0xff]  ;;  %v6982_v8 = vadd.f32 %v22272_v55, %v22771_v52 }
 0x40a   : > { %26308 = vst [vmem:[#allocation33_spill] sm:$0xff] %v22794_v59  ;;  %26318 = vst [vmem:[#allocation166_spill] sm:$0xff] %v22810_v50  ;;  %v22834_v17 = vpop.f32.mrf.mxu0  ;;  %v26327_v28 = vmax.f32 %v26325_v30, %v26326_v15  ;;  %v26334_v31 = vmax.f32 %v26332_v11, %v26333_v41  ;;  %v26335_v0 = vld [vmem:[#allocation80_spill] sm:$0xff]  ;;  %v26336_v9 = vld [vmem:[#allocation94_spill] sm:$0xff] }
 0x40b   : > { %26321 = vst [vmem:[#allocation159_spill] sm:$0xff] %v22819_v26  ;;  %26323 = vst [vmem:[#allocation168_spill] sm:$0xff] %v22824_v12  ;;  %v26337_v18 = vmax.f32 %v26335_v0, %v26336_v9  ;;  %v26339_v39 = vld [vmem:[#allocation107_spill] sm:$0xff]  ;;  %v17103_v9 = vld [vmem:[%s17242_s29 + $0x7f0] sm:$0xff]   ;;  %v6977_v12 = vadd.f32 %v22272_v55, %v22734_v19 }
 0x40c   : > { %26324 = vst [vmem:[#allocation169_spill] sm:$0xff] %v22828_v20  ;;  %v22836_v6 = vpop.f32.mrf.mxu0  ;;  %v22854_v1 = vpack.c.bf16 %v26330_v38, %v26327_v28  ;;  %v26340_v3 = vld [vmem:[#allocation123_spill] sm:$0xff]  ;;  %v17105_v7 = vld [vmem:[%s17242_s29 + $0x800] sm:$0xff]   ;;  %v17108_v50 = vld [vmem:[%s17242_s29 + $0x818] sm:$0xff]  }
 0x40d   : > { %v22874_v54 = vpack.c.bf16 %v26337_v18, %v26334_v31  ;;  %v26341_v38 = vmax.f32 %v26339_v39, %v26340_v3  ;;  %v17102_v0 = vld [vmem:[%s17242_s29 + $0x7e8] sm:$0xff]   ;;  %v26347_v3 = vld [vmem:[#allocation98_spill] sm:$0xff]  ;;  %v9911_v19 = vmax.f32 %v6977_v12, 0.0  ;;  %v17131_v57 = vld [vmem:[%s17242_s29 + $0x8d0] sm:$0xff]  }
 0x40e   : > { %v22840_v24 = vpop.f32.mrf.mxu0  ;;  %15848 = vmatmul.mubr.msk.bf16.gmra.mxu0 %vm3854_vm1, %v17096_v22  ;;  %26331 = vst [vmem:[#allocation46_spill] sm:$0xff] %v22854_v1  ;;  %v17100_v22 = vld [vmem:[%s17242_s29 + $0x7d8] sm:$0xff]   ;;  %v26346_v39 = vld [vmem:[#allocation111_spill] sm:$0xff] }
 0x40f   : > { %15851 = vmatprep.mubr.msk.bf16.mxu0 %vm3854_vm1, %v17097_v25  ;;  %26338 = vst [vmem:[#allocation171_spill] sm:$0xff] %v22874_v54  ;;  %v17101_v25 = vld [vmem:[%s17242_s29 + $0x7e0] sm:$0xff]  }
 0x410   : > { %v22842_v4 = vpop.f32.mrf.mxu0 }
 0x412   : > { %v22846_v16 = vpop.f32.mrf.mxu0 }
 0x414   : > { %v22856_v53 = vpop.f32.mrf.mxu0 }
 0x416   : > { %v22860_v33 = vpop.f32.mrf.mxu0  ;;  %15852 = vmatmul.mubr.msk.bf16.gmra.mxu0 %vm3854_vm1, %v17098_v21  ;;  %v26342_v21 = vld [vmem:[#allocation82_spill] sm:$0xff] }
 0x417   : > { %15855 = vmatprep.mubr.msk.bf16.mxu0 %vm3854_vm1, %v17099_v13  ;;  %v26343_v13 = vld [vmem:[#allocation124_spill] sm:$0xff] }
 0x418   : > { %v22862_v58 = vpop.f32.mrf.mxu0  ;;  %v26344_v11 = vmax.f32 %v26342_v21, %v26343_v13  ;;  %v26349_v21 = vld [vmem:[#allocation115_spill] sm:$0xff] }
 0x419   : > { %v26350_v13 = vld [vmem:[#allocation127_spill] sm:$0xff] }
 0x41a   : > { %v22866_v23 = vpop.f32.mrf.mxu0  ;;  %v22894_v41 = vpack.c.bf16 %v26344_v11, %v26341_v38  ;;  %v26348_v38 = vmax.f32 %v26346_v39, %v26347_v3  ;;  %v26351_v11 = vmax.f32 %v26349_v21, %v26350_v13  ;;  %v17106_v39 = vld [vmem:[%s17242_s29 + $0x808] sm:$0xff]   ;;  %v17107_v3 = vld [vmem:[%s17242_s29 + $0x810] sm:$0xff]   ;;  %v6974_v21 = vadd.f32 %v22272_v55, %v22709_v51 }
 0x41b   : > { %v6966_v13 = vadd.f32 %v22272_v55, %v22722_v61  ;;  %v6969_v61 = vadd.f32 %v22272_v55, %v22738_v56 }
 0x41c   : > { %v22876_v42 = vpop.f32.mrf.mxu0  ;;  %26345 = vst [vmem:[#allocation172_spill] sm:$0xff] %v22894_v41  ;;  %v22914_v47 = vpack.c.bf16 %v26351_v11, %v26348_v38  ;;  %v17104_v41 = vld [vmem:[%s17242_s29 + $0x7f8] sm:$0xff]  }
 0x41d   : > { %v9908_v51 = vmax.f32 %v6966_v13, 0.0 }
 0x41e   : > { %v22880_v30 = vpop.f32.mrf.mxu0  ;;  %15856 = vmatmul.mubr.msk.bf16.gmra.mxu0 %vm3854_vm1, %v17100_v22  ;;  %26352 = vst [vmem:[#allocation37_spill] sm:$0xff] %v22914_v47  ;;  %v9910_v47 = vmax.f32 %v6974_v21, 0.0  ;;  %v6990_v21 = vadd.f32 %v22272_v55, %v22748_v5 }
 0x41f   : > { %15859 = vmatprep.mubr.msk.bf16.mxu0 %vm3854_vm1, %v17101_v25 }
 0x420   : > { %v22882_v15 = vpop.f32.mrf.mxu0  ;;  %v9914_v12 = vmax.f32 %v6990_v21, 0.0  ;;  %v17111_v21 = vld [vmem:[%s17242_s29 + $0x830] sm:$0xff]  }
 0x422   : > { %v22886_v28 = vpop.f32.mrf.mxu0 }
 0x424   : > { %v22896_v31 = vpop.f32.mrf.mxu0 }
 0x426   : > { %v22900_v18 = vpop.f32.mrf.mxu0  ;;  %15860 = vmatmul.mubr.msk.bf16.gmra.mxu0 %vm3854_vm1, %v17102_v0 }
 0x427   : > { %15863 = vmatprep.mubr.msk.bf16.mxu0 %vm3854_vm1, %v17103_v9 }
 0x428   : > { %v22902_v22 = vpop.f32.mrf.mxu0 }
 0x42a   : > { %v22906_v25 = vpop.f32.mrf.mxu0 }
 0x42c   : > { %v22916_v32 = vpop.f32.mrf.mxu0 }
 0x42e   : > { %v22920_v20 = vpop.f32.mrf.mxu0  ;;  %15864 = vmatmul.mubr.msk.bf16.gmra.mxu0 %vm3854_vm1, %v17104_v41 }
 0x42f   : > { %15867 = vmatprep.mubr.msk.bf16.mxu0 %vm3854_vm1, %v17105_v7 }
 0x430   : > { %v22922_v49 = vpop.f32.mrf.mxu0 }
 0x432   : > { %v22926_v0 = vpop.f32.mrf.mxu0 }
 0x434   : > { %v22928_v9 = vpop.f32.mrf.mxu0 }
 0x436   : > { %v22932_v38 = vpop.f32.mrf.mxu0  ;;  %15868 = vmatmul.mubr.msk.bf16.gmra.mxu0 %vm3854_vm1, %v17106_v39 }
 0x437   : > { %15871 = vmatprep.mubr.msk.bf16.mxu0 %vm3854_vm1, %v17107_v3  ;;  %v17109_v3 = vld [vmem:[%s17242_s29 + $0x820] sm:$0xff]  }
 0x438   : > { %v15773_v11 = vpop.f32.mrf.mxu0 }
 0x439   : > { %v7102_v7 = vadd.f32 %v22272_v55, %v15773_v11 }
 0x43a   : > { %v7093_v41 = vpop.f32.mrf.mxu0 }
 0x43b   : > { %v9942_v54 = vmax.f32 %v7102_v7, 0.0  ;;  %v7094_v1 = vadd.f32 %v22272_v55, %v7093_v41 }
 0x43c   : > { %v15774_v26 = vpop.f32.mrf.mxu0 }
 0x43d   : > { %v22947_v29 = vmax.f32 %v9910_v47, %v9942_v54  ;;  %v9940_v39 = vmax.f32 %v7094_v1, 0.0  ;;  %v7105_v11 = vadd.f32 %v22272_v55, %v15774_v26  ;;  %v9909_v47 = vmax.f32 %v6969_v61, 0.0 }
 0x43e   : > { %v7096_v59 = vpop.f32.mrf.mxu0  ;;  %15872 = vmatmul.mubr.msk.bf16.gmra.mxu0 %vm3854_vm1, %v17108_v50  ;;  %v9912_v50 = vmax.f32 %v6982_v8, 0.0 }
 0x43f   : > { %v22953_v7 = vmax.f32 %v9908_v51, %v9940_v39  ;;  %v9943_v41 = vmax.f32 %v7105_v11, 0.0  ;;  %v7097_v13 = vadd.f32 %v22272_v55, %v7096_v59  ;;  %15875 = vmatprep.mubr.msk.bf16.mxu0 %vm3854_vm1, %v17109_v3  ;;  %v6993_v59 = vadd.f32 %v22272_v55, %v22785_v10  ;;  %v17110_v11 = vld [vmem:[%s17242_s29 + $0x828] sm:$0xff]   ;;  %v22976_v3 = vld [vmem:[%s24956_s2] ss:$0 sm:$0xff] }
 0x440   : > { %v15777_v56 = vpop.f32.mrf.mxu0 }
 0x441   : > { %v22959_v26 = vmax.f32 %v9911_v19, %v9943_v41  ;;  %v9941_v1 = vmax.f32 %v7097_v13, 0.0  ;;  %v7118_v5 = vadd.f32 %v22272_v55, %v15777_v56  ;;  %v6985_v19 = vadd.f32 %v22272_v55, %v22826_v40 }
 0x442   : > { %v7109_v54 = vpop.f32.mrf.mxu0  ;;  %v7006_v56 = vadd.f32 %v22976_v3, %v22830_v37  ;;  %v6998_v40 = vadd.f32 %v22976_v3, %v22834_v17 }
 0x443   : > { %v22965_v51 = vmax.f32 %v9909_v47, %v9941_v1  ;;  %v9946_v52 = vmax.f32 %v7118_v5, 0.0  ;;  %v7110_v39 = vadd.f32 %v22272_v55, %v7109_v54  ;;  %v9915_v47 = vmax.f32 %v6993_v59, 0.0 }
 0x444   : > { %v15778_v61 = vpop.f32.mrf.mxu0  ;;  %v9913_v54 = vmax.f32 %v6985_v19, 0.0  ;;  %v9918_v59 = vmax.f32 %v7006_v56, 0.0  ;;  %v17113_v56 = vld [vmem:[%s17242_s29 + $0x840] sm:$0xff]  }
 0x445   : > { %v22971_v41 = vmax.f32 %v9914_v12, %v9946_v52  ;;  %v9944_v13 = vmax.f32 %v7110_v39, 0.0  ;;  %v7121_v10 = vadd.f32 %v22976_v3, %v15778_v61  ;;  %v7009_v61 = vadd.f32 %v22976_v3, %v22836_v6 }
 0x446   : > { %v7112_v8 = vpop.f32.mrf.mxu0  ;;  %15876 = vmatmul.mubr.msk.bf16.gmra.mxu0 %vm3854_vm1, %v17110_v11  ;;  %v9916_v11 = vmax.f32 %v6998_v40, 0.0  ;;  %v7022_v6 = vadd.f32 %v22976_v3, %v22842_v4 }
 0x447   : > { %v22982_v1 = vmax.f32 %v9912_v50, %v9944_v13  ;;  %v9947_v5 = vmax.f32 %v7121_v10, 0.0  ;;  %v7113_v55 = vadd.f32 %v22976_v3, %v7112_v8  ;;  %15879 = vmatprep.mubr.msk.bf16.mxu0 %vm3854_vm1, %v17111_v21  ;;  %v17112_v8 = vld [vmem:[%s17242_s29 + $0x838] sm:$0xff]  }
 0x448   : > { %v15781_v12 = vpop.f32.mrf.mxu0 }
 0x449   : > { %v22988_v52 = vmax.f32 %v9915_v47, %v9947_v5  ;;  %v9945_v39 = vmax.f32 %v7113_v55, 0.0  ;;  %v7134_v37 = vadd.f32 %v22976_v3, %v15781_v12  ;;  %v7001_v47 = vadd.f32 %v22976_v3, %v22840_v24 }
 0x44a   : > { %v7125_v50 = vpop.f32.mrf.mxu0 }
 0x44b   : > { %v22994_v13 = vmax.f32 %v9913_v54, %v9945_v39  ;;  %v9950_v17 = vmax.f32 %v7134_v37, 0.0  ;;  %v7126_v10 = vadd.f32 %v22976_v3, %v7125_v50  ;;  %v9919_v54 = vmax.f32 %v7009_v61, 0.0 }
 0x44c   : > { %v15782_v19 = vpop.f32.mrf.mxu0  ;;  %v7014_v50 = vadd.f32 %v22976_v3, %v22846_v16  ;;  %v9922_v61 = vmax.f32 %v7022_v6, 0.0  ;;  %v17115_v6 = vld [vmem:[%s17242_s29 + $0x850] sm:$0xff]  }
 0x44d   : > { %v23000_v5 = vmax.f32 %v9918_v59, %v9950_v17  ;;  %v9948_v55 = vmax.f32 %v7126_v10, 0.0  ;;  %v7137_v21 = vadd.f32 %v22976_v3, %v15782_v19  ;;  %v9917_v59 = vmax.f32 %v7001_v47, 0.0 }
 0x44e   : > { %v7128_v12 = vpop.f32.mrf.mxu0  ;;  %15880 = vmatmul.mubr.msk.bf16.gmra.mxu0 %vm3854_vm1, %v17112_v8  ;;  %v7025_v19 = vadd.f32 %v22976_v3, %v22856_v53  ;;  %v9920_v8 = vmax.f32 %v7014_v50, 0.0  ;;  %v7038_v53 = vadd.f32 %v22976_v3, %v22862_v58 }
 0x44f   : > { %v23006_v39 = vmax.f32 %v9916_v11, %v9948_v55  ;;  %v9951_v37 = vmax.f32 %v7137_v21, 0.0  ;;  %v7129_v40 = vadd.f32 %v22976_v3, %v7128_v12  ;;  %15883 = vmatprep.mubr.msk.bf16.mxu0 %vm3854_vm1, %v17113_v56  ;;  %v17114_v12 = vld [vmem:[%s17242_s29 + $0x848] sm:$0xff]  }
 0x450   : > { %v15785_v24 = vpop.f32.mrf.mxu0 }
 0x451   : > { %v23012_v17 = vmax.f32 %v9919_v54, %v9951_v37  ;;  %v9949_v10 = vmax.f32 %v7129_v40, 0.0  ;;  %v7150_v4 = vadd.f32 %v22976_v3, %v15785_v24  ;;  %v7017_v54 = vadd.f32 %v22976_v3, %v22860_v33 }
 0x452   : > { %v7141_v11 = vpop.f32.mrf.mxu0 }
 0x453   : > { %v23018_v55 = vmax.f32 %v9917_v59, %v9949_v10  ;;  %v9954_v16 = vmax.f32 %v7150_v4, 0.0  ;;  %v7142_v21 = vadd.f32 %v22976_v3, %v7141_v11  ;;  %v9923_v59 = vmax.f32 %v7025_v19, 0.0 }
 0x454   : > { %v15786_v47 = vpop.f32.mrf.mxu0  ;;  %v7030_v11 = vadd.f32 %v22976_v3, %v22866_v23  ;;  %v9926_v19 = vmax.f32 %v7038_v53, 0.0  ;;  %v17117_v53 = vld [vmem:[%s17242_s29 + $0x860] sm:$0xff]  }
 0x455   : > { %v23024_v37 = vmax.f32 %v9922_v61, %v9954_v16  ;;  %v9952_v40 = vmax.f32 %v7142_v21, 0.0  ;;  %v7153_v56 = vadd.f32 %v22976_v3, %v15786_v47  ;;  %v9921_v61 = vmax.f32 %v7017_v54, 0.0 }
 0x456   : > { %v7144_v24 = vpop.f32.mrf.mxu0  ;;  %15884 = vmatmul.mubr.msk.bf16.gmra.mxu0 %vm3854_vm1, %v17114_v12  ;;  %v7041_v47 = vadd.f32 %v22976_v3, %v22876_v42  ;;  %v9924_v12 = vmax.f32 %v7030_v11, 0.0  ;;  %v7054_v42 = vadd.f32 %v22976_v3, %v22882_v15 }
 0x457   : > { %v23030_v10 = vmax.f32 %v9920_v8, %v9952_v40  ;;  %v9955_v4 = vmax.f32 %v7153_v56, 0.0  ;;  %v7145_v50 = vadd.f32 %v22976_v3, %v7144_v24  ;;  %15887 = vmatprep.mubr.msk.bf16.mxu0 %vm3854_vm1, %v17115_v6  ;;  %v17116_v24 = vld [vmem:[%s17242_s29 + $0x858] sm:$0xff]  }
 0x458   : > { %v15789_v33 = vpop.f32.mrf.mxu0 }
 0x459   : > { %v23036_v16 = vmax.f32 %v9923_v59, %v9955_v4  ;;  %v9953_v21 = vmax.f32 %v7145_v50, 0.0  ;;  %v7166_v58 = vadd.f32 %v22976_v3, %v15789_v33  ;;  %v7033_v59 = vadd.f32 %v22976_v3, %v22880_v30 }
 0x45a   : > { %v7157_v8 = vpop.f32.mrf.mxu0 }
 0x45b   : > { %v23042_v40 = vmax.f32 %v9921_v61, %v9953_v21  ;;  %v9958_v23 = vmax.f32 %v7166_v58, 0.0  ;;  %v7158_v56 = vadd.f32 %v22976_v3, %v7157_v8  ;;  %v9927_v61 = vmax.f32 %v7041_v47, 0.0 }
 0x45c   : > { %v15790_v54 = vpop.f32.mrf.mxu0  ;;  %v7046_v8 = vadd.f32 %v22976_v3, %v22886_v28  ;;  %v9930_v47 = vmax.f32 %v7054_v42, 0.0  ;;  %v17119_v42 = vld [vmem:[%s17242_s29 + $0x870] sm:$0xff]  }
 0x45d   : > { %v23048_v4 = vmax.f32 %v9926_v19, %v9958_v23  ;;  %v9956_v50 = vmax.f32 %v7158_v56, 0.0  ;;  %v7169_v6 = vadd.f32 %v22976_v3, %v15790_v54  ;;  %v9925_v19 = vmax.f32 %v7033_v59, 0.0 }
 0x45e   : > { %v7160_v33 = vpop.f32.mrf.mxu0  ;;  %15888 = vmatmul.mubr.msk.bf16.gmra.mxu0 %vm3854_vm1, %v17116_v24  ;;  %v7057_v54 = vadd.f32 %v22976_v3, %v22896_v31  ;;  %v9928_v24 = vmax.f32 %v7046_v8, 0.0  ;;  %v7070_v31 = vadd.f32 %v22976_v3, %v22902_v22 }
 0x45f   : > { %v23054_v21 = vmax.f32 %v9924_v12, %v9956_v50  ;;  %v9959_v58 = vmax.f32 %v7169_v6, 0.0  ;;  %v7161_v11 = vadd.f32 %v22976_v3, %v7160_v33  ;;  %15891 = vmatprep.mubr.msk.bf16.mxu0 %vm3854_vm1, %v17117_v53  ;;  %v17118_v33 = vld [vmem:[%s17242_s29 + $0x868] sm:$0xff]  }
 0x460   : > { %v15793_v30 = vpop.f32.mrf.mxu0 }
 0x461   : > { %v23060_v23 = vmax.f32 %v9927_v61, %v9959_v58  ;;  %v9957_v56 = vmax.f32 %v7161_v11, 0.0  ;;  %v7182_v15 = vadd.f32 %v22976_v3, %v15793_v30  ;;  %v7049_v61 = vadd.f32 %v22976_v3, %v22900_v18 }
 0x462   : > { %v7173_v12 = vpop.f32.mrf.mxu0 }
 0x463   : > { %26353 = vst [vmem:[#allocation12_spill] sm:$0xff] %v23060_v23  ;;  %v23066_v50 = vmax.f32 %v9925_v19, %v9957_v56  ;;  %v9962_v28 = vmax.f32 %v7182_v15, 0.0  ;;  %v7174_v6 = vadd.f32 %v22976_v3, %v7173_v12  ;;  %v9931_v19 = vmax.f32 %v7057_v54, 0.0 }
 0x464   : > { %v15794_v59 = vpop.f32.mrf.mxu0  ;;  %v7062_v12 = vadd.f32 %v22976_v3, %v22906_v25  ;;  %v9934_v54 = vmax.f32 %v7070_v31, 0.0  ;;  %v17121_v31 = vld [vmem:[%s17242_s29 + $0x880] sm:$0xff]  }
 0x465   : > { %26354 = vst [vmem:[#allocation39_spill] sm:$0xff] %v23066_v50  ;;  %v23072_v58 = vmax.f32 %v9930_v47, %v9962_v28  ;;  %v9960_v11 = vmax.f32 %v7174_v6, 0.0  ;;  %v7185_v53 = vadd.f32 %v22976_v3, %v15794_v59  ;;  %v9929_v47 = vmax.f32 %v7049_v61, 0.0 }
 0x466   : > { %v7176_v30 = vpop.f32.mrf.mxu0  ;;  %15892 = vmatmul.mubr.msk.bf16.gmra.mxu0 %vm3854_vm1, %v17118_v33  ;;  %v7073_v59 = vadd.f32 %v22976_v3, %v22916_v32  ;;  %v9932_v33 = vmax.f32 %v7062_v12, 0.0  ;;  %v7086_v32 = vadd.f32 %v22976_v3, %v22922_v49 }
 0x467   : > { %26355 = vst [vmem:[#allocation50_spill] sm:$0xff] %v23072_v58  ;;  %v23078_v56 = vmax.f32 %v9928_v24, %v9960_v11  ;;  %v9963_v15 = vmax.f32 %v7185_v53, 0.0  ;;  %v7177_v8 = vadd.f32 %v22976_v3, %v7176_v30  ;;  %15895 = vmatprep.mubr.msk.bf16.mxu0 %vm3854_vm1, %v17119_v42  ;;  %v17120_v30 = vld [vmem:[%s17242_s29 + $0x878] sm:$0xff]  }
 0x468   : > { %v15797_v18 = vpop.f32.mrf.mxu0 }
 0x469   : > { %26356 = vst [vmem:[#allocation174_spill] sm:$0xff] %v23078_v56  ;;  %v23084_v28 = vmax.f32 %v9931_v19, %v9963_v15  ;;  %v9961_v6 = vmax.f32 %v7177_v8, 0.0  ;;  %v7198_v22 = vadd.f32 %v22976_v3, %v15797_v18  ;;  %v7065_v19 = vadd.f32 %v22976_v3, %v22920_v20 }
 0x46a   : > { %v7189_v24 = vpop.f32.mrf.mxu0 }
 0x46b   : > { %26357 = vst [vmem:[#allocation175_spill] sm:$0xff] %v23084_v28  ;;  %v23090_v11 = vmax.f32 %v9929_v47, %v9961_v6  ;;  %v9966_v25 = vmax.f32 %v7198_v22, 0.0  ;;  %v7190_v53 = vadd.f32 %v22976_v3, %v7189_v24  ;;  %v9935_v47 = vmax.f32 %v7073_v59, 0.0 }
 0x46c   : > { %v15798_v61 = vpop.f32.mrf.mxu0  ;;  %v7078_v24 = vadd.f32 %v22976_v3, %v22926_v0  ;;  %v9938_v59 = vmax.f32 %v7086_v32, 0.0  ;;  %v17123_v32 = vld [vmem:[%s17242_s29 + $0x890] sm:$0xff]  }
 0x46d   : > { %26358 = vst [vmem:[#allocation160_spill] sm:$0xff] %v23090_v11  ;;  %v23096_v15 = vmax.f32 %v9934_v54, %v9966_v25  ;;  %v9964_v8 = vmax.f32 %v7190_v53, 0.0  ;;  %v7201_v42 = vadd.f32 %v22976_v3, %v15798_v61  ;;  %v9933_v54 = vmax.f32 %v7065_v19, 0.0 }
 0x46e   : > { %v7192_v18 = vpop.f32.mrf.mxu0  ;;  %15896 = vmatmul.mubr.msk.bf16.gmra.mxu0 %vm3854_vm1, %v17120_v30  ;;  %v7089_v61 = vadd.f32 %v22976_v3, %v22928_v9  ;;  %v9936_v30 = vmax.f32 %v7078_v24, 0.0 }
 0x46f   : > { %26359 = vst [vmem:[#allocation66_spill] sm:$0xff] %v23096_v15  ;;  %v23102_v6 = vmax.f32 %v9932_v33, %v9964_v8  ;;  %v9967_v22 = vmax.f32 %v7201_v42, 0.0  ;;  %v7193_v12 = vadd.f32 %v22976_v3, %v7192_v18  ;;  %15899 = vmatprep.mubr.msk.bf16.mxu0 %vm3854_vm1, %v17121_v31  ;;  %v17122_v18 = vld [vmem:[%s17242_s29 + $0x888] sm:$0xff]  }
 0x470   : > { %v15801_v20 = vpop.f32.mrf.mxu0 }
 0x471   : > { %26360 = vst [vmem:[#allocation161_spill] sm:$0xff] %v23102_v6  ;;  %v23108_v25 = vmax.f32 %v9935_v47, %v9967_v22  ;;  %v9965_v53 = vmax.f32 %v7193_v12, 0.0  ;;  %v7214_v49 = vadd.f32 %v22976_v3, %v15801_v20  ;;  %v7081_v47 = vadd.f32 %v22976_v3, %v22932_v38 }
 0x472   : > { %v7205_v33 = vpop.f32.mrf.mxu0  ;;  %v9939_v20 = vmax.f32 %v7089_v61, 0.0 }
 0x473   : > { %26361 = vst [vmem:[#allocation54_spill] sm:$0xff] %v23108_v25  ;;  %v23114_v8 = vmax.f32 %v9933_v54, %v9965_v53  ;;  %v9970_v0 = vmax.f32 %v7214_v49, 0.0  ;;  %v7206_v42 = vadd.f32 %v22976_v3, %v7205_v33  ;;  %v9937_v38 = vmax.f32 %v7081_v47, 0.0 }
 0x474   : > { %v15802_v19 = vpop.f32.mrf.mxu0 }
 0x475   : > { %26362 = vst [vmem:[#allocation68_spill] sm:$0xff] %v23114_v8  ;;  %v23120_v22 = vmax.f32 %v9938_v59, %v9970_v0  ;;  %v9968_v12 = vmax.f32 %v7206_v42, 0.0  ;;  %v7217_v31 = vadd.f32 %v22976_v3, %v15802_v19  ;;  %v17125_v19 = vld [vmem:[%s17242_s29 + $0x8a0] sm:$0xff]  }
 0x476   : > { %v7208_v9 = vpop.f32.mrf.mxu0  ;;  %15900 = vmatmul.mubr.msk.bf16.gmra.mxu0 %vm3854_vm1, %v17122_v18 }
 0x477   : > { %26363 = vst [vmem:[#allocation58_spill] sm:$0xff] %v23120_v22  ;;  %v23124_v54 = vmax.f32 %v9936_v30, %v9968_v12  ;;  %v9971_v53 = vmax.f32 %v7217_v31, 0.0  ;;  %v7209_v24 = vadd.f32 %v22976_v3, %v7208_v9  ;;  %15903 = vmatprep.mubr.msk.bf16.mxu0 %vm3854_vm1, %v17123_v32  ;;  %v17124_v30 = vld [vmem:[%s17242_s29 + $0x898] sm:$0xff]   ;;  %v17126_v32 = vld [vmem:[%s17242_s29 + $0x8a8] sm:$0xff]   ;;  %v17127_v9 = vld [vmem:[%s17242_s29 + $0x8b0] sm:$0xff]  }
 0x478   : > { %v23127_v49 = vpop.f32.mrf.mxu0  ;;  %v17135_v22 = vld [vmem:[%s17242_s29 + $0x8f0] sm:$0xff]  }
 0x479   : > { %26364 = vst [vmem:[#allocation71_spill] sm:$0xff] %v23124_v54  ;;  %v23130_v59 = vmax.f32 %v9939_v20, %v9971_v53  ;;  %v9969_v33 = vmax.f32 %v7209_v24, 0.0  ;;  %v7230_v28 = vadd.f32 %v22976_v3, %v23127_v49  ;;  %v26377_v49 = vld [vmem:[#allocation126_spill] sm:$0xff] }
 0x47a   : > { %v23133_v0 = vpop.f32.mrf.mxu0  ;;  %v9017_v56 = vadd.f32 %v22976_v3, %v26377_v49  ;;  %v26380_v49 = vld [vmem:[#allocation109_spill] sm:$0xff] }
 0x47b   : > { %26365 = vst [vmem:[#allocation3_spill] sm:$0xff] %v23130_v59  ;;  %v23135_v61 = vmax.f32 %v9937_v38, %v9969_v33  ;;  %v17128_v33 = vld [vmem:[%s17242_s29 + $0x8b8] sm:$0xff]   ;;  %v9145_v44 = vadd.f32 %v22976_v3, %v26380_v49 }
 0x47c   : > { %v23137_v42 = vpop.f32.mrf.mxu0 }
 0x47d   : > { %26366 = vst [vmem:[#allocation29_spill] sm:$0xff] %v23135_v61 }
 0x47e   : > { %v23141_v12 = vpop.f32.mrf.mxu0  ;;  %15904 = vmatmul.mubr.msk.bf16.gmra.mxu0 %vm3854_vm1, %v17124_v30  ;;  %v17129_v30 = vld [vmem:[%s17242_s29 + $0x8c0] sm:$0xff]  }
 0x47f   : > { %15907 = vmatprep.mubr.msk.bf16.mxu0 %vm3854_vm1, %v17125_v19 }
 0x480   : > { %v23143_v18 = vpop.f32.mrf.mxu0 }
 0x481   : > { %v7246_v50 = vadd.f32 %v22976_v3, %v23143_v18 }
 0x482   : > { %v23147_v47 = vpop.f32.mrf.mxu0 }
 0x483   : > { %v7238_v49 = vadd.f32 %v22976_v3, %v23147_v47 }
 0x484   : > { %v23149_v31 = vpop.f32.mrf.mxu0 }
 0x486   : > { %v23153_v20 = vpop.f32.mrf.mxu0  ;;  %15908 = vmatmul.mubr.msk.bf16.gmra.mxu0 %vm3854_vm1, %v17126_v32 }
 0x487   : > { %15911 = vmatprep.mubr.msk.bf16.mxu0 %vm3854_vm1, %v17127_v9  ;;  %v17130_v9 = vld [vmem:[%s17242_s29 + $0x8c8] sm:$0xff]  }
 0x488   : > { %v23155_v53 = vpop.f32.mrf.mxu0 }
 0x48a   : > { %v23159_v24 = vpop.f32.mrf.mxu0 }
 0x48c   : > { %v23161_v38 = vpop.f32.mrf.mxu0 }
 0x48e   : > { %v23165_v19 = vpop.f32.mrf.mxu0  ;;  %15912 = vmatmul.mubr.msk.bf16.gmra.mxu0 %vm3854_vm1, %v17128_v33 }
 0x48f   : > { %15915 = vmatprep.mubr.msk.bf16.mxu0 %vm3854_vm1, %v17129_v30  ;;  %v17132_v30 = vld [vmem:[%s17242_s29 + $0x8d8] sm:$0xff]  }
 0x490   : > { %v23167_v36 = vpop.f32.mrf.mxu0 }
 0x492   : > { %v23171_v62 = vpop.f32.mrf.mxu0 }
 0x494   : > { %v23173_v32 = vpop.f32.mrf.mxu0 }
 0x496   : > { %v23177_v63 = vpop.f32.mrf.mxu0  ;;  %15916 = vmatmul.mubr.msk.bf16.gmra.mxu0 %vm3854_vm1, %v17130_v9 }
 0x497   : > { %15919 = vmatprep.mubr.msk.bf16.mxu0 %vm3854_vm1, %v17131_v57  ;;  %v17134_v57 = vld [vmem:[%s17242_s29 + $0x8e8] sm:$0xff]  }
 0x498   : > { %v23179_v45 = vpop.f32.mrf.mxu0 }
 0x49a   : > { %v23183_v27 = vpop.f32.mrf.mxu0 }
 0x49c   : > { %v23185_v33 = vpop.f32.mrf.mxu0 }
 0x49e   : > { %v23189_v61 = vpop.f32.mrf.mxu0  ;;  %15920 = vmatmul.mubr.msk.bf16.gmra.mxu0 %vm3854_vm1, %v17132_v30 }
 0x49f   : > { %15923 = vmatprep.mubr.msk.bf16.mxu0 %vm3854_vm1, %v17133_v60  ;;  %v17136_v60 = vld [vmem:[%s17242_s29 + $0x8f8] sm:$0xff]  }
 0x4a0   : > { %v23191_v59 = vpop.f32.mrf.mxu0 }
 0x4a2   : > { %v23195_v54 = vpop.f32.mrf.mxu0 }
 0x4a4   : > { %v23197_v9 = vpop.f32.mrf.mxu0 }
 0x4a5   : > { %26367 = vst [vmem:[#allocation163_spill] sm:$0xff] %v23197_v9 }
 0x4a6   : > { %v23201_v8 = vpop.f32.mrf.mxu0  ;;  %15924 = vmatmul.mubr.msk.bf16.gmra.mxu0 %vm3854_vm1, %v17134_v57  ;;  %v17138_v57 = vld [vmem:[%s17242_s29 + $0x908] sm:$0xff]  }
 0x4a7   : > { %26368 = vst [vmem:[#allocation167_spill] sm:$0xff] %v23201_v8  ;;  %15927 = vmatprep.mubr.msk.bf16.mxu0 %vm3854_vm1, %v17135_v22  ;;  %v17139_v22 = vld [vmem:[%s17242_s29 + $0x910] sm:$0xff]  }
 0x4a8   : > { %v23203_v25 = vpop.f32.mrf.mxu0 }
 0x4a9   : > { %26369 = vst [vmem:[#allocation89_spill] sm:$0xff] %v23203_v25 }
 0x4aa   : > { %v23207_v46 = vpop.f32.mrf.mxu0 }
 0x4ab   : > { %26370 = vst [vmem:[#allocation136_spill] sm:$0xff] %v23207_v46 }
 0x4ac   : > { %v23209_v30 = vpop.f32.mrf.mxu0 }
 0x4ad   : > { %26371 = vst [vmem:[#allocation137_spill] sm:$0xff] %v23209_v30 }
 0x4ae   : > { %v23213_v6 = vpop.f32.mrf.mxu0  ;;  %15928 = vmatmul.mubr.msk.bf16.gmra.mxu0 %vm3854_vm1, %v17136_v60  ;;  %v7222_v60 = vadd.f32 %v22976_v3, %v23133_v0  ;;  %v7225_v0 = vadd.f32 %v22976_v3, %v23141_v12 }
 0x4af   : > { %26372 = vst [vmem:[#allocation170_spill] sm:$0xff] %v23213_v6  ;;  %15931 = vmatprep.mubr.msk.bf16.mxu0 %vm3854_vm1, %v17137_v48 }
 0x4b0   : > { %v23215_v43 = vpop.f32.mrf.mxu0  ;;  %v9972_v58 = vmax.f32 %v7222_v60, 0.0 }
 0x4b1   : > { %26373 = vst [vmem:[#allocation78_spill] sm:$0xff] %v23215_v43 }
 0x4b2   : > { %v23219_v35 = vpop.f32.mrf.mxu0 }
 0x4b3   : > { %26374 = vst [vmem:[#allocation104_spill] sm:$0xff] %v23219_v35 }
 0x4b4   : > { %v23221_v15 = vpop.f32.mrf.mxu0 }
 0x4b5   : > { %26375 = vst [vmem:[#allocation105_spill] sm:$0xff] %v23221_v15  ;;  %v7233_v15 = vadd.f32 %v22976_v3, %v23137_v42 }
 0x4b6   : > { %v23225_v11 = vpop.f32.mrf.mxu0  ;;  %15932 = vmatmul.mubr.msk.bf16.gmra.mxu0 %vm3854_vm1, %v17138_v57  ;;  %v26378_v57 = vld [vmem:[#allocation7_spill] sm:$0xff] }
 0x4b7   : > { %26376 = vst [vmem:[#allocation57_spill] sm:$0xff] %v23225_v11  ;;  %15935 = vmatprep.mubr.msk.bf16.mxu0 %vm3854_vm1, %v17139_v22  ;;  %v9974_v11 = vmax.f32 %v7230_v28, 0.0  ;;  %v23241_v46 = vadd.f32 %v22976_v3, %v26378_v57  ;;  %v17140_v22 = vld [vmem:[%s17242_s29 + $0x918] sm:$0xff]   ;;  %v9975_v57 = vmax.f32 %v7233_v15, 0.0 }
 0x4b8   : > { %v15837_v30 = vpop.f32.mrf.mxu0 }
 0x4b9   : > { %v7358_v48 = vadd.f32 %v22976_v3, %v15837_v30 }
 0x4ba   : > { %v7349_v35 = vpop.f32.mrf.mxu0 }
 0x4bb   : > { %v10006_v43 = vmax.f32 %v7358_v48, 0.0  ;;  %v7350_v6 = vadd.f32 %v22976_v3, %v7349_v35  ;;  %v17141_v48 = vld [vmem:[%s17242_s29 + $0x920] sm:$0xff]   ;;  %v23250_v35 = vadd.f32 %v22976_v3, %v26379_v34  ;;  %v9973_v34 = vmax.f32 %v7225_v0, 0.0 }
 0x4bc   : > { %v15838_v30 = vpop.f32.mrf.mxu0  ;;  %v10453_v0 = vmax.f32 %v9145_v44, 0.0  ;;  %v17142_v44 = vld [vmem:[%s17242_s29 + $0x928] sm:$0xff]  }
 0x4bd   : > { %v10902_v25 = vmax.f32 %v9974_v11, %v10006_v43  ;;  %v10004_v42 = vmax.f32 %v7350_v6, 0.0  ;;  %v7361_v28 = vadd.f32 %v22976_v3, %v15838_v30  ;;  %v10421_v6 = vmax.f32 %v9017_v56, 0.0  ;;  %v26381_v30 = vld [vmem:[#allocation134_spill] sm:$0xff] }
 0x4be   : > { %v7352_v12 = vpop.f32.mrf.mxu0  ;;  %v23260_v9 = vadd.f32 %v22976_v3, %v26381_v30  ;;  %15936 = vmatmul.mubr.msk.bf16.gmra.mxu0 %vm3854_vm1, %v17140_v22  ;;  %v10425_v56 = vmax.f32 %v23241_v46, 0.0 }
 0x4bf   : > { %v11158_v8 = vmax.f32 %v22947_v29, %v10902_v25  ;;  %v10900_v60 = vmax.f32 %v9972_v58, %v10004_v42  ;;  %v10007_v43 = vmax.f32 %v7361_v28, 0.0  ;;  %v7353_v11 = vadd.f32 %v22976_v3, %v7352_v12  ;;  %15939 = vmatprep.mubr.msk.bf16.mxu0 %vm3854_vm1, %v17141_v48 }
 0x4c0   : > { %v15841_v15 = vpop.f32.mrf.mxu0  ;;  %v10429_v25 = vmax.f32 %v23250_v35, 0.0  ;;  %v9978_v42 = vmax.f32 %v7246_v50, 0.0  ;;  %v7249_v48 = vadd.f32 %v22976_v3, %v23149_v31  ;;  %v7262_v31 = vadd.f32 %v22976_v3, %v23155_v53 }
 0x4c1   : > { %v11156_v18 = vmax.f32 %v22953_v7, %v10900_v60  ;;  %v10903_v23 = vmax.f32 %v9975_v57, %v10007_v43  ;;  %v10005_v29 = vmax.f32 %v7353_v11, 0.0  ;;  %v7374_v58 = vadd.f32 %v22976_v3, %v15841_v15 }
 0x4c2   : > { %v7365_v47 = vpop.f32.mrf.mxu0  ;;  %v10433_v57 = vmax.f32 %v23260_v9, 0.0  ;;  %v9976_v60 = vmax.f32 %v7238_v49, 0.0  ;;  %v7241_v43 = vadd.f32 %v22976_v3, %v23153_v20  ;;  %v23282_v15 = vmax.f32 %v10421_v6, %v10453_v0 }
 0x4c3   : > { %v11159_v28 = vmax.f32 %v22959_v26, %v10903_v23  ;;  %v10901_v22 = vmax.f32 %v9973_v34, %v10005_v29  ;;  %v10010_v12 = vmax.f32 %v7374_v58, 0.0  ;;  %v7366_v7 = vadd.f32 %v22976_v3, %v7365_v47  ;;  %v17143_v34 = vld [vmem:[%s17242_s29 + $0x930] sm:$0xff]  }
 0x4c4   : > { %v15842_v11 = vpop.f32.mrf.mxu0  ;;  %v26383_v29 = vld [vmem:[#allocation144_spill] sm:$0xff]  ;;  %v9979_v0 = vmax.f32 %v7249_v48, 0.0  ;;  %v9977_v53 = vmax.f32 %v7241_v43, 0.0  ;;  %v7281_v9 = vadd.f32 %v22976_v3, %v23173_v32 }
 0x4c5   : > { %v23278_v50 = vpack.c.bf16 %v11159_v28, %v11158_v8  ;;  %v11157_v30 = vmax.f32 %v22965_v51, %v10901_v22  ;;  %v10906_v26 = vmax.f32 %v9978_v42, %v10010_v12  ;;  %v10008_v23 = vmax.f32 %v7366_v7, 0.0  ;;  %v26385_v42 = vld [vmem:[#allocation40_spill] sm:$0xff] }
 0x4c6   : > { %v9161_v49 = vadd.f32 %v22976_v3, %v26383_v29  ;;  %v7377_v58 = vadd.f32 %v22976_v3, %v15842_v11  ;;  %v7368_v20 = vpop.f32.mrf.mxu0  ;;  %v9177_v6 = vadd.f32 %v22976_v3, %v26385_v42  ;;  %v7254_v22 = vadd.f32 %v22976_v3, %v23159_v24  ;;  %15940 = vmatmul.mubr.msk.bf16.gmra.mxu0 %vm3854_vm1, %v17142_v44 }
 0x4c7   : > { %26382 = vst [vmem:[#allocation118_spill] sm:$0xff] %v23278_v50  ;;  %v11162_v47 = vmax.f32 %v22971_v41, %v10906_v26  ;;  %v10904_v8 = vmax.f32 %v9976_v60, %v10008_v23  ;;  %v7369_v28 = vadd.f32 %v22976_v3, %v7368_v20  ;;  %v23291_v51 = vpack.c.bf16 %v11157_v30, %v11156_v18  ;;  %v26386_v30 = vld [vmem:[#allocation25_spill] sm:$0xff] }
 0x4c8   : > { %v10011_v12 = vmax.f32 %v7377_v58, 0.0  ;;  %v15845_v7 = vpop.f32.mrf.mxu0  ;;  %15943 = vmatprep.mubr.msk.bf16.mxu0 %vm3854_vm1, %v17143_v34  ;;  %v10457_v18 = vmax.f32 %v9161_v49, 0.0  ;;  %v9193_v48 = vadd.f32 %v22976_v3, %v26386_v30  ;;  %v7265_v24 = vadd.f32 %v22976_v3, %v23161_v38 }
 0x4c9   : > { %26384 = vst [vmem:[#allocation96_spill] sm:$0xff] %v23291_v51  ;;  %v11160_v11 = vmax.f32 %v22982_v1, %v10904_v8  ;;  %v10009_v41 = vmax.f32 %v7369_v28, 0.0  ;;  %v7390_v60 = vadd.f32 %v22976_v3, %v15845_v7  ;;  %v9982_v44 = vmax.f32 %v7262_v31, 0.0  ;;  %v17144_v28 = vld [vmem:[%s17242_s29 + $0x938] sm:$0xff]   ;;  %v17145_v31 = vld [vmem:[%s17242_s29 + $0x940] sm:$0xff]  }
 0x4ca   : > { %v10907_v26 = vmax.f32 %v9979_v0, %v10011_v12  ;;  %v7381_v23 = vpop.f32.mrf.mxu0  ;;  %v10461_v58 = vmax.f32 %v9177_v6, 0.0  ;;  %v9980_v20 = vmax.f32 %v7254_v22, 0.0  ;;  %v7257_v34 = vadd.f32 %v22976_v3, %v23165_v19 }
 0x4cb   : > { %v10905_v43 = vmax.f32 %v9977_v53, %v10009_v41  ;;  %v10014_v29 = vmax.f32 %v7390_v60, 0.0  ;;  %v7382_v1 = vadd.f32 %v22976_v3, %v7381_v23  ;;  %v10465_v7 = vmax.f32 %v9193_v48, 0.0 }
 0x4cc   : > { %v11163_v49 = vmax.f32 %v22988_v52, %v10907_v26  ;;  %v15846_v8 = vpop.f32.mrf.mxu0  ;;  %v9983_v53 = vmax.f32 %v7265_v24, 0.0  ;;  %v7278_v6 = vadd.f32 %v22976_v3, %v23167_v36  ;;  %v9981_v26 = vmax.f32 %v7257_v34, 0.0  ;;  %v26390_v34 = vld [vmem:[#allocation81_spill] sm:$0xff] }
 0x4cd   : > { %v11161_v42 = vmax.f32 %v22994_v13, %v10905_v43  ;;  %v10910_v38 = vmax.f32 %v9982_v44, %v10014_v29  ;;  %v10012_v0 = vmax.f32 %v7382_v1, 0.0  ;;  %v7393_v12 = vadd.f32 %v22976_v3, %v15846_v8 }
 0x4ce   : > { %v23315_v22 = vpack.c.bf16 %v11163_v49, %v11162_v47  ;;  %v7384_v41 = vpop.f32.mrf.mxu0  ;;  %v23321_v13 = vmax.f32 %v10425_v56, %v10457_v18  ;;  %v7270_v48 = vadd.f32 %v22976_v3, %v23171_v62  ;;  %15944 = vmatmul.mubr.msk.bf16.gmra.mxu0 %vm3854_vm1, %v17144_v28  ;;  %v23333_v46 = vmax.f32 %v10429_v25, %v10461_v58  ;;  %v26389_v56 = vld [vmem:[#allocation142_spill] sm:$0xff]  ;;  %v17146_v49 = vld [vmem:[%s17242_s29 + $0x948] sm:$0xff]  }
 0x4cf   : > { %v11166_v19 = vmax.f32 %v23000_v5, %v10910_v38  ;;  %v10908_v52 = vmax.f32 %v9980_v20, %v10012_v0  ;;  %v10015_v60 = vmax.f32 %v7393_v12, 0.0  ;;  %v7385_v30 = vadd.f32 %v22976_v3, %v7384_v41  ;;  %15947 = vmatprep.mubr.msk.bf16.mxu0 %vm3854_vm1, %v17145_v31  ;;  %v17147_v38 = vld [vmem:[%s17242_s29 + $0x950] sm:$0xff]  }
 0x4d0   : > { %26387 = vst [vmem:[#allocation119_spill] sm:$0xff] %v23315_v22  ;;  %v15849_v24 = vpop.f32.mrf.mxu0  ;;  %v23326_v36 = vpack.c.bf16 %v11161_v42, %v11160_v11  ;;  %v23337_v62 = vmax.f32 %v10433_v57, %v10465_v7  ;;  %v9273_v11 = vadd.f32 %v22976_v3, %v26389_v56  ;;  %v9986_v18 = vmax.f32 %v7278_v6, 0.0 }
 0x4d1   : > { %v11164_v47 = vmax.f32 %v23006_v39, %v10908_v52  ;;  %v10911_v5 = vmax.f32 %v9983_v53, %v10015_v60  ;;  %v10013_v23 = vmax.f32 %v7385_v30, 0.0  ;;  %v7406_v44 = vadd.f32 %v22976_v3, %v15849_v24 }
 0x4d2   : > { %26388 = vst [vmem:[#allocation139_spill] sm:$0xff] %v23326_v36  ;;  %v7397_v39 = vpop.f32.mrf.mxu0  ;;  %v23345_v35 = vadd.f32 %v22976_v3, %v26390_v34  ;;  %v9984_v25 = vmax.f32 %v7270_v48, 0.0  ;;  %v7273_v57 = vadd.f32 %v22976_v3, %v23177_v63  ;;  %v10485_v0 = vmax.f32 %v9273_v11, 0.0  ;;  %v26391_v48 = vld [vmem:[#allocation11_spill] sm:$0xff] }
 0x4d3   : > { %v11167_v43 = vmax.f32 %v23012_v17, %v10911_v5  ;;  %v10909_v29 = vmax.f32 %v9981_v26, %v10013_v23  ;;  %v10018_v1 = vmax.f32 %v7406_v44, 0.0  ;;  %v7398_v20 = vadd.f32 %v22976_v3, %v7397_v39 }
 0x4d4   : > { %v15850_v58 = vpop.f32.mrf.mxu0  ;;  %v9401_v12 = vadd.f32 %v22976_v3, %v22332_v14  ;;  %v7294_v31 = vadd.f32 %v22976_v3, %v23179_v45  ;;  %v7286_v52 = vadd.f32 %v22976_v3, %v23183_v27  ;;  %v9985_v45 = vmax.f32 %v7273_v57, 0.0 }
 0x4d5   : > { %v11369_v8 = vpack.c.bf16 %v11167_v43, %v11166_v19  ;;  %v11165_v17 = vmax.f32 %v23018_v55, %v10909_v29  ;;  %v10914_v28 = vmax.f32 %v9986_v18, %v10018_v1  ;;  %v10016_v42 = vmax.f32 %v7398_v20, 0.0  ;;  %v26392_v18 = vld [vmem:[#allocation108_spill] sm:$0xff]  ;;  %v17148_v20 = vld [vmem:[%s17242_s29 + $0x958] sm:$0xff]  }
 0x4d6   : > { %v7409_v32 = vadd.f32 %v22976_v3, %v15850_v58  ;;  %v7400_v7 = vpop.f32.mrf.mxu0  ;;  %v10489_v55 = vmax.f32 %v23345_v35, 0.0  ;;  %v9987_v19 = vmax.f32 %v7281_v9, 0.0  ;;  %15948 = vmatmul.mubr.msk.bf16.gmra.mxu0 %vm3854_vm1, %v17146_v49  ;;  %v23371_v24 = vadd.f32 %v22976_v3, %v26391_v48  ;;  %v17149_v58 = vld [vmem:[%s17242_s29 + $0x960] sm:$0xff]  }
 0x4d7   : > { %v11170_v63 = vmax.f32 %v23024_v37, %v10914_v28  ;;  %v10912_v53 = vmax.f32 %v9984_v25, %v10016_v42  ;;  %v7401_v6 = vadd.f32 %v22976_v3, %v7400_v7  ;;  %v11368_v41 = vpack.c.bf16 %v11165_v17, %v11164_v47  ;;  %15951 = vmatprep.mubr.msk.bf16.mxu0 %vm3854_vm1, %v17147_v38 }
 0x4d8   : > { %v10019_v60 = vmax.f32 %v7409_v32, 0.0  ;;  %v15853_v14 = vpop.f32.mrf.mxu0  ;;  %v10517_v27 = vmax.f32 %v9401_v12, 0.0  ;;  %v7297_v47 = vadd.f32 %v22976_v3, %v23185_v33  ;;  %v23379_v39 = vadd.f32 %v22976_v3, %v26392_v18  ;;  %v17151_v18 = vld [vmem:[%s17242_s29 + $0x970] sm:$0xff]  }
 0x4d9   : > { %v11168_v30 = vmax.f32 %v23030_v10, %v10912_v53  ;;  %v10017_v26 = vmax.f32 %v7401_v6, 0.0  ;;  %v7422_v37 = vadd.f32 %v22976_v3, %v15853_v14  ;;  %16405 = vmatprep.mubr.msk.bf16.mxu1 %vm11455_vm2, %v11368_v41  ;;  %v9990_v10 = vmax.f32 %v7294_v31, 0.0 }
 0x4da   : > { %v10915_v5 = vmax.f32 %v9987_v19, %v10019_v60  ;;  %v7413_v23 = vpop.f32.mrf.mxu0  ;;  %16406 = vmatmul.mubr.msk.bf16.gmra.mxu1 %vm11455_vm2, %v11369_v8  ;;  %v9988_v43 = vmax.f32 %v7286_v52, 0.0  ;;  %v7289_v29 = vadd.f32 %v22976_v3, %v23189_v61  ;;  %v23388_v49 = vmax.f32 %v10485_v0, %v10517_v27  ;;  %v26393_v52 = vld [vmem:[#allocation12_spill] sm:$0xff] }
 0x4db   : > { %v10913_v44 = vmax.f32 %v9985_v45, %v10017_v26  ;;  %v10022_v56 = vmax.f32 %v7422_v37, 0.0  ;;  %v7414_v11 = vadd.f32 %v22976_v3, %v7413_v23  ;;  %v9991_v8 = vmax.f32 %v7297_v47, 0.0  ;;  %v26394_v37 = vld [vmem:[#allocation163_spill] sm:$0xff] }
 0x4dc   : > { %v11171_v33 = vmax.f32 %v23036_v16, %v10915_v5  ;;  %v15854_v1 = vpop.f32.mrf.mxu0  ;;  %v7310_v17 = vadd.f32 %v22976_v3, %v23191_v59  ;;  %v9989_v31 = vmax.f32 %v7289_v29, 0.0  ;;  %v7302_v0 = vadd.f32 %v22976_v3, %v23195_v54  ;;  %v17150_v5 = vld [vmem:[%s17242_s29 + $0x968] sm:$0xff]   ;;  %v26399_v29 = vld [vmem:[#allocation112_spill] sm:$0xff] }
 0x4dd   : > { %v11169_v34 = vmax.f32 %v23042_v40, %v10913_v44  ;;  %v10918_v25 = vmax.f32 %v9990_v10, %v10022_v56  ;;  %v10020_v9 = vmax.f32 %v7414_v11, 0.0  ;;  %v7425_v57 = vadd.f32 %v22976_v3, %v15854_v1  ;;  %v26397_v10 = vld [vmem:[#allocation39_spill] sm:$0xff]  ;;  %v26400_v1 = vld [vmem:[#allocation89_spill] sm:$0xff] }
 0x4de   : > { %v11371_v28 = vpack.c.bf16 %v11171_v33, %v11170_v63  ;;  %v7416_v42 = vpop.f32.mrf.mxu0  ;;  %v9433_v40 = vadd.f32 %v22976_v3, %v22443_v2  ;;  %15952 = vmatmul.mubr.msk.bf16.gmra.mxu0 %vm3854_vm1, %v17148_v20  ;;  %v10493_v6 = vmax.f32 %v23371_v24, 0.0  ;;  %v10497_v2 = vmax.f32 %v23379_v39, 0.0  ;;  %v26395_v24 = vld [vmem:[#allocation167_spill] sm:$0xff] }
 0x4df   : > { %v11174_v61 = vmax.f32 %v23048_v4, %v10918_v25  ;;  %v10916_v16 = vmax.f32 %v9988_v43, %v10020_v9  ;;  %v10023_v38 = vmax.f32 %v7425_v57, 0.0  ;;  %v7417_v12 = vadd.f32 %v22976_v3, %v7416_v42  ;;  %15955 = vmatprep.mubr.msk.bf16.mxu0 %vm3854_vm1, %v17149_v58  ;;  %v26398_v39 = vld [vmem:[#allocation179_spill] sm:$0xff]  ;;  %v26401_v9 = vld [vmem:[#allocation50_spill] sm:$0xff] }
 0x4e0   : > { %v15857_v32 = vpop.f32.mrf.mxu0  ;;  %v11370_v7 = vpack.c.bf16 %v11169_v34, %v11168_v30  ;;  %v11285_v54 = vmax.f32 %v23282_v15, %v23388_v49  ;;  %v9994_v41 = vmax.f32 %v7310_v17, 0.0  ;;  %v10525_v30 = vmax.f32 %v9433_v40, 0.0  ;;  %v26427_v15 = vld [vmem:[#allocation68_spill] sm:$0xff] }
 0x4e1   : > { %v11172_v59 = vmax.f32 %v23054_v21, %v10916_v16  ;;  %v10919_v63 = vmax.f32 %v9991_v8, %v10023_v38  ;;  %v10021_v53 = vmax.f32 %v7417_v12, 0.0  ;;  %v7438_v4 = vadd.f32 %v22976_v3, %v15857_v32 }
 0x4e2   : > { %16409 = vmatprep.mubr.msk.bf16.mxu1 %vm11455_vm2, %v11370_v7  ;;  %v7429_v19 = vpop.f32.mrf.mxu0  ;;  %v9992_v26 = vmax.f32 %v7302_v0, 0.0  ;;  %v7313_v48 = vadd.f32 %v22976_v3, %v26394_v37  ;;  %v7305_v27 = vadd.f32 %v22976_v3, %v26395_v24  ;;  %v9417_v43 = vadd.f32 %v22976_v3, %v26398_v39  ;;  %v26407_v37 = vld [vmem:[#allocation175_spill] sm:$0xff] }
 0x4e3   : > { %v11175_v21 = vmax.f32 %v26393_v52, %v10919_v63  ;;  %v10917_v60 = vmax.f32 %v9989_v31, %v10021_v53  ;;  %v10026_v14 = vmax.f32 %v7438_v4, 0.0  ;;  %v7430_v45 = vadd.f32 %v22976_v3, %v7429_v19  ;;  %16410 = vmatmul.mubr.msk.bf16.gmra.mxu1 %vm11455_vm2, %v11371_v28  ;;  %v26404_v31 = vld [vmem:[#allocation174_spill] sm:$0xff]  ;;  %v26405_v53 = vld [vmem:[#allocation137_spill] sm:$0xff] }
 0x4e4   : > { %v15858_v47 = vpop.f32.mrf.mxu0  ;;  %v9449_v33 = vadd.f32 %v22976_v3, %v26399_v29  ;;  %v7326_v20 = vadd.f32 %v22976_v3, %v26400_v1  ;;  %v11037_v28 = vmax.f32 %v10493_v6, %v10525_v30  ;;  %v9995_v42 = vmax.f32 %v7313_v48, 0.0  ;;  %v26406_v30 = vld [vmem:[#allocation170_spill] sm:$0xff] }
 0x4e5   : > { %v23415_v23 = vpack.c.bf16 %v11175_v21, %v11174_v61  ;;  %v11173_v44 = vmax.f32 %v26397_v10, %v10917_v60  ;;  %v10922_v56 = vmax.f32 %v9994_v41, %v10026_v14  ;;  %v10024_v11 = vmax.f32 %v7430_v45, 0.0  ;;  %v26403_v61 = vld [vmem:[#allocation136_spill] sm:$0xff]  ;;  %v26411_v1 = vld [vmem:[#allocation66_spill] sm:$0xff] }
 0x4e6   : > { %v7441_v34 = vadd.f32 %v22976_v3, %v15858_v47  ;;  %v7432_v25 = vpop.f32.mrf.mxu0  ;;  %v7318_v16 = vadd.f32 %v22976_v3, %v26403_v61  ;;  %15956 = vmatmul.mubr.msk.bf16.gmra.mxu0 %vm3854_vm1, %v17150_v5  ;;  %v9993_v40 = vmax.f32 %v7305_v27, 0.0  ;;  %v10529_v63 = vmax.f32 %v9449_v33, 0.0  ;;  %v17152_v27 = vld [vmem:[%s17242_s29 + $0x978] sm:$0xff]   ;;  %v26408_v47 = vld [vmem:[#allocation160_spill] sm:$0xff] }
 0x4e7   : > { %26396 = vst [vmem:[#allocation100_spill] sm:$0xff] %v23415_v23  ;;  %v11178_v57 = vmax.f32 %v26401_v9, %v10922_v56  ;;  %v10920_v58 = vmax.f32 %v9992_v26, %v10024_v11  ;;  %v7433_v8 = vadd.f32 %v22976_v3, %v7432_v25  ;;  %v23428_v17 = vpack.c.bf16 %v11173_v44, %v11172_v59  ;;  %v17153_v11 = vld [vmem:[%s17242_s29 + $0x980] sm:$0xff]  }
 0x4e8   : > { %v10027_v38 = vmax.f32 %v7441_v34, 0.0  ;;  %v15861_v12 = vpop.f32.mrf.mxu0  ;;  %15959 = vmatprep.mubr.msk.bf16.mxu0 %vm3854_vm1, %v17151_v18  ;;  %v10521_v59 = vmax.f32 %v9417_v43, 0.0  ;;  %v7329_v4 = vadd.f32 %v22976_v3, %v26405_v53  ;;  %v9998_v19 = vmax.f32 %v7326_v20, 0.0  ;;  %v26409_v43 = vld [vmem:[#allocation78_spill] sm:$0xff] }
 0x4e9   : > { %26402 = vst [vmem:[#allocation20_spill] sm:$0xff] %v23428_v17  ;;  %v11176_v0 = vmax.f32 %v26404_v31, %v10920_v58  ;;  %v10025_v32 = vmax.f32 %v7433_v8, 0.0  ;;  %v7454_v7 = vadd.f32 %v22976_v3, %v15861_v12  ;;  %v11293_v14 = vmax.f32 %v23333_v46, %v11037_v28  ;;  %v23455_v9 = vld [vmem:[%s24956_s2] ss:$0 sm:$0xff]  ;;  %v26418_v12 = vld [vmem:[#allocation161_spill] sm:$0xff] }
 0x4ea   : > { %v10923_v6 = vmax.f32 %v9995_v42, %v10027_v38  ;;  %v7445_v41 = vpop.f32.mrf.mxu0  ;;  %v9996_v45 = vmax.f32 %v7318_v16, 0.0  ;;  %v7321_v26 = vadd.f32 %v22976_v3, %v26406_v30  ;;  %v11041_v18 = vmax.f32 %v10497_v2, %v10529_v63  ;;  %v26412_v2 = vld [vmem:[#allocation104_spill] sm:$0xff]  ;;  %v26425_v30 = vld [vmem:[#allocation57_spill] sm:$0xff] }
 0x4eb   : > { %v10921_v52 = vmax.f32 %v9993_v40, %v10025_v32  ;;  %v10030_v21 = vmax.f32 %v7454_v7, 0.0  ;;  %v7446_v60 = vadd.f32 %v22976_v3, %v7445_v41  ;;  %v9999_v39 = vmax.f32 %v7329_v4, 0.0  ;;  %v26419_v41 = vld [vmem:[#allocation110_spill] sm:$0xff] }
 0x4ec   : > { %v11179_v48 = vmax.f32 %v26407_v37, %v10923_v6  ;;  %v15862_v24 = vpop.f32.mrf.mxu0  ;;  %v7342_v46 = vadd.f32 %v22976_v3, %v26409_v43  ;;  %v9997_v8 = vmax.f32 %v7321_v26, 0.0  ;;  %v7334_v28 = vadd.f32 %v23455_v9, %v26412_v2  ;;  %v26429_v43 = vld [vmem:[#allocation91_spill] sm:$0xff] }
 0x4ed   : > { %v11177_v5 = vmax.f32 %v26408_v47, %v10921_v52  ;;  %v10926_v10 = vmax.f32 %v9998_v19, %v10030_v21  ;;  %v10028_v44 = vmax.f32 %v7446_v60, 0.0  ;;  %v7457_v56 = vadd.f32 %v22976_v3, %v15862_v24  ;;  %v26413_v3 = vld [vmem:[#allocation62_spill] sm:$0xff]  ;;  %v17155_v47 = vld [vmem:[%s17242_s29 + $0x990] sm:$0xff]  }
 0x4ee   : > { %v23449_v29 = vpack.c.bf16 %v11179_v48, %v11178_v57  ;;  %v7448_v33 = vpop.f32.mrf.mxu0  ;;  %15960 = vmatmul.mubr.msk.bf16.gmra.mxu0 %vm3854_vm1, %v17152_v27  ;;  %v26414_v57 = vld [vmem:[#allocation143_spill] sm:$0xff]  ;;  %v11033_v63 = vmax.f32 %v10489_v55, %v10521_v59  ;;  %v11297_v53 = vmax.f32 %v23337_v62, %v11041_v18  ;;  %v10002_v4 = vmax.f32 %v7342_v46, 0.0  ;;  %v26423_v21 = vld [vmem:[#allocation54_spill] sm:$0xff]  ;;  %v26424_v59 = vld [vmem:[#allocation105_spill] sm:$0xff] }
 0x4ef   : > { %v11182_v20 = vmax.f32 %v26411_v1, %v10926_v10  ;;  %v10924_v34 = vmax.f32 %v9996_v45, %v10028_v44  ;;  %v10031_v25 = vmax.f32 %v7457_v56, 0.0  ;;  %v7449_v58 = vadd.f32 %v23455_v9, %v7448_v33  ;;  %15963 = vmatprep.mubr.msk.bf16.mxu0 %vm3854_vm1, %v17153_v11  ;;  %v17154_v48 = vld [vmem:[%s17242_s29 + $0x988] sm:$0xff]   ;;  %v26428_v56 = vld [vmem:[#allocation58_spill] sm:$0xff] }
 0x4f0   : > { %26410 = vst [vmem:[#allocation49_spill] sm:$0xff] %v23449_v29  ;;  %v15865_v42 = vpop.f32.mrf.mxu0  ;;  %v26415_v61 = vmax.f32 %v26413_v3, %v26414_v57  ;;  %v23466_v38 = vpack.c.bf16 %v11177_v5, %v11176_v0  ;;  %v26420_v0 = vld [vmem:[#allocation176_spill] sm:$0xff]  ;;  %v10000_v55 = vmax.f32 %v7334_v28, 0.0  ;;  %v7345_v62 = vadd.f32 %v23455_v9, %v26424_v59  ;;  %v26430_v46 = vld [vmem:[#allocation114_spill] sm:$0xff]  ;;  %v26435_v57 = vld [vmem:[#allocation145_spill] sm:$0xff] }
 0x4f1   : > { %v11180_v40 = vmax.f32 %v26418_v12, %v10924_v34  ;;  %v10927_v31 = vmax.f32 %v9999_v39, %v10031_v25  ;;  %v10029_v32 = vmax.f32 %v7449_v58, 0.0  ;;  %v7470_v7 = vadd.f32 %v23455_v9, %v15865_v42  ;;  %v26445_v59 = vld [vmem:[#allocation150_spill] sm:$0xff] }
 0x4f2   : > { %v23464_v16 = vpack.c.bf16 %v11293_v14, %v26415_v61  ;;  %26417 = vst [vmem:[#allocation140_spill] sm:$0xff] %v23466_v38  ;;  %v7461_v6 = vpop.f32.mrf.mxu0  ;;  %v26421_v19 = vmax.f32 %v26419_v41, %v26420_v0  ;;  %v7337_v26 = vadd.f32 %v23455_v9, %v26425_v30  ;;  %v11289_v5 = vmax.f32 %v23321_v13, %v11033_v63  ;;  %v26436_v61 = vld [vmem:[#allocation180_spill] sm:$0xff]  ;;  %v17157_v41 = vld [vmem:[%s17242_s29 + $0x9a0] sm:$0xff]  }
 0x4f3   : > { %v11183_v60 = vmax.f32 %v26423_v21, %v10927_v31  ;;  %v10925_v14 = vmax.f32 %v9997_v8, %v10029_v32  ;;  %v10034_v45 = vmax.f32 %v7470_v7, 0.0  ;;  %v7462_v35 = vadd.f32 %v23455_v9, %v7461_v6  ;;  %v26434_v8 = vld [vmem:[#allocation71_spill] sm:$0xff]  ;;  %v26446_v30 = vld [vmem:[#allocation36_spill] sm:$0xff] }
 0x4f4   : > { %26416 = vst [vmem:[#allocation52_spill] sm:$0xff] %v23464_v16  ;;  %v23480_v52 = vpack.c.bf16 %v11285_v54, %v26421_v19  ;;  %v15866_v37 = vpop.f32.mrf.mxu0  ;;  %v26431_v33 = vmax.f32 %v26429_v43, %v26430_v46  ;;  %v10001_v58 = vmax.f32 %v7337_v26, 0.0  ;;  %v26437_v12 = vmax.f32 %v26435_v57, %v26436_v61  ;;  %v26439_v7 = vld [vmem:[#allocation3_spill] sm:$0xff]  ;;  %v17161_v61 = vld [vmem:[%s17242_s29 + $0x9c0] sm:$0xff]  }
 0x4f5   : > { %v23489_v24 = vpack.c.bf16 %v11183_v60, %v11182_v20  ;;  %v11181_v49 = vmax.f32 %v26427_v15, %v10925_v14  ;;  %v10930_v54 = vmax.f32 %v10002_v4, %v10034_v45  ;;  %v10032_v27 = vmax.f32 %v7462_v35, 0.0  ;;  %v26440_v4 = vld [vmem:[#allocation29_spill] sm:$0xff]  ;;  %v26443_v14 = vld [vmem:[#allocation102_spill] sm:$0xff]  ;;  %v26444_v35 = vld [vmem:[#allocation8_spill] sm:$0xff] }
 0x4f6   : > { %26422 = vst [vmem:[#allocation141_spill] sm:$0xff] %v23480_v52  ;;  %v7473_v10 = vadd.f32 %v23455_v9, %v15866_v37  ;;  %v7464_v44 = vpop.f32.mrf.mxu0  ;;  %v23500_v1 = vpack.c.bf16 %v11297_v53, %v26431_v33  ;;  %v10003_v20 = vmax.f32 %v7345_v62, 0.0  ;;  %15964 = vmatmul.mubr.msk.bf16.gmra.mxu0 %vm3854_vm1, %v17154_v48  ;;  %v23514_v31 = vpack.c.bf16 %v11289_v5, %v26437_v12  ;;  %v17158_v15 = vld [vmem:[%s17242_s29 + $0x9a8] sm:$0xff]  }
 0x4f7   : > { %26426 = vst [vmem:[#allocation86_spill] sm:$0xff] %v23489_v24  ;;  %v11186_v11 = vmax.f32 %v26428_v56, %v10930_v54  ;;  %v10928_v18 = vmax.f32 %v10000_v55, %v10032_v27  ;;  %v7465_v39 = vadd.f32 %v23455_v9, %v7464_v44  ;;  %v23505_v13 = vpack.c.bf16 %v11181_v49, %v11180_v40  ;;  %v17156_v40 = vld [vmem:[%s17242_s29 + $0x998] sm:$0xff]   ;;  %v17159_v49 = vld [vmem:[%s17242_s29 + $0x9b0] sm:$0xff]   ;;  %v26447_v56 = vld [vmem:[#allocation135_spill] sm:$0xff] }
 0x4f8   : > { %26432 = vst [vmem:[#allocation85_spill] sm:$0xff] %v23500_v1  ;;  %v10035_v34 = vmax.f32 %v7473_v10, 0.0  ;;  %v23502_v25 = vpop.f32.mrf.mxu0  ;;  %15967 = vmatprep.mubr.msk.bf16.mxu0 %vm3854_vm1, %v17155_v47  ;;  %26438 = vst [vmem:[#allocation147_spill] sm:$0xff] %v23514_v31  ;;  %v9081_v45 = vadd.f32 %v23455_v9, %v26443_v14  ;;  %v9209_v55 = vadd.f32 %v23455_v9, %v26444_v35  ;;  %v26449_v46 = vld [vmem:[#allocation151_spill] sm:$0xff]  ;;  %v26452_v14 = vld [vmem:[#allocation21_spill] sm:$0xff] }
 0x4f9   : > { %26433 = vst [vmem:[#allocation87_spill] sm:$0xff] %v23505_v13  ;;  %v11184_v2 = vmax.f32 %v26434_v8, %v10928_v18  ;;  %v10033_v28 = vmax.f32 %v7465_v39, 0.0  ;;  %v9337_v62 = vadd.f32 %v23455_v9, %v26445_v59  ;;  %v9465_v26 = vadd.f32 %v23455_v9, %v26446_v30  ;;  %v26448_v18 = vld [vmem:[#allocation22_spill] sm:$0xff]  ;;  %v26453_v35 = vld [vmem:[#allocation157_spill] sm:$0xff] }
 0x4fa   : > { %v10931_v42 = vmax.f32 %v10003_v20, %v10035_v34  ;;  %v23509_v3 = vpop.f32.mrf.mxu0  ;;  %v10437_v54 = vmax.f32 %v9081_v45, 0.0  ;;  %v10469_v27 = vmax.f32 %v9209_v55, 0.0  ;;  %v9225_v39 = vadd.f32 %v23455_v9, %v26448_v18  ;;  %v26450_v34 = vld [vmem:[#allocation154_spill] sm:$0xff]  ;;  %v17163_v18 = vld [vmem:[%s17242_s29 + $0x9d0] sm:$0xff]  }
 0x4fb   : > { %v10929_v32 = vmax.f32 %v10001_v58, %v10033_v28  ;;  %v10501_v47 = vmax.f32 %v9337_v62, 0.0  ;;  %v10533_v5 = vmax.f32 %v9465_v26, 0.0  ;;  %v9353_v33 = vadd.f32 %v23455_v9, %v26449_v46  ;;  %v17160_v28 = vld [vmem:[%s17242_s29 + $0x9b8] sm:$0xff]   ;;  %v26454_v62 = vld [vmem:[#allocation31_spill] sm:$0xff] }
 0x4fc   : > { %v11187_v63 = vmax.f32 %v26439_v7, %v10931_v42  ;;  %v23517_v53 = vpop.f32.mrf.mxu0  ;;  %v10789_v43 = vmax.f32 %v10437_v54, %v10469_v27  ;;  %v9481_v58 = vadd.f32 %v23455_v9, %v26450_v34  ;;  %v10473_v57 = vmax.f32 %v9225_v39, 0.0  ;;  %v26459_v34 = vld [vmem:[#allocation48_spill] sm:$0xff] }
 0x4fd   : > { %v11185_v6 = vmax.f32 %v26440_v4, %v10929_v32  ;;  %v11045_v20 = vmax.f32 %v10501_v47, %v10533_v5  ;;  %v10505_v12 = vmax.f32 %v9353_v33, 0.0  ;;  %v26451_v4 = vld [vmem:[#allocation138_spill] sm:$0xff]  ;;  %v9241_v45 = vadd.f32 %v23455_v9, %v26452_v14  ;;  %v17162_v5 = vld [vmem:[%s17242_s29 + $0x9c8] sm:$0xff]  }
 0x4fe   : > { %v23522_v0 = vpack.c.bf16 %v11187_v63, %v11186_v11  ;;  %v23524_v19 = vpop.f32.mrf.mxu0  ;;  %15968 = vmatmul.mubr.msk.bf16.gmra.mxu0 %vm3854_vm1, %v17156_v40  ;;  %v9097_v11 = vadd.f32 %v23455_v9, %v26447_v56  ;;  %v10537_v7 = vmax.f32 %v9481_v58, 0.0  ;;  %v9369_v55 = vadd.f32 %v23455_v9, %v26453_v35  ;;  %v26463_v14 = vld [vmem:[#allocation19_spill] sm:$0xff] }
 0x4ff   : > { %v23526_v21 = vpack.c.bf16 %v11185_v6, %v11184_v2  ;;  %15971 = vmatprep.mubr.msk.bf16.mxu0 %vm3854_vm1, %v17157_v41  ;;  %v11301_v32 = vmax.f32 %v10789_v43, %v11045_v20  ;;  %v9113_v6 = vadd.f32 %v23455_v9, %v26451_v4  ;;  %v9497_v30 = vadd.f32 %v23455_v9, %v26454_v62  ;;  %v17164_v62 = vld [vmem:[%s17242_s29 + $0x9d8] sm:$0xff]  }
 0x500   : > { %26441 = vst [vmem:[#allocation51_spill] sm:$0xff] %v23522_v0  ;;  %v23528_v60 = vpop.f32.mrf.mxu0  ;;  %v10441_v42 = vmax.f32 %v9097_v11, 0.0  ;;  %v11049_v59 = vmax.f32 %v10505_v12, %v10537_v7  ;;  %v10477_v11 = vmax.f32 %v9241_v45, 0.0  ;;  %v10509_v39 = vmax.f32 %v9369_v55, 0.0  ;;  %v26461_v12 = vld [vmem:[#allocation173_spill] sm:$0xff]  ;;  %v17169_v55 = vld [vmem:[%s24957_s3] sm:$0xff]  }
 0x501   : > { %26442 = vst [vmem:[#allocation116_spill] sm:$0xff] %v23526_v21  ;;  %v10445_v56 = vmax.f32 %v9113_v6, 0.0  ;;  %v10541_v46 = vmax.f32 %v9497_v30, 0.0  ;;  %v9129_v58 = vadd.f32 %v23455_v9, %v26459_v34  ;;  %16445 = vmatprep.subr.bf16.mxu1 %v17169_v55  ;;  %v26466_v34 = vld [vmem:[#allocation34_spill] sm:$0xff] }
 0x502   : > { %v23540_v37 = vpop.f32.mrf.mxu0  ;;  %v10793_v41 = vmax.f32 %v10441_v42, %v10473_v57  ;;  %v26460_v42 = vld [vmem:[#allocation106_spill] sm:$0xff]  ;;  %16446 = vmatpush3.bf16.msra.mxu1 %v17169_v55 }
 0x503   : > { %v9257_v57 = vadd.f32 %v23455_v9, %v26460_v42  ;;  %v11053_v7 = vmax.f32 %v10509_v39, %v10541_v46  ;;  %v10449_v30 = vmax.f32 %v9129_v58, 0.0  ;;  %v26467_v58 = vld [vmem:[#allocation155_spill] sm:$0xff] }
 0x504   : > { %v23542_v48 = vpop.f32.mrf.mxu0  ;;  %v11305_v43 = vmax.f32 %v10793_v41, %v11049_v59  ;;  %v26462_v41 = vld [vmem:[#allocation15_spill] sm:$0xff]  ;;  %v26468_v42 = vmax.f32 %v26466_v34, %v26467_v58  ;;  %v7478_v34 = vadd.f32 %v23455_v9, %v23509_v3 }
 0x505   : > { %v26464_v45 = vmax.f32 %v26462_v41, %v26463_v14  ;;  %v26470_v14 = vld [vmem:[#allocation10_spill] sm:$0xff] }
 0x506   : > { %v23546_v10 = vpop.f32.mrf.mxu0  ;;  %15972 = vmatmul.mubr.msk.bf16.gmra.mxu0 %vm3854_vm1, %v17158_v15  ;;  %v26455_v15 = vld [vmem:[#allocation64_spill] sm:$0xff] }
 0x507   : > { %15975 = vmatprep.mubr.msk.bf16.mxu0 %vm3854_vm1, %v17159_v49  ;;  %v26456_v49 = vld [vmem:[#allocation61_spill] sm:$0xff]  ;;  %v23609_v35 = vpack.c.bf16 %v11305_v43, %v26464_v45  ;;  %v26471_v45 = vld [vmem:[#allocation156_spill] sm:$0xff] }
 0x508   : > { %v23548_v44 = vpop.f32.mrf.mxu0  ;;  %v26457_v54 = vmax.f32 %v26455_v15, %v26456_v49  ;;  %v17165_v15 = vld [vmem:[%s17242_s29 + $0x9e0] sm:$0xff]   ;;  %v10481_v49 = vmax.f32 %v9257_v57, 0.0  ;;  %v26472_v55 = vmax.f32 %v26470_v14, %v26471_v45 }
 0x509   : > { %26465 = vst [vmem:[#allocation14_spill] sm:$0xff] %v23609_v35 }
 0x50a   : > { %v23560_v8 = vpop.f32.mrf.mxu0  ;;  %v23585_v27 = vpack.c.bf16 %v11301_v32, %v26457_v54  ;;  %v9385_v32 = vadd.f32 %v23455_v9, %v26461_v12  ;;  %v10801_v39 = vmax.f32 %v10449_v30, %v10481_v49  ;;  %v17167_v12 = vld [vmem:[%s17242_s29 + $0x9f0] sm:$0xff]  }
 0x50c   : > { %v23562_v2 = vpop.f32.mrf.mxu0  ;;  %26458 = vst [vmem:[#allocation88_spill] sm:$0xff] %v23585_v27  ;;  %v10513_v54 = vmax.f32 %v9385_v32, 0.0 }
 0x50e   : > { %v23566_v63 = vpop.f32.mrf.mxu0  ;;  %15976 = vmatmul.mubr.msk.bf16.gmra.mxu0 %vm3854_vm1, %v17160_v28  ;;  %v10797_v28 = vmax.f32 %v10445_v56, %v10477_v11 }
 0x50f   : > { %15979 = vmatprep.mubr.msk.bf16.mxu0 %vm3854_vm1, %v17161_v61  ;;  %v9512_v61 = vpop.f32.mrf.mxu1 }
 0x510   : > { %v23568_v40 = vpop.f32.mrf.mxu0  ;;  %v9513_v4 = vadd.f32 %v23455_v9, %v9512_v61  ;;  %v17166_v61 = vld [vmem:[%s17242_s29 + $0x9e8] sm:$0xff]  }
 0x512   : > { %v23580_v26 = vpop.f32.mrf.mxu0  ;;  %v10545_v56 = vmax.f32 %v9513_v4, 0.0 }
 0x514   : > { %v23587_v47 = vpop.f32.mrf.mxu0  ;;  %v11057_v43 = vmax.f32 %v10513_v54, %v10545_v56 }
 0x516   : > { %v23591_v33 = vpop.f32.mrf.mxu0  ;;  %15980 = vmatmul.mubr.msk.bf16.gmra.mxu0 %vm3854_vm1, %v17162_v5  ;;  %v11309_v5 = vmax.f32 %v10797_v28, %v11053_v7  ;;  %v11313_v32 = vmax.f32 %v10801_v39, %v11057_v43  ;;  %v7486_v43 = vadd.f32 %v23455_v9, %v23502_v25 }
 0x517   : > { %15983 = vmatprep.mubr.msk.bf16.mxu0 %vm3854_vm1, %v17163_v18 }
 0x518   : > { %v23593_v20 = vpop.f32.mrf.mxu0  ;;  %v23629_v57 = vpack.c.bf16 %v11309_v5, %v26468_v42 }
 0x51a   : > { %v23604_v6 = vpop.f32.mrf.mxu0  ;;  %26469 = vst [vmem:[#allocation84_spill] sm:$0xff] %v23629_v57 }
 0x51c   : > { %v23614_v59 = vpop.f32.mrf.mxu0 }
 0x51e   : > { %v23618_v11 = vpop.f32.mrf.mxu0  ;;  %15984 = vmatmul.mubr.msk.bf16.gmra.mxu0 %vm3854_vm1, %v17164_v62  ;;  %v23646_v62 = vpack.c.bf16 %v11313_v32, %v26472_v55  ;;  %v7489_v32 = vadd.f32 %v23455_v9, %v23517_v53  ;;  %v10036_v55 = vmax.f32 %v7478_v34, 0.0  ;;  %v7494_v34 = vadd.f32 %v23455_v9, %v23540_v37 }
 0x51f   : > { %15987 = vmatprep.mubr.msk.bf16.mxu0 %vm3854_vm1, %v17165_v15  ;;  %v17168_v15 = vld [vmem:[%s17242_s29 + $0x9f8] sm:$0xff]   ;;  %v7497_v37 = vadd.f32 %v23455_v9, %v23546_v10 }
 0x520   : > { %v23620_v18 = vpop.f32.mrf.mxu0  ;;  %26473 = vst [vmem:[#allocation53_spill] sm:$0xff] %v23646_v62  ;;  %v7481_v62 = vadd.f32 %v23455_v9, %v23524_v19  ;;  %v10039_v0 = vmax.f32 %v7489_v32, 0.0 }
 0x521   : > { %v10041_v10 = vmax.f32 %v7497_v37, 0.0 }
 0x522   : > { %v23624_v46 = vpop.f32.mrf.mxu0  ;;  %v10037_v19 = vmax.f32 %v7481_v62, 0.0 }
 0x524   : > { %v23631_v28 = vpop.f32.mrf.mxu0 }
 0x526   : > { %v23635_v7 = vpop.f32.mrf.mxu0  ;;  %15988 = vmatmul.mubr.msk.bf16.gmra.mxu0 %vm3854_vm1, %v17166_v61 }
 0x527   : > { %15991 = vmatprep.mubr.msk.bf16.mxu0 %vm3854_vm1, %v17167_v12  ;;  %v10038_v12 = vmax.f32 %v7486_v43, 0.0 }
 0x528   : > { %v23637_v4 = vpop.f32.mrf.mxu0 }
 0x52a   : > { %v23641_v41 = vpop.f32.mrf.mxu0 }
 0x52c   : > { %v23648_v30 = vpop.f32.mrf.mxu0 }
 0x52e   : > { %v23651_v49 = vpop.f32.mrf.mxu0  ;;  %15992 = vmatmul.mubr.msk.bf16.gmra.mxu0 %vm3854_vm1, %v17168_v15 }
 0x530   : > { %v23653_v54 = vpop.f32.mrf.mxu0 }
 0x532   : > { %v23656_v5 = vpop.f32.mrf.mxu0 }
 0x534   : > { %v23658_v56 = vpop.f32.mrf.mxu0 }
 0x536   : > { %v23660_v39 = vpop.f32.mrf.mxu0 }
 0x538   : > { %v15901_v58 = vpop.f32.mrf.mxu0 }
 0x539   : > { %v7614_v42 = vadd.f32 %v23455_v9, %v15901_v58  ;;  %v7502_v58 = vadd.f32 %v23455_v9, %v23528_v60  ;;  %v7505_v60 = vadd.f32 %v23455_v9, %v23542_v48 }
 0x53a   : > { %v7605_v61 = vpop.f32.mrf.mxu0 }
 0x53b   : > { %v10070_v14 = vmax.f32 %v7614_v42, 0.0  ;;  %v7606_v45 = vadd.f32 %v23455_v9, %v7605_v61  ;;  %v10043_v48 = vmax.f32 %v7505_v60, 0.0 }
 0x53c   : > { %v15902_v15 = vpop.f32.mrf.mxu0 }
 0x53d   : > { %v23672_v25 = vmax.f32 %v10038_v12, %v10070_v14  ;;  %v10068_v57 = vmax.f32 %v7606_v45, 0.0  ;;  %v7617_v3 = vadd.f32 %v23455_v9, %v15902_v15  ;;  %v10042_v15 = vmax.f32 %v7502_v58, 0.0 }
 0x53e   : > { %v7608_v43 = vpop.f32.mrf.mxu0  ;;  %v7518_v58 = vadd.f32 %v23455_v9, %v23548_v44  ;;  %v7521_v44 = vadd.f32 %v23455_v9, %v23562_v2 }
 0x53f   : > { %v23677_v21 = vmax.f32 %v10036_v55, %v10068_v57  ;;  %v10071_v53 = vmax.f32 %v7617_v3, 0.0  ;;  %v7609_v42 = vadd.f32 %v23455_v9, %v7608_v43  ;;  %v10040_v3 = vmax.f32 %v7494_v34, 0.0 }
 0x540   : > { %v15905_v61 = vpop.f32.mrf.mxu0  ;;  %v7510_v34 = vadd.f32 %v23455_v9, %v23560_v8  ;;  %v7513_v8 = vadd.f32 %v23455_v9, %v23566_v63  ;;  %v10047_v2 = vmax.f32 %v7521_v44, 0.0 }
 0x541   : > { %v23682_v12 = vmax.f32 %v10039_v0, %v10071_v53  ;;  %v10069_v14 = vmax.f32 %v7609_v42, 0.0  ;;  %v7630_v45 = vadd.f32 %v23455_v9, %v15905_v61 }
 0x542   : > { %v7621_v24 = vpop.f32.mrf.mxu0  ;;  %v10045_v63 = vmax.f32 %v7513_v8, 0.0 }
 0x543   : > { %v23687_v57 = vmax.f32 %v10037_v19, %v10069_v14  ;;  %v10074_v32 = vmax.f32 %v7630_v45, 0.0  ;;  %v7622_v55 = vadd.f32 %v23455_v9, %v7621_v24 }
 0x544   : > { %v15906_v43 = vpop.f32.mrf.mxu0 }
 0x545   : > { %v23692_v0 = vmax.f32 %v10042_v15, %v10074_v32  ;;  %v10072_v62 = vmax.f32 %v7622_v55, 0.0  ;;  %v7633_v53 = vadd.f32 %v23455_v9, %v15906_v43  ;;  %v10046_v55 = vmax.f32 %v7518_v58, 0.0 }
 0x546   : > { %v7624_v42 = vpop.f32.mrf.mxu0  ;;  %v7534_v58 = vadd.f32 %v23455_v9, %v23568_v40  ;;  %v7537_v40 = vadd.f32 %v23455_v9, %v23587_v47 }
 0x547   : > { %v23697_v61 = vmax.f32 %v10040_v3, %v10072_v62  ;;  %v10075_v19 = vmax.f32 %v7633_v53, 0.0  ;;  %v7625_v24 = vadd.f32 %v23455_v9, %v7624_v42  ;;  %v10044_v53 = vmax.f32 %v7510_v34, 0.0 }
 0x548   : > { %v15909_v14 = vpop.f32.mrf.mxu0  ;;  %v7526_v34 = vadd.f32 %v23455_v9, %v23580_v26  ;;  %v7529_v26 = vadd.f32 %v23455_v9, %v23591_v33  ;;  %v10051_v47 = vmax.f32 %v7537_v40, 0.0 }
 0x549   : > { %v23702_v45 = vmax.f32 %v10043_v48, %v10075_v19  ;;  %v10073_v15 = vmax.f32 %v7625_v24, 0.0  ;;  %v7646_v32 = vadd.f32 %v23455_v9, %v15909_v14 }
 0x54a   : > { %v7637_v43 = vpop.f32.mrf.mxu0  ;;  %v10049_v33 = vmax.f32 %v7529_v26, 0.0 }
 0x54b   : > { %v23707_v60 = vmax.f32 %v10041_v10, %v10073_v15  ;;  %v10078_v3 = vmax.f32 %v7646_v32, 0.0  ;;  %v7638_v62 = vadd.f32 %v23455_v9, %v7637_v43 }
 0x54c   : > { %v15910_v42 = vpop.f32.mrf.mxu0 }
 0x54d   : > { %v23712_v37 = vmax.f32 %v10046_v55, %v10078_v3  ;;  %v10076_v48 = vmax.f32 %v7638_v62, 0.0  ;;  %v7649_v19 = vadd.f32 %v23455_v9, %v15910_v42  ;;  %v10050_v62 = vmax.f32 %v7534_v58, 0.0 }
 0x54e   : > { %v7640_v24 = vpop.f32.mrf.mxu0  ;;  %v7550_v58 = vadd.f32 %v23455_v9, %v23593_v20  ;;  %v7553_v20 = vadd.f32 %v23455_v9, %v23614_v59 }
 0x54f   : > { %v23717_v14 = vmax.f32 %v10044_v53, %v10076_v48  ;;  %v10079_v10 = vmax.f32 %v7649_v19, 0.0  ;;  %v7641_v15 = vadd.f32 %v23455_v9, %v7640_v24  ;;  %v10048_v19 = vmax.f32 %v7526_v34, 0.0 }
 0x550   : > { %v15913_v32 = vpop.f32.mrf.mxu0  ;;  %v7542_v34 = vadd.f32 %v23455_v9, %v23604_v6  ;;  %v7545_v6 = vadd.f32 %v23455_v9, %v23618_v11  ;;  %v10055_v59 = vmax.f32 %v7553_v20, 0.0 }
 0x551   : > { %v23722_v55 = vmax.f32 %v10047_v2, %v10079_v10  ;;  %v10077_v43 = vmax.f32 %v7641_v15, 0.0  ;;  %v7662_v3 = vadd.f32 %v23455_v9, %v15913_v32 }
 0x552   : > { %v7653_v42 = vpop.f32.mrf.mxu0  ;;  %v10053_v11 = vmax.f32 %v7545_v6, 0.0 }
 0x553   : > { %v23727_v44 = vmax.f32 %v10045_v63, %v10077_v43  ;;  %v10082_v53 = vmax.f32 %v7662_v3, 0.0  ;;  %v7654_v48 = vadd.f32 %v23455_v9, %v7653_v42 }
 0x554   : > { %v15914_v24 = vpop.f32.mrf.mxu0 }
 0x555   : > { %v23732_v8 = vmax.f32 %v10050_v62, %v10082_v53  ;;  %v10080_v2 = vmax.f32 %v7654_v48, 0.0  ;;  %v7665_v10 = vadd.f32 %v23455_v9, %v15914_v24  ;;  %v10054_v48 = vmax.f32 %v7550_v58, 0.0 }
 0x556   : > { %v7656_v15 = vpop.f32.mrf.mxu0  ;;  %v7566_v58 = vadd.f32 %v23455_v9, %v23620_v18  ;;  %v7569_v18 = vadd.f32 %v23455_v9, %v23631_v28 }
 0x557   : > { %v23737_v32 = vmax.f32 %v10048_v19, %v10080_v2  ;;  %v10083_v63 = vmax.f32 %v7665_v10, 0.0  ;;  %v7657_v43 = vadd.f32 %v23455_v9, %v7656_v15  ;;  %v10052_v10 = vmax.f32 %v7542_v34, 0.0 }
 0x558   : > { %v15917_v3 = vpop.f32.mrf.mxu0  ;;  %v7558_v34 = vadd.f32 %v23455_v9, %v23624_v46  ;;  %v7561_v46 = vadd.f32 %v23455_v9, %v23635_v7  ;;  %v10059_v28 = vmax.f32 %v7569_v18, 0.0 }
 0x559   : > { %v23742_v62 = vmax.f32 %v10051_v47, %v10083_v63  ;;  %v10081_v42 = vmax.f32 %v7657_v43, 0.0  ;;  %v7678_v53 = vadd.f32 %v23455_v9, %v15917_v3 }
 0x55a   : > { %v7669_v24 = vpop.f32.mrf.mxu0  ;;  %v10057_v7 = vmax.f32 %v7561_v46, 0.0 }
 0x55b   : > { %v23747_v40 = vmax.f32 %v10049_v33, %v10081_v42  ;;  %v10086_v19 = vmax.f32 %v7678_v53, 0.0  ;;  %v7670_v2 = vadd.f32 %v23455_v9, %v7669_v24 }
 0x55c   : > { %v15918_v15 = vpop.f32.mrf.mxu0 }
 0x55d   : > { %v23752_v26 = vmax.f32 %v10054_v48, %v10086_v19  ;;  %v10084_v47 = vmax.f32 %v7670_v2, 0.0  ;;  %v7681_v63 = vadd.f32 %v23455_v9, %v15918_v15  ;;  %v10058_v2 = vmax.f32 %v7566_v58, 0.0 }
 0x55e   : > { %v7672_v43 = vpop.f32.mrf.mxu0  ;;  %v7582_v58 = vadd.f32 %v23455_v9, %v23637_v4  ;;  %v7585_v4 = vadd.f32 %v23455_v9, %v23648_v30 }
 0x55f   : > { %v23757_v3 = vmax.f32 %v10052_v10, %v10084_v47  ;;  %v10087_v33 = vmax.f32 %v7681_v63, 0.0  ;;  %v7673_v42 = vadd.f32 %v23455_v9, %v7672_v43  ;;  %v10056_v63 = vmax.f32 %v7558_v34, 0.0 }
 0x560   : > { %v15921_v53 = vpop.f32.mrf.mxu0  ;;  %v7574_v34 = vadd.f32 %v23455_v9, %v23641_v41  ;;  %v7577_v41 = vadd.f32 %v23455_v9, %v23651_v49  ;;  %v10063_v30 = vmax.f32 %v7585_v4, 0.0 }
 0x561   : > { %v23762_v48 = vmax.f32 %v10055_v59, %v10087_v33  ;;  %v10085_v24 = vmax.f32 %v7673_v42, 0.0  ;;  %v7694_v19 = vadd.f32 %v23455_v9, %v15921_v53 }
 0x562   : > { %v7685_v15 = vpop.f32.mrf.mxu0  ;;  %v10061_v49 = vmax.f32 %v7577_v41, 0.0 }
 0x563   : > { %v23767_v20 = vmax.f32 %v10053_v11, %v10085_v24  ;;  %v10090_v10 = vmax.f32 %v7694_v19, 0.0  ;;  %v7686_v47 = vadd.f32 %v23455_v9, %v7685_v15 }
 0x564   : > { %v15922_v43 = vpop.f32.mrf.mxu0 }
 0x565   : > { %v23772_v6 = vmax.f32 %v10058_v2, %v10090_v10  ;;  %v10088_v59 = vmax.f32 %v7686_v47, 0.0  ;;  %v7697_v33 = vadd.f32 %v23455_v9, %v15922_v43  ;;  %v10062_v47 = vmax.f32 %v7582_v58, 0.0 }
 0x566   : > { %v7688_v42 = vpop.f32.mrf.mxu0  ;;  %v7598_v58 = vadd.f32 %v23455_v9, %v23653_v54  ;;  %v7601_v54 = vadd.f32 %v23455_v9, %v23658_v56 }
 0x567   : > { %26474 = vst [vmem:[#allocation9_spill] sm:$0xff] %v23772_v6  ;;  %v23777_v53 = vmax.f32 %v10056_v63, %v10088_v59  ;;  %v10091_v11 = vmax.f32 %v7697_v33, 0.0  ;;  %v7689_v24 = vadd.f32 %v23455_v9, %v7688_v42  ;;  %v10060_v33 = vmax.f32 %v7574_v34, 0.0 }
 0x568   : > { %v15925_v19 = vpop.f32.mrf.mxu0  ;;  %v7590_v34 = vadd.f32 %v23455_v9, %v23656_v5  ;;  %v7593_v5 = vadd.f32 %v23455_v9, %v23660_v39 }
 0x569   : > { %26475 = vst [vmem:[#allocation56_spill] sm:$0xff] %v23777_v53  ;;  %v23782_v2 = vmax.f32 %v10059_v28, %v10091_v11  ;;  %v10089_v15 = vmax.f32 %v7689_v24, 0.0  ;;  %v7710_v10 = vadd.f32 %v23455_v9, %v15925_v19 }
 0x56a   : > { %v7701_v43 = vpop.f32.mrf.mxu0 }
 0x56b   : > { %26476 = vst [vmem:[#allocation103_spill] sm:$0xff] %v23782_v2  ;;  %v23787_v18 = vmax.f32 %v10057_v7, %v10089_v15  ;;  %v10094_v63 = vmax.f32 %v7710_v10, 0.0  ;;  %v7702_v59 = vadd.f32 %v23455_v9, %v7701_v43 }
 0x56c   : > { %v15926_v42 = vpop.f32.mrf.mxu0 }
 0x56d   : > { %26477 = vst [vmem:[#allocation121_spill] sm:$0xff] %v23787_v18  ;;  %v23792_v46 = vmax.f32 %v10062_v47, %v10094_v63  ;;  %v10092_v28 = vmax.f32 %v7702_v59, 0.0  ;;  %v7713_v11 = vadd.f32 %v23455_v9, %v15926_v42  ;;  %v10066_v59 = vmax.f32 %v7598_v58, 0.0 }
 0x56e   : > { %v7704_v24 = vpop.f32.mrf.mxu0 }
 0x56f   : > { %26478 = vst [vmem:[#allocation80_spill] sm:$0xff] %v23792_v46  ;;  %v23797_v19 = vmax.f32 %v10060_v33, %v10092_v28  ;;  %v10095_v7 = vmax.f32 %v7713_v11, 0.0  ;;  %v7705_v15 = vadd.f32 %v23455_v9, %v7704_v24  ;;  %v10064_v11 = vmax.f32 %v7590_v34, 0.0 }
 0x570   : > { %v15929_v10 = vpop.f32.mrf.mxu0 }
 0x571   : > { %26479 = vst [vmem:[#allocation94_spill] sm:$0xff] %v23797_v19  ;;  %v23802_v47 = vmax.f32 %v10063_v30, %v10095_v7  ;;  %v10093_v43 = vmax.f32 %v7705_v15, 0.0  ;;  %v7726_v63 = vadd.f32 %v23455_v9, %v15929_v10  ;;  %v10067_v15 = vmax.f32 %v7601_v54, 0.0 }
 0x572   : > { %v7717_v42 = vpop.f32.mrf.mxu0 }
 0x573   : > { %26480 = vst [vmem:[#allocation107_spill] sm:$0xff] %v23802_v47  ;;  %v23807_v4 = vmax.f32 %v10061_v49, %v10093_v43  ;;  %v10098_v33 = vmax.f32 %v7726_v63, 0.0  ;;  %v7718_v28 = vadd.f32 %v23455_v9, %v7717_v42  ;;  %v10065_v63 = vmax.f32 %v7593_v5, 0.0 }
 0x574   : > { %v15930_v24 = vpop.f32.mrf.mxu0 }
 0x575   : > { %26481 = vst [vmem:[#allocation123_spill] sm:$0xff] %v23807_v4  ;;  %v23812_v41 = vmax.f32 %v10066_v59, %v10098_v33  ;;  %v10096_v30 = vmax.f32 %v7718_v28, 0.0  ;;  %v7729_v7 = vadd.f32 %v23455_v9, %v15930_v24 }
 0x576   : > { %v7720_v58 = vpop.f32.mrf.mxu0 }
 0x577   : > { %26482 = vst [vmem:[#allocation82_spill] sm:$0xff] %v23812_v41  ;;  %v23815_v10 = vmax.f32 %v10064_v11, %v10096_v30  ;;  %v10099_v56 = vmax.f32 %v7729_v7, 0.0  ;;  %v7721_v49 = vadd.f32 %v23455_v9, %v7720_v58 }
 0x578   : > { %v15933_v43 = vpop.f32.mrf.mxu0 }
 0x579   : > { %26483 = vst [vmem:[#allocation124_spill] sm:$0xff] %v23815_v10  ;;  %v23818_v42 = vmax.f32 %v10067_v15, %v10099_v56  ;;  %v10097_v34 = vmax.f32 %v7721_v49, 0.0  ;;  %v23843_v49 = vld [vmem:[%s24957_s3 + $0x10] sm:$0xff]  }
 0x57a   : > { %v7733_v13 = vpop.f32.mrf.mxu0  ;;  %26486 = vst [vmem:[#allocation115_spill] sm:$0xff] %v23843_v49  ;;  %16511 = vmatprep.subr.bf16.mxu1 %v23843_v49 }
 0x57b   : > { %26484 = vst [vmem:[#allocation111_spill] sm:$0xff] %v23818_v42  ;;  %v23820_v35 = vmax.f32 %v10065_v63, %v10097_v34  ;;  %v7742_v42 = vadd.f32 %v23455_v9, %v15933_v43  ;;  %v7734_v41 = vadd.f32 %v23455_v9, %v7733_v13 }
 0x57c   : > { %v15934_v39 = vpop.f32.mrf.mxu0 }
 0x57d   : > { %26485 = vst [vmem:[#allocation98_spill] sm:$0xff] %v23820_v35  ;;  %v7745_v47 = vadd.f32 %v23455_v9, %v15934_v39  ;;  %v10102_v46 = vmax.f32 %v7742_v42, 0.0 }
 0x57e   : > { %v7736_v59 = vpop.f32.mrf.mxu0 }
 0x580   : > { %v15937_v33 = vpop.f32.mrf.mxu0 }
 0x581   : > { %v7758_v13 = vadd.f32 %v23455_v9, %v15937_v33 }
 0x582   : > { %v7749_v28 = vpop.f32.mrf.mxu0 }
 0x584   : > { %v23822_v24 = vpop.f32.mrf.mxu0 }
 0x586   : > { %v23824_v54 = vpop.f32.mrf.mxu0 }
 0x588   : > { %v23826_v11 = vpop.f32.mrf.mxu0 }
 0x58a   : > { %v23828_v30 = vpop.f32.mrf.mxu0 }
 0x58c   : > { %v23830_v7 = vpop.f32.mrf.mxu0 }
 0x58e   : > { %v23832_v5 = vpop.f32.mrf.mxu0 }
 0x590   : > { %v23834_v58 = vpop.f32.mrf.mxu0 }
 0x592   : > { %v23836_v15 = vpop.f32.mrf.mxu0 }
 0x594   : > { %v23838_v56 = vpop.f32.mrf.mxu0 }
 0x596   : > { %v23845_v63 = vpop.f32.mrf.mxu0 }
 0x598   : > { %v23848_v34 = vpop.f32.mrf.mxu0 }
 0x59a   : > { %v23850_v27 = vpop.f32.mrf.mxu0 }
 0x59c   : > { %v23852_v29 = vpop.f32.mrf.mxu0 }
 0x59e   : > { %v23854_v38 = vpop.f32.mrf.mxu0 }
 0x5a0   : > { %v23856_v23 = vpop.f32.mrf.mxu0 }
 0x5a2   : > { %v23858_v17 = vpop.f32.mrf.mxu0 }
 0x5a4   : > { %v23860_v31 = vpop.f32.mrf.mxu0 }
 0x5a6   : > { %v23862_v52 = vpop.f32.mrf.mxu0 }
 0x5a8   : > { %v23864_v22 = vpop.f32.mrf.mxu0 }
 0x5aa   : > { %v23866_v36 = vpop.f32.mrf.mxu0 }
 0x5ab   : > { %26487 = vst [vmem:[#allocation127_spill] sm:$0xff] %v23866_v36 }
 0x5ac   : > { %v23868_v50 = vpop.f32.mrf.mxu0 }
 0x5ad   : > { %26488 = vst [vmem:[#allocation126_spill] sm:$0xff] %v23868_v50  ;;  %v10103_v50 = vmax.f32 %v7745_v47, 0.0  ;;  %v10106_v47 = vmax.f32 %v7758_v13, 0.0 }
 0x5ae   : > { %v23870_v51 = vpop.f32.mrf.mxu0 }
 0x5af   : > { %26489 = vst [vmem:[#allocation7_spill] sm:$0xff] %v23870_v51 }
 0x5b0   : > { %v23872_v49 = vpop.f32.mrf.mxu0 }
 0x5b1   : > { %26490 = vst [vmem:[#allocation44_spill] sm:$0xff] %v23872_v49 }
 0x5b2   : > { %v23874_v1 = vpop.f32.mrf.mxu0 }
 0x5b3   : > { %26491 = vst [vmem:[#allocation109_spill] sm:$0xff] %v23874_v1  ;;  %v7737_v1 = vadd.f32 %v23455_v9, %v7736_v59 }
 0x5b4   : > { %v23876_v16 = vpop.f32.mrf.mxu0 }
 0x5b5   : > { %26492 = vst [vmem:[#allocation134_spill] sm:$0xff] %v23876_v16  ;;  %v10100_v16 = vmax.f32 %v7734_v41, 0.0  ;;  %v10101_v42 = vmax.f32 %v7737_v1, 0.0  ;;  %v7761_v1 = vadd.f32 %v23455_v9, %v23822_v24 }
 0x5b6   : > { %v23878_v35 = vpop.f32.mrf.mxu0 }
 0x5b7   : > { %26493 = vst [vmem:[#allocation144_spill] sm:$0xff] %v23878_v35 }
 0x5b8   : > { %v15965_v10 = vpop.f32.mrf.mxu0 }
 0x5b9   : > { %v7870_v4 = vadd.f32 %v23455_v9, %v15965_v10 }
 0x5ba   : > { %v7861_v19 = vpop.f32.mrf.mxu0 }
 0x5bb   : > { %v10134_v18 = vmax.f32 %v7870_v4, 0.0  ;;  %v7862_v49 = vadd.f32 %v23455_v9, %v7861_v19  ;;  %v7750_v19 = vadd.f32 %v23455_v9, %v7749_v28 }
 0x5bc   : > { %v15966_v51 = vpop.f32.mrf.mxu0 }
 0x5bd   : > { %v10934_v2 = vmax.f32 %v10102_v46, %v10134_v18  ;;  %v10132_v35 = vmax.f32 %v7862_v49, 0.0  ;;  %v7873_v43 = vadd.f32 %v23455_v9, %v15966_v51 }
 0x5be   : > { %v7864_v53 = vpop.f32.mrf.mxu0 }
 0x5bf   : > { %v11190_v10 = vmax.f32 %v23672_v25, %v10934_v2  ;;  %v10932_v39 = vmax.f32 %v10100_v16, %v10132_v35  ;;  %v10135_v36 = vmax.f32 %v7873_v43, 0.0  ;;  %v7865_v4 = vadd.f32 %v23455_v9, %v7864_v53 }
 0x5c0   : > { %v15969_v59 = vpop.f32.mrf.mxu0  ;;  %v10104_v35 = vmax.f32 %v7750_v19, 0.0  ;;  %v7753_v53 = vadd.f32 %v23455_v9, %v23824_v54 }
 0x5c1   : > { %v11188_v41 = vmax.f32 %v23677_v21, %v10932_v39  ;;  %v10935_v18 = vmax.f32 %v10103_v50, %v10135_v36  ;;  %v10133_v46 = vmax.f32 %v7865_v4, 0.0  ;;  %v7886_v51 = vadd.f32 %v23455_v9, %v15969_v59 }
 0x5c2   : > { %v7877_v49 = vpop.f32.mrf.mxu0  ;;  %v10105_v19 = vmax.f32 %v7753_v53, 0.0 }
 0x5c3   : > { %v11191_v33 = vmax.f32 %v23682_v12, %v10935_v18  ;;  %v10933_v6 = vmax.f32 %v10101_v42, %v10133_v46  ;;  %v10138_v25 = vmax.f32 %v7886_v51, 0.0  ;;  %v7878_v16 = vadd.f32 %v23455_v9, %v7877_v49 }
 0x5c4   : > { %v15970_v21 = vpop.f32.mrf.mxu0  ;;  %v7774_v12 = vadd.f32 %v23455_v9, %v23826_v11  ;;  %v10107_v42 = vmax.f32 %v7761_v1, 0.0 }
 0x5c5   : > { %v23899_v50 = vpack.c.bf16 %v11191_v33, %v11190_v10  ;;  %v11189_v36 = vmax.f32 %v23687_v57, %v10933_v6  ;;  %v10938_v2 = vmax.f32 %v10106_v47, %v10138_v25  ;;  %v10136_v28 = vmax.f32 %v7878_v16, 0.0 }
 0x5c6   : > { %v7889_v43 = vadd.f32 %v23455_v9, %v15970_v21  ;;  %v7880_v13 = vpop.f32.mrf.mxu0  ;;  %v7766_v10 = vadd.f32 %v23455_v9, %v23828_v30  ;;  %v10110_v51 = vmax.f32 %v7774_v12, 0.0 }
 0x5c7   : > { %v23905_v39 = vpack.c.bf16 %v11189_v36, %v11188_v41  ;;  %v11194_v24 = vmax.f32 %v23692_v0, %v10938_v2  ;;  %v10936_v4 = vmax.f32 %v10104_v35, %v10136_v28  ;;  %v7881_v54 = vadd.f32 %v23455_v9, %v7880_v13 }
 0x5c8   : > { %v10139_v57 = vmax.f32 %v7889_v43, 0.0  ;;  %v15973_v6 = vpop.f32.mrf.mxu0  ;;  %v7777_v41 = vadd.f32 %v23455_v9, %v23830_v7  ;;  %v10108_v25 = vmax.f32 %v7766_v10, 0.0  ;;  %v7769_v7 = vadd.f32 %v23455_v9, %v23832_v5 }
 0x5c9   : > { %v11192_v59 = vmax.f32 %v23697_v61, %v10936_v4  ;;  %v10137_v11 = vmax.f32 %v7881_v54, 0.0  ;;  %v7902_v18 = vadd.f32 %v23455_v9, %v15973_v6  ;;  %v7790_v36 = vadd.f32 %v23455_v9, %v23834_v58 }
 0x5ca   : > { %v10939_v46 = vmax.f32 %v10107_v42, %v10139_v57  ;;  %v7893_v0 = vpop.f32.mrf.mxu0  ;;  %v10111_v21 = vmax.f32 %v7777_v41, 0.0  ;;  %v7782_v13 = vadd.f32 %v23455_v9, %v23836_v15  ;;  %v7793_v10 = vadd.f32 %v23455_v9, %v23838_v56 }
 0x5cb   : > { %v10937_v47 = vmax.f32 %v10105_v19, %v10137_v11  ;;  %v10142_v49 = vmax.f32 %v7902_v18, 0.0  ;;  %v7894_v33 = vadd.f32 %v23455_v9, %v7893_v0  ;;  %v7785_v18 = vadd.f32 %v23455_v9, %v23845_v63 }
 0x5cc   : > { %v11195_v30 = vmax.f32 %v23702_v45, %v10939_v46  ;;  %v15974_v16 = vpop.f32.mrf.mxu0  ;;  %v10112_v11 = vmax.f32 %v7782_v13, 0.0  ;;  %v10115_v56 = vmax.f32 %v7793_v10, 0.0 }
 0x5cd   : > { %v11193_v35 = vmax.f32 %v23707_v60, %v10937_v47  ;;  %v10942_v61 = vmax.f32 %v10110_v51, %v10142_v49  ;;  %v10140_v1 = vmax.f32 %v7894_v33, 0.0  ;;  %v7905_v53 = vadd.f32 %v23455_v9, %v15974_v16 }
 0x5ce   : > { %v23923_v2 = vpack.c.bf16 %v11195_v30, %v11194_v24  ;;  %v7896_v28 = vpop.f32.mrf.mxu0  ;;  %v10109_v24 = vmax.f32 %v7769_v7, 0.0  ;;  %v7806_v49 = vadd.f32 %v23455_v9, %v23848_v34 }
 0x5cf   : > { %v23925_v12 = vpack.c.bf16 %v11193_v35, %v11192_v59  ;;  %v11198_v45 = vmax.f32 %v23712_v37, %v10942_v61  ;;  %v10940_v43 = vmax.f32 %v10108_v25, %v10140_v1  ;;  %v10143_v60 = vmax.f32 %v7905_v53, 0.0 }
 0x5d0   : > { %v7897_v4 = vadd.f32 %v23455_v9, %v7896_v28  ;;  %v15977_v54 = vpop.f32.mrf.mxu0  ;;  %v10114_v37 = vmax.f32 %v7790_v36, 0.0  ;;  %v10113_v35 = vmax.f32 %v7785_v18, 0.0  ;;  %v7798_v61 = vadd.f32 %v23455_v9, %v23850_v27  ;;  %v23954_v27 = vld [vmem:[%s24956_s2] ss:$0 sm:$0xff] }
 0x5d1   : > { %v11196_v5 = vmax.f32 %v23717_v14, %v10940_v43  ;;  %v10943_v42 = vmax.f32 %v10111_v21, %v10143_v60  ;;  %v7918_v58 = vadd.f32 %v23455_v9, %v15977_v54  ;;  %v7801_v13 = vadd.f32 %v23954_v27, %v23854_v38 }
 0x5d2   : > { %v10141_v57 = vmax.f32 %v7897_v4, 0.0  ;;  %v7909_v6 = vpop.f32.mrf.mxu0  ;;  %v7814_v38 = vadd.f32 %v23954_v27, %v23858_v17 }
 0x5d3   : > { %v11199_v19 = vmax.f32 %v23722_v55, %v10943_v42  ;;  %v10146_v59 = vmax.f32 %v7918_v58, 0.0  ;;  %v7910_v15 = vadd.f32 %v23455_v9, %v7909_v6  ;;  %v7822_v58 = vadd.f32 %v23954_v27, %v23856_v23 }
 0x5d4   : > { %v10941_v14 = vmax.f32 %v10109_v24, %v10141_v57  ;;  %v15978_v41 = vpop.f32.mrf.mxu0 }
 0x5d5   : > { %v11385_v46 = vpack.c.bf16 %v11199_v19, %v11198_v45  ;;  %v10946_v0 = vmax.f32 %v10114_v37, %v10146_v59  ;;  %v10144_v51 = vmax.f32 %v7910_v15, 0.0  ;;  %v7921_v47 = vadd.f32 %v23455_v9, %v15978_v41 }
 0x5d6   : > { %v11197_v55 = vmax.f32 %v23727_v44, %v10941_v14  ;;  %v7912_v33 = vpop.f32.mrf.mxu0  ;;  %v10118_v44 = vmax.f32 %v7806_v49, 0.0  ;;  %v10117_v15 = vmax.f32 %v7801_v13, 0.0 }
 0x5d7   : > { %v11202_v25 = vmax.f32 %v23732_v8, %v10946_v0  ;;  %v10944_v30 = vmax.f32 %v10112_v11, %v10144_v51  ;;  %v10147_v16 = vmax.f32 %v7921_v47, 0.0  ;;  %v7913_v63 = vadd.f32 %v23455_v9, %v7912_v33 }
 0x5d8   : > { %v11384_v1 = vpack.c.bf16 %v11197_v55, %v11196_v5  ;;  %v15981_v53 = vpop.f32.mrf.mxu0  ;;  %v10120_v47 = vmax.f32 %v7814_v38, 0.0 }
 0x5d9   : > { %v11200_v21 = vmax.f32 %v23737_v32, %v10944_v30  ;;  %v10947_v7 = vmax.f32 %v10115_v56, %v10147_v16  ;;  %v10145_v36 = vmax.f32 %v7913_v63, 0.0  ;;  %v7934_v34 = vadd.f32 %v23455_v9, %v15981_v53  ;;  %v26494_v56 = vld [vmem:[#allocation47_spill] sm:$0xff] }
 0x5da   : > { %16413 = vmatprep.mubr.msk.bf16.mxu1 %vm11455_vm2, %v11384_v1  ;;  %v7925_v8 = vpop.f32.mrf.mxu0  ;;  %v10116_v32 = vmax.f32 %v7798_v61, 0.0  ;;  %v7809_v9 = vadd.f32 %v23954_v27, %v23852_v29  ;;  %v7817_v16 = vadd.f32 %v23954_v27, %v23862_v52  ;;  %v7838_v63 = vadd.f32 %v23954_v27, %v23864_v22  ;;  %v26495_v1 = vld [vmem:[#allocation9_spill] sm:$0xff] }
 0x5db   : > { %v11203_v28 = vmax.f32 %v23742_v62, %v10947_v7  ;;  %v10945_v45 = vmax.f32 %v10113_v35, %v10145_v36  ;;  %v10150_v43 = vmax.f32 %v7934_v34, 0.0  ;;  %v7926_v60 = vadd.f32 %v23954_v27, %v7925_v8  ;;  %16414 = vmatmul.mubr.msk.bf16.gmra.mxu1 %vm11455_vm2, %v11385_v46  ;;  %v26496_v7 = vld [vmem:[#allocation127_spill] sm:$0xff]  ;;  %v26497_v8 = vld [vmem:[#allocation56_spill] sm:$0xff] }
 0x5dc   : > { %v15982_v4 = vpop.f32.mrf.mxu0  ;;  %v10119_v19 = vmax.f32 %v7809_v9, 0.0  ;;  %v10122_v46 = vmax.f32 %v7822_v58, 0.0  ;;  %v7830_v36 = vadd.f32 %v23954_v27, %v26496_v7  ;;  %v10126_v13 = vmax.f32 %v7838_v63, 0.0  ;;  %v26509_v7 = vld [vmem:[#allocation35_spill] sm:$0xff] }
 0x5dd   : > { %v11387_v62 = vpack.c.bf16 %v11203_v28, %v11202_v25  ;;  %v11201_v54 = vmax.f32 %v23747_v40, %v10945_v45  ;;  %v10950_v5 = vmax.f32 %v10118_v44, %v10150_v43  ;;  %v10148_v42 = vmax.f32 %v7926_v60, 0.0  ;;  %v26498_v43 = vld [vmem:[#allocation126_spill] sm:$0xff] }
 0x5de   : > { %v7937_v24 = vadd.f32 %v23954_v27, %v15982_v4  ;;  %v7928_v10 = vpop.f32.mrf.mxu0  ;;  %v10121_v45 = vmax.f32 %v7817_v16, 0.0  ;;  %v7841_v60 = vadd.f32 %v23954_v27, %v26498_v43  ;;  %v26499_v4 = vld [vmem:[#allocation103_spill] sm:$0xff]  ;;  %v10124_v58 = vmax.f32 %v7830_v36, 0.0 }
 0x5df   : > { %v11386_v57 = vpack.c.bf16 %v11201_v54, %v11200_v21  ;;  %v11206_v6 = vmax.f32 %v23752_v26, %v10950_v5  ;;  %v10948_v37 = vmax.f32 %v10116_v32, %v10148_v42  ;;  %v7929_v29 = vadd.f32 %v23954_v27, %v7928_v10  ;;  %v26500_v42 = vld [vmem:[#allocation30_spill] sm:$0xff]  ;;  %v26513_v43 = vld [vmem:[#allocation123_spill] sm:$0xff] }
 0x5e0   : > { %v10151_v59 = vmax.f32 %v7937_v24, 0.0  ;;  %v15985_v40 = vpop.f32.mrf.mxu0  ;;  %v7825_v26 = vadd.f32 %v23954_v27, %v23860_v31  ;;  %v26501_v24 = vld [vmem:[#allocation7_spill] sm:$0xff] }
 0x5e1   : > { %v11204_v11 = vmax.f32 %v23757_v3, %v10948_v37  ;;  %v10149_v18 = vmax.f32 %v7929_v29, 0.0  ;;  %v7950_v23 = vadd.f32 %v23954_v27, %v15985_v40  ;;  %16417 = vmatprep.mubr.msk.bf16.mxu1 %vm11455_vm2, %v11386_v57  ;;  %v7833_v10 = vadd.f32 %v23954_v27, %v26501_v24 }
 0x5e2   : > { %v10951_v14 = vmax.f32 %v10119_v19, %v10151_v59  ;;  %v7941_v41 = vpop.f32.mrf.mxu0  ;;  %v10123_v30 = vmax.f32 %v7825_v26, 0.0  ;;  %v10127_v40 = vmax.f32 %v7841_v60, 0.0 }
 0x5e3   : > { %v10949_v0 = vmax.f32 %v10117_v15, %v10149_v18  ;;  %v10154_v51 = vmax.f32 %v7950_v23, 0.0  ;;  %v7942_v17 = vadd.f32 %v23954_v27, %v7941_v41  ;;  %16418 = vmatmul.mubr.msk.bf16.gmra.mxu1 %vm11455_vm2, %v11387_v62  ;;  %v26503_v15 = vld [vmem:[#allocation44_spill] sm:$0xff]  ;;  %v26504_v18 = vld [vmem:[#allocation121_spill] sm:$0xff] }
 0x5e4   : > { %v11207_v3 = vmax.f32 %v23762_v48, %v10951_v14  ;;  %16421 = vmatprep.mubr.msk.bf16.mxu1 %vm11455_vm2, %v26494_v56  ;;  %v15986_v49 = vpop.f32.mrf.mxu0  ;;  %v26505_v14 = vld [vmem:[#allocation80_spill] sm:$0xff] }
 0x5e5   : > { %v11205_v55 = vmax.f32 %v23767_v20, %v10949_v0  ;;  %v10954_v33 = vmax.f32 %v10122_v46, %v10154_v51  ;;  %v10152_v31 = vmax.f32 %v7942_v17, 0.0  ;;  %v7953_v25 = vadd.f32 %v23954_v27, %v15986_v49 }
 0x5e6   : > { %v23986_v35 = vpack.c.bf16 %v11207_v3, %v11206_v6  ;;  %v7944_v48 = vpop.f32.mrf.mxu0  ;;  %v26502_v6 = vld [vmem:[#allocation13_spill] sm:$0xff]  ;;  %v10125_v17 = vmax.f32 %v7833_v10, 0.0 }
 0x5e7   : > { %v23988_v61 = vpack.c.bf16 %v11205_v55, %v11204_v11  ;;  %v11210_v53 = vmax.f32 %v26495_v1, %v10954_v33  ;;  %v10952_v21 = vmax.f32 %v10120_v47, %v10152_v31  ;;  %v10155_v20 = vmax.f32 %v7953_v25, 0.0  ;;  %v26506_v47 = vld [vmem:[#allocation109_spill] sm:$0xff]  ;;  %v26507_v55 = vld [vmem:[#allocation94_spill] sm:$0xff] }
 0x5e8   : > { %v7945_v34 = vadd.f32 %v23954_v27, %v7944_v48  ;;  %v15989_v44 = vpop.f32.mrf.mxu0  ;;  %v7854_v11 = vadd.f32 %v23954_v27, %v26503_v15  ;;  %v7846_v3 = vadd.f32 %v23954_v27, %v26506_v47  ;;  %v26508_v48 = vld [vmem:[#allocation107_spill] sm:$0xff]  ;;  %v26525_v47 = vld [vmem:[#allocation4_spill] sm:$0xff] }
 0x5e9   : > { %v11208_v52 = vmax.f32 %v26497_v8, %v10952_v21  ;;  %v10955_v28 = vmax.f32 %v10123_v30, %v10155_v20  ;;  %v7966_v22 = vadd.f32 %v23954_v27, %v15989_v44  ;;  %v26511_v8 = vld [vmem:[#allocation144_spill] sm:$0xff]  ;;  %v26517_v15 = vld [vmem:[#allocation111_spill] sm:$0xff] }
 0x5ea   : > { %v10153_v32 = vmax.f32 %v7945_v34, 0.0  ;;  %v7957_v9 = vpop.f32.mrf.mxu0  ;;  %v10130_v16 = vmax.f32 %v7854_v11, 0.0  ;;  %v10128_v36 = vmax.f32 %v7846_v3, 0.0  ;;  %v26510_v34 = vld [vmem:[#allocation134_spill] sm:$0xff]  ;;  %v24064_v3 = vld [vmem:[%s24957_s3 + $0x18] sm:$0xff]  }
 0x5eb   : > { %v11211_v62 = vmax.f32 %v26499_v4, %v10955_v28  ;;  %v10158_v54 = vmax.f32 %v7966_v22, 0.0  ;;  %v7958_v5 = vadd.f32 %v23954_v27, %v7957_v9  ;;  %16422 = vmatmul.mubr.msk.bf16.gmra.mxu1 %vm11455_vm2, %v26500_v42  ;;  %v7857_v44 = vadd.f32 %v23954_v27, %v26510_v34  ;;  %v26512_v28 = vld [vmem:[#allocation26_spill] sm:$0xff] }
 0x5ec   : > { %v10953_v57 = vmax.f32 %v10121_v45, %v10153_v32  ;;  %16425 = vmatprep.mubr.msk.bf16.mxu1 %vm11455_vm2, %v26502_v6  ;;  %v15990_v37 = vpop.f32.mrf.mxu0  ;;  %v26515_v6 = vld [vmem:[#allocation124_spill] sm:$0xff] }
 0x5ed   : > { %v24006_v29 = vpack.c.bf16 %v11211_v62, %v11210_v53  ;;  %v10958_v19 = vmax.f32 %v10126_v13, %v10158_v54  ;;  %v10156_v38 = vmax.f32 %v7958_v5, 0.0  ;;  %v7969_v59 = vadd.f32 %v23954_v27, %v15990_v37  ;;  %v26514_v54 = vld [vmem:[#allocation82_spill] sm:$0xff] }
 0x5ee   : > { %v11209_v23 = vmax.f32 %v26504_v18, %v10953_v57  ;;  %v7960_v26 = vpop.f32.mrf.mxu0  ;;  %v10131_v24 = vmax.f32 %v7857_v44, 0.0  ;;  %v26518_v18 = vld [vmem:[#allocation32_spill] sm:$0xff]  ;;  %v26535_v44 = vld [vmem:[#allocation177_spill] sm:$0xff] }
 0x5ef   : > { %v11214_v41 = vmax.f32 %v26505_v14, %v10958_v19  ;;  %v10956_v46 = vmax.f32 %v10124_v58, %v10156_v38  ;;  %v10159_v0 = vmax.f32 %v7969_v59, 0.0  ;;  %v7961_v51 = vadd.f32 %v23954_v27, %v7960_v26 }
 0x5f0   : > { %v24016_v56 = vpack.c.bf16 %v11209_v23, %v11208_v52  ;;  %v15993_v49 = vpop.f32.mrf.mxu0  ;;  %v7849_v52 = vadd.f32 %v23954_v27, %v26511_v8  ;;  %v26519_v23 = vld [vmem:[#allocation98_spill] sm:$0xff]  ;;  %v26536_v8 = vld [vmem:[#allocation164_spill] sm:$0xff] }
 0x5f1   : > { %v11212_v33 = vmax.f32 %v26507_v55, %v10956_v46  ;;  %v10959_v31 = vmax.f32 %v10127_v40, %v10159_v0  ;;  %v10157_v25 = vmax.f32 %v7961_v51, 0.0  ;;  %v7982_v30 = vadd.f32 %v23954_v27, %v15993_v49  ;;  %v26516_v40 = vld [vmem:[#allocation120_spill] sm:$0xff]  ;;  %v26522_v0 = vld [vmem:[#allocation113_spill] sm:$0xff]  ;;  %v26527_v55 = vld [vmem:[#allocation115_spill] sm:$0xff] }
 0x5f2   : > { %v7973_v63 = vpop.f32.mrf.mxu0  ;;  %v10129_v57 = vmax.f32 %v7849_v52, 0.0  ;;  %v26521_v46 = vld [vmem:[#allocation52_spill] sm:$0xff]  ;;  %v26523_v51 = vld [vmem:[#allocation85_spill] sm:$0xff] }
 0x5f3   : > { %v11215_v1 = vmax.f32 %v26508_v48, %v10959_v31  ;;  %v10957_v53 = vmax.f32 %v10125_v17, %v10157_v25  ;;  %v10162_v21 = vmax.f32 %v7982_v30, 0.0  ;;  %v7974_v20 = vadd.f32 %v23954_v27, %v7973_v63  ;;  %16426 = vmatmul.mubr.msk.bf16.gmra.mxu1 %vm11455_vm2, %v26509_v7  ;;  %v26524_v17 = vld [vmem:[#allocation153_spill] sm:$0xff]  ;;  %v26526_v49 = vld [vmem:[#allocation92_spill] sm:$0xff]  ;;  %v24072_v31 = vpop.f32.mrf.mxu1  ;;  %v26529_v25 = vld [vmem:[#allocation27_spill] sm:$0xff] }
 0x5f4   : > { %16429 = vmatprep.mubr.msk.bf16.mxu1 %vm11455_vm2, %v26512_v28  ;;  %v15994_v22 = vpop.f32.mrf.mxu0  ;;  %v26530_v30 = vld [vmem:[#allocation43_spill] sm:$0xff]  ;;  %v26531_v48 = vld [vmem:[#allocation148_spill] sm:$0xff] }
 0x5f5   : > { %v24030_v45 = vpack.c.bf16 %v11215_v1, %v11214_v41  ;;  %v11213_v60 = vmax.f32 %v26513_v43, %v10957_v53  ;;  %v10962_v32 = vmax.f32 %v10130_v16, %v10162_v21  ;;  %v10160_v9 = vmax.f32 %v7974_v20, 0.0  ;;  %v26520_v41 = vld [vmem:[#allocation55_spill] sm:$0xff]  ;;  %v24078_v16 = vpop.f32.mrf.mxu1  ;;  %v26533_v20 = vld [vmem:[#allocation117_spill] sm:$0xff]  ;;  %v26538_v43 = vld [vmem:[#allocation96_spill] sm:$0xff] }
 0x5f6   : > { %v7985_v13 = vadd.f32 %v23954_v27, %v15994_v22  ;;  %v7976_v4 = vpop.f32.mrf.mxu0  ;;  %v26532_v1 = vld [vmem:[#allocation83_spill] sm:$0xff]  ;;  %v26537_v22 = vld [vmem:[#allocation146_spill] sm:$0xff] }
 0x5f7   : > { %v24034_v62 = vpack.c.bf16 %v11213_v60, %v11212_v33  ;;  %v11218_v5 = vmax.f32 %v26514_v54, %v10962_v32  ;;  %v10960_v42 = vmax.f32 %v10128_v36, %v10160_v9  ;;  %v7977_v58 = vadd.f32 %v23954_v27, %v7976_v4  ;;  %v26528_v33 = vld [vmem:[#allocation23_spill] sm:$0xff]  ;;  %v24080_v63 = vpop.f32.mrf.mxu1  ;;  %v26539_v9 = vld [vmem:[#allocation118_spill] sm:$0xff] }
 0x5f8   : > { %v10163_v10 = vmax.f32 %v7985_v13, 0.0  ;;  %v26534_v7 = vld [vmem:[#allocation59_spill] sm:$0xff] }
 0x5f9   : > { %v11216_v37 = vmax.f32 %v26515_v6, %v10960_v42  ;;  %v10161_v19 = vmax.f32 %v7977_v58, 0.0  ;;  %v24086_v53 = vpop.f32.mrf.mxu1  ;;  %v26540_v13 = vld [vmem:[#allocation139_spill] sm:$0xff] }
 0x5fa   : > { %v10963_v38 = vmax.f32 %v10131_v24, %v10163_v10 }
 0x5fb   : > { %v10961_v59 = vmax.f32 %v10129_v57, %v10161_v19  ;;  %16430 = vmatmul.mubr.msk.bf16.gmra.mxu1 %vm11455_vm2, %v26516_v40  ;;  %v24088_v21 = vpop.f32.mrf.mxu1 }
 0x5fc   : > { %v11219_v11 = vmax.f32 %v26517_v15, %v10963_v38  ;;  %16433 = vmatprep.mubr.msk.bf16.mxu1 %vm11455_vm2, %v26518_v18  ;;  %v26548_v18 = vld [vmem:[#allocation158_spill] sm:$0xff] }
 0x5fd   : > { %v11217_v26 = vmax.f32 %v26519_v23, %v10961_v59  ;;  %v24094_v36 = vpop.f32.mrf.mxu1  ;;  %v26545_v59 = vld [vmem:[#allocation60_spill] sm:$0xff] }
 0x5fe   : > { %v24045_v14 = vpack.c.bf16 %v11219_v11, %v11218_v5  ;;  %v26541_v5 = vld [vmem:[#allocation119_spill] sm:$0xff]  ;;  %v26547_v11 = vld [vmem:[#allocation149_spill] sm:$0xff] }
 0x5ff   : > { %v24047_v27 = vpack.c.bf16 %v11217_v26, %v11216_v37  ;;  %v24096_v34 = vpop.f32.mrf.mxu1 }
 0x601   : > { %v24102_v52 = vpop.f32.mrf.mxu1 }
 0x603   : > { %16434 = vmatmul.mubr.msk.bf16.gmra.mxu1 %vm11455_vm2, %v26520_v41  ;;  %v24104_v28 = vpop.f32.mrf.mxu1  ;;  %v26550_v41 = vld [vmem:[#allocation17_spill] sm:$0xff] }
 0x604   : > { %16437 = vmatprep.mubr.msk.bf16.mxu1 %vm11455_vm2, %v26521_v46  ;;  %v26551_v46 = vld [vmem:[#allocation141_spill] sm:$0xff] }
 0x605   : > { %v24110_v60 = vpop.f32.mrf.mxu1 }
 0x607   : > { %v24112_v32 = vpop.f32.mrf.mxu1 }
 0x609   : > { %v24118_v4 = vpop.f32.mrf.mxu1 }
 0x60b   : > { %16438 = vmatmul.mubr.msk.bf16.gmra.mxu1 %vm11455_vm2, %v26522_v0  ;;  %v24120_v54 = vpop.f32.mrf.mxu1 }
 0x60c   : > { %16441 = vmatprep.mubr.msk.bf16.mxu1 %vm11455_vm2, %v26523_v51 }
 0x60d   : > { %v24126_v42 = vpop.f32.mrf.mxu1 }
 0x60f   : > { %v24128_v58 = vpop.f32.mrf.mxu1 }
 0x611   : > { %v24134_v24 = vpop.f32.mrf.mxu1 }
 0x613   : > { %16442 = vmatmul.mubr.msk.bf16.gmra.mxu1 %vm11455_vm2, %v26524_v17  ;;  %v24136_v10 = vpop.f32.mrf.mxu1  ;;  %v26554_v17 = vld [vmem:[#allocation178_spill] sm:$0xff] }
 0x614   : > { %16447 = vmatprep.mubr.msk.bf16.mxu1 %vm11455_vm2, %v26525_v47  ;;  %v26555_v47 = vld [vmem:[#allocation147_spill] sm:$0xff] }
 0x615   : > { %v24138_v57 = vpop.f32.mrf.mxu1 }
 0x617   : > { %v24144_v6 = vpop.f32.mrf.mxu1 }
 0x619   : > { %v24146_v37 = vpop.f32.mrf.mxu1 }
 0x61b   : > { %16448 = vmatmul.mubr.msk.bf16.vlgmr.msra.gmra.mxu1 %vm11455_vm2, %v26526_v49  ;;  %v24152_v19 = vpop.f32.mrf.mxu1 }
 0x61c   : > { %16512 = vmatpush3.bf16.msra.mxu1 %v26527_v55  ;;  %16451 = vmatprep.mubr.msk.bf16.mxu1 %vm11455_vm2, %v26528_v33  ;;  %v26558_v33 = vld [vmem:[#allocation152_spill] sm:$0xff] }
 0x61d   : > { %16577 = vmatprep.subr.bf16.mxu1 %v24064_v3  ;;  %v24154_v38 = vpop.f32.mrf.mxu1 }
 0x61f   : > { %v24160_v40 = vpop.f32.mrf.mxu1 }
 0x621   : > { %v24162_v15 = vpop.f32.mrf.mxu1 }
 0x623   : > { %16452 = vmatmul.mubr.msk.bf16.gmra.mxu1 %vm11455_vm2, %v26529_v25  ;;  %v24168_v23 = vpop.f32.mrf.mxu1  ;;  %v26559_v25 = vld [vmem:[#allocation72_spill] sm:$0xff] }
 0x624   : > { %16455 = vmatprep.mubr.msk.bf16.mxu1 %vm11455_vm2, %v26530_v30 }
 0x625   : > { %v24170_v26 = vpop.f32.mrf.mxu1 }
 0x626   : > { %26549 = vst [vmem:[#allocation40_spill] sm:$0xff] %v24170_v26 }
 0x627   : > { %v24176_v0 = vpop.f32.mrf.mxu1 }
 0x628   : > { %26552 = vst [vmem:[#allocation25_spill] sm:$0xff] %v24176_v0 }
 0x629   : > { %v24178_v51 = vpop.f32.mrf.mxu1 }
 0x62a   : > { %26553 = vst [vmem:[#allocation142_spill] sm:$0xff] %v24178_v51  ;;  %v26625_v51 = vld [vmem:[#allocation6_spill] sm:$0xff] }
 0x62b   : > { %16456 = vmatmul.mubr.msk.bf16.gmra.mxu1 %vm11455_vm2, %v26531_v48  ;;  %v24184_v49 = vpop.f32.mrf.mxu1 }
 0x62c   : > { %16459 = vmatprep.mubr.msk.bf16.mxu1 %vm11455_vm2, %v26532_v1  ;;  %26556 = vst [vmem:[#allocation81_spill] sm:$0xff] %v24184_v49  ;;  %v26624_v49 = vld [vmem:[#allocation90_spill] sm:$0xff] }
 0x62d   : > { %v24186_v55 = vpop.f32.mrf.mxu1 }
 0x62e   : > { %26557 = vst [vmem:[#allocation11_spill] sm:$0xff] %v24186_v55 }
 0x62f   : > { %v24192_v30 = vpop.f32.mrf.mxu1 }
 0x630   : > { %26560 = vst [vmem:[#allocation108_spill] sm:$0xff] %v24192_v30 }
 0x631   : > { %v24194_v48 = vpop.f32.mrf.mxu1 }
 0x632   : > { %26561 = vst [vmem:[#allocation12_spill] sm:$0xff] %v24194_v48  ;;  %v26619_v48 = vld [vmem:[#allocation14_spill] sm:$0xff] }
 0x633   : > { %16460 = vmatmul.mubr.msk.bf16.gmra.mxu1 %vm11455_vm2, %v26533_v20  ;;  %v26563_v20 = vld [vmem:[#allocation38_spill] sm:$0xff] }
 0x634   : > { %16463 = vmatprep.mubr.msk.bf16.mxu1 %vm11455_vm2, %v26534_v7  ;;  %v26564_v7 = vld [vmem:[#allocation73_spill] sm:$0xff] }
 0x63b   : > { %16464 = vmatmul.mubr.msk.bf16.gmra.mxu1 %vm11455_vm2, %v26535_v44 }
 0x63c   : > { %16467 = vmatprep.mubr.msk.bf16.mxu1 %vm11455_vm2, %v26536_v8 }
 0x643   : > { %16468 = vmatmul.mubr.msk.bf16.gmra.mxu1 %vm11455_vm2, %v26537_v22 }
 0x644   : > { %16471 = vmatprep.mubr.msk.bf16.mxu1 %vm11455_vm2, %v26538_v43 }
 0x64b   : > { %16472 = vmatmul.mubr.msk.bf16.gmra.mxu1 %vm11455_vm2, %v26539_v9  ;;  %v26569_v9 = vld [vmem:[#allocation42_spill] sm:$0xff] }
 0x64c   : > { %16475 = vmatprep.mubr.msk.bf16.mxu1 %vm11455_vm2, %v26540_v13  ;;  %v26570_v13 = vld [vmem:[#allocation76_spill] sm:$0xff] }
 0x653   : > { %16476 = vmatmul.mubr.msk.bf16.gmra.mxu1 %vm11455_vm2, %v26541_v5 }
 0x654   : > { %16479 = vmatprep.mubr.msk.bf16.mxu1 %vm11455_vm2, %v23905_v39  ;;  %v26542_v39 = vld [vmem:[#allocation129_spill] sm:$0xff] }
 0x65b   : > { %16480 = vmatmul.mubr.msk.bf16.gmra.mxu1 %vm11455_vm2, %v23899_v50  ;;  %v26543_v50 = vld [vmem:[#allocation93_spill] sm:$0xff] }
 0x65c   : > { %16483 = vmatprep.mubr.msk.bf16.mxu1 %vm11455_vm2, %v23925_v12  ;;  %v26544_v12 = vld [vmem:[#allocation130_spill] sm:$0xff] }
 0x663   : > { %16484 = vmatmul.mubr.msk.bf16.gmra.mxu1 %vm11455_vm2, %v23923_v2  ;;  %v26546_v2 = vld [vmem:[#allocation33_spill] sm:$0xff] }
 0x664   : > { %16487 = vmatprep.mubr.msk.bf16.mxu1 %vm11455_vm2, %v26542_v39 }
 0x66b   : > { %16488 = vmatmul.mubr.msk.bf16.gmra.mxu1 %vm11455_vm2, %v26543_v50 }
 0x66c   : > { %16491 = vmatprep.mubr.msk.bf16.mxu1 %vm11455_vm2, %v26544_v12  ;;  %v26575_v12 = vld [vmem:[#allocation122_spill] sm:$0xff] }
 0x673   : > { %16492 = vmatmul.mubr.msk.bf16.gmra.mxu1 %vm11455_vm2, %v26545_v59  ;;  %v26576_v59 = vld [vmem:[#allocation131_spill] sm:$0xff] }
 0x674   : > { %16495 = vmatprep.mubr.msk.bf16.mxu1 %vm11455_vm2, %v26546_v2 }
 0x67b   : > { %16496 = vmatmul.mubr.msk.bf16.gmra.mxu1 %vm11455_vm2, %v26547_v11 }
 0x67c   : > { %16499 = vmatprep.mubr.msk.bf16.mxu1 %vm11455_vm2, %v26548_v18 }
 0x683   : > { %16500 = vmatmul.mubr.msk.bf16.gmra.mxu1 %vm11455_vm2, %v26550_v41 }
 0x684   : > { %16503 = vmatprep.mubr.msk.bf16.mxu1 %vm11455_vm2, %v26551_v46  ;;  %v26581_v46 = vld [vmem:[#allocation95_spill] sm:$0xff] }
 0x68b   : > { %16504 = vmatmul.mubr.msk.bf16.gmra.mxu1 %vm11455_vm2, %v26554_v17  ;;  %v26582_v17 = vld [vmem:[#allocation166_spill] sm:$0xff] }
 0x68c   : > { %16507 = vmatprep.mubr.msk.bf16.mxu1 %vm11455_vm2, %v26555_v47 }
 0x693   : > { %16508 = vmatmul.mubr.msk.bf16.gmra.mxu1 %vm11455_vm2, %v26558_v33 }
 0x694   : > { %16513 = vmatprep.mubr.msk.bf16.mxu1 %vm11455_vm2, %v26559_v25 }
 0x69b   : > { %v24196_v1 = vpop.f32.mrf.mxu1  ;;  %16514 = vmatmul.mubr.msk.bf16.vlgmr.msra.gmra.mxu1 %vm11455_vm2, %v26563_v20 }
 0x69c   : > { %26562 = vst [vmem:[#allocation163_spill] sm:$0xff] %v24196_v1  ;;  %16578 = vmatpush3.bf16.msra.mxu1 %v24064_v3  ;;  %16517 = vmatprep.mubr.msk.bf16.mxu1 %vm11455_vm2, %v26564_v7  ;;  %v26587_v7 = vld [vmem:[#allocation16_spill] sm:$0xff]  ;;  %v26618_v1 = vld [vmem:[#allocation63_spill] sm:$0xff] }
 0x69d   : > { %v24203_v44 = vpop.f32.mrf.mxu1 }
 0x69e   : > { %26565 = vst [vmem:[#allocation167_spill] sm:$0xff] %v24203_v44 }
 0x69f   : > { %v24205_v8 = vpop.f32.mrf.mxu1 }
 0x6a0   : > { %26566 = vst [vmem:[#allocation39_spill] sm:$0xff] %v24205_v8 }
 0x6a1   : > { %v24207_v22 = vpop.f32.mrf.mxu1 }
 0x6a2   : > { %26567 = vst [vmem:[#allocation179_spill] sm:$0xff] %v24207_v22  ;;  %v26617_v22 = vld [vmem:[#allocation88_spill] sm:$0xff] }
 0x6a3   : > { %v24209_v43 = vpop.f32.mrf.mxu1  ;;  %16518 = vmatmul.mubr.msk.bf16.gmra.mxu1 %vm11455_vm2, %v26569_v9  ;;  %v26588_v9 = vld [vmem:[#allocation159_spill] sm:$0xff] }
 0x6a4   : > { %26568 = vst [vmem:[#allocation112_spill] sm:$0xff] %v24209_v43  ;;  %16521 = vmatprep.mubr.msk.bf16.mxu1 %vm11455_vm2, %v26570_v13  ;;  %v26616_v43 = vld [vmem:[#allocation97_spill] sm:$0xff] }
 0x6a5   : > { %v24215_v5 = vpop.f32.mrf.mxu1 }
 0x6a6   : > { %26571 = vst [vmem:[#allocation89_spill] sm:$0xff] %v24215_v5 }
 0x6a7   : > { %v24217_v3 = vpop.f32.mrf.mxu1 }
 0x6a8   : > { %26572 = vst [vmem:[#allocation50_spill] sm:$0xff] %v24217_v3 }
 0x6a9   : > { %v24219_v39 = vpop.f32.mrf.mxu1 }
 0x6aa   : > { %26573 = vst [vmem:[#allocation136_spill] sm:$0xff] %v24219_v39  ;;  %v26615_v39 = vld [vmem:[#allocation171_spill] sm:$0xff] }
 0x6ab   : > { %v24221_v50 = vpop.f32.mrf.mxu1  ;;  %16522 = vmatmul.mubr.msk.bf16.gmra.mxu1 %vm11455_vm2, %v26575_v12 }
 0x6ac   : > { %26574 = vst [vmem:[#allocation174_spill] sm:$0xff] %v24221_v50  ;;  %16525 = vmatprep.mubr.msk.bf16.mxu1 %vm11455_vm2, %v26576_v59  ;;  %v26614_v50 = vld [vmem:[#allocation41_spill] sm:$0xff] }
 0x6ad   : > { %v24227_v2 = vpop.f32.mrf.mxu1 }
 0x6ae   : > { %26577 = vst [vmem:[#allocation137_spill] sm:$0xff] %v24227_v2 }
 0x6af   : > { %v24229_v11 = vpop.f32.mrf.mxu1 }
 0x6b0   : > { %26578 = vst [vmem:[#allocation170_spill] sm:$0xff] %v24229_v11 }
 0x6b1   : > { %v24231_v18 = vpop.f32.mrf.mxu1 }
 0x6b2   : > { %26579 = vst [vmem:[#allocation175_spill] sm:$0xff] %v24231_v18  ;;  %v26613_v18 = vld [vmem:[#allocation46_spill] sm:$0xff] }
 0x6b3   : > { %v24233_v41 = vpop.f32.mrf.mxu1  ;;  %16526 = vmatmul.mubr.msk.bf16.gmra.mxu1 %vm11455_vm2, %v26581_v46 }
 0x6b4   : > { %26580 = vst [vmem:[#allocation160_spill] sm:$0xff] %v24233_v41  ;;  %16529 = vmatprep.mubr.msk.bf16.mxu1 %vm11455_vm2, %v26582_v17  ;;  %v26593_v17 = vld [vmem:[#allocation24_spill] sm:$0xff]  ;;  %v26612_v41 = vld [vmem:[#allocation67_spill] sm:$0xff] }
 0x6b5   : > { %v24239_v47 = vpop.f32.mrf.mxu1 }
 0x6b6   : > { %26583 = vst [vmem:[#allocation78_spill] sm:$0xff] %v24239_v47 }
 0x6b7   : > { %v24241_v33 = vpop.f32.mrf.mxu1 }
 0x6b8   : > { %26584 = vst [vmem:[#allocation66_spill] sm:$0xff] %v24241_v33 }
 0x6b9   : > { %v24243_v25 = vpop.f32.mrf.mxu1 }
 0x6ba   : > { %26585 = vst [vmem:[#allocation104_spill] sm:$0xff] %v24243_v25  ;;  %v26594_v25 = vld [vmem:[#allocation20_spill] sm:$0xff] }
 0x6bb   : > { %v24245_v20 = vpop.f32.mrf.mxu1  ;;  %16530 = vmatmul.mubr.msk.bf16.gmra.mxu1 %vm11455_vm2, %v26587_v7 }
 0x6bc   : > { %26586 = vst [vmem:[#allocation62_spill] sm:$0xff] %v24245_v20  ;;  %16533 = vmatprep.mubr.msk.bf16.mxu1 %vm11455_vm2, %v26588_v9 }
 0x6bd   : > { %v24251_v13 = vpop.f32.mrf.mxu1 }
 0x6be   : > { %26589 = vst [vmem:[#allocation143_spill] sm:$0xff] %v24251_v13  ;;  %v26599_v13 = vld [vmem:[#allocation100_spill] sm:$0xff] }
 0x6bf   : > { %v24253_v12 = vpop.f32.mrf.mxu1 }
 0x6c0   : > { %26590 = vst [vmem:[#allocation161_spill] sm:$0xff] %v24253_v12 }
 0x6c1   : > { %v24255_v59 = vpop.f32.mrf.mxu1 }
 0x6c2   : > { %26591 = vst [vmem:[#allocation110_spill] sm:$0xff] %v24255_v59  ;;  %v26600_v59 = vld [vmem:[#allocation140_spill] sm:$0xff] }
 0x6c3   : > { %v24257_v46 = vpop.f32.mrf.mxu1  ;;  %16534 = vmatmul.mubr.msk.bf16.gmra.mxu1 %vm11455_vm2, %v26593_v17 }
 0x6c4   : > { %26592 = vst [vmem:[#allocation176_spill] sm:$0xff] %v24257_v46  ;;  %16537 = vmatprep.mubr.msk.bf16.mxu1 %vm11455_vm2, %v26594_v25 }
 0x6c5   : > { %v24263_v20 = vpop.f32.mrf.mxu1 }
 0x6c6   : > { %26595 = vst [vmem:[#allocation54_spill] sm:$0xff] %v24263_v20  ;;  %v26605_v20 = vld [vmem:[#allocation49_spill] sm:$0xff] }
 0x6c7   : > { %v24265_v7 = vpop.f32.mrf.mxu1 }
 0x6c8   : > { %26596 = vst [vmem:[#allocation105_spill] sm:$0xff] %v24265_v7 }
 0x6c9   : > { %v24267_v33 = vpop.f32.mrf.mxu1 }
 0x6ca   : > { %26597 = vst [vmem:[#allocation57_spill] sm:$0xff] %v24267_v33 }
 0x6cb   : > { %v24269_v9 = vpop.f32.mrf.mxu1  ;;  %16538 = vmatmul.mubr.msk.bf16.gmra.mxu1 %vm11455_vm2, %v26599_v13 }
 0x6cc   : > { %26598 = vst [vmem:[#allocation68_spill] sm:$0xff] %v24269_v9  ;;  %16541 = vmatprep.mubr.msk.bf16.mxu1 %vm11455_vm2, %v26600_v59 }
 0x6cd   : > { %v24275_v46 = vpop.f32.mrf.mxu1 }
 0x6ce   : > { %26601 = vst [vmem:[#allocation58_spill] sm:$0xff] %v24275_v46  ;;  %v26611_v46 = vld [vmem:[#allocation101_spill] sm:$0xff] }
 0x6cf   : > { %v24277_v17 = vpop.f32.mrf.mxu1 }
 0x6d0   : > { %26602 = vst [vmem:[#allocation91_spill] sm:$0xff] %v24277_v17  ;;  %v26610_v17 = vld [vmem:[#allocation65_spill] sm:$0xff] }
 0x6d1   : > { %v24279_v12 = vpop.f32.mrf.mxu1 }
 0x6d2   : > { %26603 = vst [vmem:[#allocation114_spill] sm:$0xff] %v24279_v12 }
 0x6d3   : > { %v24281_v25 = vpop.f32.mrf.mxu1  ;;  %16542 = vmatmul.mubr.msk.bf16.gmra.mxu1 %vm11455_vm2, %v26605_v20 }
 0x6d4   : > { %26604 = vst [vmem:[#allocation71_spill] sm:$0xff] %v24281_v25  ;;  %16545 = vmatprep.mubr.msk.bf16.mxu1 %vm11455_vm2, %v23988_v61 }
 0x6d5   : > { %v24287_v9 = vpop.f32.mrf.mxu1 }
 0x6d6   : > { %26606 = vst [vmem:[#allocation145_spill] sm:$0xff] %v24287_v9 }
 0x6d7   : > { %v24289_v13 = vpop.f32.mrf.mxu1 }
 0x6d8   : > { %26607 = vst [vmem:[#allocation180_spill] sm:$0xff] %v24289_v13 }
 0x6d9   : > { %v24291_v33 = vpop.f32.mrf.mxu1 }
 0x6da   : > { %26608 = vst [vmem:[#allocation3_spill] sm:$0xff] %v24291_v33  ;;  %v26609_v33 = vld [vmem:[#allocation45_spill] sm:$0xff] }
 0x6db   : > { %v24293_v59 = vpop.f32.mrf.mxu1  ;;  %16546 = vmatmul.mubr.msk.bf16.gmra.mxu1 %vm11455_vm2, %v23986_v35 }
 0x6dc   : > { %16549 = vmatprep.mubr.msk.bf16.mxu1 %vm11455_vm2, %v24016_v56 }
 0x6dd   : > { %v24299_v25 = vpop.f32.mrf.mxu1 }
 0x6df   : > { %v24301_v20 = vpop.f32.mrf.mxu1 }
 0x6e1   : > { %v24303_v12 = vpop.f32.mrf.mxu1 }
 0x6e3   : > { %v24305_v61 = vpop.f32.mrf.mxu1  ;;  %16550 = vmatmul.mubr.msk.bf16.gmra.mxu1 %vm11455_vm2, %v24006_v29 }
 0x6e4   : > { %16553 = vmatprep.mubr.msk.bf16.mxu1 %vm11455_vm2, %v26609_v33 }
 0x6e5   : > { %v24311_v13 = vpop.f32.mrf.mxu1 }
 0x6e7   : > { %v24313_v35 = vpop.f32.mrf.mxu1 }
 0x6e9   : > { %v24315_v9 = vpop.f32.mrf.mxu1 }
 0x6eb   : > { %v24317_v56 = vpop.f32.mrf.mxu1  ;;  %16554 = vmatmul.mubr.msk.bf16.gmra.mxu1 %vm11455_vm2, %v26610_v17 }
 0x6ec   : > { %16557 = vmatprep.mubr.msk.bf16.mxu1 %vm11455_vm2, %v26611_v46 }
 0x6ed   : > { %v24323_v7 = vpop.f32.mrf.mxu1 }
 0x6ef   : > { %v24325_v29 = vpop.f32.mrf.mxu1 }
 0x6f1   : > { %v24327_v47 = vpop.f32.mrf.mxu1 }
 0x6f3   : > { %v24329_v33 = vpop.f32.mrf.mxu1  ;;  %16558 = vmatmul.mubr.msk.bf16.gmra.mxu1 %vm11455_vm2, %v26612_v41 }
 0x6f4   : > { %16561 = vmatprep.mubr.msk.bf16.mxu1 %vm11455_vm2, %v26613_v18 }
 0x6f5   : > { %v24335_v11 = vpop.f32.mrf.mxu1 }
 0x6f7   : > { %v24337_v17 = vpop.f32.mrf.mxu1 }
 0x6f9   : > { %v24339_v2 = vpop.f32.mrf.mxu1 }
 0x6fb   : > { %v24341_v46 = vpop.f32.mrf.mxu1  ;;  %16562 = vmatmul.mubr.msk.bf16.gmra.mxu1 %vm11455_vm2, %v26614_v50 }
 0x6fc   : > { %16565 = vmatprep.mubr.msk.bf16.mxu1 %vm11455_vm2, %v26615_v39 }
 0x6fd   : > { %v24347_v3 = vpop.f32.mrf.mxu1 }
 0x6ff   : > { %v24349_v41 = vpop.f32.mrf.mxu1 }
 0x701   : > { %v24351_v5 = vpop.f32.mrf.mxu1 }
 0x703   : > { %v24353_v18 = vpop.f32.mrf.mxu1  ;;  %16566 = vmatmul.mubr.msk.bf16.gmra.mxu1 %vm11455_vm2, %v26616_v43 }
 0x704   : > { %16569 = vmatprep.mubr.msk.bf16.mxu1 %vm11455_vm2, %v26617_v22 }
 0x705   : > { %v24359_v8 = vpop.f32.mrf.mxu1 }
 0x707   : > { %v24361_v50 = vpop.f32.mrf.mxu1 }
 0x709   : > { %v24363_v44 = vpop.f32.mrf.mxu1 }
 0x70b   : > { %v24365_v39 = vpop.f32.mrf.mxu1  ;;  %16570 = vmatmul.mubr.msk.bf16.gmra.mxu1 %vm11455_vm2, %v26618_v1 }
 0x70c   : > { %16573 = vmatprep.mubr.msk.bf16.mxu1 %vm11455_vm2, %v26619_v48 }
 0x70d   : > { %v24371_v30 = vpop.f32.mrf.mxu1 }
 0x70e   : > { %26620 = vst [vmem:[#allocation29_spill] sm:$0xff] %v24371_v30  ;;  %v26630_v30 = vld [vmem:[#allocation69_spill] sm:$0xff] }
 0x70f   : > { %v24373_v43 = vpop.f32.mrf.mxu1 }
 0x710   : > { %26621 = vst [vmem:[#allocation102_spill] sm:$0xff] %v24373_v43 }
 0x711   : > { %v24375_v55 = vpop.f32.mrf.mxu1 }
 0x712   : > { %26622 = vst [vmem:[#allocation8_spill] sm:$0xff] %v24375_v55  ;;  %v26631_v55 = vld [vmem:[#allocation74_spill] sm:$0xff] }
 0x713   : > { %v24377_v22 = vpop.f32.mrf.mxu1  ;;  %16574 = vmatmul.mubr.msk.bf16.gmra.mxu1 %vm11455_vm2, %v26624_v49 }
 0x714   : > { %26623 = vst [vmem:[#allocation150_spill] sm:$0xff] %v24377_v22  ;;  %16579 = vmatprep.mubr.msk.bf16.mxu1 %vm11455_vm2, %v26625_v51 }
 0x715   : > { %v24383_v0 = vpop.f32.mrf.mxu1 }
 0x716   : > { %26626 = vst [vmem:[#allocation36_spill] sm:$0xff] %v24383_v0  ;;  %v26636_v0 = vld [vmem:[#allocation2_spill] sm:$0xff] }
 0x717   : > { %v24385_v1 = vpop.f32.mrf.mxu1 }
 0x718   : > { %26627 = vst [vmem:[#allocation135_spill] sm:$0xff] %v24385_v1 }
 0x719   : > { %v24387_v26 = vpop.f32.mrf.mxu1 }
 0x71a   : > { %26628 = vst [vmem:[#allocation22_spill] sm:$0xff] %v24387_v26  ;;  %v26637_v26 = vld [vmem:[#allocation132_spill] sm:$0xff] }
 0x71b   : > { %v24389_v48 = vpop.f32.mrf.mxu1  ;;  %16580 = vmatmul.mubr.msk.bf16.vlgmr.msra.gmra.mxu1 %vm11455_vm2, %v26630_v30 }
 0x71c   : > { %26629 = vst [vmem:[#allocation151_spill] sm:$0xff] %v24389_v48  ;;  %16583 = vmatprep.mubr.msk.bf16.mxu1 %vm11455_vm2, %v26631_v55 }
 0x71d   : > { %v24395_v22 = vpop.f32.mrf.mxu1 }
 0x71e   : > { %26632 = vst [vmem:[#allocation154_spill] sm:$0xff] %v24395_v22  ;;  %v26642_v22 = vld [vmem:[#allocation125_spill] sm:$0xff] }
 0x71f   : > { %v24397_v49 = vpop.f32.mrf.mxu1 }
 0x720   : > { %26633 = vst [vmem:[#allocation138_spill] sm:$0xff] %v24397_v49 }
 0x721   : > { %v24399_v43 = vpop.f32.mrf.mxu1 }
 0x722   : > { %26634 = vst [vmem:[#allocation21_spill] sm:$0xff] %v24399_v43  ;;  %v26643_v43 = vld [vmem:[#allocation133_spill] sm:$0xff] }
 0x723   : > { %v24401_v51 = vpop.f32.mrf.mxu1  ;;  %16584 = vmatmul.mubr.msk.bf16.gmra.mxu1 %vm11455_vm2, %v26636_v0 }
 0x724   : > { %26635 = vst [vmem:[#allocation157_spill] sm:$0xff] %v24401_v51  ;;  %16587 = vmatprep.mubr.msk.bf16.mxu1 %vm11455_vm2, %v26637_v26 }
 0x725   : > { %v24407_v48 = vpop.f32.mrf.mxu1 }
 0x726   : > { %26638 = vst [vmem:[#allocation31_spill] sm:$0xff] %v24407_v48  ;;  %v26648_v48 = vld [vmem:[#allocation128_spill] sm:$0xff] }
 0x727   : > { %v24409_v30 = vpop.f32.mrf.mxu1 }
 0x728   : > { %26639 = vst [vmem:[#allocation64_spill] sm:$0xff] %v24409_v30 }
 0x729   : > { %v24411_v1 = vpop.f32.mrf.mxu1 }
 0x72a   : > { %26640 = vst [vmem:[#allocation61_spill] sm:$0xff] %v24411_v1  ;;  %v26649_v1 = vld [vmem:[#allocation168_spill] sm:$0xff] }
 0x72b   : > { %v24413_v55 = vpop.f32.mrf.mxu1  ;;  %16588 = vmatmul.mubr.msk.bf16.gmra.mxu1 %vm11455_vm2, %v26642_v22 }
 0x72c   : > { %26641 = vst [vmem:[#allocation48_spill] sm:$0xff] %v24413_v55  ;;  %16591 = vmatprep.mubr.msk.bf16.mxu1 %vm11455_vm2, %v26643_v43 }
 0x72d   : > { %v24419_v51 = vpop.f32.mrf.mxu1 }
 0x72e   : > { %26644 = vst [vmem:[#allocation106_spill] sm:$0xff] %v24419_v51  ;;  %v26654_v51 = vld [vmem:[#allocation162_spill] sm:$0xff] }
 0x72f   : > { %v24421_v0 = vpop.f32.mrf.mxu1 }
 0x730   : > { %26645 = vst [vmem:[#allocation173_spill] sm:$0xff] %v24421_v0 }
 0x731   : > { %v24423_v49 = vpop.f32.mrf.mxu1 }
 0x732   : > { %26646 = vst [vmem:[#allocation15_spill] sm:$0xff] %v24423_v49  ;;  %v26655_v49 = vld [vmem:[#allocation169_spill] sm:$0xff] }
 0x733   : > { %v24425_v26 = vpop.f32.mrf.mxu1  ;;  %16592 = vmatmul.mubr.msk.bf16.gmra.mxu1 %vm11455_vm2, %v26648_v48 }
 0x734   : > { %26647 = vst [vmem:[#allocation19_spill] sm:$0xff] %v24425_v26  ;;  %16595 = vmatprep.mubr.msk.bf16.mxu1 %vm11455_vm2, %v26649_v1 }
 0x735   : > { %v24431_v55 = vpop.f32.mrf.mxu1 }
 0x736   : > { %26650 = vst [vmem:[#allocation34_spill] sm:$0xff] %v24431_v55  ;;  %v26660_v55 = vld [vmem:[#allocation5_spill] sm:$0xff] }
 0x737   : > { %v24433_v22 = vpop.f32.mrf.mxu1 }
 0x738   : > { %26651 = vst [vmem:[#allocation155_spill] sm:$0xff] %v24433_v22 }
 0x739   : > { %v24435_v30 = vpop.f32.mrf.mxu1 }
 0x73a   : > { %26652 = vst [vmem:[#allocation10_spill] sm:$0xff] %v24435_v30  ;;  %v26661_v30 = vld [vmem:[#allocation87_spill] sm:$0xff] }
 0x73b   : > { %v24437_v43 = vpop.f32.mrf.mxu1  ;;  %16596 = vmatmul.mubr.msk.bf16.gmra.mxu1 %vm11455_vm2, %v26654_v51 }
 0x73c   : > { %26653 = vst [vmem:[#allocation156_spill] sm:$0xff] %v24437_v43  ;;  %16599 = vmatprep.mubr.msk.bf16.mxu1 %vm11455_vm2, %v26655_v49 }
 0x73d   : > { %v24443_v26 = vpop.f32.mrf.mxu1 }
 0x73e   : > { %26656 = vst [vmem:[#allocation47_spill] sm:$0xff] %v24443_v26  ;;  %v26665_v26 = vld [vmem:[#allocation86_spill] sm:$0xff] }
 0x73f   : > { %v24445_v48 = vpop.f32.mrf.mxu1 }
 0x740   : > { %26657 = vst [vmem:[#allocation9_spill] sm:$0xff] %v24445_v48 }
 0x741   : > { %v24447_v0 = vpop.f32.mrf.mxu1 }
 0x742   : > { %26658 = vst [vmem:[#allocation127_spill] sm:$0xff] %v24447_v0  ;;  %v26666_v0 = vld [vmem:[#allocation116_spill] sm:$0xff] }
 0x743   : > { %v24449_v1 = vpop.f32.mrf.mxu1  ;;  %16600 = vmatmul.mubr.msk.bf16.gmra.mxu1 %vm11455_vm2, %v26660_v55 }
 0x744   : > { %26659 = vst [vmem:[#allocation56_spill] sm:$0xff] %v24449_v1  ;;  %16603 = vmatprep.mubr.msk.bf16.mxu1 %vm11455_vm2, %v26661_v30 }
 0x745   : > { %v24455_v43 = vpop.f32.mrf.mxu1 }
 0x746   : > { %26662 = vst [vmem:[#allocation126_spill] sm:$0xff] %v24455_v43  ;;  %v26669_v43 = vld [vmem:[#allocation51_spill] sm:$0xff] }
 0x747   : > { %v24457_v51 = vpop.f32.mrf.mxu1 }
 0x749   : > { %v24459_v22 = vpop.f32.mrf.mxu1 }
 0x74a   : > { %26663 = vst [vmem:[#allocation103_spill] sm:$0xff] %v24459_v22 }
 0x74b   : > { %v24461_v49 = vpop.f32.mrf.mxu1  ;;  %16604 = vmatmul.mubr.msk.bf16.gmra.mxu1 %vm11455_vm2, %v26665_v26 }
 0x74c   : > { %26664 = vst [vmem:[#allocation30_spill] sm:$0xff] %v24461_v49  ;;  %16607 = vmatprep.mubr.msk.bf16.mxu1 %vm11455_vm2, %v26666_v0  ;;  %v11986_v0 = vadd.f32 %v24293_v59, %v24072_v31  ;;  %v11981_v31 = vadd.f32 %v24303_v12, %v24086_v53  ;;  %v12005_v12 = vadd.f32 %v24313_v35, %v24096_v34 }
 0x74d   : > { %v24467_v1 = vpop.f32.mrf.mxu1  ;;  %v12010_v34 = vadd.f32 %v24323_v7, %v24110_v60  ;;  %v12034_v60 = vadd.f32 %v24329_v33, %v24120_v54  ;;  %v12029_v33 = vadd.f32 %v24339_v2, %v24134_v24  ;;  %v12053_v2 = vadd.f32 %v24349_v41, %v24144_v6 }
 0x74e   : > { %v12058_v6 = vadd.f32 %v24359_v8, %v24154_v38  ;;  %v12082_v38 = vadd.f32 %v24365_v39, %v24168_v23  ;;  %v26688_v39 = vld [vmem:[#allocation142_spill] sm:$0xff] }
 0x74f   : > { %v24469_v55 = vpop.f32.mrf.mxu1 }
 0x750   : > { %26667 = vst [vmem:[#allocation7_spill] sm:$0xff] %v24469_v55 }
 0x751   : > { %v24471_v48 = vpop.f32.mrf.mxu1 }
 0x753   : > { %v24473_v30 = vpop.f32.mrf.mxu1  ;;  %16608 = vmatmul.mubr.msk.bf16.gmra.mxu1 %vm11455_vm2, %v26669_v43 }
 0x754   : > { %26668 = vst [vmem:[#allocation13_spill] sm:$0xff] %v24473_v30  ;;  %16611 = vmatprep.mubr.msk.bf16.mxu1 %vm11455_vm2, %v24034_v62  ;;  %v11978_v30 = vadd.f32 %v24299_v25, %v24078_v16  ;;  %v12002_v16 = vadd.f32 %v24305_v61, %v24088_v21  ;;  %v11997_v61 = vadd.f32 %v24315_v9, %v24102_v52 }
 0x755   : > { %v24479_v49 = vpop.f32.mrf.mxu1  ;;  %v12021_v9 = vadd.f32 %v24325_v29, %v24112_v32  ;;  %v12026_v32 = vadd.f32 %v24335_v11, %v24126_v42  ;;  %v12050_v42 = vadd.f32 %v24341_v46, %v24136_v10  ;;  %v12045_v46 = vadd.f32 %v24351_v5, %v24146_v37 }
 0x756   : > { %26670 = vst [vmem:[#allocation44_spill] sm:$0xff] %v24479_v49  ;;  %v12069_v5 = vadd.f32 %v24361_v50, %v24160_v40  ;;  %v26684_v40 = vld [vmem:[#allocation29_spill] sm:$0xff] }
 0x757   : > { %v24481_v26 = vpop.f32.mrf.mxu1 }
 0x758   : > { %26671 = vst [vmem:[#allocation121_spill] sm:$0xff] %v24481_v26  ;;  %v11989_v26 = vadd.f32 %v24301_v20, %v24080_v63  ;;  %v26673_v20 = vld [vmem:[#allocation77_spill] sm:$0xff] }
 0x759   : > { %v24483_v22 = vpop.f32.mrf.mxu1 }
 0x75a   : > { %26672 = vst [vmem:[#allocation80_spill] sm:$0xff] %v24483_v22 }
 0x75b   : > { %v16515_v55 = vpop.f32.mrf.mxu1  ;;  %16612 = vmatmul.mubr.msk.bf16.gmra.mxu1 %vm11455_vm2, %v24030_v45 }
 0x75c   : > { %v24491_v43 = vadd.f32 %v16515_v55, %v11986_v0  ;;  %16615 = vmatprep.mubr.msk.bf16.mxu1 %vm11455_vm2, %v24047_v27  ;;  %v11994_v27 = vadd.f32 %v24311_v13, %v24094_v36  ;;  %v12018_v36 = vadd.f32 %v24317_v56, %v24104_v28  ;;  %v26674_v0 = vld [vmem:[#allocation70_spill] sm:$0xff]  ;;  %v12013_v56 = vadd.f32 %v24327_v47, %v24118_v4 }
 0x75d   : > { %v12371_v62 = vpop.f32.mrf.mxu1  ;;  %v12037_v47 = vadd.f32 %v24337_v17, %v24128_v58  ;;  %v12042_v58 = vadd.f32 %v24347_v3, %v24138_v57  ;;  %v12066_v57 = vadd.f32 %v24353_v18, %v24152_v19  ;;  %v12061_v18 = vadd.f32 %v24363_v44, %v24162_v15  ;;  %v26686_v44 = vld [vmem:[#allocation25_spill] sm:$0xff] }
 0x75e   : > { %v24497_v22 = vadd.f32 %v12371_v62, %v11978_v30  ;;  %v26675_v62 = vld [vmem:[#allocation79_spill] sm:$0xff] }
 0x75f   : > { %v16516_v49 = vpop.f32.mrf.mxu1 }
 0x760   : > { %v24501_v59 = vadd.f32 %v16516_v49, %v11989_v26 }
 0x761   : > { %v12374_v45 = vpop.f32.mrf.mxu1 }
 0x762   : > { %v24505_v25 = vadd.f32 %v12374_v45, %v11981_v31 }
 0x763   : > { %v16519_v55 = vpop.f32.mrf.mxu1  ;;  %16616 = vmatmul.mubr.msk.bf16.gmra.mxu1 %vm11455_vm2, %v24045_v14 }
 0x764   : > { %v24511_v63 = vadd.f32 %v16519_v55, %v12002_v16  ;;  %16619 = vmatprep.mubr.msk.bf16.mxu1 %vm11455_vm2, %v26673_v20  ;;  %v26677_v20 = vld [vmem:[#allocation172_spill] sm:$0xff] }
 0x765   : > { %v12387_v53 = vpop.f32.mrf.mxu1 }
 0x766   : > { %v24517_v49 = vadd.f32 %v12387_v53, %v11994_v27  ;;  %v26676_v27 = vld [vmem:[#allocation18_spill] sm:$0xff] }
 0x767   : > { %v16520_v21 = vpop.f32.mrf.mxu1 }
 0x768   : > { %v24521_v30 = vadd.f32 %v16520_v21, %v12005_v12 }
 0x769   : > { %v12390_v14 = vpop.f32.mrf.mxu1 }
 0x76a   : > { %v24525_v13 = vadd.f32 %v12390_v14, %v11997_v61  ;;  %v26678_v14 = vld [vmem:[#allocation99_spill] sm:$0xff] }
 0x76b   : > { %v16523_v26 = vpop.f32.mrf.mxu1  ;;  %16620 = vmatmul.mubr.msk.bf16.gmra.mxu1 %vm11455_vm2, %v26674_v0 }
 0x76c   : > { %v24531_v35 = vadd.f32 %v16523_v26, %v12018_v36  ;;  %16623 = vmatprep.mubr.msk.bf16.mxu1 %vm11455_vm2, %v26675_v62  ;;  %v26679_v36 = vld [vmem:[#allocation37_spill] sm:$0xff] }
 0x76d   : > { %v12403_v52 = vpop.f32.mrf.mxu1 }
 0x76e   : > { %v24537_v31 = vadd.f32 %v12403_v52, %v12010_v34  ;;  %v26680_v52 = vld [vmem:[#allocation75_spill] sm:$0xff] }
 0x76f   : > { %v16524_v28 = vpop.f32.mrf.mxu1 }
 0x770   : > { %v24541_v45 = vadd.f32 %v16524_v28, %v12021_v9  ;;  %v26681_v9 = vld [vmem:[#allocation84_spill] sm:$0xff] }
 0x771   : > { %v12406_v16 = vpop.f32.mrf.mxu1 }
 0x772   : > { %v24545_v7 = vadd.f32 %v12406_v16, %v12013_v56 }
 0x773   : > { %v16527_v55 = vpop.f32.mrf.mxu1  ;;  %16624 = vmatmul.mubr.msk.bf16.gmra.mxu1 %vm11455_vm2, %v26676_v27  ;;  %v26683_v27 = vld [vmem:[#allocation40_spill] sm:$0xff] }
 0x774   : > { %v24551_v29 = vadd.f32 %v16527_v55, %v12034_v60  ;;  %16627 = vmatprep.mubr.msk.bf16.mxu1 %vm11455_vm2, %v26677_v20  ;;  %v26682_v55 = vld [vmem:[#allocation28_spill] sm:$0xff]  ;;  %v12074_v50 = vadd.f32 %v26684_v40, %v26683_v27  ;;  %v26685_v20 = vld [vmem:[#allocation53_spill] sm:$0xff]  ;;  %v26699_v27 = vld [vmem:[#allocation163_spill] sm:$0xff] }
 0x775   : > { %v12419_v4 = vpop.f32.mrf.mxu1  ;;  %v26700_v40 = vld [vmem:[#allocation151_spill] sm:$0xff] }
 0x776   : > { %v24557_v53 = vadd.f32 %v12419_v4, %v12026_v32  ;;  %v26687_v4 = vld [vmem:[#allocation102_spill] sm:$0xff] }
 0x777   : > { %v16528_v54 = vpop.f32.mrf.mxu1 }
 0x778   : > { %v24561_v12 = vadd.f32 %v16528_v54, %v12037_v47  ;;  %v12085_v47 = vadd.f32 %v26687_v4, %v26686_v44  ;;  %v26701_v44 = vld [vmem:[#allocation167_spill] sm:$0xff]  ;;  %v26702_v4 = vld [vmem:[#allocation154_spill] sm:$0xff] }
 0x779   : > { %v12422_v21 = vpop.f32.mrf.mxu1 }
 0x77a   : > { %v24565_v11 = vadd.f32 %v12422_v21, %v12029_v33  ;;  %v26689_v33 = vld [vmem:[#allocation8_spill] sm:$0xff] }
 0x77b   : > { %v16531_v61 = vpop.f32.mrf.mxu1  ;;  %16628 = vmatmul.mubr.msk.bf16.gmra.mxu1 %vm11455_vm2, %v26678_v14  ;;  %v12077_v21 = vadd.f32 %v26689_v33, %v26688_v39  ;;  %v26690_v14 = vld [vmem:[#allocation81_spill] sm:$0xff]  ;;  %v26703_v33 = vld [vmem:[#allocation39_spill] sm:$0xff] }
 0x77c   : > { %v24571_v17 = vadd.f32 %v16531_v61, %v12050_v42  ;;  %16631 = vmatprep.mubr.msk.bf16.mxu1 %vm11455_vm2, %v26679_v36 }
 0x77d   : > { %v12435_v24 = vpop.f32.mrf.mxu1 }
 0x77e   : > { %v24577_v26 = vadd.f32 %v12435_v24, %v12042_v58  ;;  %v26691_v58 = vld [vmem:[#allocation150_spill] sm:$0xff] }
 0x77f   : > { %v16532_v10 = vpop.f32.mrf.mxu1  ;;  %v12098_v36 = vadd.f32 %v26691_v58, %v26690_v14 }
 0x780   : > { %v24581_v0 = vadd.f32 %v16532_v10, %v12053_v2  ;;  %v26692_v10 = vld [vmem:[#allocation165_spill] sm:$0xff] }
 0x781   : > { %v12438_v34 = vpop.f32.mrf.mxu1 }
 0x782   : > { %v24585_v3 = vadd.f32 %v12438_v34, %v12045_v46  ;;  %v26693_v46 = vld [vmem:[#allocation11_spill] sm:$0xff]  ;;  %v26694_v34 = vld [vmem:[#allocation36_spill] sm:$0xff] }
 0x783   : > { %v16535_v62 = vpop.f32.mrf.mxu1  ;;  %16632 = vmatmul.mubr.msk.bf16.gmra.mxu1 %vm11455_vm2, %v26680_v52 }
 0x784   : > { %v24591_v41 = vadd.f32 %v16535_v62, %v12066_v57  ;;  %16635 = vmatprep.mubr.msk.bf16.mxu1 %vm11455_vm2, %v26681_v9  ;;  %v12090_v57 = vadd.f32 %v26694_v34, %v26693_v46  ;;  %v26696_v9 = vld [vmem:[#allocation135_spill] sm:$0xff] }
 0x785   : > { %v12451_v37 = vpop.f32.mrf.mxu1 }
 0x786   : > { %v24597_v28 = vadd.f32 %v12451_v37, %v12058_v6  ;;  %v26695_v6 = vld [vmem:[#allocation108_spill] sm:$0xff] }
 0x787   : > { %v16536_v19 = vpop.f32.mrf.mxu1  ;;  %v12101_v37 = vadd.f32 %v26696_v9, %v26695_v6 }
 0x788   : > { %v24601_v56 = vadd.f32 %v16536_v19, %v12069_v5 }
 0x789   : > { %v12454_v16 = vpop.f32.mrf.mxu1 }
 0x78a   : > { %v24605_v8 = vadd.f32 %v12454_v16, %v12061_v18  ;;  %v26697_v18 = vld [vmem:[#allocation12_spill] sm:$0xff]  ;;  %v26698_v16 = vld [vmem:[#allocation22_spill] sm:$0xff] }
 0x78b   : > { %v16539_v60 = vpop.f32.mrf.mxu1  ;;  %16636 = vmatmul.mubr.msk.bf16.gmra.mxu1 %vm11455_vm2, %v26682_v55 }
 0x78c   : > { %v24611_v32 = vadd.f32 %v16539_v60, %v12082_v38  ;;  %16639 = vmatprep.mubr.msk.bf16.mxu1 %vm11455_vm2, %v26685_v20  ;;  %v12093_v38 = vadd.f32 %v26698_v16, %v26697_v18  ;;  %v26710_v18 = vld [vmem:[#allocation31_spill] sm:$0xff] }
 0x78d   : > { %v12467_v15 = vpop.f32.mrf.mxu1 }
 0x78e   : > { %v24617_v54 = vadd.f32 %v12467_v15, %v12074_v50  ;;  %v12114_v50 = vadd.f32 %v26700_v40, %v26699_v27  ;;  %v26711_v27 = vld [vmem:[#allocation50_spill] sm:$0xff]  ;;  %v26712_v40 = vld [vmem:[#allocation64_spill] sm:$0xff] }
 0x78f   : > { %v16540_v23 = vpop.f32.mrf.mxu1 }
 0x790   : > { %v24621_v42 = vadd.f32 %v16540_v23, %v12085_v47  ;;  %v12106_v47 = vadd.f32 %v26702_v4, %v26701_v44  ;;  %v26713_v4 = vld [vmem:[#allocation136_spill] sm:$0xff] }
 0x791   : > { %v12470_v61 = vpop.f32.mrf.mxu1 }
 0x792   : > { %v24625_v24 = vadd.f32 %v12470_v61, %v12077_v21  ;;  %v26704_v21 = vld [vmem:[#allocation138_spill] sm:$0xff] }
 0x793   : > { %v16543_v2 = vpop.f32.mrf.mxu1  ;;  %16640 = vmatmul.mubr.msk.bf16.gmra.mxu1 %vm11455_vm2, %v26692_v10  ;;  %v12117_v61 = vadd.f32 %v26704_v21, %v26703_v33 }
 0x794   : > { %v24631_v62 = vadd.f32 %v16543_v2, %v12098_v36  ;;  %v26705_v36 = vld [vmem:[#allocation179_spill] sm:$0xff]  ;;  %v26706_v2 = vld [vmem:[#allocation21_spill] sm:$0xff] }
 0x795   : > { %v12483_v52 = vpop.f32.mrf.mxu1  ;;  %v12109_v10 = vadd.f32 %v26706_v2, %v26705_v36 }
 0x796   : > { %v24635_v5 = vadd.f32 %v12483_v52, %v12090_v57  ;;  %v26707_v57 = vld [vmem:[#allocation112_spill] sm:$0xff]  ;;  %v26708_v52 = vld [vmem:[#allocation157_spill] sm:$0xff] }
 0x797   : > { %v16544_v19 = vpop.f32.mrf.mxu1  ;;  %v12130_v6 = vadd.f32 %v26708_v52, %v26707_v57  ;;  %v26718_v57 = vld [vmem:[#allocation106_spill] sm:$0xff] }
 0x798   : > { %v24639_v60 = vadd.f32 %v16544_v19, %v12101_v37  ;;  %v26709_v19 = vld [vmem:[#allocation89_spill] sm:$0xff] }
 0x799   : > { %v12486_v55 = vpop.f32.mrf.mxu1  ;;  %v12122_v16 = vadd.f32 %v26710_v18, %v26709_v19  ;;  %v26720_v19 = vld [vmem:[#allocation170_spill] sm:$0xff]  ;;  %v26721_v18 = vld [vmem:[#allocation173_spill] sm:$0xff] }
 0x79a   : > { %v24643_v20 = vadd.f32 %v12486_v55, %v12093_v38 }
 0x79b   : > { %v16547_v15 = vpop.f32.mrf.mxu1 }
 0x79c   : > { %v24647_v23 = vadd.f32 %v16547_v15, %v12114_v50  ;;  %v12133_v50 = vadd.f32 %v26712_v40, %v26711_v27  ;;  %v26723_v40 = vld [vmem:[#allocation175_spill] sm:$0xff] }
 0x79d   : > { %v12499_v39 = vpop.f32.mrf.mxu1 }
 0x79e   : > { %v24651_v14 = vadd.f32 %v12499_v39, %v12106_v47  ;;  %v26714_v47 = vld [vmem:[#allocation61_spill] sm:$0xff] }
 0x79f   : > { %v16548_v58 = vpop.f32.mrf.mxu1  ;;  %v12125_v39 = vadd.f32 %v26714_v47, %v26713_v4 }
 0x7a0   : > { %v24655_v46 = vadd.f32 %v16548_v58, %v12117_v61  ;;  %v26715_v61 = vld [vmem:[#allocation174_spill] sm:$0xff]  ;;  %v26716_v58 = vld [vmem:[#allocation48_spill] sm:$0xff] }
 0x7a1   : > { %v12502_v34 = vpop.f32.mrf.mxu1  ;;  %v12146_v36 = vadd.f32 %v26716_v58, %v26715_v61 }
 0x7a2   : > { %v24659_v9 = vadd.f32 %v12502_v34, %v12109_v10  ;;  %v26717_v34 = vld [vmem:[#allocation137_spill] sm:$0xff] }
 0x7a3   : > { %v16551_v37 = vpop.f32.mrf.mxu1  ;;  %v12138_v52 = vadd.f32 %v26718_v57, %v26717_v34  ;;  %v26730_v34 = vld [vmem:[#allocation34_spill] sm:$0xff] }
 0x7a4   : > { %v24663_v38 = vadd.f32 %v16551_v37, %v12130_v6 }
 0x7a5   : > { %v12515_v55 = vpop.f32.mrf.mxu1 }
 0x7a6   : > { %v24667_v15 = vadd.f32 %v12515_v55, %v12122_v16  ;;  %v12149_v16 = vadd.f32 %v26721_v18, %v26720_v19  ;;  %v26733_v19 = vld [vmem:[#allocation155_spill] sm:$0xff] }
 0x7a7   : > { %v16552_v44 = vpop.f32.mrf.mxu1 }
 0x7a8   : > { %v24671_v33 = vadd.f32 %v16552_v44, %v12133_v50  ;;  %v26724_v50 = vld [vmem:[#allocation15_spill] sm:$0xff] }
 0x7a9   : > { %v12518_v21 = vpop.f32.mrf.mxu1  ;;  %v12141_v44 = vadd.f32 %v26724_v50, %v26723_v40  ;;  %v26736_v40 = vld [vmem:[#allocation10_spill] sm:$0xff] }
 0x7aa   : > { %v24675_v2 = vadd.f32 %v12518_v21, %v12125_v39  ;;  %v26726_v39 = vld [vmem:[#allocation160_spill] sm:$0xff]  ;;  %v26727_v21 = vld [vmem:[#allocation19_spill] sm:$0xff] }
 0x7ab   : > { %v16555_v10 = vpop.f32.mrf.mxu1  ;;  %v12162_v61 = vadd.f32 %v26727_v21, %v26726_v39  ;;  %v26739_v39 = vld [vmem:[#allocation156_spill] sm:$0xff] }
 0x7ac   : > { %v24679_v6 = vadd.f32 %v16555_v10, %v12146_v36  ;;  %v26729_v10 = vld [vmem:[#allocation78_spill] sm:$0xff] }
 0x7ad   : > { %v12531_v37 = vpop.f32.mrf.mxu1  ;;  %v12154_v57 = vadd.f32 %v26730_v34, %v26729_v10  ;;  %v26742_v10 = vld [vmem:[#allocation47_spill] sm:$0xff] }
 0x7ae   : > { %26719 = vst [vmem:[#allocation109_spill] sm:$0xff] %v24679_v6  ;;  %v24683_v55 = vadd.f32 %v12531_v37, %v12138_v52  ;;  %v26732_v37 = vld [vmem:[#allocation66_spill] sm:$0xff] }
 0x7af   : > { %v16556_v27 = vpop.f32.mrf.mxu1  ;;  %v12165_v18 = vadd.f32 %v26733_v19, %v26732_v37  ;;  %v26745_v37 = vld [vmem:[#allocation9_spill] sm:$0xff] }
 0x7b0   : > { %26722 = vst [vmem:[#allocation94_spill] sm:$0xff] %v24683_v55  ;;  %v24687_v4 = vadd.f32 %v16556_v27, %v12149_v16  ;;  %v26735_v27 = vld [vmem:[#allocation104_spill] sm:$0xff] }
 0x7b1   : > { %v12534_v47 = vpop.f32.mrf.mxu1  ;;  %v12157_v50 = vadd.f32 %v26736_v40, %v26735_v27  ;;  %v26747_v27 = vld [vmem:[#allocation127_spill] sm:$0xff] }
 0x7b2   : > { %26725 = vst [vmem:[#allocation107_spill] sm:$0xff] %v24687_v4  ;;  %v24691_v58 = vadd.f32 %v12534_v47, %v12141_v44  ;;  %v26738_v47 = vld [vmem:[#allocation62_spill] sm:$0xff] }
 0x7b3   : > { %v16559_v36 = vpop.f32.mrf.mxu1  ;;  %v12178_v21 = vadd.f32 %v26739_v39, %v26738_v47  ;;  %v26750_v47 = vld [vmem:[#allocation56_spill] sm:$0xff] }
 0x7b4   : > { %26728 = vst [vmem:[#allocation35_spill] sm:$0xff] %v24691_v58  ;;  %v24695_v6 = vadd.f32 %v16559_v36, %v12162_v61  ;;  %v26741_v36 = vld [vmem:[#allocation143_spill] sm:$0xff] }
 0x7b5   : > { %v12547_v52 = vpop.f32.mrf.mxu1  ;;  %v12170_v34 = vadd.f32 %v26742_v10, %v26741_v36  ;;  %v26753_v36 = vld [vmem:[#allocation126_spill] sm:$0xff] }
 0x7b6   : > { %26731 = vst [vmem:[#allocation134_spill] sm:$0xff] %v24695_v6  ;;  %v24699_v55 = vadd.f32 %v12547_v52, %v12154_v57  ;;  %v26744_v52 = vld [vmem:[#allocation161_spill] sm:$0xff] }
 0x7b7   : > { %v16560_v16 = vpop.f32.mrf.mxu1  ;;  %v12181_v19 = vadd.f32 %v26745_v37, %v26744_v52 }
 0x7b8   : > { %26734 = vst [vmem:[#allocation144_spill] sm:$0xff] %v24699_v55  ;;  %v24703_v4 = vadd.f32 %v16560_v16, %v12165_v18  ;;  %v26746_v16 = vld [vmem:[#allocation110_spill] sm:$0xff] }
 0x7b9   : > { %v12550_v44 = vpop.f32.mrf.mxu1  ;;  %v12173_v40 = vadd.f32 %v26747_v27, %v26746_v16  ;;  %v26757_v16 = vld [vmem:[#allocation103_spill] sm:$0xff] }
 0x7ba   : > { %26737 = vst [vmem:[#allocation26_spill] sm:$0xff] %v24703_v4  ;;  %v24707_v58 = vadd.f32 %v12550_v44, %v12157_v50  ;;  %v26749_v44 = vld [vmem:[#allocation176_spill] sm:$0xff] }
 0x7bb   : > { %v16563_v61 = vpop.f32.mrf.mxu1  ;;  %v12194_v39 = vadd.f32 %v26750_v47, %v26749_v44  ;;  %v26759_v44 = vld [vmem:[#allocation30_spill] sm:$0xff] }
 0x7bc   : > { %26740 = vst [vmem:[#allocation123_spill] sm:$0xff] %v24707_v58  ;;  %v24711_v6 = vadd.f32 %v16563_v61, %v12178_v21  ;;  %v26752_v61 = vld [vmem:[#allocation54_spill] sm:$0xff] }
 0x7bd   : > { %v12563_v57 = vpop.f32.mrf.mxu1  ;;  %v12186_v10 = vadd.f32 %v26753_v36, %v26752_v61 }
 0x7be   : > { %26743 = vst [vmem:[#allocation82_spill] sm:$0xff] %v24711_v6  ;;  %v24715_v55 = vadd.f32 %v12563_v57, %v12170_v34  ;;  %v26754_v57 = vld [vmem:[#allocation105_spill] sm:$0xff] }
 0x7bf   : > { %v16564_v18 = vpop.f32.mrf.mxu1  ;;  %v12197_v52 = vadd.f32 %v24457_v51, %v26754_v57 }
 0x7c0   : > { %v24719_v4 = vadd.f32 %v16564_v18, %v12181_v19  ;;  %v26756_v18 = vld [vmem:[#allocation57_spill] sm:$0xff] }
 0x7c1   : > { %v12566_v50 = vpop.f32.mrf.mxu1  ;;  %v12189_v27 = vadd.f32 %v26757_v16, %v26756_v18 }
 0x7c2   : > { %26748 = vst [vmem:[#allocation124_spill] sm:$0xff] %v24719_v4  ;;  %v24723_v58 = vadd.f32 %v12566_v50, %v12173_v40  ;;  %v26758_v50 = vld [vmem:[#allocation68_spill] sm:$0xff] }
 0x7c3   : > { %v16567_v21 = vpop.f32.mrf.mxu1  ;;  %v12210_v47 = vadd.f32 %v26759_v44, %v26758_v50  ;;  %v26769_v50 = vld [vmem:[#allocation13_spill] sm:$0xff] }
 0x7c4   : > { %26751 = vst [vmem:[#allocation120_spill] sm:$0xff] %v24723_v58  ;;  %v24727_v6 = vadd.f32 %v16567_v21, %v12194_v39  ;;  %v26761_v21 = vld [vmem:[#allocation58_spill] sm:$0xff] }
 0x7c5   : > { %v12579_v34 = vpop.f32.mrf.mxu1  ;;  %v12202_v61 = vadd.f32 %v24467_v1, %v26761_v21 }
 0x7c6   : > { %v24731_v37 = vadd.f32 %v12579_v34, %v12186_v10  ;;  %v26763_v10 = vld [vmem:[#allocation91_spill] sm:$0xff] }
 0x7c7   : > { %v16568_v19 = vpop.f32.mrf.mxu1  ;;  %v26764_v34 = vld [vmem:[#allocation7_spill] sm:$0xff] }
 0x7c8   : > { %26755 = vst [vmem:[#allocation111_spill] sm:$0xff] %v24731_v37  ;;  %v24735_v4 = vadd.f32 %v16568_v19, %v12197_v52  ;;  %v12213_v57 = vadd.f32 %v26764_v34, %v26763_v10  ;;  %v26766_v19 = vld [vmem:[#allocation114_spill] sm:$0xff]  ;;  %v26773_v10 = vld [vmem:[#allocation121_spill] sm:$0xff] }
 0x7c9   : > { %v12582_v40 = vpop.f32.mrf.mxu1  ;;  %v12205_v18 = vadd.f32 %v24471_v48, %v26766_v19 }
 0x7ca   : > { %v24739_v58 = vadd.f32 %v12582_v40, %v12189_v27  ;;  %v26768_v40 = vld [vmem:[#allocation71_spill] sm:$0xff] }
 0x7cb   : > { %v16571_v39 = vpop.f32.mrf.mxu1  ;;  %v12226_v44 = vadd.f32 %v26769_v50, %v26768_v40  ;;  %v24774_v50 = vld [vmem:[%s24958_s4] ss:$0 sm:$0xff] }
 0x7cc   : > { %26760 = vst [vmem:[#allocation32_spill] sm:$0xff] %v24739_v58  ;;  %v24743_v36 = vadd.f32 %v16571_v39, %v12210_v47  ;;  %v26770_v47 = vld [vmem:[#allocation145_spill] sm:$0xff]  ;;  %v26771_v39 = vld [vmem:[#allocation44_spill] sm:$0xff] }
 0x7cd   : > { %v12595_v51 = vpop.f32.mrf.mxu1  ;;  %v12218_v21 = vadd.f32 %v26771_v39, %v26770_v47 }
 0x7ce   : > { %26762 = vst [vmem:[#allocation98_spill] sm:$0xff] %v24743_v36  ;;  %v24747_v37 = vadd.f32 %v12595_v51, %v12202_v61  ;;  %v26772_v51 = vld [vmem:[#allocation180_spill] sm:$0xff] }
 0x7cf   : > { %v16572_v52 = vpop.f32.mrf.mxu1  ;;  %v12229_v34 = vadd.f32 %v26773_v10, %v26772_v51 }
 0x7d0   : > { %26765 = vst [vmem:[#allocation55_spill] sm:$0xff] %v24747_v37  ;;  %v24751_v16 = vadd.f32 %v16572_v52, %v12213_v57  ;;  %v26774_v57 = vld [vmem:[#allocation3_spill] sm:$0xff]  ;;  %v26775_v52 = vld [vmem:[#allocation80_spill] sm:$0xff] }
 0x7d1   : > { %v12598_v27 = vpop.f32.mrf.mxu1  ;;  %v12221_v19 = vadd.f32 %v26775_v52, %v26774_v57 }
 0x7d2   : > { %26767 = vst [vmem:[#allocation52_spill] sm:$0xff] %v24751_v16  ;;  %v24755_v58 = vadd.f32 %v12598_v27, %v12205_v18 }
 0x7d3   : > { %v16575_v1 = vpop.f32.mrf.mxu1 }
 0x7d4   : > { %v24759_v36 = vadd.f32 %v16575_v1, %v12226_v44 }
 0x7d5   : > { %v12611_v61 = vpop.f32.mrf.mxu1 }
 0x7d6   : > { %v24763_v37 = vadd.f32 %v12611_v61, %v12218_v21 }
 0x7d7   : > { %v16576_v48 = vpop.f32.mrf.mxu1 }
 0x7d8   : > { %v24767_v16 = vadd.f32 %v16576_v48, %v12229_v34 }
 0x7d9   : > { %v12614_v18 = vpop.f32.mrf.mxu1 }
 0x7da   : > { %v24769_v27 = vadd.f32 %v12614_v18, %v12221_v19 }
 0x7db   : > { %v16581_v40 = vpop.f32.mrf.mxu1 }
 0x7dc   : > { %v13086_v44 = vadd.f32 %v16581_v40, %v24491_v43 }
 0x7dd   : > { %v12829_v1 = vpop.f32.mrf.mxu1 }
 0x7de   : > { %v13157_v47 = vadd.f32 %v24774_v50, %v13086_v44  ;;  %v13084_v39 = vadd.f32 %v12829_v1, %v24497_v22 }
 0x7df   : > { %v16582_v21 = vpop.f32.mrf.mxu1 }
 0x7e0   : > { %v13155_v61 = vadd.f32 %v24774_v50, %v13084_v39  ;;  %v13087_v51 = vadd.f32 %v16582_v21, %v24501_v59  ;;  %v13221_v34 = vmax.f32 %v13157_v47, 0.0 }
 0x7e1   : > { %v12832_v10 = vpop.f32.mrf.mxu1 }
 0x7e2   : > { %v13219_v48 = vmax.f32 %v13155_v61, 0.0  ;;  %v13158_v57 = vadd.f32 %v24774_v50, %v13087_v51  ;;  %v13085_v52 = vadd.f32 %v12832_v10, %v24505_v25 }
 0x7e3   : > { %v16585_v19 = vpop.f32.mrf.mxu1 }
 0x7e4   : > { %v13283_v18 = vmax.f32 %v13219_v48, %v13221_v34  ;;  %v13156_v43 = vadd.f32 %v24774_v50, %v13085_v52  ;;  %v13090_v40 = vadd.f32 %v16585_v19, %v24511_v63  ;;  %v13222_v22 = vmax.f32 %v13158_v57, 0.0 }
 0x7e5   : > { %v12845_v44 = vpop.f32.mrf.mxu1 }
 0x7e6   : > { %v13220_v1 = vmax.f32 %v13156_v43, 0.0  ;;  %v13161_v39 = vadd.f32 %v24774_v50, %v13090_v40  ;;  %v13088_v59 = vadd.f32 %v12845_v44, %v24517_v49 }
 0x7e7   : > { %v16586_v21 = vpop.f32.mrf.mxu1 }
 0x7e8   : > { %v13284_v47 = vmax.f32 %v13220_v1, %v13222_v22  ;;  %v13159_v61 = vadd.f32 %v24774_v50, %v13088_v59  ;;  %v13091_v51 = vadd.f32 %v16586_v21, %v24521_v30  ;;  %v13225_v10 = vmax.f32 %v13161_v39, 0.0  ;;  %v24798_v39 = vld [vmem:[%s24959_s5] sm:$0xff] }
 0x7e9   : > { %v12848_v25 = vpop.f32.mrf.mxu1 }
 0x7ea   : > { %v13223_v34 = vmax.f32 %v13159_v61, 0.0  ;;  %v13162_v48 = vadd.f32 %v24774_v50, %v13091_v51  ;;  %v13089_v63 = vadd.f32 %v12848_v25, %v24525_v13 }
 0x7eb   : > { %v16589_v52 = vpop.f32.mrf.mxu1 }
 0x7ec   : > { %v13299_v57 = vmax.f32 %v13223_v34, %v13225_v10  ;;  %v13160_v19 = vadd.f32 %v24774_v50, %v13089_v63  ;;  %v13094_v43 = vadd.f32 %v16589_v52, %v24531_v35  ;;  %v13226_v49 = vmax.f32 %v13162_v48, 0.0  ;;  %v24808_v48 = vld [vmem:[%s24959_s5 + $0x8] sm:$0xff] }
 0x7ed   : > { %v12861_v40 = vpop.f32.mrf.mxu1 }
 0x7ee   : > { %v13224_v44 = vmax.f32 %v13160_v19, 0.0  ;;  %v13165_v22 = vadd.f32 %v24774_v50, %v13094_v43  ;;  %v13092_v30 = vadd.f32 %v12861_v40, %v24537_v31  ;;  %v13315_v1 = vmax.f32 %v13283_v18, %v13299_v57 }
 0x7ef   : > { %v16590_v13 = vpop.f32.mrf.mxu1 }
 0x7f0   : > { %v13300_v59 = vmax.f32 %v13224_v44, %v13226_v49  ;;  %v13163_v21 = vadd.f32 %v24774_v50, %v13092_v30  ;;  %v13095_v61 = vadd.f32 %v16590_v13, %v24541_v45  ;;  %v13229_v35 = vmax.f32 %v13165_v22, 0.0 }
 0x7f1   : > { %v12864_v51 = vpop.f32.mrf.mxu1  ;;  %v13333_v25 = vmul.f32 %v24798_v39, %v13315_v1 }
 0x7f2   : > { %v13227_v10 = vmax.f32 %v13163_v21, 0.0  ;;  %v13166_v31 = vadd.f32 %v24774_v50, %v13095_v61  ;;  %v13093_v18 = vadd.f32 %v12864_v51, %v24545_v7  ;;  %v13316_v34 = vmax.f32 %v13284_v47, %v13300_v59 }
 0x7f3   : > { %v16593_v63 = vpop.f32.mrf.mxu1  ;;  %v13350_v52 = vsel %vm13349_vm3, %v13333_v25, 0.0 }
 0x7f4   : > { %v13285_v45 = vmax.f32 %v13227_v10, %v13229_v35  ;;  %v13164_v57 = vadd.f32 %v24774_v50, %v13093_v18  ;;  %v13098_v19 = vadd.f32 %v16593_v63, %v24551_v29  ;;  %13351 = vadd.xlane.f32.xlu0 %v13350_v52  ;;  %v13334_v49 = vmul.f32 %v24808_v48, %v13316_v34 }
 0x7f5   : > { %v12877_v43 = vpop.f32.mrf.mxu1  ;;  %v13230_v40 = vmax.f32 %v13166_v31, 0.0 }
 0x7f6   : > { %v13228_v7 = vmax.f32 %v13164_v57, 0.0  ;;  %v13169_v47 = vadd.f32 %v24774_v50, %v13098_v19  ;;  %v13096_v44 = vadd.f32 %v12877_v43, %v24557_v53  ;;  %v13353_v30 = vsel %vm13349_vm3, %v13334_v49, 0.0 }
 0x7f7   : > { %v16594_v22 = vpop.f32.mrf.mxu1 }
 0x7f8   : > { %v13286_v1 = vmax.f32 %v13228_v7, %v13230_v40  ;;  %v13167_v13 = vadd.f32 %v24774_v50, %v13096_v44  ;;  %v13099_v59 = vadd.f32 %v16594_v22, %v24561_v12  ;;  %13354 = vadd.xlane.f32.xlu0 %v13353_v30  ;;  %v13233_v21 = vmax.f32 %v13169_v47, 0.0 }
 0x7f9   : > { %v12880_v29 = vpop.f32.mrf.mxu1 }
 0x7fa   : > { %v13231_v61 = vmax.f32 %v13167_v13, 0.0  ;;  %v13170_v35 = vadd.f32 %v24774_v50, %v13099_v59  ;;  %v13097_v51 = vadd.f32 %v12880_v29, %v24565_v11 }
 0x7fb   : > { %v16597_v25 = vpop.f32.mrf.mxu1 }
 0x7fc   : > { %v13301_v10 = vmax.f32 %v13231_v61, %v13233_v21  ;;  %v13168_v53 = vadd.f32 %v24774_v50, %v13097_v51  ;;  %v13102_v31 = vadd.f32 %v16597_v25, %v24571_v17  ;;  %v13234_v18 = vmax.f32 %v13170_v35, 0.0 }
 0x7fd   : > { %v12893_v34 = vpop.f32.mrf.mxu1 }
 0x7fe   : > { %v13232_v63 = vmax.f32 %v13168_v53, 0.0  ;;  %v13173_v52 = vadd.f32 %v24774_v50, %v13102_v31  ;;  %v13100_v12 = vadd.f32 %v12893_v34, %v24577_v26  ;;  %v13317_v57 = vmax.f32 %v13285_v45, %v13301_v10 }
 0x7ff   : > { %v16598_v19 = vpop.f32.mrf.mxu1 }
 0x800   : > { %v13302_v43 = vmax.f32 %v13232_v63, %v13234_v18  ;;  %v13171_v49 = vadd.f32 %v24774_v50, %v13100_v12  ;;  %v13103_v11 = vadd.f32 %v16598_v19, %v24581_v0  ;;  %v13237_v40 = vmax.f32 %v13173_v52, 0.0 }
 0x801   : > { %v12896_v7 = vpop.f32.mrf.mxu1  ;;  %v13335_v47 = vmul.f32 %v24798_v39, %v13317_v57 }
 0x802   : > { %v13235_v44 = vmax.f32 %v13171_v49, 0.0  ;;  %v13174_v17 = vadd.f32 %v24774_v50, %v13103_v11  ;;  %v13101_v22 = vadd.f32 %v12896_v7, %v24585_v3  ;;  %v13318_v30 = vmax.f32 %v13286_v1, %v13302_v43 }
 0x803   : > { %v16601_v13 = vpop.f32.mrf.mxu1  ;;  %v13356_v26 = vsel %vm13349_vm3, %v13335_v47, 0.0 }
 0x804   : > { %v13287_v45 = vmax.f32 %v13235_v44, %v13237_v40  ;;  %v13172_v59 = vadd.f32 %v24774_v50, %v13101_v22  ;;  %v13106_v29 = vadd.f32 %v16601_v13, %v24591_v41  ;;  %13357 = vadd.xlane.f32.xlu1 %v13356_v26  ;;  %v13336_v21 = vmul.f32 %v24808_v48, %v13318_v30 }
 0x805   : > { %v12909_v0 = vpop.f32.mrf.mxu1  ;;  %v13238_v61 = vmax.f32 %v13174_v17, 0.0 }
 0x806   : > { %v13236_v35 = vmax.f32 %v13172_v59, 0.0  ;;  %v13177_v51 = vadd.f32 %v24774_v50, %v13106_v29  ;;  %v13104_v25 = vadd.f32 %v12909_v0, %v24597_v28  ;;  %v13359_v1 = vsel %vm13349_vm3, %v13336_v21, 0.0 }
 0x807   : > { %v16602_v3 = vpop.f32.mrf.mxu1 }
 0x808   : > { %v13288_v10 = vmax.f32 %v13236_v35, %v13238_v61  ;;  %v13175_v53 = vadd.f32 %v24774_v50, %v13104_v25  ;;  %v13107_v31 = vadd.f32 %v16602_v3, %v24601_v56  ;;  %13360 = vadd.xlane.f32.xlu1 %v13359_v1  ;;  %v13241_v18 = vmax.f32 %v13177_v51, 0.0 }
 0x809   : > { %v12912_v41 = vpop.f32.mrf.mxu1 }
 0x80a   : > { %v13239_v34 = vmax.f32 %v13175_v53, 0.0  ;;  %v13178_v63 = vadd.f32 %v24774_v50, %v13107_v31  ;;  %v13105_v52 = vadd.f32 %v12912_v41, %v24605_v8 }
 0x80b   : > { %v16605_v12 = vpop.f32.mrf.mxu1 }
 0x80c   : > { %v13303_v57 = vmax.f32 %v13239_v34, %v13241_v18  ;;  %v13176_v28 = vadd.f32 %v24774_v50, %v13105_v52  ;;  %v13110_v19 = vadd.f32 %v16605_v12, %v24611_v32  ;;  %v13242_v43 = vmax.f32 %v13178_v63, 0.0 }
 0x80d   : > { %v12925_v49 = vpop.f32.mrf.mxu1 }
 0x80e   : > { %v13240_v11 = vmax.f32 %v13176_v28, 0.0  ;;  %v13181_v40 = vadd.f32 %v24774_v50, %v13110_v19  ;;  %v13108_v56 = vadd.f32 %v12925_v49, %v24617_v54  ;;  %v13319_v7 = vmax.f32 %v13287_v45, %v13303_v57 }
 0x80f   : > { %v16606_v47 = vpop.f32.mrf.mxu1 }
 0x810   : > { %v13304_v44 = vmax.f32 %v13240_v11, %v13242_v43  ;;  %v13179_v17 = vadd.f32 %v24774_v50, %v13108_v56  ;;  %v13111_v8 = vadd.f32 %v16606_v47, %v24621_v42  ;;  %v13245_v22 = vmax.f32 %v13181_v40, 0.0 }
 0x811   : > { %v12928_v30 = vpop.f32.mrf.mxu1  ;;  %v13337_v13 = vmul.f32 %v24798_v39, %v13319_v7 }
 0x812   : > { %v13243_v26 = vmax.f32 %v13179_v17, 0.0  ;;  %v13182_v32 = vadd.f32 %v24774_v50, %v13111_v8  ;;  %v13109_v59 = vadd.f32 %v12928_v30, %v24625_v24  ;;  %v13320_v29 = vmax.f32 %v13288_v10, %v13304_v44 }
 0x813   : > { %v16609_v0 = vpop.f32.mrf.mxu1  ;;  %v13362_v54 = vsel %vm13349_vm3, %v13337_v13, 0.0 }
 0x814   : > { %v13289_v45 = vmax.f32 %v13243_v26, %v13245_v22  ;;  %v13180_v21 = vadd.f32 %v24774_v50, %v13109_v59  ;;  %v13114_v61 = vadd.f32 %v16609_v0, %v24631_v62  ;;  %13363 = vadd.xlane.f32.xlu0 %v13362_v54  ;;  %v13338_v35 = vmul.f32 %v24808_v48, %v13320_v29 }
 0x815   : > { %v12941_v42 = vpop.f32.mrf.mxu1  ;;  %v13246_v51 = vmax.f32 %v13182_v32, 0.0 }
 0x816   : > { %v13244_v25 = vmax.f32 %v13180_v21, 0.0  ;;  %v13185_v3 = vadd.f32 %v24774_v50, %v13114_v61  ;;  %v13112_v1 = vadd.f32 %v12941_v42, %v24635_v5  ;;  %v13365_v10 = vsel %vm13349_vm3, %v13338_v35, 0.0 }
 0x817   : > { %v16610_v24 = vpop.f32.mrf.mxu1  ;;  %13366 = vadd.xlane.f32.xlu1 %v13365_v10 }
 0x818   : > { %v13290_v53 = vmax.f32 %v13244_v25, %v13246_v51  ;;  %v13183_v31 = vadd.f32 %v24774_v50, %v13112_v1  ;;  %v13115_v41 = vadd.f32 %v16610_v24, %v24639_v60  ;;  %v13249_v18 = vmax.f32 %v13185_v3, 0.0 }
 0x819   : > { %v12944_v62 = vpop.f32.mrf.mxu1 }
 0x81a   : > { %v13247_v34 = vmax.f32 %v13183_v31, 0.0  ;;  %v13186_v63 = vadd.f32 %v24774_v50, %v13115_v41  ;;  %v13113_v52 = vadd.f32 %v12944_v62, %v24643_v20  ;;  %v26776_v41 = vld [vmem:[#allocation109_spill] sm:$0xff] }
 0x81b   : > { %v16613_v12 = vpop.f32.mrf.mxu1 }
 0x81c   : > { %v13305_v57 = vmax.f32 %v13247_v34, %v13249_v18  ;;  %v13184_v5 = vadd.f32 %v24774_v50, %v13113_v52  ;;  %v13118_v28 = vadd.f32 %v16613_v12, %v24647_v23  ;;  %v13250_v19 = vmax.f32 %v13186_v63, 0.0 }
 0x81d   : > { %v12957_v43 = vpop.f32.mrf.mxu1 }
 0x81e   : > { %v13248_v49 = vmax.f32 %v13184_v5, 0.0  ;;  %v13189_v11 = vadd.f32 %v24774_v50, %v13118_v28  ;;  %v13116_v60 = vadd.f32 %v12957_v43, %v24651_v14  ;;  %v13321_v40 = vmax.f32 %v13289_v45, %v13305_v57  ;;  %v26778_v43 = vld [vmem:[#allocation107_spill] sm:$0xff] }
 0x81f   : > { %v16614_v56 = vpop.f32.mrf.mxu1 }
 0x820   : > { %v13306_v7 = vmax.f32 %v13248_v49, %v13250_v19  ;;  %v13187_v47 = vadd.f32 %v24774_v50, %v13116_v60  ;;  %v13119_v20 = vadd.f32 %v16614_v56, %v24655_v46  ;;  %v13253_v44 = vmax.f32 %v13189_v11, 0.0 }
 0x821   : > { %v12960_v17 = vpop.f32.mrf.mxu1  ;;  %v13339_v8 = vmul.f32 %v24798_v39, %v13321_v40 }
 0x822   : > { %v13251_v22 = vmax.f32 %v13187_v47, 0.0  ;;  %v13190_v23 = vadd.f32 %v24774_v50, %v13119_v20  ;;  %v13117_v30 = vadd.f32 %v12960_v17, %v24659_v9  ;;  %v13322_v13 = vmax.f32 %v13290_v53, %v13306_v7  ;;  %v26779_v7 = vld [vmem:[#allocation35_spill] sm:$0xff] }
 0x823   : > { %v16617_v26 = vpop.f32.mrf.mxu1  ;;  %v13368_v14 = vsel %vm13349_vm3, %v13339_v8, 0.0 }
 0x824   : > { %v13291_v32 = vmax.f32 %v13251_v22, %v13253_v44  ;;  %v13188_v59 = vadd.f32 %v24774_v50, %v13117_v30  ;;  %v13122_v29 = vadd.f32 %v16617_v26, %v24663_v38  ;;  %13369 = vadd.xlane.f32.xlu0 %v13368_v14  ;;  %v13340_v0 = vmul.f32 %v24808_v48, %v13322_v13 }
 0x825   : > { %v12973_v46 = vpop.f32.mrf.mxu1  ;;  %v13254_v54 = vmax.f32 %v13190_v23, 0.0  ;;  %v26780_v23 = vld [vmem:[#allocation134_spill] sm:$0xff] }
 0x826   : > { %v13252_v45 = vmax.f32 %v13188_v59, 0.0  ;;  %v13193_v21 = vadd.f32 %v24774_v50, %v13122_v29  ;;  %v13120_v61 = vadd.f32 %v12973_v46, %v24667_v15  ;;  %v13371_v42 = vsel %vm13349_vm3, %v13340_v0, 0.0  ;;  %v26781_v29 = vld [vmem:[#allocation144_spill] sm:$0xff] }
 0x827   : > { %v16618_v9 = vpop.f32.mrf.mxu1  ;;  %13372 = vadd.xlane.f32.xlu1 %v13371_v42 }
 0x828   : > { %v13292_v35 = vmax.f32 %v13252_v45, %v13254_v54  ;;  %v13191_v51 = vadd.f32 %v24774_v50, %v13120_v61  ;;  %v13123_v25 = vadd.f32 %v16618_v9, %v24671_v33  ;;  %v13257_v3 = vmax.f32 %v13193_v21, 0.0  ;;  %v26777_v33 = vld [vmem:[#allocation94_spill] sm:$0xff] }
 0x829   : > { %v12976_v38 = vpop.f32.mrf.mxu1  ;;  %v26782_v61 = vld [vmem:[#allocation26_spill] sm:$0xff] }
 0x82a   : > { %v13255_v1 = vmax.f32 %v13191_v51, 0.0  ;;  %v13194_v24 = vadd.f32 %v24774_v50, %v13123_v25  ;;  %v13121_v10 = vadd.f32 %v12976_v38, %v24675_v2  ;;  %v26783_v38 = vld [vmem:[#allocation123_spill] sm:$0xff] }
 0x82b   : > { %v16621_v53 = vpop.f32.mrf.mxu1 }
 0x82c   : > { %v13307_v31 = vmax.f32 %v13255_v1, %v13257_v3  ;;  %v13192_v15 = vadd.f32 %v24774_v50, %v13121_v10  ;;  %v13126_v62 = vadd.f32 %v16621_v53, %v26776_v41  ;;  %v13258_v18 = vmax.f32 %v13194_v24, 0.0  ;;  %v26784_v53 = vld [vmem:[#allocation82_spill] sm:$0xff] }
 0x82d   : > { %v12989_v34 = vpop.f32.mrf.mxu1 }
 0x82e   : > { %v13256_v63 = vmax.f32 %v13192_v15, 0.0  ;;  %v13197_v52 = vadd.f32 %v24774_v50, %v13126_v62  ;;  %v13124_v12 = vadd.f32 %v12989_v34, %v26777_v33  ;;  %v13323_v57 = vmax.f32 %v13291_v32, %v13307_v31 }
 0x82f   : > { %v16622_v5 = vpop.f32.mrf.mxu1 }
 0x830   : > { %v13308_v28 = vmax.f32 %v13256_v63, %v13258_v18  ;;  %v13195_v19 = vadd.f32 %v24774_v50, %v13124_v12  ;;  %v13127_v2 = vadd.f32 %v16622_v5, %v26778_v43  ;;  %v13261_v49 = vmax.f32 %v13197_v52, 0.0 }
 0x831   : > { %v12992_v11 = vpop.f32.mrf.mxu1  ;;  %v13341_v60 = vmul.f32 %v24798_v39, %v13323_v57  ;;  %v26785_v57 = vld [vmem:[#allocation124_spill] sm:$0xff] }
 0x832   : > { %v13259_v40 = vmax.f32 %v13195_v19, 0.0  ;;  %v13198_v56 = vadd.f32 %v24774_v50, %v13127_v2  ;;  %v13125_v47 = vadd.f32 %v12992_v11, %v26779_v7  ;;  %v13324_v20 = vmax.f32 %v13292_v35, %v13308_v28  ;;  %v26786_v11 = vld [vmem:[#allocation120_spill] sm:$0xff] }
 0x833   : > { %v16625_v44 = vpop.f32.mrf.mxu1  ;;  %v13374_v17 = vsel %vm13349_vm3, %v13341_v60, 0.0 }
 0x834   : > { %v13293_v8 = vmax.f32 %v13259_v40, %v13261_v49  ;;  %v13196_v22 = vadd.f32 %v24774_v50, %v13125_v47  ;;  %v13130_v30 = vadd.f32 %v16625_v44, %v26780_v23  ;;  %13375 = vadd.xlane.f32.xlu0 %v13374_v17  ;;  %v13342_v26 = vmul.f32 %v24808_v48, %v13324_v20 }
 0x835   : > { %v13005_v13 = vpop.f32.mrf.mxu1  ;;  %v13262_v14 = vmax.f32 %v13198_v56, 0.0 }
 0x836   : > { %v13260_v32 = vmax.f32 %v13196_v22, 0.0  ;;  %v13201_v59 = vadd.f32 %v24774_v50, %v13130_v30  ;;  %v13128_v46 = vadd.f32 %v13005_v13, %v26781_v29  ;;  %v13377_v54 = vsel %vm13349_vm3, %v13342_v26, 0.0  ;;  %v26787_v30 = vld [vmem:[#allocation111_spill] sm:$0xff] }
 0x837   : > { %v16626_v0 = vpop.f32.mrf.mxu1  ;;  %13378 = vadd.xlane.f32.xlu1 %v13377_v54 }
 0x838   : > { %v13294_v45 = vmax.f32 %v13260_v32, %v13262_v14  ;;  %v13199_v21 = vadd.f32 %v24774_v50, %v13128_v46  ;;  %v13131_v9 = vadd.f32 %v16626_v0, %v26782_v61  ;;  %v13265_v35 = vmax.f32 %v13201_v59, 0.0 }
 0x839   : > { %v13008_v42 = vpop.f32.mrf.mxu1 }
 0x83a   : > { %v13263_v51 = vmax.f32 %v13199_v21, 0.0  ;;  %v13202_v25 = vadd.f32 %v24774_v50, %v13131_v9  ;;  %v13129_v3 = vadd.f32 %v13008_v42, %v26783_v38 }
 0x83b   : > { %v16629_v1 = vpop.f32.mrf.mxu1 }
 0x83c   : > { %v13309_v24 = vmax.f32 %v13263_v51, %v13265_v35  ;;  %v13200_v10 = vadd.f32 %v24774_v50, %v13129_v3  ;;  %v13134_v31 = vadd.f32 %v16629_v1, %v26784_v53  ;;  %v13266_v15 = vmax.f32 %v13202_v25, 0.0  ;;  %v26789_v35 = vld [vmem:[#allocation98_spill] sm:$0xff] }
 0x83d   : > { %v13021_v41 = vpop.f32.mrf.mxu1 }
 0x83e   : > { %v13264_v62 = vmax.f32 %v13200_v10, 0.0  ;;  %v13205_v18 = vadd.f32 %v24774_v50, %v13134_v31  ;;  %v13132_v34 = vadd.f32 %v13021_v41, %v24715_v55  ;;  %v13325_v63 = vmax.f32 %v13293_v8, %v13309_v24  ;;  %v26791_v41 = vld [vmem:[#allocation52_spill] sm:$0xff] }
 0x83f   : > { %v16630_v52 = vpop.f32.mrf.mxu1 }
 0x840   : > { %v13310_v33 = vmax.f32 %v13264_v62, %v13266_v15  ;;  %v13203_v12 = vadd.f32 %v24774_v50, %v13132_v34  ;;  %v13135_v5 = vadd.f32 %v16630_v52, %v26785_v57  ;;  %v13269_v28 = vmax.f32 %v13205_v18, 0.0 }
 0x841   : > { %v13024_v19 = vpop.f32.mrf.mxu1  ;;  %v13343_v43 = vmul.f32 %v24798_v39, %v13325_v63 }
 0x842   : > { %v13267_v2 = vmax.f32 %v13203_v12, 0.0  ;;  %v13206_v49 = vadd.f32 %v24774_v50, %v13135_v5  ;;  %v13133_v60 = vadd.f32 %v13024_v19, %v26786_v11  ;;  %v13326_v40 = vmax.f32 %v13294_v45, %v13310_v33  ;;  %v26788_v45 = vld [vmem:[#allocation32_spill] sm:$0xff] }
 0x843   : > { %v16633_v56 = vpop.f32.mrf.mxu1  ;;  %v13380_v55 = vsel %vm13349_vm3, %v13343_v43, 0.0 }
 0x844   : > { %v13295_v7 = vmax.f32 %v13267_v2, %v13269_v28  ;;  %v13204_v47 = vadd.f32 %v24774_v50, %v13133_v60  ;;  %v13138_v20 = vadd.f32 %v16633_v56, %v24727_v6  ;;  %13381 = vadd.xlane.f32.xlu0 %v13380_v55  ;;  %v13344_v17 = vmul.f32 %v24808_v48, %v13326_v40 }
 0x845   : > { %v13037_v44 = vpop.f32.mrf.mxu1  ;;  %v13270_v8 = vmax.f32 %v13206_v49, 0.0 }
 0x846   : > { %v13268_v22 = vmax.f32 %v13204_v47, 0.0  ;;  %v13209_v23 = vadd.f32 %v24774_v50, %v13138_v20  ;;  %v13136_v13 = vadd.f32 %v13037_v44, %v26787_v30  ;;  %v13383_v14 = vsel %vm13349_vm3, %v13344_v17, 0.0 }
 0x847   : > { %v16634_v26 = vpop.f32.mrf.mxu1  ;;  %13384 = vadd.xlane.f32.xlu1 %v13383_v14 }
 0x848   : > { %v13296_v32 = vmax.f32 %v13268_v22, %v13270_v8  ;;  %v13207_v59 = vadd.f32 %v24774_v50, %v13136_v13  ;;  %v13139_v29 = vadd.f32 %v16634_v26, %v24735_v4  ;;  %v13273_v46 = vmax.f32 %v13209_v23, 0.0  ;;  %v26790_v4 = vld [vmem:[#allocation55_spill] sm:$0xff] }
 0x849   : > { %v13040_v6 = vpop.f32.mrf.mxu1 }
 0x84a   : > { %v13271_v0 = vmax.f32 %v13207_v59, 0.0  ;;  %v13210_v54 = vadd.f32 %v24774_v50, %v13139_v29  ;;  %v13137_v21 = vadd.f32 %v13040_v6, %v26788_v45 }
 0x84b   : > { %v16637_v61 = vpop.f32.mrf.mxu1 }
 0x84c   : > { %v13311_v9 = vmax.f32 %v13271_v0, %v13273_v46  ;;  %v13208_v42 = vadd.f32 %v24774_v50, %v13137_v21  ;;  %v13142_v51 = vadd.f32 %v16637_v61, %v26789_v35  ;;  %v13274_v25 = vmax.f32 %v13210_v54, 0.0 }
 0x84d   : > { %v13053_v38 = vpop.f32.mrf.mxu1 }
 0x84e   : > { %v13272_v3 = vmax.f32 %v13208_v42, 0.0  ;;  %v13213_v1 = vadd.f32 %v24774_v50, %v13142_v51  ;;  %v13140_v24 = vadd.f32 %v13053_v38, %v26790_v4  ;;  %v13327_v10 = vmax.f32 %v13295_v7, %v13311_v9 }
 0x84f   : > { %v16638_v53 = vpop.f32.mrf.mxu1 }
 0x850   : > { %v13312_v31 = vmax.f32 %v13272_v3, %v13274_v25  ;;  %v13211_v15 = vadd.f32 %v24774_v50, %v13140_v24  ;;  %v13143_v62 = vadd.f32 %v16638_v53, %v26791_v41  ;;  %v13277_v18 = vmax.f32 %v13213_v1, 0.0 }
 0x851   : > { %v13056_v34 = vpop.f32.mrf.mxu1  ;;  %v13345_v63 = vmul.f32 %v24798_v39, %v13327_v10 }
 0x852   : > { %v13275_v52 = vmax.f32 %v13211_v15, 0.0  ;;  %v13214_v33 = vadd.f32 %v24774_v50, %v13143_v62  ;;  %v13141_v12 = vadd.f32 %v13056_v34, %v24755_v58  ;;  %v13328_v57 = vmax.f32 %v13296_v32, %v13312_v31 }
 0x853   : > { %v16641_v5 = vpop.f32.mrf.mxu1  ;;  %v13386_v28 = vsel %vm13349_vm3, %v13345_v63, 0.0 }
 0x854   : > { %v13297_v19 = vmax.f32 %v13275_v52, %v13277_v18  ;;  %v13212_v43 = vadd.f32 %v24774_v50, %v13141_v12  ;;  %v13146_v2 = vadd.f32 %v16641_v5, %v24759_v36  ;;  %13387 = vadd.xlane.f32.xlu0 %v13386_v28  ;;  %v13346_v11 = vmul.f32 %v24808_v48, %v13328_v57 }
 0x855   : > { %v13069_v49 = vpop.f32.mrf.mxu1  ;;  %v13278_v60 = vmax.f32 %v13214_v33, 0.0 }
 0x856   : > { %v13276_v40 = vmax.f32 %v13212_v43, 0.0  ;;  %v13217_v56 = vadd.f32 %v24774_v50, %v13146_v2  ;;  %v13144_v55 = vadd.f32 %v13069_v49, %v24763_v37  ;;  %v13389_v7 = vsel %vm13349_vm3, %v13346_v11, 0.0 }
 0x857   : > { %v16642_v58 = vpop.f32.mrf.mxu1  ;;  %13390 = vadd.xlane.f32.xlu1 %v13389_v7 }
 0x858   : > { %v13298_v47 = vmax.f32 %v13276_v40, %v13278_v60  ;;  %v13215_v20 = vadd.f32 %v24774_v50, %v13144_v55  ;;  %v13147_v44 = vadd.f32 %v16642_v58, %v24767_v16  ;;  %v13281_v17 = vmax.f32 %v13217_v56, 0.0 }
 0x859   : > { %v13072_v36 = vpop.f32.mrf.mxu1 }
 0x85a   : > { %v13279_v8 = vmax.f32 %v13215_v20, 0.0  ;;  %v13218_v22 = vadd.f32 %v24774_v50, %v13147_v44  ;;  %v13145_v23 = vadd.f32 %v13072_v36, %v24769_v27 }
 0x85c   : > { %v13313_v30 = vmax.f32 %v13279_v8, %v13281_v17  ;;  %v13216_v13 = vadd.f32 %v24774_v50, %v13145_v23  ;;  %v13282_v37 = vmax.f32 %v13218_v22, 0.0 }
 0x85e   : > { %v13280_v26 = vmax.f32 %v13216_v13, 0.0  ;;  %v13329_v14 = vmax.f32 %v13297_v19, %v13313_v30 }
 0x860   : > { %v13314_v32 = vmax.f32 %v13280_v26, %v13282_v37  ;;  %v13347_v59 = vmul.f32 %v24798_v39, %v13329_v14 }
 0x862   : > { %v13392_v29 = vsel %vm13349_vm3, %v13347_v59, 0.0  ;;  %v13330_v16 = vmax.f32 %v13298_v47, %v13314_v32 }
 0x863   : > { %13393 = vadd.xlane.f32.xlu0 %v13392_v29 }
 0x864   : > { %v13348_v6 = vmul.f32 %v24808_v48, %v13330_v16 }
 0x866   : > { %v13395_v46 = vsel %vm13349_vm3, %v13348_v6, 0.0 }
 0x867   : > { %13396 = vadd.xlane.f32.xlu1 %v13395_v46 }
 0x87d   : > { %v13352_v0 = vpop.xlane.xlu0 %13351 }
 0x881   : > { %v13355_v54 = vpop.xlane.xlu0 %13354 }
 0x882   : > { %v13398_v3 = vadd.f32 %v13355_v54, %v13352_v0 }
 0x884   : > { %v13399_v41 = vrot.slane %v13398_v3, 4 }
 0x886   : > { %v13400_v12 = vadd.f32 %v13399_v41, %v13398_v3 }
 0x888   : > { %v13401_v49 = vrot.slane %v13400_v12, 2 }
 0x88a   : > { %v13402_v7 = vadd.f32 %v13401_v49, %v13400_v12 }
 0x88c   : > { %v13403_v13 = vrot.slane %v13402_v7, 1 }
 0x88d   : > { %v13358_v27 = vpop.xlane.xlu1 %13357 }
 0x88e   : > { %v13404_v46 = vadd.f32 %v13403_v13, %v13402_v7 }
 0x891   : > { %v13361_v45 = vpop.xlane.xlu1 %13360 }
 0x892   : > { %v13405_v39 = vadd.f32 %v13361_v45, %v13358_v27 }
 0x894   : > { %v13406_v4 = vrot.slane %v13405_v39, 4 }
 0x896   : > { %v13407_v34 = vadd.f32 %v13406_v4, %v13405_v39 }
 0x898   : > { %v13408_v28 = vrot.slane %v13407_v34, 2 }
 0x89a   : > { %v13409_v40 = vadd.f32 %v13408_v28, %v13407_v34 }
 0x89c   : > { %v13410_v17 = vrot.slane %v13409_v40, 1 }
 0x89d   : > { %v13364_v50 = vpop.xlane.xlu0 %13363 }
 0x89e   : > { %v13411_v32 = vadd.f32 %v13410_v17, %v13409_v40 }
 0x8a0   : > { %v13367_v21 = vpop.xlane.xlu1 %13366  ;;  %v13463_v45 = vsel %vm13462_vm4, %v13411_v32, %v13404_v46 }
 0x8a1   : > { %v13412_v38 = vadd.f32 %v13367_v21, %v13364_v50 }
 0x8a3   : > { %v13413_v31 = vrot.slane %v13412_v38, 4 }
 0x8a5   : > { %v13414_v52 = vadd.f32 %v13413_v31, %v13412_v38 }
 0x8a7   : > { %v13415_v43 = vrot.slane %v13414_v52, 2 }
 0x8a9   : > { %v13416_v55 = vadd.f32 %v13415_v43, %v13414_v52 }
 0x8ab   : > { %v13417_v23 = vrot.slane %v13416_v55, 1 }
 0x8ad   : > { %v13370_v61 = vpop.xlane.xlu0 %13369  ;;  %v13418_v16 = vadd.f32 %v13417_v23, %v13416_v55 }
 0x8b0   : > { %v13373_v9 = vpop.xlane.xlu1 %13372 }
 0x8b1   : > { %v13419_v1 = vadd.f32 %v13373_v9, %v13370_v61  ;;  %v13465_v61 = vsel %vm13464_vm5, %v13418_v16, %v13463_v45 }
 0x8b3   : > { %v13420_v62 = vrot.slane %v13419_v1, 4 }
 0x8b5   : > { %v13421_v57 = vadd.f32 %v13420_v62, %v13419_v1 }
 0x8b7   : > { %v13422_v11 = vrot.slane %v13421_v57, 2 }
 0x8b9   : > { %v13423_v47 = vadd.f32 %v13422_v11, %v13421_v57 }
 0x8bb   : > { %v13424_v37 = vrot.slane %v13423_v47, 1 }
 0x8bd   : > { %v13376_v42 = vpop.xlane.xlu0 %13375  ;;  %v13425_v0 = vadd.f32 %v13424_v37, %v13423_v47 }
 0x8c0   : > { %v13379_v35 = vpop.xlane.xlu1 %13378 }
 0x8c1   : > { %v13426_v48 = vadd.f32 %v13379_v35, %v13376_v42  ;;  %v13467_v42 = vsel %vm13466_vm6, %v13425_v0, %v13465_v61 }
 0x8c3   : > { %v13427_v18 = vrot.slane %v13426_v48, 4 }
 0x8c5   : > { %v13428_v5 = vadd.f32 %v13427_v18, %v13426_v48 }
 0x8c7   : > { %v13429_v60 = vrot.slane %v13428_v5, 2 }
 0x8c9   : > { %v13430_v20 = vadd.f32 %v13429_v60, %v13428_v5 }
 0x8cb   : > { %v13431_v14 = vrot.slane %v13430_v20, 1 }
 0x8cd   : > { %v13382_v51 = vpop.xlane.xlu0 %13381  ;;  %v13432_v54 = vadd.f32 %v13431_v14, %v13430_v20 }
 0x8cf   : > { %v13469_v39 = vsel %vm13468_vm7, %v13432_v54, %v13467_v42 }
 0x8d0   : > { %v13385_v25 = vpop.xlane.xlu1 %13384 }
 0x8d1   : > { %v13433_v24 = vadd.f32 %v13385_v25, %v13382_v51 }
 0x8d3   : > { %v13434_v63 = vrot.slane %v13433_v24, 4 }
 0x8d5   : > { %v13435_v19 = vadd.f32 %v13434_v63, %v13433_v24 }
 0x8d7   : > { %v13436_v56 = vrot.slane %v13435_v19, 2 }
 0x8d9   : > { %v13437_v8 = vadd.f32 %v13436_v56, %v13435_v19 }
 0x8db   : > { %v13438_v59 = vrot.slane %v13437_v8, 1 }
 0x8dd   : > { %v13388_v10 = vpop.xlane.xlu0 %13387  ;;  %v13439_v50 = vadd.f32 %v13438_v59, %v13437_v8 }
 0x8df   : > { %v13471_v51 = vsel %vm13470_vm8, %v13439_v50, %v13469_v39 }
 0x8e0   : > { %v13391_v53 = vpop.xlane.xlu1 %13390 }
 0x8e1   : > { %v13440_v15 = vadd.f32 %v13391_v53, %v13388_v10 }
 0x8e3   : > { %v13441_v33 = vrot.slane %v13440_v15, 4 }
 0x8e5   : > { %v13442_v2 = vadd.f32 %v13441_v33, %v13440_v15 }
 0x8e7   : > { %v13443_v58 = vrot.slane %v13442_v2, 2 }
 0x8e9   : > { %v13444_v30 = vadd.f32 %v13443_v58, %v13442_v2 }
 0x8eb   : > { %v13445_v6 = vrot.slane %v13444_v30, 1 }
 0x8ec   : > { %v13394_v44 = vpop.xlane.xlu0 %13393 }
 0x8ed   : > { %v13446_v9 = vadd.f32 %v13445_v6, %v13444_v30 }
 0x8ef   : > { %v13473_v38 = vsel %vm13472_vm9, %v13446_v9, %v13471_v51 }
 0x8f0   : > { %v13397_v36 = vpop.xlane.xlu1 %13396 }
 0x8f1   : > { %v13447_v22 = vadd.f32 %v13397_v36, %v13394_v44 }
 0x8f3   : > { %v13448_v26 = vrot.slane %v13447_v22, 4 }
 0x8f5   : > { %v13449_v29 = vadd.f32 %v13448_v26, %v13447_v22 }
 0x8f7   : > { %v13450_v27 = vrot.slane %v13449_v29, 2 }
 0x8f9   : > { %v13451_v21 = vadd.f32 %v13450_v27, %v13449_v29 }
 0x8fb   : > { %v13452_v35 = vrot.slane %v13451_v21, 1 }
 0x8fd   : > { %v13453_v25 = vadd.f32 %v13452_v35, %v13451_v21 }
 0x8ff   : > { %v13475_v3 = vsel %vm13474_vm10, %v13453_v25, %v13473_v38 }
 0x900   : > { %13477 = vst [vmem:[%s254_s25] sm:$0xff] %v13475_v3 }
 0x901 PF: > { %s16_s21 = sadd.s32 1, %s17188_s21  }
 0x902   : > { %p13_p5 = scmp.ge.s32.totalorder %s16_s21, 4  }
 0x904   :  { %15 = sbr.rel (!%p13_p5) target bundleno = 1 (0x1), region = 77 }

</bundles_post_ra>
